<compile_context>
chip_gen: v7x
topology: tpu7x:2x2x1
jax: 0.10.0
libtpu: 0.0.40
codegen_flags: <defaults>
</compile_context>

<pallas_src>
import jax
import jax.numpy as jnp
from jax.experimental import pallas as pl
from jax.experimental.pallas import tpu as pltpu

INV_SQRT2 = 0.7071067811865476
COUT_PAD = 128          # lane-dense output-channel padding (multiple of 128)
MAX_BATCH_BLOCK = 8     # samples per grid step; keeps several parallel blocks at large N


# ----------------------------- conv block kernel -----------------------------
def _conv_block_kernel(patch_ref, w_ref, b_ref, o_ref):
    # patch_ref: (NB, pk*pk, HWp_pad, K*K*Cin)
    # w_ref:     (K*K*Cin, COUT_PAD)   zero-padded columns beyond Cout
    # b_ref:     (1, COUT_PAD)         zero-padded beyond Cout
    # o_ref:     (NB, HWp_pad, COUT_PAD)
    nb, pk2, hwp, kkc = patch_ref.shape
    cpad = w_ref.shape[1]

    # One MXU matmul over all samples / pool offsets / spatial positions.
    p = patch_ref[...].reshape(nb * pk2 * hwp, kkc)
    acc = jnp.dot(p, w_ref[...], preferred_element_type=jnp.float32)
    acc = acc + b_ref[...]                                   # bias broadcast, once
    # exact GELU: 0.5 * x * (1 + erf(x / sqrt(2))), applied once
    acc = 0.5 * acc * (1.0 + jax.lax.erf(acc * INV_SQRT2))

    # MaxPool over the pool-offset axis (static unroll of VPU maximums).
    acc = acc.reshape(nb, pk2, hwp, cpad)
    pooled = acc[:, 0]
    for j in range(1, pk2):
        pooled = jnp.maximum(pooled, acc[:, j])

    # TODO(synk): nn.Dropout is identity here (eval mode); training-mode RNG dropout not implemented.
    o_ref[...] = pooled


def conv_block_pallas(patches, w2d_pad, bias_pad, nb):
    n, pk2, hwp, kkc = patches.shape
    cpad = w2d_pad.shape[1]
    assert n % nb == 0
    return pl.pallas_call(
        _conv_block_kernel,
        out_shape=jax.ShapeDtypeStruct((n, hwp, cpad), jnp.float32),
        grid_spec=pltpu.PrefetchScalarGridSpec(
            num_scalar_prefetch=0,
            grid=(n // nb,),
            in_specs=[
                pl.BlockSpec((nb, pk2, hwp, kkc), lambda i: (i, 0, 0, 0)),
                pl.BlockSpec((kkc, cpad), lambda i: (0, 0)),
                pl.BlockSpec((1, cpad), lambda i: (0, 0)),
            ],
            out_specs=pl.BlockSpec((nb, hwp, cpad), lambda i: (i, 0, 0)),
        ),
        compiler_params=pltpu.CompilerParams(dimension_semantics=("parallel",)),
    )(patches, w2d_pad, bias_pad)


# --------------------------------- JAX glue ----------------------------------
def extract_pool_patches(x, k, pk):
    """x: (N, H, W, C) -> patches (N, pk*pk, HWp_pad, K*K*C), plus (Hp, Wp, HWp_pad)."""
    n, h, w, c = x.shape
    ho, wo = h - k + 1, w - k + 1
    hp, wp = ho // pk, wo // pk
    cols = []
    for dy in range(k):
        for dx in range(k):
            cols.append(x[:, dy:dy + ho, dx:dx + wo, :])
    patches = jnp.concatenate(cols, axis=-1)                  # (N, Ho, Wo, K*K*C), idx = (dy*K+dx)*C + ci
    patches = patches[:, :hp * pk, :wp * pk, :]               # floor-mode MaxPool crop
    patches = patches.reshape(n, hp, pk, wp, pk, k * k * c)
    patches = patches.transpose(0, 2, 4, 1, 3, 5)             # (N, pk, pk, Hp, Wp, KKC)
    patches = patches.reshape(n, pk * pk, hp * wp, k * k * c)
    hw = hp * wp
    hw_pad = ((hw + 7) // 8) * 8                              # sublane-align the spatial axis
    if hw_pad != hw:
        patches = jnp.pad(patches, ((0, 0), (0, 0), (0, hw_pad - hw), (0, 0)))
    return patches, hp, wp, hw_pad


def init_params(key, num_blocks=3, conv_kernels=(3, 3, 3), pool_kernels=(3, 2, 2),
                input_channels=1):
    # CNNFeatures channel schedule: Conv2d(in->16), Conv2d(16->32), Conv2d(32->64), ...
    channels = []
    cin = input_channels
    for i in range(num_blocks):
        cout = 16 if i == 0 else 2 ** (4 + i)
        channels.append((cin, cout))
        cin = cout
    blocks = []
    for i, (cin, cout) in enumerate(channels):
        key, k1, k2 = jax.random.split(key, 3)
        k = conv_kernels[i]
        bound = 1.0 / float(cin * k * k) ** 0.5
        w = jax.random.uniform(k1, (k, k, cin, cout), jnp.float32, -bound, bound)
        b = jax.random.uniform(k2, (1, cout), jnp.float32, -bound, bound)
        w2d = w.reshape(k * k * cin, cout)                    # row order (dy, dx, ci) matches patch order
        w2d_pad = jnp.pad(w2d, ((0, 0), (0, COUT_PAD - cout)))   # lane-dense weights, zero columns
        b_pad = jnp.pad(b, ((0, 0), (0, COUT_PAD - cout)))       # zero bias in padded lanes => GELU(0)=0
        blocks.append((w2d_pad, b_pad, k, pool_kernels[i], cout))
    return {"blocks": blocks}


def cnn_features_forward(params, x_nchw):
    """x_nchw: (N, C, H, W) float32 (PyTorch NCHW). Returns (N, features) == torch .flatten(1)."""
    x = jnp.transpose(x_nchw, (0, 2, 3, 1)).astype(jnp.float32)   # -> NHWC
    n0 = x.shape[0]
    nb = min(n0, MAX_BATCH_BLOCK)
    n_pad = ((n0 + nb - 1) // nb) * nb
    if n_pad != n0:
        x = jnp.pad(x, ((0, n_pad - n0), (0, 0), (0, 0), (0, 0)))
    for (w2d_pad, b_pad, k, pk, cout) in params["blocks"]:
        patches, hp, wp, hw_pad = extract_pool_patches(x, k, pk)
        out = conv_block_pallas(patches, w2d_pad, b_pad, nb)      # (n_pad, hw_pad, 128)
        x = out[:, :hp * wp, :cout].reshape(n_pad, hp, wp, cout)  # drop padded rows / channels
    # torch .flatten(1) operates on NCHW: transpose back so channel is major.
    feats = jnp.transpose(x, (0, 3, 1, 2)).reshape(n_pad, -1)
    return feats[:n0]


if __name__ == "__main__":
    key = jax.random.PRNGKey(0)
    kp, kx = jax.random.split(key)

    # CNNFeatures(3, [0.1, 0.1, 0.1], conv_kernels=[3, 3, 3], pool_kernels=[3, 2, 2])
    params = init_params(kp, num_blocks=3, conv_kernels=(3, 3, 3),
                         pool_kernels=(3, 2, 2), input_channels=1)

    # inp 38x38: 38 -conv3-> 36 -pool3-> 12 -conv3-> 10 -pool2-> 5 -conv3-> 3 -pool2-> 1
    # => features = 64 * 1 * 1 = 64
    x = jax.random.normal(kx, (2, 1, 38, 38), jnp.float32)        # NCHW, batch=2

    feats = cnn_features_forward(params, x)
    jax.block_until_ready(feats)
    assert feats.shape == (2, 64)
    assert feats.dtype == jnp.float32
    print("KERNEL_OK")
</pallas_src>

<mosaic_0001>
module attributes {stable_mosaic.version = 11 : i64} {
  func.func @_conv_block_kernel(%arg0: i32, %arg1: memref<2x9x144x9xf32, #tpu.memory_space<vmem>>, %arg2: memref<9x128xf32, #tpu.memory_space<vmem>>, %arg3: memref<1x128xf32, #tpu.memory_space<vmem>>, %arg4: memref<2x144x128xf32, #tpu.memory_space<vmem>>) attributes {dimension_semantics = [#tpu.dimension_semantics<parallel>], iteration_bounds = array<i64: 1>, scalar_prefetch = 0 : i64, scratch_operands = 0 : i64, tpu.core_type = #tpu.core_type<tc>, window_params = [{transform_indices = @transform_0, window_bounds = array<i64: 2, 9, 144, 9>}, {pipeline_mode = #tpu.pipeline_mode<synchronous>, transform_indices = @transform_1, window_bounds = array<i64: 9, 128>}, {pipeline_mode = #tpu.pipeline_mode<synchronous>, transform_indices = @transform_2, window_bounds = array<i64: 1, 128>}, {transform_indices = @transform_3, window_bounds = array<i64: 2, 144, 128>}]} {
    %c0 = arith.constant 0 : index
    %c0_0 = arith.constant 0 : index
    %c0_1 = arith.constant 0 : index
    %c0_2 = arith.constant 0 : index
    %0 = vector.load %arg1[%c0, %c0_0, %c0_1, %c0_2] : memref<2x9x144x9xf32, #tpu.memory_space<vmem>>, vector<2x9x144x9xf32>
    %1 = vector.shape_cast %0 : vector<2x9x144x9xf32> to vector<2592x9xf32>
    %c0_3 = arith.constant 0 : index
    %c0_4 = arith.constant 0 : index
    %2 = vector.load %arg2[%c0_3, %c0_4] : memref<9x128xf32, #tpu.memory_space<vmem>>, vector<9x128xf32>
    %cst = arith.constant dense<0.000000e+00> : vector<2592x128xf32>
    %3 = tpu.matmul %1, %2, %cst {dimension_numbers = #tpu.dot_dimension_numbers<[1], [0], [0], [1], [0, 0, 1, 1], [], []>} : vector<2592x9xf32>, vector<9x128xf32>, vector<2592x128xf32> -> vector<2592x128xf32>
    %c0_5 = arith.constant 0 : index
    %c0_6 = arith.constant 0 : index
    %4 = vector.load %arg3[%c0_5, %c0_6] : memref<1x128xf32, #tpu.memory_space<vmem>>, vector<1x128xf32>
    %5 = vector.broadcast %4 : vector<1x128xf32> to vector<2592x128xf32>
    %6 = arith.addf %3, %5 : vector<2592x128xf32>
    %cst_7 = arith.constant 5.000000e-01 : f32
    %7 = vector.broadcast %cst_7 : f32 to vector<2592x128xf32>
    %8 = arith.mulf %7, %6 : vector<2592x128xf32>
    %cst_8 = arith.constant 0.707106769 : f32
    %9 = vector.broadcast %cst_8 : f32 to vector<2592x128xf32>
    %10 = arith.mulf %6, %9 : vector<2592x128xf32>
    %11 = math.erf %10 : vector<2592x128xf32>
    %cst_9 = arith.constant 1.000000e+00 : f32
    %12 = vector.broadcast %cst_9 : f32 to vector<2592x128xf32>
    %13 = arith.addf %12, %11 : vector<2592x128xf32>
    %14 = arith.mulf %8, %13 : vector<2592x128xf32>
    %15 = vector.shape_cast %14 : vector<2592x128xf32> to vector<2x9x144x128xf32>
    %16 = vector.extract_strided_slice %15 {offsets = [0, 0, 0, 0], sizes = [2, 1, 144, 128], strides = [1, 1, 1, 1]} : vector<2x9x144x128xf32> to vector<2x1x144x128xf32>
    %17 = vector.shape_cast %16 : vector<2x1x144x128xf32> to vector<2x144x128xf32>
    %18 = vector.extract_strided_slice %15 {offsets = [0, 1, 0, 0], sizes = [2, 1, 144, 128], strides = [1, 1, 1, 1]} : vector<2x9x144x128xf32> to vector<2x1x144x128xf32>
    %19 = vector.shape_cast %18 : vector<2x1x144x128xf32> to vector<2x144x128xf32>
    %20 = arith.maximumf %17, %19 : vector<2x144x128xf32>
    %21 = vector.extract_strided_slice %15 {offsets = [0, 2, 0, 0], sizes = [2, 1, 144, 128], strides = [1, 1, 1, 1]} : vector<2x9x144x128xf32> to vector<2x1x144x128xf32>
    %22 = vector.shape_cast %21 : vector<2x1x144x128xf32> to vector<2x144x128xf32>
    %23 = arith.maximumf %20, %22 : vector<2x144x128xf32>
    %24 = vector.extract_strided_slice %15 {offsets = [0, 3, 0, 0], sizes = [2, 1, 144, 128], strides = [1, 1, 1, 1]} : vector<2x9x144x128xf32> to vector<2x1x144x128xf32>
    %25 = vector.shape_cast %24 : vector<2x1x144x128xf32> to vector<2x144x128xf32>
    %26 = arith.maximumf %23, %25 : vector<2x144x128xf32>
    %27 = vector.extract_strided_slice %15 {offsets = [0, 4, 0, 0], sizes = [2, 1, 144, 128], strides = [1, 1, 1, 1]} : vector<2x9x144x128xf32> to vector<2x1x144x128xf32>
    %28 = vector.shape_cast %27 : vector<2x1x144x128xf32> to vector<2x144x128xf32>
    %29 = arith.maximumf %26, %28 : vector<2x144x128xf32>
    %30 = vector.extract_strided_slice %15 {offsets = [0, 5, 0, 0], sizes = [2, 1, 144, 128], strides = [1, 1, 1, 1]} : vector<2x9x144x128xf32> to vector<2x1x144x128xf32>
    %31 = vector.shape_cast %30 : vector<2x1x144x128xf32> to vector<2x144x128xf32>
    %32 = arith.maximumf %29, %31 : vector<2x144x128xf32>
    %33 = vector.extract_strided_slice %15 {offsets = [0, 6, 0, 0], sizes = [2, 1, 144, 128], strides = [1, 1, 1, 1]} : vector<2x9x144x128xf32> to vector<2x1x144x128xf32>
    %34 = vector.shape_cast %33 : vector<2x1x144x128xf32> to vector<2x144x128xf32>
    %35 = arith.maximumf %32, %34 : vector<2x144x128xf32>
    %36 = vector.extract_strided_slice %15 {offsets = [0, 7, 0, 0], sizes = [2, 1, 144, 128], strides = [1, 1, 1, 1]} : vector<2x9x144x128xf32> to vector<2x1x144x128xf32>
    %37 = vector.shape_cast %36 : vector<2x1x144x128xf32> to vector<2x144x128xf32>
    %38 = arith.maximumf %35, %37 : vector<2x144x128xf32>
    %39 = vector.extract_strided_slice %15 {offsets = [0, 8, 0, 0], sizes = [2, 1, 144, 128], strides = [1, 1, 1, 1]} : vector<2x9x144x128xf32> to vector<2x1x144x128xf32>
    %40 = vector.shape_cast %39 : vector<2x1x144x128xf32> to vector<2x144x128xf32>
    %41 = arith.maximumf %38, %40 : vector<2x144x128xf32>
    %c0_10 = arith.constant 0 : index
    %c0_11 = arith.constant 0 : index
    %c0_12 = arith.constant 0 : index
    %42 = vector.load %arg4[%c0_10, %c0_11, %c0_12] : memref<2x144x128xf32, #tpu.memory_space<vmem>>, vector<2x144x128xf32>
    tpu.vector_store %arg4[%c0_10, %c0_11, %c0_12], %41 {strides = array<i32>} : memref<2x144x128xf32, #tpu.memory_space<vmem>>, vector<2x144x128xf32>,
    return
  }
  func.func @transform_0(%arg0: i32) -> (i32, i32, i32, i32) {
    %c0_i32 = arith.constant 0 : i32
    %c0_i32_0 = arith.constant 0 : i32
    %c0_i32_1 = arith.constant 0 : i32
    %c0_i32_2 = arith.constant 0 : i32
    return %arg0, %c0_i32, %c0_i32_0, %c0_i32_1 : i32, i32, i32, i32
  }
  func.func @transform_1(%arg0: i32) -> (i32, i32) {
    %c0_i32 = arith.constant 0 : i32
    %c0_i32_0 = arith.constant 0 : i32
    %c0_i32_1 = arith.constant 0 : i32
    return %c0_i32, %c0_i32_0 : i32, i32
  }
  func.func @transform_2(%arg0: i32) -> (i32, i32) {
    %c0_i32 = arith.constant 0 : i32
    %c0_i32_0 = arith.constant 0 : i32
    %c0_i32_1 = arith.constant 0 : i32
    return %c0_i32, %c0_i32_0 : i32, i32
  }
  func.func @transform_3(%arg0: i32) -> (i32, i32, i32) {
    %c0_i32 = arith.constant 0 : i32
    %c0_i32_0 = arith.constant 0 : i32
    %c0_i32_1 = arith.constant 0 : i32
    return %arg0, %c0_i32, %c0_i32_0 : i32, i32, i32
  }
}

</mosaic_0001>

<bundles_post_ra>
// kernel: tpu_custom_call.1
= control target key start
LH: loop header
LB: loop body
LE: loop exit
PB: predicated region body
PF: predicated region fallthrough
CT: control target
= control target key end

     0   :  { %vm1321_vm0 = vcmask 1040384   ;;  %vm6801_vm1 = vmmov 1   ;;  %vm348_vm3 = vcmask 72704   ;;  %s11665_s0 = inlined_call_operand.vmem [shape: f32[2,9,144,9], index: 0, kind: input, shape index: {}]   ;;  %s11666_s1 = inlined_call_operand.vmem [shape: f32[9,128], index: 1, kind: input, shape index: {}]   ;;  %s11667_s2 = inlined_call_operand.vmem [shape: f32[1,128], index: 2, kind: input, shape index: {}]   ;;  %s11668_s3 = inlined_call_operand.hbm [shape: f32[2,144,128], index: 3, kind: output, shape index: {}]  }
   0x1   :  { %v339_v0 = vld [vmem:[%s11666_s1] sm:$0xff]  ;;  %v340_v1 = vld [vmem:[%s11666_s1 + $0x8] sm:$0x1]  ;;  %vm6113_vm2 = vmpackc.low %vm1321_vm0, %vm6801_vm1 }
   0x2   :  { %v15_v2 = vld [vmem:[%s11665_s0] sm:$0xff]  ;;  %v6112_v3 = vpack.c.bf16 %v340_v1, %v339_v0  ;;  %v177_v4 = vld [vmem:[%s11665_s0 + $0x510] sm:$0xff]  ;;  %v16_v5 = vld [vmem:[%s11665_s0 + $0x8] sm:$0xff] }
   0x3   :  { %5626 = vmatprep.mubr.msk.f32.mxu0 %vm348_vm3, %v15_v2  ;;  %5869 = vmatprep.mubr.msk.f32.mxu1 %vm348_vm3, %v177_v4  ;;  %v178_v6 = vld [vmem:[%s11665_s0 + $0x518] sm:$0xff]  ;;  %v17_v7 = vld [vmem:[%s11665_s0 + $0x10] sm:$0xff]  ;;  %v179_v8 = vld [vmem:[%s11665_s0 + $0x520] sm:$0xff] }
   0x4   :  { %6114 = vmatprep.subr.msk.bf16.mxu0 %vm6113_vm2, %v6112_v3  ;;  %6118 = vmatprep.subr.msk.bf16.mxu1 %vm6113_vm2, %v6112_v3  ;;  %v18_v9 = vld [vmem:[%s11665_s0 + $0x18] sm:$0xff]  ;;  %v180_v10 = vld [vmem:[%s11665_s0 + $0x528] sm:$0xff]  ;;  %v19_v11 = vld [vmem:[%s11665_s0 + $0x20] sm:$0xff] }
   0x5   :  { %6117 = vmatpush3.bf16.msk.msra.mxu0 %vm6113_vm2, %v6112_v3  ;;  %6119 = vmatpush3.bf16.msk.msra.mxu1 %vm6113_vm2, %v6112_v3  ;;  %v181_v12 = vld [vmem:[%s11665_s0 + $0x530] sm:$0xff]  ;;  %v20_v13 = vld [vmem:[%s11665_s0 + $0x28] sm:$0xff]  ;;  %v182_v14 = vld [vmem:[%s11665_s0 + $0x538] sm:$0xff] }
   0x6   :  { %v21_v15 = vld [vmem:[%s11665_s0 + $0x30] sm:$0xff]  ;;  %v183_v16 = vld [vmem:[%s11665_s0 + $0x540] sm:$0xff]  ;;  %v22_v17 = vld [vmem:[%s11665_s0 + $0x38] sm:$0xff] }
   0x7   :  { %v184_v18 = vld [vmem:[%s11665_s0 + $0x548] sm:$0xff]  ;;  %v23_v19 = vld [vmem:[%s11665_s0 + $0x40] sm:$0xff]  ;;  %v185_v20 = vld [vmem:[%s11665_s0 + $0x550] sm:$0xff] }
   0x8   :  { %5627 = vmatmul.mubr.msk.f32.vlgmr.msra.gmra.mrb[0].mxu0 %vm348_vm3, %v16_v5  ;;  %5870 = vmatmul.mubr.msk.f32.vlgmr.msra.gmra.mrb[0].mxu1 %vm348_vm3, %v178_v6  ;;  %v24_v21 = vld [vmem:[%s11665_s0 + $0x48] sm:$0xff]  ;;  %v186_v22 = vld [vmem:[%s11665_s0 + $0x558] sm:$0xff]  ;;  %v25_v23 = vld [vmem:[%s11665_s0 + $0x50] sm:$0xff] }
   0x9   :  { %5629 = vmatprep.mubr.msk.f32.mxu0 %vm348_vm3, %v17_v7  ;;  %5872 = vmatprep.mubr.msk.f32.mxu1 %vm348_vm3, %v179_v8  ;;  %v187_v24 = vld [vmem:[%s11665_s0 + $0x560] sm:$0xff]  ;;  %v26_v25 = vld [vmem:[%s11665_s0 + $0x58] sm:$0xff]  ;;  %v188_v26 = vld [vmem:[%s11665_s0 + $0x568] sm:$0xff] }
   0xa   :  { %v27_v27 = vld [vmem:[%s11665_s0 + $0x60] sm:$0xff]  ;;  %v189_v28 = vld [vmem:[%s11665_s0 + $0x570] sm:$0xff]  ;;  %v28_v29 = vld [vmem:[%s11665_s0 + $0x68] sm:$0xff] }
   0xb   :  { %v190_v30 = vld [vmem:[%s11665_s0 + $0x578] sm:$0xff]  ;;  %v29_v31 = vld [vmem:[%s11665_s0 + $0x70] sm:$0xff]  ;;  %v191_v32 = vld [vmem:[%s11665_s0 + $0x580] sm:$0xff] }
   0xc   :  { %5630 = vmatmul.mubr.msk.f32.gmra.mrb[2].mxu0 %vm348_vm3, %v18_v9  ;;  %5873 = vmatmul.mubr.msk.f32.gmra.mrb[2].mxu1 %vm348_vm3, %v180_v10  ;;  %v30_v33 = vld [vmem:[%s11665_s0 + $0x78] sm:$0xff]  ;;  %v192_v34 = vld [vmem:[%s11665_s0 + $0x588] sm:$0xff]  ;;  %v31_v35 = vld [vmem:[%s11665_s0 + $0x80] sm:$0xff] }
   0xd   :  { %5632 = vmatprep.mubr.msk.f32.mxu0 %vm348_vm3, %v19_v11  ;;  %5875 = vmatprep.mubr.msk.f32.mxu1 %vm348_vm3, %v181_v12  ;;  %v193_v36 = vld [vmem:[%s11665_s0 + $0x590] sm:$0xff]  ;;  %v32_v37 = vld [vmem:[%s11665_s0 + $0x88] sm:$0xff]  ;;  %v194_v38 = vld [vmem:[%s11665_s0 + $0x598] sm:$0xff] }
   0xe   :  { %v33_v39 = vld [vmem:[%s11665_s0 + $0x90] sm:$0xff]  ;;  %v195_v40 = vld [vmem:[%s11665_s0 + $0x5a0] sm:$0xff]  ;;  %v34_v41 = vld [vmem:[%s11665_s0 + $0x98] sm:$0xff] }
   0xf   :  { %v196_v42 = vld [vmem:[%s11665_s0 + $0x5a8] sm:$0xff]  ;;  %v35_v43 = vld [vmem:[%s11665_s0 + $0xa0] sm:$0xff]  ;;  %v197_v44 = vld [vmem:[%s11665_s0 + $0x5b0] sm:$0xff] }
  0x10   :  { %5633 = vmatmul.mubr.msk.f32.gmra.mrb[4].mxu0 %vm348_vm3, %v20_v13  ;;  %5876 = vmatmul.mubr.msk.f32.gmra.mrb[4].mxu1 %vm348_vm3, %v182_v14  ;;  %v36_v45 = vld [vmem:[%s11665_s0 + $0xa8] sm:$0xff]  ;;  %v198_v46 = vld [vmem:[%s11665_s0 + $0x5b8] sm:$0xff]  ;;  %v37_v47 = vld [vmem:[%s11665_s0 + $0xb0] sm:$0xff] }
  0x11   :  { %5635 = vmatprep.mubr.msk.f32.mxu0 %vm348_vm3, %v21_v15  ;;  %5878 = vmatprep.mubr.msk.f32.mxu1 %vm348_vm3, %v183_v16  ;;  %v199_v48 = vld [vmem:[%s11665_s0 + $0x5c0] sm:$0xff]  ;;  %v38_v49 = vld [vmem:[%s11665_s0 + $0xb8] sm:$0xff]  ;;  %v200_v50 = vld [vmem:[%s11665_s0 + $0x5c8] sm:$0xff] }
  0x12   :  { %v39_v51 = vld [vmem:[%s11665_s0 + $0xc0] sm:$0xff]  ;;  %v201_v52 = vld [vmem:[%s11665_s0 + $0x5d0] sm:$0xff]  ;;  %v40_v53 = vld [vmem:[%s11665_s0 + $0xc8] sm:$0xff] }
  0x13   :  { %v202_v54 = vld [vmem:[%s11665_s0 + $0x5d8] sm:$0xff]  ;;  %v41_v55 = vld [vmem:[%s11665_s0 + $0xd0] sm:$0xff]  ;;  %v203_v56 = vld [vmem:[%s11665_s0 + $0x5e0] sm:$0xff] }
  0x14   :  { %5636 = vmatmul.mubr.msk.f32.gmra.mrb[6].mxu0 %vm348_vm3, %v22_v17  ;;  %5879 = vmatmul.mubr.msk.f32.gmra.mrb[6].mxu1 %vm348_vm3, %v184_v18  ;;  %v42_v57 = vld [vmem:[%s11665_s0 + $0xd8] sm:$0xff]  ;;  %v204_v58 = vld [vmem:[%s11665_s0 + $0x5e8] sm:$0xff]  ;;  %v43_v59 = vld [vmem:[%s11665_s0 + $0xe0] sm:$0xff] }
  0x15   :  { %5638 = vmatprep.mubr.msk.f32.mxu0 %vm348_vm3, %v23_v19  ;;  %5881 = vmatprep.mubr.msk.f32.mxu1 %vm348_vm3, %v185_v20  ;;  %v205_v60 = vld [vmem:[%s11665_s0 + $0x5f0] sm:$0xff]  ;;  %v44_v61 = vld [vmem:[%s11665_s0 + $0xe8] sm:$0xff]  ;;  %v206_v62 = vld [vmem:[%s11665_s0 + $0x5f8] sm:$0xff] }
  0x16   :  { %v45_v63 = vld [vmem:[%s11665_s0 + $0xf0] sm:$0xff]  ;;  %v207_v0 = vld [vmem:[%s11665_s0 + $0x600] sm:$0xff]  ;;  %v46_v1 = vld [vmem:[%s11665_s0 + $0xf8] sm:$0xff] }
  0x17   :  { %v208_v2 = vld [vmem:[%s11665_s0 + $0x608] sm:$0xff] }
  0x18   :  { %5639 = vmatmul.mubr.msk.f32.gmra.mrb[8].mxu0 %vm348_vm3, %v24_v21  ;;  %5882 = vmatmul.mubr.msk.f32.gmra.mrb[8].mxu1 %vm348_vm3, %v186_v22 }
  0x19   :  { %5641 = vmatprep.mubr.msk.f32.mxu0 %vm348_vm3, %v25_v23  ;;  %5884 = vmatprep.mubr.msk.f32.mxu1 %vm348_vm3, %v187_v24 }
  0x1c   :  { %5642 = vmatmul.mubr.msk.f32.gmra.mrb[10].mxu0 %vm348_vm3, %v26_v25  ;;  %5885 = vmatmul.mubr.msk.f32.gmra.mrb[10].mxu1 %vm348_vm3, %v188_v26 }
  0x1d   :  { %5644 = vmatprep.mubr.msk.f32.mxu0 %vm348_vm3, %v27_v27  ;;  %5887 = vmatprep.mubr.msk.f32.mxu1 %vm348_vm3, %v189_v28 }
  0x20   :  { %5645 = vmatmul.mubr.msk.f32.gmra.mrb[12].mxu0 %vm348_vm3, %v28_v29  ;;  %5888 = vmatmul.mubr.msk.f32.gmra.mrb[12].mxu1 %vm348_vm3, %v190_v30 }
  0x21   :  { %5647 = vmatprep.mubr.msk.f32.mxu0 %vm348_vm3, %v29_v31  ;;  %5890 = vmatprep.mubr.msk.f32.mxu1 %vm348_vm3, %v191_v32 }
  0x24   :  { %5648 = vmatmul.mubr.msk.f32.gmra.mrb[14].mxu0 %vm348_vm3, %v30_v33  ;;  %5891 = vmatmul.mubr.msk.f32.gmra.mrb[14].mxu1 %vm348_vm3, %v192_v34 }
  0x25   :  { %5650 = vmatprep.mubr.msk.f32.mxu0 %vm348_vm3, %v31_v35  ;;  %5893 = vmatprep.mubr.msk.f32.mxu1 %vm348_vm3, %v193_v36 }
  0x28   :  { %5651 = vmatmul.mubr.msk.f32.gmra.mrb[16].mxu0 %vm348_vm3, %v32_v37  ;;  %5894 = vmatmul.mubr.msk.f32.gmra.mrb[16].mxu1 %vm348_vm3, %v194_v38 }
  0x29   :  { %5653 = vmatprep.mubr.msk.f32.mxu0 %vm348_vm3, %v33_v39  ;;  %5896 = vmatprep.mubr.msk.f32.mxu1 %vm348_vm3, %v195_v40 }
  0x2c   :  { %5654 = vmatmul.mubr.msk.f32.gmra.mrb[18].mxu0 %vm348_vm3, %v34_v41  ;;  %5897 = vmatmul.mubr.msk.f32.gmra.mrb[18].mxu1 %vm348_vm3, %v196_v42 }
  0x2d   :  { %5656 = vmatprep.mubr.msk.f32.mxu0 %vm348_vm3, %v35_v43  ;;  %5899 = vmatprep.mubr.msk.f32.mxu1 %vm348_vm3, %v197_v44 }
  0x30   :  { %5657 = vmatmul.mubr.msk.f32.gmra.mrb[20].mxu0 %vm348_vm3, %v36_v45  ;;  %5900 = vmatmul.mubr.msk.f32.gmra.mrb[20].mxu1 %vm348_vm3, %v198_v46 }
  0x31   :  { %5659 = vmatprep.mubr.msk.f32.mxu0 %vm348_vm3, %v37_v47  ;;  %5902 = vmatprep.mubr.msk.f32.mxu1 %vm348_vm3, %v199_v48 }
  0x34   :  { %5660 = vmatmul.mubr.msk.f32.gmra.mrb[22].mxu0 %vm348_vm3, %v38_v49  ;;  %5903 = vmatmul.mubr.msk.f32.gmra.mrb[22].mxu1 %vm348_vm3, %v200_v50 }
  0x35   :  { %5662 = vmatprep.mubr.msk.f32.mxu0 %vm348_vm3, %v39_v51  ;;  %5905 = vmatprep.mubr.msk.f32.mxu1 %vm348_vm3, %v201_v52 }
  0x38   :  { %5663 = vmatmul.mubr.msk.f32.gmra.mrb[24].mxu0 %vm348_vm3, %v40_v53  ;;  %5906 = vmatmul.mubr.msk.f32.gmra.mrb[24].mxu1 %vm348_vm3, %v202_v54 }
  0x39   :  { %5665 = vmatprep.mubr.msk.f32.mxu0 %vm348_vm3, %v41_v55  ;;  %5908 = vmatprep.mubr.msk.f32.mxu1 %vm348_vm3, %v203_v56 }
  0x3c   :  { %5666 = vmatmul.mubr.msk.f32.gmra.mrb[26].mxu0 %vm348_vm3, %v42_v57  ;;  %5909 = vmatmul.mubr.msk.f32.gmra.mrb[26].mxu1 %vm348_vm3, %v204_v58 }
  0x3d   :  { %5668 = vmatprep.mubr.msk.f32.mxu0 %vm348_vm3, %v43_v59  ;;  %5911 = vmatprep.mubr.msk.f32.mxu1 %vm348_vm3, %v205_v60 }
  0x40   :  { %5669 = vmatmul.mubr.msk.f32.gmra.mrb[28].mxu0 %vm348_vm3, %v44_v61  ;;  %5912 = vmatmul.mubr.msk.f32.gmra.mrb[28].mxu1 %vm348_vm3, %v206_v62 }
  0x41   :  { %5671 = vmatprep.mubr.msk.f32.mxu0 %vm348_vm3, %v45_v63  ;;  %5914 = vmatprep.mubr.msk.f32.mxu1 %vm348_vm3, %v207_v0 }
  0x42   :  { %8 = vsyncpa [#allocation3], 0  ;;  %v47_v3 = vld [vmem:[%s11665_s0 + $0x100] sm:$0xff]  ;;  %v209_v4 = vld [vmem:[%s11665_s0 + $0x610] sm:$0xff] }
  0x43   :  { %v48_v5 = vld [vmem:[%s11665_s0 + $0x108] sm:$0xff]  ;;  %v210_v6 = vld [vmem:[%s11665_s0 + $0x618] sm:$0xff]  ;;  %v49_v7 = vld [vmem:[%s11665_s0 + $0x110] sm:$0xff] }
  0x44   :  { %5672 = vmatmul.mubr.msk.f32.gmra.mrb[30].mxu0 %vm348_vm3, %v46_v1  ;;  %5915 = vmatmul.mubr.msk.f32.gmra.mrb[30].mxu1 %vm348_vm3, %v208_v2  ;;  %v211_v8 = vld [vmem:[%s11665_s0 + $0x620] sm:$0xff]  ;;  %v50_v9 = vld [vmem:[%s11665_s0 + $0x118] sm:$0xff]  ;;  %v212_v10 = vld [vmem:[%s11665_s0 + $0x628] sm:$0xff] }
  0x45   :  { %5674 = vmatprep.mubr.msk.f32.mxu0 %vm348_vm3, %v47_v3  ;;  %5917 = vmatprep.mubr.msk.f32.mxu1 %vm348_vm3, %v209_v4  ;;  %v51_v11 = vld [vmem:[%s11665_s0 + $0x120] sm:$0xff]  ;;  %v213_v12 = vld [vmem:[%s11665_s0 + $0x630] sm:$0xff]  ;;  %v52_v13 = vld [vmem:[%s11665_s0 + $0x128] sm:$0xff] }
  0x46   :  { %v214_v14 = vld [vmem:[%s11665_s0 + $0x638] sm:$0xff]  ;;  %v53_v15 = vld [vmem:[%s11665_s0 + $0x130] sm:$0xff]  ;;  %v215_v16 = vld [vmem:[%s11665_s0 + $0x640] sm:$0xff] }
  0x47   :  { %v54_v17 = vld [vmem:[%s11665_s0 + $0x138] sm:$0xff]  ;;  %v216_v18 = vld [vmem:[%s11665_s0 + $0x648] sm:$0xff]  ;;  %v55_v19 = vld [vmem:[%s11665_s0 + $0x140] sm:$0xff] }
  0x48   :  { %5675 = vmatmul.mubr.msk.f32.gmra.mrb[32].mxu0 %vm348_vm3, %v48_v5  ;;  %5918 = vmatmul.mubr.msk.f32.gmra.mrb[32].mxu1 %vm348_vm3, %v210_v6  ;;  %v217_v20 = vld [vmem:[%s11665_s0 + $0x650] sm:$0xff]  ;;  %v56_v21 = vld [vmem:[%s11665_s0 + $0x148] sm:$0xff]  ;;  %v218_v22 = vld [vmem:[%s11665_s0 + $0x658] sm:$0xff] }
  0x49   :  { %5677 = vmatprep.mubr.msk.f32.mxu0 %vm348_vm3, %v49_v7  ;;  %5920 = vmatprep.mubr.msk.f32.mxu1 %vm348_vm3, %v211_v8  ;;  %v57_v23 = vld [vmem:[%s11665_s0 + $0x150] sm:$0xff]  ;;  %v219_v24 = vld [vmem:[%s11665_s0 + $0x660] sm:$0xff]  ;;  %v58_v25 = vld [vmem:[%s11665_s0 + $0x158] sm:$0xff] }
  0x4a   :  { %v220_v26 = vld [vmem:[%s11665_s0 + $0x668] sm:$0xff]  ;;  %v59_v27 = vld [vmem:[%s11665_s0 + $0x160] sm:$0xff]  ;;  %v221_v28 = vld [vmem:[%s11665_s0 + $0x670] sm:$0xff] }
  0x4b   :  { %v60_v29 = vld [vmem:[%s11665_s0 + $0x168] sm:$0xff]  ;;  %v222_v30 = vld [vmem:[%s11665_s0 + $0x678] sm:$0xff]  ;;  %v61_v31 = vld [vmem:[%s11665_s0 + $0x170] sm:$0xff] }
  0x4c   :  { %5678 = vmatmul.mubr.msk.f32.gmra.mrb[34].mxu0 %vm348_vm3, %v50_v9  ;;  %5921 = vmatmul.mubr.msk.f32.gmra.mrb[34].mxu1 %vm348_vm3, %v212_v10  ;;  %v223_v32 = vld [vmem:[%s11665_s0 + $0x680] sm:$0xff]  ;;  %v62_v33 = vld [vmem:[%s11665_s0 + $0x178] sm:$0xff]  ;;  %v224_v34 = vld [vmem:[%s11665_s0 + $0x688] sm:$0xff] }
  0x4d   :  { %5680 = vmatprep.mubr.msk.f32.mxu0 %vm348_vm3, %v51_v11  ;;  %5923 = vmatprep.mubr.msk.f32.mxu1 %vm348_vm3, %v213_v12  ;;  %v63_v35 = vld [vmem:[%s11665_s0 + $0x180] sm:$0xff]  ;;  %v225_v36 = vld [vmem:[%s11665_s0 + $0x690] sm:$0xff]  ;;  %v64_v37 = vld [vmem:[%s11665_s0 + $0x188] sm:$0xff] }
  0x4e   :  { %v226_v38 = vld [vmem:[%s11665_s0 + $0x698] sm:$0xff]  ;;  %v65_v39 = vld [vmem:[%s11665_s0 + $0x190] sm:$0xff]  ;;  %v227_v40 = vld [vmem:[%s11665_s0 + $0x6a0] sm:$0xff] }
  0x4f   :  { %v66_v41 = vld [vmem:[%s11665_s0 + $0x198] sm:$0xff]  ;;  %v228_v42 = vld [vmem:[%s11665_s0 + $0x6a8] sm:$0xff]  ;;  %v67_v43 = vld [vmem:[%s11665_s0 + $0x1a0] sm:$0xff] }
  0x50   :  { %5681 = vmatmul.mubr.msk.f32.gmra.mrb[36].mxu0 %vm348_vm3, %v52_v13  ;;  %5924 = vmatmul.mubr.msk.f32.gmra.mrb[36].mxu1 %vm348_vm3, %v214_v14  ;;  %v229_v44 = vld [vmem:[%s11665_s0 + $0x6b0] sm:$0xff]  ;;  %v68_v45 = vld [vmem:[%s11665_s0 + $0x1a8] sm:$0xff]  ;;  %v230_v46 = vld [vmem:[%s11665_s0 + $0x6b8] sm:$0xff] }
  0x51   :  { %5683 = vmatprep.mubr.msk.f32.mxu0 %vm348_vm3, %v53_v15  ;;  %5926 = vmatprep.mubr.msk.f32.mxu1 %vm348_vm3, %v215_v16  ;;  %v69_v47 = vld [vmem:[%s11665_s0 + $0x1b0] sm:$0xff]  ;;  %v231_v48 = vld [vmem:[%s11665_s0 + $0x6c0] sm:$0xff]  ;;  %v70_v49 = vld [vmem:[%s11665_s0 + $0x1b8] sm:$0xff] }
  0x52   :  { %v232_v50 = vld [vmem:[%s11665_s0 + $0x6c8] sm:$0xff]  ;;  %v71_v51 = vld [vmem:[%s11665_s0 + $0x1c0] sm:$0xff]  ;;  %v233_v52 = vld [vmem:[%s11665_s0 + $0x6d0] sm:$0xff] }
  0x53   :  { %v72_v53 = vld [vmem:[%s11665_s0 + $0x1c8] sm:$0xff]  ;;  %v234_v54 = vld [vmem:[%s11665_s0 + $0x6d8] sm:$0xff]  ;;  %v73_v55 = vld [vmem:[%s11665_s0 + $0x1d0] sm:$0xff] }
  0x54   :  { %5684 = vmatmul.mubr.msk.f32.gmra.mrb[38].mxu0 %vm348_vm3, %v54_v17  ;;  %5927 = vmatmul.mubr.msk.f32.gmra.mrb[38].mxu1 %vm348_vm3, %v216_v18  ;;  %v235_v56 = vld [vmem:[%s11665_s0 + $0x6e0] sm:$0xff]  ;;  %v74_v57 = vld [vmem:[%s11665_s0 + $0x1d8] sm:$0xff]  ;;  %v236_v58 = vld [vmem:[%s11665_s0 + $0x6e8] sm:$0xff] }
  0x55   :  { %5686 = vmatprep.mubr.msk.f32.mxu0 %vm348_vm3, %v55_v19  ;;  %5929 = vmatprep.mubr.msk.f32.mxu1 %vm348_vm3, %v217_v20  ;;  %v75_v59 = vld [vmem:[%s11665_s0 + $0x1e0] sm:$0xff]  ;;  %v237_v60 = vld [vmem:[%s11665_s0 + $0x6f0] sm:$0xff]  ;;  %v76_v61 = vld [vmem:[%s11665_s0 + $0x1e8] sm:$0xff] }
  0x56   :  { %v238_v62 = vld [vmem:[%s11665_s0 + $0x6f8] sm:$0xff]  ;;  %v77_v63 = vld [vmem:[%s11665_s0 + $0x1f0] sm:$0xff]  ;;  %v239_v0 = vld [vmem:[%s11665_s0 + $0x700] sm:$0xff] }
  0x57   :  { %v78_v1 = vld [vmem:[%s11665_s0 + $0x1f8] sm:$0xff]  ;;  %v240_v2 = vld [vmem:[%s11665_s0 + $0x708] sm:$0xff]  ;;  %v79_v3 = vld [vmem:[%s11665_s0 + $0x200] sm:$0xff] }
  0x58   :  { %5687 = vmatmul.mubr.msk.f32.gmra.mrb[40].mxu0 %vm348_vm3, %v56_v21  ;;  %5930 = vmatmul.mubr.msk.f32.gmra.mrb[40].mxu1 %vm348_vm3, %v218_v22  ;;  %v241_v4 = vld [vmem:[%s11665_s0 + $0x710] sm:$0xff]  ;;  %v80_v5 = vld [vmem:[%s11665_s0 + $0x208] sm:$0xff]  ;;  %v242_v6 = vld [vmem:[%s11665_s0 + $0x718] sm:$0xff] }
  0x59   :  { %5689 = vmatprep.mubr.msk.f32.mxu0 %vm348_vm3, %v57_v23  ;;  %5932 = vmatprep.mubr.msk.f32.mxu1 %vm348_vm3, %v219_v24  ;;  %v81_v7 = vld [vmem:[%s11665_s0 + $0x210] sm:$0xff]  ;;  %v243_v8 = vld [vmem:[%s11665_s0 + $0x720] sm:$0xff]  ;;  %v82_v9 = vld [vmem:[%s11665_s0 + $0x218] sm:$0xff] }
  0x5a   :  { %v244_v10 = vld [vmem:[%s11665_s0 + $0x728] sm:$0xff]  ;;  %v83_v11 = vld [vmem:[%s11665_s0 + $0x220] sm:$0xff]  ;;  %v245_v12 = vld [vmem:[%s11665_s0 + $0x730] sm:$0xff] }
  0x5b   :  { %v84_v13 = vld [vmem:[%s11665_s0 + $0x228] sm:$0xff]  ;;  %v246_v14 = vld [vmem:[%s11665_s0 + $0x738] sm:$0xff]  ;;  %v85_v15 = vld [vmem:[%s11665_s0 + $0x230] sm:$0xff] }
  0x5c   :  { %5690 = vmatmul.mubr.msk.f32.gmra.mrb[42].mxu0 %vm348_vm3, %v58_v25  ;;  %5933 = vmatmul.mubr.msk.f32.gmra.mrb[42].mxu1 %vm348_vm3, %v220_v26  ;;  %v247_v16 = vld [vmem:[%s11665_s0 + $0x740] sm:$0xff]  ;;  %v86_v17 = vld [vmem:[%s11665_s0 + $0x238] sm:$0xff]  ;;  %v248_v18 = vld [vmem:[%s11665_s0 + $0x748] sm:$0xff] }
  0x5d   :  { %5692 = vmatprep.mubr.msk.f32.mxu0 %vm348_vm3, %v59_v27  ;;  %5935 = vmatprep.mubr.msk.f32.mxu1 %vm348_vm3, %v221_v28  ;;  %v87_v19 = vld [vmem:[%s11665_s0 + $0x240] sm:$0xff]  ;;  %v249_v20 = vld [vmem:[%s11665_s0 + $0x750] sm:$0xff]  ;;  %v88_v21 = vld [vmem:[%s11665_s0 + $0x248] sm:$0xff] }
  0x5e   :  { %v250_v22 = vld [vmem:[%s11665_s0 + $0x758] sm:$0xff]  ;;  %v89_v23 = vld [vmem:[%s11665_s0 + $0x250] sm:$0xff]  ;;  %v251_v24 = vld [vmem:[%s11665_s0 + $0x760] sm:$0xff] }
  0x5f   :  { %v90_v25 = vld [vmem:[%s11665_s0 + $0x258] sm:$0xff]  ;;  %v252_v26 = vld [vmem:[%s11665_s0 + $0x768] sm:$0xff]  ;;  %v91_v27 = vld [vmem:[%s11665_s0 + $0x260] sm:$0xff] }
  0x60   :  { %5693 = vmatmul.mubr.msk.f32.gmra.mrb[44].mxu0 %vm348_vm3, %v60_v29  ;;  %5936 = vmatmul.mubr.msk.f32.gmra.mrb[44].mxu1 %vm348_vm3, %v222_v30  ;;  %v253_v28 = vld [vmem:[%s11665_s0 + $0x770] sm:$0xff]  ;;  %v92_v29 = vld [vmem:[%s11665_s0 + $0x268] sm:$0xff]  ;;  %v254_v30 = vld [vmem:[%s11665_s0 + $0x778] sm:$0xff] }
  0x61   :  { %5695 = vmatprep.mubr.msk.f32.mxu0 %vm348_vm3, %v61_v31  ;;  %5938 = vmatprep.mubr.msk.f32.mxu1 %vm348_vm3, %v223_v32  ;;  %v93_v31 = vld [vmem:[%s11665_s0 + $0x270] sm:$0xff]  ;;  %v255_v32 = vld [vmem:[%s11665_s0 + $0x780] sm:$0xff] }
  0x64   :  { %5696 = vmatmul.mubr.msk.f32.gmra.mrb[46].mxu0 %vm348_vm3, %v62_v33  ;;  %5939 = vmatmul.mubr.msk.f32.gmra.mrb[46].mxu1 %vm348_vm3, %v224_v34  ;;  %v94_v33 = vld [vmem:[%s11665_s0 + $0x278] sm:$0xff]  ;;  %v256_v34 = vld [vmem:[%s11665_s0 + $0x788] sm:$0xff] }
  0x65   :  { %5698 = vmatprep.mubr.msk.f32.mxu0 %vm348_vm3, %v63_v35  ;;  %5941 = vmatprep.mubr.msk.f32.mxu1 %vm348_vm3, %v225_v36  ;;  %v95_v35 = vld [vmem:[%s11665_s0 + $0x280] sm:$0xff]  ;;  %v257_v36 = vld [vmem:[%s11665_s0 + $0x790] sm:$0xff] }
  0x68   :  { %5699 = vmatmul.mubr.msk.f32.gmra.mrb[48].mxu0 %vm348_vm3, %v64_v37  ;;  %5942 = vmatmul.mubr.msk.f32.gmra.mrb[48].mxu1 %vm348_vm3, %v226_v38  ;;  %v96_v37 = vld [vmem:[%s11665_s0 + $0x288] sm:$0xff]  ;;  %v258_v38 = vld [vmem:[%s11665_s0 + $0x798] sm:$0xff] }
  0x69   :  { %5701 = vmatprep.mubr.msk.f32.mxu0 %vm348_vm3, %v65_v39  ;;  %5944 = vmatprep.mubr.msk.f32.mxu1 %vm348_vm3, %v227_v40  ;;  %v97_v39 = vld [vmem:[%s11665_s0 + $0x290] sm:$0xff]  ;;  %v259_v40 = vld [vmem:[%s11665_s0 + $0x7a0] sm:$0xff] }
  0x6c   :  { %5702 = vmatmul.mubr.msk.f32.gmra.mrb[50].mxu0 %vm348_vm3, %v66_v41  ;;  %5945 = vmatmul.mubr.msk.f32.gmra.mrb[50].mxu1 %vm348_vm3, %v228_v42  ;;  %v98_v41 = vld [vmem:[%s11665_s0 + $0x298] sm:$0xff]  ;;  %v260_v42 = vld [vmem:[%s11665_s0 + $0x7a8] sm:$0xff] }
  0x6d   :  { %5704 = vmatprep.mubr.msk.f32.mxu0 %vm348_vm3, %v67_v43  ;;  %5947 = vmatprep.mubr.msk.f32.mxu1 %vm348_vm3, %v229_v44  ;;  %v99_v43 = vld [vmem:[%s11665_s0 + $0x2a0] sm:$0xff]  ;;  %v261_v44 = vld [vmem:[%s11665_s0 + $0x7b0] sm:$0xff] }
  0x70   :  { %5705 = vmatmul.mubr.msk.f32.gmra.mrb[52].mxu0 %vm348_vm3, %v68_v45  ;;  %5948 = vmatmul.mubr.msk.f32.gmra.mrb[52].mxu1 %vm348_vm3, %v230_v46  ;;  %v100_v45 = vld [vmem:[%s11665_s0 + $0x2a8] sm:$0xff]  ;;  %v262_v46 = vld [vmem:[%s11665_s0 + $0x7b8] sm:$0xff] }
  0x71   :  { %5707 = vmatprep.mubr.msk.f32.mxu0 %vm348_vm3, %v69_v47  ;;  %5950 = vmatprep.mubr.msk.f32.mxu1 %vm348_vm3, %v231_v48  ;;  %v101_v47 = vld [vmem:[%s11665_s0 + $0x2b0] sm:$0xff]  ;;  %v263_v48 = vld [vmem:[%s11665_s0 + $0x7c0] sm:$0xff] }
  0x74   :  { %5708 = vmatmul.mubr.msk.f32.gmra.mrb[54].mxu0 %vm348_vm3, %v70_v49  ;;  %5951 = vmatmul.mubr.msk.f32.gmra.mrb[54].mxu1 %vm348_vm3, %v232_v50  ;;  %v102_v49 = vld [vmem:[%s11665_s0 + $0x2b8] sm:$0xff]  ;;  %v264_v50 = vld [vmem:[%s11665_s0 + $0x7c8] sm:$0xff] }
  0x75   :  { %5710 = vmatprep.mubr.msk.f32.mxu0 %vm348_vm3, %v71_v51  ;;  %5953 = vmatprep.mubr.msk.f32.mxu1 %vm348_vm3, %v233_v52  ;;  %v103_v51 = vld [vmem:[%s11665_s0 + $0x2c0] sm:$0xff]  ;;  %v265_v52 = vld [vmem:[%s11665_s0 + $0x7d0] sm:$0xff] }
  0x78   :  { %5711 = vmatmul.mubr.msk.f32.gmra.mrb[56].mxu0 %vm348_vm3, %v72_v53  ;;  %5954 = vmatmul.mubr.msk.f32.gmra.mrb[56].mxu1 %vm348_vm3, %v234_v54  ;;  %v104_v53 = vld [vmem:[%s11665_s0 + $0x2c8] sm:$0xff]  ;;  %v266_v54 = vld [vmem:[%s11665_s0 + $0x7d8] sm:$0xff] }
  0x79   :  { %5713 = vmatprep.mubr.msk.f32.mxu0 %vm348_vm3, %v73_v55  ;;  %5956 = vmatprep.mubr.msk.f32.mxu1 %vm348_vm3, %v235_v56  ;;  %v105_v55 = vld [vmem:[%s11665_s0 + $0x2d0] sm:$0xff]  ;;  %v267_v56 = vld [vmem:[%s11665_s0 + $0x7e0] sm:$0xff] }
  0x7c   :  { %5714 = vmatmul.mubr.msk.f32.gmra.mrb[58].mxu0 %vm348_vm3, %v74_v57  ;;  %5957 = vmatmul.mubr.msk.f32.gmra.mrb[58].mxu1 %vm348_vm3, %v236_v58  ;;  %v106_v57 = vld [vmem:[%s11665_s0 + $0x2d8] sm:$0xff]  ;;  %v268_v58 = vld [vmem:[%s11665_s0 + $0x7e8] sm:$0xff] }
  0x7d   :  { %5716 = vmatprep.mubr.msk.f32.mxu0 %vm348_vm3, %v75_v59  ;;  %5959 = vmatprep.mubr.msk.f32.mxu1 %vm348_vm3, %v237_v60  ;;  %v107_v59 = vld [vmem:[%s11665_s0 + $0x2e0] sm:$0xff]  ;;  %v269_v60 = vld [vmem:[%s11665_s0 + $0x7f0] sm:$0xff] }
  0x80   :  { %5717 = vmatmul.mubr.msk.f32.gmra.mrb[60].mxu0 %vm348_vm3, %v76_v61  ;;  %5960 = vmatmul.mubr.msk.f32.gmra.mrb[60].mxu1 %vm348_vm3, %v238_v62  ;;  %v108_v61 = vld [vmem:[%s11665_s0 + $0x2e8] sm:$0xff]  ;;  %v270_v62 = vld [vmem:[%s11665_s0 + $0x7f8] sm:$0xff] }
  0x81   :  { %5719 = vmatprep.mubr.msk.f32.mxu0 %vm348_vm3, %v77_v63  ;;  %5962 = vmatprep.mubr.msk.f32.mxu1 %vm348_vm3, %v239_v0  ;;  %v109_v63 = vld [vmem:[%s11665_s0 + $0x2f0] sm:$0xff]  ;;  %v271_v0 = vld [vmem:[%s11665_s0 + $0x800] sm:$0xff] }
  0x84   :  { %5720 = vmatmul.mubr.msk.f32.gmra.mrb[62].mxu0 %vm348_vm3, %v78_v1  ;;  %5963 = vmatmul.mubr.msk.f32.gmra.mrb[62].mxu1 %vm348_vm3, %v240_v2  ;;  %v110_v1 = vld [vmem:[%s11665_s0 + $0x2f8] sm:$0xff]  ;;  %v272_v2 = vld [vmem:[%s11665_s0 + $0x808] sm:$0xff] }
  0x85   :  { %5722 = vmatprep.mubr.msk.f32.mxu0 %vm348_vm3, %v79_v3  ;;  %5965 = vmatprep.mubr.msk.f32.mxu1 %vm348_vm3, %v241_v4  ;;  %v111_v3 = vld [vmem:[%s11665_s0 + $0x300] sm:$0xff]  ;;  %v273_v4 = vld [vmem:[%s11665_s0 + $0x810] sm:$0xff] }
  0x88   :  { %5723 = vmatmul.mubr.msk.f32.gmra.mrb[64].mxu0 %vm348_vm3, %v80_v5  ;;  %5966 = vmatmul.mubr.msk.f32.gmra.mrb[64].mxu1 %vm348_vm3, %v242_v6  ;;  %v112_v5 = vld [vmem:[%s11665_s0 + $0x308] sm:$0xff]  ;;  %v274_v6 = vld [vmem:[%s11665_s0 + $0x818] sm:$0xff] }
  0x89   :  { %5725 = vmatprep.mubr.msk.f32.mxu0 %vm348_vm3, %v81_v7  ;;  %5968 = vmatprep.mubr.msk.f32.mxu1 %vm348_vm3, %v243_v8  ;;  %v113_v7 = vld [vmem:[%s11665_s0 + $0x310] sm:$0xff]  ;;  %v275_v8 = vld [vmem:[%s11665_s0 + $0x820] sm:$0xff] }
  0x8c   :  { %5726 = vmatmul.mubr.msk.f32.gmra.mrb[66].mxu0 %vm348_vm3, %v82_v9  ;;  %5969 = vmatmul.mubr.msk.f32.gmra.mrb[66].mxu1 %vm348_vm3, %v244_v10  ;;  %v114_v9 = vld [vmem:[%s11665_s0 + $0x318] sm:$0xff]  ;;  %v276_v10 = vld [vmem:[%s11665_s0 + $0x828] sm:$0xff] }
  0x8d   :  { %5728 = vmatprep.mubr.msk.f32.mxu0 %vm348_vm3, %v83_v11  ;;  %5971 = vmatprep.mubr.msk.f32.mxu1 %vm348_vm3, %v245_v12  ;;  %v115_v11 = vld [vmem:[%s11665_s0 + $0x320] sm:$0xff]  ;;  %v277_v12 = vld [vmem:[%s11665_s0 + $0x830] sm:$0xff] }
  0x90   :  { %5729 = vmatmul.mubr.msk.f32.gmra.mrb[68].mxu0 %vm348_vm3, %v84_v13  ;;  %5972 = vmatmul.mubr.msk.f32.gmra.mrb[68].mxu1 %vm348_vm3, %v246_v14  ;;  %v116_v13 = vld [vmem:[%s11665_s0 + $0x328] sm:$0xff]  ;;  %v278_v14 = vld [vmem:[%s11665_s0 + $0x838] sm:$0xff] }
  0x91   :  { %5731 = vmatprep.mubr.msk.f32.mxu0 %vm348_vm3, %v85_v15  ;;  %5974 = vmatprep.mubr.msk.f32.mxu1 %vm348_vm3, %v247_v16  ;;  %v117_v15 = vld [vmem:[%s11665_s0 + $0x330] sm:$0xff]  ;;  %v279_v16 = vld [vmem:[%s11665_s0 + $0x840] sm:$0xff] }
  0x94   :  { %5732 = vmatmul.mubr.msk.f32.gmra.mrb[70].mxu0 %vm348_vm3, %v86_v17  ;;  %5975 = vmatmul.mubr.msk.f32.gmra.mrb[70].mxu1 %vm348_vm3, %v248_v18  ;;  %v118_v17 = vld [vmem:[%s11665_s0 + $0x338] sm:$0xff]  ;;  %v280_v18 = vld [vmem:[%s11665_s0 + $0x848] sm:$0xff] }
  0x95   :  { %5734 = vmatprep.mubr.msk.f32.mxu0 %vm348_vm3, %v87_v19  ;;  %5977 = vmatprep.mubr.msk.f32.mxu1 %vm348_vm3, %v249_v20  ;;  %v119_v19 = vld [vmem:[%s11665_s0 + $0x340] sm:$0xff]  ;;  %v281_v20 = vld [vmem:[%s11665_s0 + $0x850] sm:$0xff] }
  0x98   :  { %5735 = vmatmul.mubr.msk.f32.gmra.mrb[72].mxu0 %vm348_vm3, %v88_v21  ;;  %5978 = vmatmul.mubr.msk.f32.gmra.mrb[72].mxu1 %vm348_vm3, %v250_v22  ;;  %v120_v21 = vld [vmem:[%s11665_s0 + $0x348] sm:$0xff]  ;;  %v282_v22 = vld [vmem:[%s11665_s0 + $0x858] sm:$0xff] }
  0x99   :  { %5737 = vmatprep.mubr.msk.f32.mxu0 %vm348_vm3, %v89_v23  ;;  %5980 = vmatprep.mubr.msk.f32.mxu1 %vm348_vm3, %v251_v24  ;;  %v121_v23 = vld [vmem:[%s11665_s0 + $0x350] sm:$0xff]  ;;  %v283_v24 = vld [vmem:[%s11665_s0 + $0x860] sm:$0xff] }
  0x9c   :  { %5738 = vmatmul.mubr.msk.f32.gmra.mrb[74].mxu0 %vm348_vm3, %v90_v25  ;;  %5981 = vmatmul.mubr.msk.f32.gmra.mrb[74].mxu1 %vm348_vm3, %v252_v26  ;;  %v7688_v25 = vld [vmem:[%s11667_s2] ss:$0 sm:$0xff]  ;;  %v122_v26 = vld [vmem:[%s11665_s0 + $0x358] sm:$0xff] }
  0x9d   :  { %5740 = vmatprep.mubr.msk.f32.mxu0 %vm348_vm3, %v91_v27  ;;  %5983 = vmatprep.mubr.msk.f32.mxu1 %vm348_vm3, %v253_v28  ;;  %v284_v27 = vld [vmem:[%s11665_s0 + $0x868] sm:$0xff]  ;;  %v123_v28 = vld [vmem:[%s11665_s0 + $0x360] sm:$0xff] }
  0xa0   :  { %5741 = vmatmul.mubr.msk.f32.gmra.mrb[76].mxu0 %vm348_vm3, %v92_v29  ;;  %5984 = vmatmul.mubr.msk.f32.gmra.mrb[76].mxu1 %vm348_vm3, %v254_v30  ;;  %v285_v29 = vld [vmem:[%s11665_s0 + $0x870] sm:$0xff] }
  0xa1   :  { %5743 = vmatprep.mubr.msk.f32.mxu0 %vm348_vm3, %v93_v31  ;;  %5986 = vmatprep.mubr.msk.f32.mxu1 %vm348_vm3, %v255_v32 }
  0xa4   :  { %5744 = vmatmul.mubr.msk.f32.gmra.mrb[78].mxu0 %vm348_vm3, %v94_v33  ;;  %5987 = vmatmul.mubr.msk.f32.gmra.mrb[78].mxu1 %vm348_vm3, %v256_v34 }
  0xa5   :  { %5746 = vmatprep.mubr.msk.f32.mxu0 %vm348_vm3, %v95_v35  ;;  %5989 = vmatprep.mubr.msk.f32.mxu1 %vm348_vm3, %v257_v36 }
  0xa8   :  { %5747 = vmatmul.mubr.msk.f32.gmra.mrb[80].mxu0 %vm348_vm3, %v96_v37  ;;  %5990 = vmatmul.mubr.msk.f32.gmra.mrb[80].mxu1 %vm348_vm3, %v258_v38  ;;  %v124_v38 = vld [vmem:[%s11665_s0 + $0x368] sm:$0xff] }
  0xa9   :  { %5749 = vmatprep.mubr.msk.f32.mxu0 %vm348_vm3, %v97_v39  ;;  %5992 = vmatprep.mubr.msk.f32.mxu1 %vm348_vm3, %v259_v40  ;;  %v286_v39 = vld [vmem:[%s11665_s0 + $0x878] sm:$0xff] }
  0xac   :  { %5750 = vmatmul.mubr.msk.f32.gmra.mrb[82].mxu0 %vm348_vm3, %v98_v41  ;;  %5993 = vmatmul.mubr.msk.f32.gmra.mrb[82].mxu1 %vm348_vm3, %v260_v42  ;;  %v125_v42 = vld [vmem:[%s11665_s0 + $0x370] sm:$0xff] }
  0xad   :  { %5752 = vmatprep.mubr.msk.f32.mxu0 %vm348_vm3, %v99_v43  ;;  %5995 = vmatprep.mubr.msk.f32.mxu1 %vm348_vm3, %v261_v44  ;;  %v287_v43 = vld [vmem:[%s11665_s0 + $0x880] sm:$0xff] }
  0xb0   :  { %5753 = vmatmul.mubr.msk.f32.gmra.mrb[84].mxu0 %vm348_vm3, %v100_v45  ;;  %5996 = vmatmul.mubr.msk.f32.gmra.mrb[84].mxu1 %vm348_vm3, %v262_v46 }
  0xb1   :  { %5755 = vmatprep.mubr.msk.f32.mxu0 %vm348_vm3, %v101_v47  ;;  %5998 = vmatprep.mubr.msk.f32.mxu1 %vm348_vm3, %v263_v48 }
  0xb4   :  { %5756 = vmatmul.mubr.msk.f32.gmra.mrb[86].mxu0 %vm348_vm3, %v102_v49  ;;  %5999 = vmatmul.mubr.msk.f32.gmra.mrb[86].mxu1 %vm348_vm3, %v264_v50 }
  0xb5   :  { %5758 = vmatprep.mubr.msk.f32.mxu0 %vm348_vm3, %v103_v51  ;;  %6001 = vmatprep.mubr.msk.f32.mxu1 %vm348_vm3, %v265_v52  ;;  %v126_v52 = vld [vmem:[%s11665_s0 + $0x378] sm:$0xff] }
  0xb8   :  { %5759 = vmatmul.mubr.msk.f32.gmra.mrb[88].mxu0 %vm348_vm3, %v104_v53  ;;  %6002 = vmatmul.mubr.msk.f32.gmra.mrb[88].mxu1 %vm348_vm3, %v266_v54  ;;  %v288_v53 = vld [vmem:[%s11665_s0 + $0x888] sm:$0xff] }
  0xb9   :  { %5761 = vmatprep.mubr.msk.f32.mxu0 %vm348_vm3, %v105_v55  ;;  %6004 = vmatprep.mubr.msk.f32.mxu1 %vm348_vm3, %v267_v56  ;;  %v127_v56 = vld [vmem:[%s11665_s0 + $0x380] sm:$0xff] }
  0xbc   :  { %5762 = vmatmul.mubr.msk.f32.gmra.mrb[90].mxu0 %vm348_vm3, %v106_v57  ;;  %6005 = vmatmul.mubr.msk.f32.gmra.mrb[90].mxu1 %vm348_vm3, %v268_v58  ;;  %v289_v57 = vld [vmem:[%s11665_s0 + $0x890] sm:$0xff] }
  0xbd   :  { %5764 = vmatprep.mubr.msk.f32.mxu0 %vm348_vm3, %v107_v59  ;;  %6007 = vmatprep.mubr.msk.f32.mxu1 %vm348_vm3, %v269_v60 }
  0xc0   :  { %5765 = vmatmul.mubr.msk.f32.gmra.mrb[92].mxu0 %vm348_vm3, %v108_v61  ;;  %6008 = vmatmul.mubr.msk.f32.gmra.mrb[92].mxu1 %vm348_vm3, %v270_v62 }
  0xc1   :  { %5767 = vmatprep.mubr.msk.f32.mxu0 %vm348_vm3, %v109_v63  ;;  %6010 = vmatprep.mubr.msk.f32.mxu1 %vm348_vm3, %v271_v0 }
  0xc4   :  { %5768 = vmatmul.mubr.msk.f32.gmra.mrb[94].mxu0 %vm348_vm3, %v110_v1  ;;  %6011 = vmatmul.mubr.msk.f32.gmra.mrb[94].mxu1 %vm348_vm3, %v272_v2 }
  0xc5   :  { %5770 = vmatprep.mubr.msk.f32.mxu0 %vm348_vm3, %v111_v3  ;;  %6013 = vmatprep.mubr.msk.f32.mxu1 %vm348_vm3, %v273_v4 }
  0xc8   :  { %5771 = vmatmul.mubr.msk.f32.gmra.mrb[96].mxu0 %vm348_vm3, %v112_v5  ;;  %6014 = vmatmul.mubr.msk.f32.gmra.mrb[96].mxu1 %vm348_vm3, %v274_v6  ;;  %v128_v5 = vld [vmem:[%s11665_s0 + $0x388] sm:$0xff]  ;;  %v290_v6 = vld [vmem:[%s11665_s0 + $0x898] sm:$0xff] }
  0xc9   :  { %5773 = vmatprep.mubr.msk.f32.mxu0 %vm348_vm3, %v113_v7  ;;  %6016 = vmatprep.mubr.msk.f32.mxu1 %vm348_vm3, %v275_v8 }
  0xcc   :  { %5774 = vmatmul.mubr.msk.f32.gmra.mrb[98].mxu0 %vm348_vm3, %v114_v9  ;;  %6017 = vmatmul.mubr.msk.f32.gmra.mrb[98].mxu1 %vm348_vm3, %v276_v10  ;;  %v129_v10 = vld [vmem:[%s11665_s0 + $0x390] sm:$0xff] }
  0xcd   :  { %5776 = vmatprep.mubr.msk.f32.mxu0 %vm348_vm3, %v115_v11  ;;  %6019 = vmatprep.mubr.msk.f32.mxu1 %vm348_vm3, %v277_v12  ;;  %v291_v11 = vld [vmem:[%s11665_s0 + $0x8a0] sm:$0xff] }
  0xd0   :  { %5777 = vmatmul.mubr.msk.f32.gmra.mrb[100].mxu0 %vm348_vm3, %v116_v13  ;;  %6020 = vmatmul.mubr.msk.f32.gmra.mrb[100].mxu1 %vm348_vm3, %v278_v14 }
  0xd1   :  { %5779 = vmatprep.mubr.msk.f32.mxu0 %vm348_vm3, %v117_v15  ;;  %6022 = vmatprep.mubr.msk.f32.mxu1 %vm348_vm3, %v279_v16 }
  0xd4   :  { %5780 = vmatmul.mubr.msk.f32.gmra.mrb[102].mxu0 %vm348_vm3, %v118_v17  ;;  %6023 = vmatmul.mubr.msk.f32.gmra.mrb[102].mxu1 %vm348_vm3, %v280_v18 }
  0xd5   :  { %5782 = vmatprep.mubr.msk.f32.mxu0 %vm348_vm3, %v119_v19  ;;  %6025 = vmatprep.mubr.msk.f32.mxu1 %vm348_vm3, %v281_v20 }
  0xd8   :  { %5783 = vmatmul.mubr.msk.f32.gmra.mrb[104].mxu0 %vm348_vm3, %v120_v21  ;;  %6026 = vmatmul.mubr.msk.f32.gmra.mrb[104].mxu1 %vm348_vm3, %v282_v22 }
  0xd9   :  { %5785 = vmatprep.mubr.msk.f32.mxu0 %vm348_vm3, %v121_v23  ;;  %6028 = vmatprep.mubr.msk.f32.mxu1 %vm348_vm3, %v283_v24 }
  0xdb   :  { %v5628_v30 = vpop.f32.mrb[0].mxu0  ;;  %v5871_v31 = vpop.f32.mrb[0].mxu1 }
  0xdc   :  { %v1397_v32 = vadd.f32 %v5628_v30, %v7688_v25  ;;  %v2207_v33 = vadd.f32 %v5871_v31, %v7688_v25  ;;  %v1391_v34 = vpop.f32.mrb[1].mxu0  ;;  %5786 = vmatmul.mubr.msk.f32.gmra.mrb[106].mxu0 %vm348_vm3, %v122_v26  ;;  %v2201_v35 = vpop.f32.mrb[1].mxu1  ;;  %6029 = vmatmul.mubr.msk.f32.gmra.mrb[106].mxu1 %vm348_vm3, %v284_v27  ;;  %v130_v26 = vld [vmem:[%s11665_s0 + $0x398] sm:$0xff]  ;;  %v292_v27 = vld [vmem:[%s11665_s0 + $0x8a8] sm:$0xff] }
  0xdd   :  { %v1392_v36 = vadd.f32 %v7688_v25, %v1391_v34  ;;  %v2202_v37 = vadd.f32 %v7688_v25, %v2201_v35  ;;  %5788 = vmatprep.mubr.msk.f32.mxu0 %vm348_vm3, %v123_v28  ;;  %6031 = vmatprep.mubr.msk.f32.mxu1 %vm348_vm3, %v285_v29 }
  0xde   :  { %v3335_v40 = vmul.f32 0.70710677, %v1397_v32  ;;  %v3497_v41 = vmul.f32 0.70710677, %v2207_v33  ;;  %v7744_v61 = vmul.f32 0.5, %v1397_v32  ;;  %v7758_v7 = vmul.f32 0.5, %v2207_v33 }
  0xdf   :  { %v3334_v44 = vmul.f32 0.70710677, %v1392_v36  ;;  %v3496_v45 = vmul.f32 0.70710677, %v2202_v37  ;;  %v5631_v46 = vpop.f32.mrb[2].mxu0  ;;  %v5874_v47 = vpop.f32.mrb[2].mxu1 }
  0xe0   :  { %6124 = verf.f32 %v3335_v40  ;;  %5789 = vmatmul.mubr.msk.f32.gmra.mrb[108].mxu0 %vm348_vm3, %v124_v38  ;;  %6032 = vmatmul.mubr.msk.f32.gmra.mrb[108].mxu1 %vm348_vm3, %v286_v39  ;;  %v1407_v48 = vadd.f32 %v5631_v46, %v7688_v25  ;;  %v2217_v49 = vadd.f32 %v5874_v47, %v7688_v25  ;;  %v1401_v50 = vpop.f32.mrb[3].mxu0  ;;  %v2211_v51 = vpop.f32.mrb[3].mxu1  ;;  %v7768_v12 = vmul.f32 0.5, %v1392_v36  ;;  %v131_v32 = vld [vmem:[%s11665_s0 + $0x3a0] sm:$0xff]  ;;  %v293_v33 = vld [vmem:[%s11665_s0 + $0x8b0] sm:$0xff] }
  0xe1   :  { %6126 = verf.f32 %v3497_v41  ;;  %5791 = vmatprep.mubr.msk.f32.mxu0 %vm348_vm3, %v125_v42  ;;  %6034 = vmatprep.mubr.msk.f32.mxu1 %vm348_vm3, %v287_v43  ;;  %v1402_v54 = vadd.f32 %v7688_v25, %v1401_v50  ;;  %v2212_v55 = vadd.f32 %v7688_v25, %v2211_v51  ;;  %v7770_v13 = vmul.f32 0.5, %v2202_v37  ;;  %v132_v50 = vld [vmem:[%s11665_s0 + $0x3a8] sm:$0xff]  ;;  %v294_v51 = vld [vmem:[%s11665_s0 + $0x8b8] sm:$0xff] }
  0xe2   :  { %6128 = verf.f32 %v3334_v44  ;;  %v3337_v58 = vmul.f32 0.70710677, %v1407_v48  ;;  %v3499_v62 = vmul.f32 0.70710677, %v2217_v49  ;;  %v7772_v17 = vmul.f32 0.5, %v1407_v48 }
  0xe3   :  { %6130 = verf.f32 %v3496_v45  ;;  %v5634_v59 = vpop.f32.mrb[4].mxu0  ;;  %v5877_v60 = vpop.f32.mrb[4].mxu1  ;;  %v3336_v63 = vmul.f32 0.70710677, %v1402_v54  ;;  %v3498_v0 = vmul.f32 0.70710677, %v2212_v55 }
  0xe4   :  { %5792 = vmatmul.mubr.msk.f32.gmra.mrb[110].mxu0 %vm348_vm3, %v126_v52  ;;  %6035 = vmatmul.mubr.msk.f32.gmra.mrb[110].mxu1 %vm348_vm3, %v288_v53  ;;  %6132 = verf.f32 %v3337_v58  ;;  %v1417_v1 = vadd.f32 %v5634_v59, %v7688_v25  ;;  %v2227_v2 = vadd.f32 %v5877_v60, %v7688_v25  ;;  %v1411_v3 = vpop.f32.mrb[5].mxu0  ;;  %v2221_v4 = vpop.f32.mrb[5].mxu1  ;;  %v7776_v21 = vmul.f32 0.5, %v2217_v49 }
  0xe5   :  { %5794 = vmatprep.mubr.msk.f32.mxu0 %vm348_vm3, %v127_v56  ;;  %6037 = vmatprep.mubr.msk.f32.mxu1 %vm348_vm3, %v289_v57  ;;  %6134 = verf.f32 %v3499_v62  ;;  %v1412_v8 = vadd.f32 %v7688_v25, %v1411_v3  ;;  %v2222_v9 = vadd.f32 %v7688_v25, %v2221_v4  ;;  %v7787_v29 = vmul.f32 0.5, %v1402_v54  ;;  %v295_v56 = vld [vmem:[%s11665_s0 + $0x8c0] sm:$0xff] }
  0xe6   :  { %6136 = verf.f32 %v3336_v63  ;;  %v3339_v14 = vmul.f32 0.70710677, %v1417_v1  ;;  %v3501_v18 = vmul.f32 0.70710677, %v2227_v2  ;;  %v7797_v35 = vmul.f32 0.5, %v2212_v55  ;;  %v133_v55 = vld [vmem:[%s11665_s0 + $0x3b0] sm:$0xff] }
  0xe7   :  { %v5637_v15 = vpop.f32.mrb[6].mxu0  ;;  %v5880_v16 = vpop.f32.mrb[6].mxu1  ;;  %6138 = verf.f32 %v3498_v0  ;;  %v3338_v19 = vmul.f32 0.70710677, %v1412_v8  ;;  %v3500_v22 = vmul.f32 0.70710677, %v2222_v9 }
  0xe8   :  { %v1421_v20 = vpop.f32.mrb[7].mxu0  ;;  %5795 = vmatmul.mubr.msk.f32.gmra.mrb[112].mxu0 %vm348_vm3, %v128_v5  ;;  %6038 = vmatmul.mubr.msk.f32.gmra.mrb[112].mxu1 %vm348_vm3, %v290_v6  ;;  %6140 = verf.f32 %v3339_v14  ;;  %v1427_v23 = vadd.f32 %v5637_v15, %v7688_v25  ;;  %v2231_v24 = vpop.f32.mrb[7].mxu1  ;;  %v2237_v30 = vadd.f32 %v5880_v16, %v7688_v25  ;;  %v7800_v42 = vmul.f32 0.5, %v1417_v1  ;;  %v296_v14 = vld [vmem:[%s11665_s0 + $0x8c8] sm:$0xff] }
  0xe9   :  { %5797 = vmatprep.mubr.msk.f32.mxu0 %vm348_vm3, %v129_v10  ;;  %6040 = vmatprep.mubr.msk.f32.mxu1 %vm348_vm3, %v291_v11  ;;  %6142 = verf.f32 %v3501_v18  ;;  %v1422_v31 = vadd.f32 %v7688_v25, %v1421_v20  ;;  %v2232_v37 = vadd.f32 %v7688_v25, %v2231_v24  ;;  %v7804_v47 = vmul.f32 0.5, %v2227_v2 }
  0xea   :  { %v6125_v28 = vpop.eup %6124  ;;  %6144 = verf.f32 %v3338_v19  ;;  %v3341_v36 = vmul.f32 0.70710677, %v1427_v23  ;;  %v3503_v43 = vmul.f32 0.70710677, %v2237_v30  ;;  %v7806_v48 = vmul.f32 0.5, %v1412_v8 }
  0xeb   :  { %v6127_v34 = vpop.eup %6126  ;;  %v5640_v38 = vpop.f32.mrb[8].mxu0  ;;  %v3983_v41 = vadd.f32 1.0, %v6125_v28  ;;  %6146 = verf.f32 %v3500_v22  ;;  %v7808_v49 = vmul.f32 0.5, %v2222_v9  ;;  %v3340_v54 = vmul.f32 0.70710677, %v1422_v31  ;;  %v135_v22 = vld [vmem:[%s11665_s0 + $0x3c0] sm:$0xff] }
  0xec   :  { %v5883_v39 = vpop.f32.mrb[8].mxu1  ;;  %v6129_v40 = vpop.eup %6128  ;;  %5798 = vmatmul.mubr.msk.f32.gmra.mrb[114].mxu0 %vm348_vm3, %v130_v26  ;;  %6041 = vmatmul.mubr.msk.f32.gmra.mrb[114].mxu1 %vm348_vm3, %v292_v27  ;;  %6148 = verf.f32 %v3341_v36  ;;  %v4145_v52 = vadd.f32 1.0, %v6127_v34  ;;  %v7824_v58 = vmul.f32 0.5, %v1427_v23  ;;  %v7826_v59 = vmul.f32 0.5, %v2237_v30  ;;  %v297_v23 = vld [vmem:[%s11665_s0 + $0x8d0] sm:$0xff] }
  0xed   :  { %v1431_v44 = vpop.f32.mrb[9].mxu0  ;;  %v2241_v45 = vpop.f32.mrb[9].mxu1  ;;  %5800 = vmatprep.mubr.msk.f32.mxu0 %vm348_vm3, %v131_v32  ;;  %6043 = vmatprep.mubr.msk.f32.mxu1 %vm348_vm3, %v293_v33  ;;  %v3982_v53 = vadd.f32 1.0, %v6129_v40  ;;  %6150 = verf.f32 %v3503_v43  ;;  %v3502_v60 = vmul.f32 0.70710677, %v2232_v37  ;;  %v1437_v62 = vadd.f32 %v5640_v38, %v7688_v25  ;;  %v298_v43 = vld [vmem:[%s11665_s0 + $0x8d8] sm:$0xff] }
  0xee   :  { %v6131_v46 = vpop.eup %6130  ;;  %v7834_v2 = vmul.f32 %v3983_v41, %v7744_v61  ;;  %6152 = verf.f32 %v3340_v54  ;;  %v2247_v4 = vadd.f32 %v5883_v39, %v7688_v25  ;;  %v7843_v10 = vmul.f32 0.5, %v1422_v31  ;;  %v134_v61 = vld [vmem:[%s11665_s0 + $0x3b8] sm:$0xff]  ;;  %v136_v41 = vld [vmem:[%s11665_s0 + $0x3c8] sm:$0xff] }
  0xef   :  { %v6133_v57 = vpop.eup %6132  ;;  %v7829_v63 = vpop.f32.mrb[10].mxu0  ;;  %v4144_v3 = vadd.f32 1.0, %v6131_v46  ;;  %6154 = verf.f32 %v3502_v60  ;;  %v3343_v11 = vmul.f32 0.70710677, %v1437_v62  ;;  %v7854_v16 = vmul.f32 %v4145_v52, %v7758_v7  ;;  %v299_v52 = vld [vmem:[%s11665_s0 + $0x8e0] sm:$0xff] }
  0xf0   :  { %v7831_v0 = vpop.f32.mrb[10].mxu1  ;;  %v6135_v1 = vpop.eup %6134  ;;  %11847 = vst [vmem:[#allocation5_spill] sm:$0xff] %v7834_v2  ;;  %5801 = vmatmul.mubr.msk.f32.gmra.mrb[116].mxu0 %vm348_vm3, %v132_v50  ;;  %6044 = vmatmul.mubr.msk.f32.gmra.mrb[116].mxu1 %vm348_vm3, %v294_v51  ;;  %v3985_v9 = vadd.f32 1.0, %v6133_v57  ;;  %v7857_v18 = vmul.f32 %v3982_v53, %v7768_v12  ;;  %v3505_v20 = vmul.f32 0.70710677, %v2247_v4  ;;  %v7865_v27 = vmul.f32 0.5, %v2232_v37 }
  0xf1   :  { %v7837_v5 = vpop.f32.mrb[11].mxu0  ;;  %v7840_v6 = vpop.f32.mrb[11].mxu1  ;;  %5803 = vmatprep.mubr.msk.f32.mxu0 %vm348_vm3, %v133_v55  ;;  %6046 = vmatprep.mubr.msk.f32.mxu1 %vm348_vm3, %v295_v56  ;;  %11848 = vst [vmem:[#allocation6_spill] sm:$0xff] %v7854_v16  ;;  %v4147_v19 = vadd.f32 1.0, %v6135_v1  ;;  %6156 = verf.f32 %v3343_v11  ;;  %v1432_v7 = vadd.f32 %v7688_v25, %v1431_v44  ;;  %v7873_v31 = vmul.f32 %v4144_v3, %v7770_v13  ;;  %v137_v51 = vld [vmem:[%s11665_s0 + $0x3d0] sm:$0xff]  ;;  %v300_v11 = vld [vmem:[%s11665_s0 + $0x8e8] sm:$0xff] }
  0xf2   :  { %v6137_v8 = vpop.eup %6136  ;;  %v7875_v33 = vmul.f32 0.5, %v1437_v62  ;;  %v2242_v34 = vadd.f32 %v7688_v25, %v2241_v45  ;;  %v7885_v39 = vmul.f32 %v3985_v9, %v7772_v17  ;;  %6158 = verf.f32 %v3505_v20  ;;  %v139_v20 = vld [vmem:[%s11665_s0 + $0x3e0] sm:$0xff] }
  0xf3   :  { %v6139_v15 = vpop.eup %6138  ;;  %v3984_v26 = vadd.f32 1.0, %v6137_v8  ;;  %v7868_v28 = vpop.f32.mrb[12].mxu0  ;;  %11849 = vst [vmem:[#allocation7_spill] sm:$0xff] %v7873_v31  ;;  %v3342_v13 = vmul.f32 0.70710677, %v1432_v7  ;;  %v7896_v45 = vmul.f32 %v4147_v19, %v7776_v21  ;;  %v7898_v46 = vmul.f32 0.5, %v2247_v4 }
  0xf4   :  { %v6141_v24 = vpop.eup %6140  ;;  %v7870_v12 = vpop.f32.mrb[12].mxu1  ;;  %v4146_v32 = vadd.f32 1.0, %v6139_v15  ;;  %5804 = vmatmul.mubr.msk.f32.gmra.mrb[118].mxu0 %vm348_vm3, %v134_v61  ;;  %6047 = vmatmul.mubr.msk.f32.gmra.mrb[118].mxu1 %vm348_vm3, %v296_v14  ;;  %11850 = vst [vmem:[#allocation8_spill] sm:$0xff] %v7885_v39  ;;  %v3504_v50 = vmul.f32 0.70710677, %v2242_v34  ;;  %v1447_v21 = vadd.f32 %v7829_v63, %v7688_v25  ;;  %v2257_v3 = vadd.f32 %v7831_v0, %v7688_v25  ;;  %v138_v0 = vld [vmem:[%s11665_s0 + $0x3d8] sm:$0xff] }
  0xf5   :  { %v6143_v30 = vpop.eup %6142  ;;  %v7878_v36 = vpop.f32.mrb[13].mxu0  ;;  %v3987_v40 = vadd.f32 1.0, %v6141_v24  ;;  %5806 = vmatprep.mubr.msk.f32.mxu0 %vm348_vm3, %v135_v22  ;;  %6049 = vmatprep.mubr.msk.f32.mxu1 %vm348_vm3, %v297_v23  ;;  %11851 = vst [vmem:[#allocation9_spill] sm:$0xff] %v7896_v45  ;;  %v7907_v54 = vmul.f32 %v3984_v26, %v7787_v29  ;;  %6160 = verf.f32 %v3342_v13  ;;  %v7929_v9 = vmul.f32 0.5, %v1432_v7  ;;  %v301_v22 = vld [vmem:[%s11665_s0 + $0x8f0] sm:$0xff] }
  0xf6   :  { %v7881_v37 = vpop.f32.mrb[13].mxu1  ;;  %v6145_v38 = vpop.eup %6144  ;;  %v4149_v17 = vadd.f32 1.0, %v6143_v30  ;;  %v7916_v62 = vmul.f32 %v4146_v32, %v7797_v35  ;;  %6162 = verf.f32 %v3504_v50  ;;  %v3345_v35 = vmul.f32 0.70710677, %v1447_v21 }
  0xf7   :  { %v6147_v44 = vpop.eup %6146  ;;  %11852 = vst [vmem:[#allocation10_spill] sm:$0xff] %v7907_v54  ;;  %v3986_v55 = vadd.f32 1.0, %v6145_v38  ;;  %v7911_v56 = vpop.f32.mrb[14].mxu0  ;;  %v7927_v63 = vmul.f32 %v3987_v40, %v7800_v42  ;;  %v7942_v14 = vmul.f32 0.5, %v2242_v34  ;;  %v3507_v15 = vmul.f32 0.70710677, %v2257_v3 }
  0xf8   :  { %v6149_v53 = vpop.eup %6148  ;;  %v7913_v57 = vpop.f32.mrb[14].mxu1  ;;  %11853 = vst [vmem:[#allocation11_spill] sm:$0xff] %v7916_v62  ;;  %v4148_v1 = vadd.f32 1.0, %v6147_v44  ;;  %5807 = vmatmul.mubr.msk.f32.gmra.mrb[120].mxu0 %vm348_vm3, %v136_v41  ;;  %6050 = vmatmul.mubr.msk.f32.gmra.mrb[120].mxu1 %vm348_vm3, %v298_v43  ;;  %v7940_v42 = vmul.f32 %v4149_v17, %v7804_v47  ;;  %v1442_v19 = vadd.f32 %v7688_v25, %v7837_v5  ;;  %6164 = verf.f32 %v3345_v35  ;;  %v140_v43 = vld [vmem:[%s11665_s0 + $0x3e8] sm:$0xff]  ;;  %v302_v44 = vld [vmem:[%s11665_s0 + $0x8f8] sm:$0xff] }
  0xf9   :  { %v6151_v60 = vpop.eup %6150  ;;  %v7920_v29 = vpop.f32.mrb[15].mxu0  ;;  %11854 = vst [vmem:[#allocation12_spill] sm:$0xff] %v7927_v63  ;;  %v3989_v8 = vadd.f32 1.0, %v6149_v53  ;;  %5809 = vmatprep.mubr.msk.f32.mxu0 %vm348_vm3, %v137_v51  ;;  %6052 = vmatprep.mubr.msk.f32.mxu1 %vm348_vm3, %v299_v52  ;;  %v7953_v24 = vmul.f32 %v3986_v55, %v7806_v48  ;;  %v2252_v26 = vadd.f32 %v7688_v25, %v7840_v6  ;;  %6166 = verf.f32 %v3507_v15  ;;  %v303_v51 = vld [vmem:[%s11665_s0 + $0x900] sm:$0xff] }
  0xfa   :  { %v7923_v4 = vpop.f32.mrb[15].mxu1  ;;  %v6153_v61 = vpop.eup %6152  ;;  %11855 = vst [vmem:[#allocation13_spill] sm:$0xff] %v7940_v42  ;;  %v4151_v47 = vadd.f32 1.0, %v6151_v60  ;;  %v7962_v30 = vmul.f32 %v4148_v1, %v7808_v49  ;;  %v3344_v34 = vmul.f32 0.70710677, %v1442_v19  ;;  %v7973_v13 = vmul.f32 0.5, %v1447_v21 }
  0xfb   :  { %v6155_v23 = vpop.eup %6154  ;;  %11856 = vst [vmem:[#allocation14_spill] sm:$0xff] %v7953_v24  ;;  %v7957_v7 = vpop.f32.mrb[16].mxu0  ;;  %v3988_v32 = vadd.f32 1.0, %v6153_v61  ;;  %v7971_v6 = vmul.f32 %v3989_v8, %v7824_v58  ;;  %v3506_v41 = vmul.f32 0.70710677, %v2252_v26  ;;  %v1457_v49 = vadd.f32 %v7868_v28, %v7688_v25  ;;  %v141_v28 = vld [vmem:[%s11665_s0 + $0x3f0] sm:$0xff] }
  0xfc   :  { %v7959_v5 = vpop.f32.mrb[16].mxu1  ;;  %11857 = vst [vmem:[#allocation15_spill] sm:$0xff] %v7962_v30  ;;  %v7964_v38 = vpop.f32.mrb[17].mxu0  ;;  %5810 = vmatmul.mubr.msk.f32.gmra.mrb[122].mxu0 %vm348_vm3, %v138_v0  ;;  %6053 = vmatmul.mubr.msk.f32.gmra.mrb[122].mxu1 %vm348_vm3, %v300_v11  ;;  %v4150_v58 = vadd.f32 1.0, %v6155_v23  ;;  %v7985_v17 = vmul.f32 0.5, %v2257_v3  ;;  %6168 = verf.f32 %v3344_v34  ;;  %v2267_v50 = vadd.f32 %v7870_v12, %v7688_v25 }
  0xfd   :  { %v7967_v48 = vpop.f32.mrb[17].mxu1  ;;  %v6157_v40 = vpop.eup %6156  ;;  %11858 = vst [vmem:[#allocation16_spill] sm:$0xff] %v7971_v6  ;;  %5812 = vmatprep.mubr.msk.f32.mxu0 %vm348_vm3, %v139_v20  ;;  %6055 = vmatprep.mubr.msk.f32.mxu1 %vm348_vm3, %v301_v22  ;;  %v7996_v53 = vmul.f32 %v4151_v47, %v7826_v59  ;;  %6170 = verf.f32 %v3506_v41  ;;  %v3347_v21 = vmul.f32 0.70710677, %v1457_v49  ;;  %v8003_v12 = vmul.f32 %v3988_v32, %v7843_v10  ;;  %v305_v47 = vld [vmem:[%s11665_s0 + $0x910] sm:$0xff] }
  0xfe   :  { %v6159_v52 = vpop.eup %6158  ;;  %v3991_v55 = vadd.f32 1.0, %v6157_v40  ;;  %v8005_v3 = vmul.f32 0.5, %v1442_v19  ;;  %v3509_v8 = vmul.f32 0.70710677, %v2267_v50  ;;  %v1452_v35 = vadd.f32 %v7688_v25, %v7878_v36  ;;  %v142_v36 = vld [vmem:[%s11665_s0 + $0x3f8] sm:$0xff]  ;;  %v304_v19 = vld [vmem:[%s11665_s0 + $0x908] sm:$0xff] }
  0xff   :  { %11859 = vst [vmem:[#allocation17_spill] sm:$0xff] %v7996_v53  ;;  %v7998_v60 = vpop.f32.mrb[18].mxu0  ;;  %v8000_v1 = vpop.f32.mrb[18].mxu1  ;;  %11860 = vst [vmem:[#allocation18_spill] sm:$0xff] %v8003_v12  ;;  %v8015_v61 = vmul.f32 0.5, %v2252_v26  ;;  %6172 = verf.f32 %v3347_v21  ;;  %v2262_v10 = vadd.f32 %v7688_v25, %v7881_v37  ;;  %v1467_v15 = vadd.f32 %v7911_v56, %v7688_v25  ;;  %v143_v56 = vld [vmem:[%s11665_s0 + $0x400] sm:$0xff] }
 0x100   :  { %v8009_v0 = vpop.f32.mrb[19].mxu0  ;;  %5813 = vmatmul.mubr.msk.f32.gmra.mrb[124].mxu0 %vm348_vm3, %v140_v43  ;;  %v8012_v59 = vpop.f32.mrb[19].mxu1  ;;  %6056 = vmatmul.mubr.msk.f32.gmra.mrb[124].mxu1 %vm348_vm3, %v302_v44  ;;  %v8030_v22 = vmul.f32 %v4150_v58, %v7865_v27  ;;  %v4153_v37 = vadd.f32 1.0, %v6159_v52  ;;  %6174 = verf.f32 %v3509_v8  ;;  %v3346_v23 = vmul.f32 0.70710677, %v1452_v35 }
 0x101   :  { %v6161_v11 = vpop.eup %6160  ;;  %5815 = vmatprep.mubr.msk.f32.mxu0 %vm348_vm3, %v141_v28  ;;  %6058 = vmatprep.mubr.msk.f32.mxu1 %vm348_vm3, %v303_v51  ;;  %v8039_v26 = vmul.f32 %v3991_v55, %v7875_v33  ;;  %v8041_v34 = vmul.f32 0.5, %v1457_v49  ;;  %v3508_v40 = vmul.f32 0.70710677, %v2262_v10  ;;  %v8045_v41 = vmul.f32 0.5, %v2267_v50  ;;  %v306_v55 = vld [vmem:[%s11665_s0 + $0x918] sm:$0xff] }
 0x102   :  { %v6163_v20 = vpop.eup %6162  ;;  %11861 = vst [vmem:[#allocation19_spill] sm:$0xff] %v8030_v22  ;;  %v3990_v32 = vadd.f32 1.0, %v6161_v11  ;;  %6176 = verf.f32 %v3346_v23  ;;  %v3349_v43 = vmul.f32 0.70710677, %v1467_v15  ;;  %v2277_v44 = vadd.f32 %v7913_v57, %v7688_v25  ;;  %v144_v57 = vld [vmem:[%s11665_s0 + $0x408] sm:$0xff]  ;;  %v145_v11 = vld [vmem:[%s11665_s0 + $0x410] sm:$0xff] }
 0x103   :  { %11862 = vst [vmem:[#allocation20_spill] sm:$0xff] %v8039_v26  ;;  %v8043_v27 = vpop.f32.mrb[20].mxu0  ;;  %v8049_v58 = vpop.f32.mrb[20].mxu1  ;;  %v4152_v49 = vadd.f32 1.0, %v6163_v20  ;;  %6178 = verf.f32 %v3508_v40  ;;  %v1462_v50 = vadd.f32 %v7688_v25, %v7920_v29  ;;  %v2272_v51 = vadd.f32 %v7688_v25, %v7923_v4 }
 0x104   :  { %v8051_v28 = vpop.f32.mrb[21].mxu0  ;;  %5816 = vmatmul.mubr.msk.f32.gmra.mrb[126].mxu0 %vm348_vm3, %v142_v36  ;;  %6059 = vmatmul.mubr.msk.f32.gmra.mrb[126].mxu1 %vm348_vm3, %v304_v19  ;;  %v6165_v33 = vpop.eup %6164  ;;  %v8070_v29 = vmul.f32 %v4153_v37, %v7898_v46  ;;  %v8072_v8 = vmul.f32 0.5, %v1452_v35  ;;  %6180 = verf.f32 %v3349_v43  ;;  %v3511_v4 = vmul.f32 0.70710677, %v2277_v44  ;;  %v307_v36 = vld [vmem:[%s11665_s0 + $0x920] sm:$0xff] }
 0x105   :  { %v8059_v52 = vpop.f32.mrb[21].mxu1  ;;  %5818 = vmatprep.mubr.msk.f32.mxu0 %vm348_vm3, %v143_v56  ;;  %6061 = vmatprep.mubr.msk.f32.mxu1 %vm348_vm3, %v305_v47  ;;  %v6167_v21 = vpop.eup %6166  ;;  %v8081_v19 = vmul.f32 %v3990_v32, %v7929_v9  ;;  %v8083_v20 = vmul.f32 0.5, %v2262_v10  ;;  %v8085_v23 = vmul.f32 0.5, %v1467_v15  ;;  %v3348_v46 = vmul.f32 0.70710677, %v1462_v50 }
 0x106   :  { %11863 = vst [vmem:[#allocation21_spill] sm:$0xff] %v8070_v29  ;;  %v6169_v37 = vpop.eup %6168  ;;  %v3993_v56 = vadd.f32 1.0, %v6165_v33  ;;  %6182 = verf.f32 %v3511_v4  ;;  %v3510_v47 = vmul.f32 0.70710677, %v2272_v51  ;;  %v1477_v40 = vadd.f32 %v7957_v7, %v7688_v25  ;;  %v146_v7 = vld [vmem:[%s11665_s0 + $0x418] sm:$0xff] }
 0x107   :  { %11864 = vst [vmem:[#allocation22_spill] sm:$0xff] %v8081_v19  ;;  %v8087_v35 = vpop.f32.mrb[22].mxu0  ;;  %v8091_v43 = vpop.f32.mrb[22].mxu1  ;;  %v8098_v10 = vmul.f32 %v4152_v49, %v7942_v14  ;;  %v4155_v15 = vadd.f32 1.0, %v6167_v21  ;;  %6184 = verf.f32 %v3348_v46  ;;  %v2287_v32 = vadd.f32 %v7959_v5, %v7688_v25  ;;  %v308_v14 = vld [vmem:[%s11665_s0 + $0x928] sm:$0xff]  ;;  %v147_v5 = vld [vmem:[%s11665_s0 + $0x420] sm:$0xff] }
 0x108   :  { %v8093_v29 = vpop.f32.mrb[23].mxu0  ;;  %5819 = vmatmul.mubr.msk.f32.gmra.mrb[128].mxu0 %vm348_vm3, %v144_v57  ;;  %6062 = vmatmul.mubr.msk.f32.gmra.mrb[128].mxu1 %vm348_vm3, %v306_v55  ;;  %v6171_v9 = vpop.eup %6170  ;;  %v3992_v49 = vadd.f32 1.0, %v6169_v37  ;;  %v8112_v57 = vmul.f32 0.5, %v2277_v44  ;;  %6186 = verf.f32 %v3510_v47  ;;  %v3351_v55 = vmul.f32 0.70710677, %v1477_v40  ;;  %v309_v21 = vld [vmem:[%s11665_s0 + $0x930] sm:$0xff] }
 0x109   :  { %11865 = vst [vmem:[#allocation23_spill] sm:$0xff] %v8098_v10  ;;  %v8102_v33 = vpop.f32.mrb[23].mxu1  ;;  %5821 = vmatprep.mubr.msk.f32.mxu0 %vm348_vm3, %v145_v11  ;;  %6064 = vmatprep.mubr.msk.f32.mxu1 %vm348_vm3, %v307_v36  ;;  %v6173_v4 = vpop.eup %6172  ;;  %v4154_v11 = vadd.f32 1.0, %v6171_v9  ;;  %v8120_v36 = vmul.f32 0.5, %v1462_v50  ;;  %v3513_v46 = vmul.f32 0.70710677, %v2287_v32  ;;  %v1472_v37 = vadd.f32 %v7688_v25, %v7964_v38 }
 0x10a   :  { %v6175_v10 = vpop.eup %6174  ;;  %v8129_v19 = vmul.f32 %v3993_v56, %v7973_v13  ;;  %v8131_v26 = vmul.f32 0.5, %v2272_v51  ;;  %6188 = verf.f32 %v3351_v55  ;;  %v2282_v9 = vadd.f32 %v7688_v25, %v7967_v48  ;;  %v148_v48 = vld [vmem:[%s11665_s0 + $0x428] sm:$0xff]  ;;  %v310_v51 = vld [vmem:[%s11665_s0 + $0x938] sm:$0xff]  ;;  %v311_v55 = vld [vmem:[%s11665_s0 + $0x940] sm:$0xff] }
 0x10b   :  { %v8124_v44 = vpop.f32.mrb[24].mxu0  ;;  %v8126_v47 = vpop.f32.mrb[24].mxu1  ;;  %v8142_v38 = vmul.f32 %v4155_v15, %v7985_v17  ;;  %v8144_v12 = vmul.f32 0.5, %v1477_v40  ;;  %6190 = verf.f32 %v3513_v46  ;;  %v3350_v13 = vmul.f32 0.70710677, %v1472_v37 }
 0x10c   :  { %11866 = vst [vmem:[#allocation24_spill] sm:$0xff] %v8129_v19  ;;  %v8135_v50 = vpop.f32.mrb[25].mxu0  ;;  %5822 = vmatmul.mubr.msk.f32.gmra.mrb[130].mxu0 %vm348_vm3, %v146_v7  ;;  %v8138_v22 = vpop.f32.mrb[25].mxu1  ;;  %6065 = vmatmul.mubr.msk.f32.gmra.mrb[130].mxu1 %vm348_vm3, %v308_v14  ;;  %v8155_v17 = vmul.f32 %v3992_v49, %v8005_v3  ;;  %v3995_v40 = vadd.f32 1.0, %v6173_v4  ;;  %v3512_v15 = vmul.f32 0.70710677, %v2282_v9  ;;  %v1487_v7 = vadd.f32 %v7998_v60, %v7688_v25 }
 0x10d   :  { %11867 = vst [vmem:[#allocation25_spill] sm:$0xff] %v8142_v38  ;;  %5824 = vmatprep.mubr.msk.f32.mxu0 %vm348_vm3, %v147_v5  ;;  %6067 = vmatprep.mubr.msk.f32.mxu1 %vm348_vm3, %v309_v21  ;;  %v6177_v56 = vpop.eup %6176  ;;  %v149_v14 = vld [vmem:[%s11665_s0 + $0x430] sm:$0xff]  ;;  %v8166_v21 = vmul.f32 %v4154_v11, %v8015_v61  ;;  %v4157_v46 = vadd.f32 1.0, %v6175_v10  ;;  %v8168_v3 = vmul.f32 0.5, %v2287_v32  ;;  %v2297_v49 = vadd.f32 %v8000_v1, %v7688_v25  ;;  %v150_v11 = vld [vmem:[%s11665_s0 + $0x438] sm:$0xff] }
 0x10e   :  { %11868 = vst [vmem:[#allocation26_spill] sm:$0xff] %v8155_v17  ;;  %v6179_v5 = vpop.eup %6178  ;;  %v3994_v38 = vadd.f32 1.0, %v6177_v56  ;;  %v8176_v19 = vmul.f32 0.5, %v1472_v37  ;;  %6192 = verf.f32 %v3350_v13  ;;  %v3353_v53 = vmul.f32 0.70710677, %v1487_v7  ;;  %v312_v37 = vld [vmem:[%s11665_s0 + $0x948] sm:$0xff] }
 0x10f   :  { %11869 = vst [vmem:[#allocation27_spill] sm:$0xff] %v8166_v21  ;;  %v8172_v4 = vpop.f32.mrb[26].mxu0  ;;  %v8174_v60 = vpop.f32.mrb[26].mxu1  ;;  %v4156_v10 = vadd.f32 1.0, %v6179_v5  ;;  %6194 = verf.f32 %v3512_v15  ;;  %v3515_v32 = vmul.f32 0.70710677, %v2297_v49  ;;  %v2292_v56 = vadd.f32 %v7688_v25, %v8012_v59 }
 0x110   :  { %v6181_v17 = vpop.eup %6180  ;;  %v8178_v6 = vpop.f32.mrb[27].mxu0  ;;  %5825 = vmatmul.mubr.msk.f32.gmra.mrb[132].mxu0 %vm348_vm3, %v148_v48  ;;  %6068 = vmatmul.mubr.msk.f32.gmra.mrb[132].mxu1 %vm348_vm3, %v310_v51  ;;  %v8193_v48 = vmul.f32 %v3995_v40, %v8041_v34  ;;  %6196 = verf.f32 %v3353_v53  ;;  %v1482_v51 = vadd.f32 %v7688_v25, %v8009_v0  ;;  %v313_v15 = vld [vmem:[%s11665_s0 + $0x950] sm:$0xff]  ;;  %v8208_v34 = vmul.f32 0.5, %v2282_v9 }
 0x111   :  { %v8181_v61 = vpop.f32.mrb[27].mxu1  ;;  %v3997_v1 = vadd.f32 1.0, %v6181_v17  ;;  %5827 = vmatprep.mubr.msk.f32.mxu0 %vm348_vm3, %v149_v14  ;;  %6070 = vmatprep.mubr.msk.f32.mxu1 %vm348_vm3, %v311_v55  ;;  %v6183_v13 = vpop.eup %6182  ;;  %v151_v17 = vld [vmem:[%s11665_s0 + $0x440] sm:$0xff]  ;;  %v8206_v55 = vmul.f32 %v4157_v46, %v8045_v41  ;;  %6198 = verf.f32 %v3515_v32  ;;  %v1497_v53 = vadd.f32 %v8043_v27, %v7688_v25 }
 0x112   :  { %11870 = vst [vmem:[#allocation28_spill] sm:$0xff] %v8193_v48  ;;  %v6185_v14 = vpop.eup %6184  ;;  %v8217_v5 = vmul.f32 %v3994_v38, %v8072_v8  ;;  %v8219_v48 = vmul.f32 0.5, %v1487_v7  ;;  %v8221_v21 = vmul.f32 0.5, %v2297_v49  ;;  %v3352_v41 = vmul.f32 0.70710677, %v1482_v51  ;;  %v152_v7 = vld [vmem:[%s11665_s0 + $0x448] sm:$0xff] }
 0x113   :  { %11871 = vst [vmem:[#allocation29_spill] sm:$0xff] %v8206_v55  ;;  %v8212_v0 = vpop.f32.mrb[28].mxu0  ;;  %v8214_v59 = vpop.f32.mrb[28].mxu1  ;;  %v8228_v27 = vmul.f32 %v4156_v10, %v8083_v20  ;;  %v8231_v9 = vmul.f32 %v3997_v1, %v8085_v23  ;;  %v4159_v32 = vadd.f32 1.0, %v6183_v13  ;;  %v3514_v8 = vmul.f32 0.70710677, %v2292_v56 }
 0x114   :  { %v6187_v40 = vpop.eup %6186  ;;  %11872 = vst [vmem:[#allocation30_spill] sm:$0xff] %v8217_v5  ;;  %v8223_v46 = vpop.f32.mrb[29].mxu0  ;;  %5828 = vmatmul.mubr.msk.f32.gmra.mrb[134].mxu0 %vm348_vm3, %v150_v11  ;;  %6071 = vmatmul.mubr.msk.f32.gmra.mrb[134].mxu1 %vm348_vm3, %v312_v37  ;;  %v314_v20 = vld [vmem:[%s11665_s0 + $0x958] sm:$0xff]  ;;  %v3996_v10 = vadd.f32 1.0, %v6185_v14  ;;  %6200 = verf.f32 %v3352_v41  ;;  %v3355_v23 = vmul.f32 0.70710677, %v1497_v53  ;;  %v2307_v1 = vadd.f32 %v8049_v58, %v7688_v25 }
 0x115   :  { %11873 = vst [vmem:[#allocation31_spill] sm:$0xff] %v8228_v27  ;;  %11874 = vst [vmem:[#allocation32_spill] sm:$0xff] %v8231_v9  ;;  %v8233_v38 = vpop.f32.mrb[29].mxu1  ;;  %5830 = vmatprep.mubr.msk.f32.mxu0 %vm348_vm3, %v151_v17  ;;  %6073 = vmatprep.mubr.msk.f32.mxu1 %vm348_vm3, %v313_v15  ;;  %v6189_v49 = vpop.eup %6188  ;;  %v153_v11 = vld [vmem:[%s11665_s0 + $0x450] sm:$0xff]  ;;  %v315_v37 = vld [vmem:[%s11665_s0 + $0x960] sm:$0xff]  ;;  %v4158_v17 = vadd.f32 1.0, %v6187_v40  ;;  %6202 = verf.f32 %v3514_v8  ;;  %v1492_v14 = vadd.f32 %v7688_v25, %v8051_v28 }
 0x116   :  { %v6191_v13 = vpop.eup %6190  ;;  %v8251_v15 = vmul.f32 0.5, %v1482_v51  ;;  %v3999_v58 = vadd.f32 1.0, %v6189_v49  ;;  %v8259_v27 = vmul.f32 0.5, %v2292_v56  ;;  %6204 = verf.f32 %v3355_v23  ;;  %v154_v56 = vld [vmem:[%s11665_s0 + $0x458] sm:$0xff]  ;;  %v155_v23 = vld [vmem:[%s11665_s0 + $0x460] sm:$0xff] }
 0x117   :  { %v8255_v41 = vpop.f32.mrb[30].mxu0  ;;  %v8257_v9 = vpop.f32.mrb[30].mxu1  ;;  %v3517_v5 = vmul.f32 0.70710677, %v2307_v1  ;;  %v8268_v51 = vmul.f32 %v4159_v32, %v8112_v57  ;;  %v4161_v28 = vadd.f32 1.0, %v6191_v13  ;;  %v2302_v49 = vadd.f32 %v7688_v25, %v8059_v52 }
 0x118   :  { %v8261_v55 = vpop.f32.mrb[31].mxu0  ;;  %5831 = vmatmul.mubr.msk.f32.gmra.mrb[136].mxu0 %vm348_vm3, %v152_v7  ;;  %v8264_v40 = vpop.f32.mrb[31].mxu1  ;;  %6074 = vmatmul.mubr.msk.f32.gmra.mrb[136].mxu1 %vm348_vm3, %v314_v20  ;;  %v3354_v8 = vmul.f32 0.70710677, %v1492_v14  ;;  %v316_v7 = vld [vmem:[%s11665_s0 + $0x968] sm:$0xff]  ;;  %v8281_v57 = vmul.f32 %v3996_v10, %v8120_v36  ;;  %v8283_v32 = vmul.f32 0.5, %v1497_v53  ;;  %v8287_v52 = vadd.f32 %v8087_v35, %v7688_v25 }
 0x119   :  { %11875 = vst [vmem:[#allocation33_spill] sm:$0xff] %v8264_v40  ;;  %11876 = vst [vmem:[#allocation34_spill] sm:$0xff] %v8268_v51  ;;  %5833 = vmatprep.mubr.msk.f32.mxu0 %vm348_vm3, %v153_v11  ;;  %6076 = vmatprep.mubr.msk.f32.mxu1 %vm348_vm3, %v315_v37  ;;  %v6193_v20 = vpop.eup %6192  ;;  %6206 = verf.f32 %v3517_v5  ;;  %v317_v11 = vld [vmem:[%s11665_s0 + $0x970] sm:$0xff]  ;;  %v8296_v13 = vmul.f32 %v4158_v17, %v8131_v26  ;;  %v8298_v36 = vmul.f32 0.5, %v2307_v1  ;;  %v3516_v53 = vmul.f32 0.70710677, %v2302_v49 }
 0x11a   :  { %11877 = vst [vmem:[#allocation35_spill] sm:$0xff] %v8281_v57  ;;  %v6195_v37 = vpop.eup %6194  ;;  %6208 = verf.f32 %v3354_v8  ;;  %v8305_v57 = vmul.f32 %v3999_v58, %v8144_v12  ;;  %v8307_v51 = vmul.f32 0.5, %v1492_v14  ;;  %v3357_v40 = vmul.f32 0.70710677, %v8287_v52 }
 0x11b   :  { %11878 = vst [vmem:[#allocation36_spill] sm:$0xff] %v8296_v13  ;;  %v8300_v5 = vpop.f32.mrb[32].mxu0  ;;  %v8302_v35 = vpop.f32.mrb[32].mxu1  ;;  %v8312_v26 = vadd.f32 %v8091_v43, %v7688_v25  ;;  %v8321_v12 = vmul.f32 %v4161_v28, %v8168_v3  ;;  %6210 = verf.f32 %v3516_v53  ;;  %v8325_v58 = vadd.f32 %v7688_v25, %v8093_v29  ;;  %v156_v43 = vld [vmem:[%s11665_s0 + $0x468] sm:$0xff]  ;;  %v157_v29 = vld [vmem:[%s11665_s0 + $0x470] sm:$0xff] }
 0x11c   :  { %v6197_v10 = vpop.eup %6196  ;;  %11879 = vst [vmem:[#allocation37_spill] sm:$0xff] %v8305_v57  ;;  %v8314_v1 = vpop.f32.mrb[33].mxu0  ;;  %5834 = vmatmul.mubr.msk.f32.gmra.mrb[138].mxu0 %vm348_vm3, %v154_v56  ;;  %6077 = vmatmul.mubr.msk.f32.gmra.mrb[138].mxu1 %vm348_vm3, %v316_v7  ;;  %v318_v56 = vld [vmem:[%s11665_s0 + $0x978] sm:$0xff]  ;;  %v3998_v3 = vadd.f32 1.0, %v6193_v20  ;;  %6212 = verf.f32 %v3357_v40  ;;  %v8348_v20 = vadd.f32 %v7688_v25, %v8102_v33 }
 0x11d   :  { %v8317_v17 = vpop.f32.mrb[33].mxu1  ;;  %v6199_v8 = vpop.eup %6198  ;;  %11880 = vst [vmem:[#allocation38_spill] sm:$0xff] %v8321_v12  ;;  %v4001_v14 = vadd.f32 1.0, %v6197_v10  ;;  %5836 = vmatprep.mubr.msk.f32.mxu0 %vm348_vm3, %v155_v23  ;;  %6079 = vmatprep.mubr.msk.f32.mxu1 %vm348_vm3, %v317_v11  ;;  %v3519_v7 = vmul.f32 0.70710677, %v8312_v26  ;;  %v319_v23 = vld [vmem:[%s11665_s0 + $0x980] sm:$0xff] }
 0x11e   :  { %v4163_v28 = vadd.f32 1.0, %v6199_v8  ;;  %v4160_v11 = vadd.f32 1.0, %v6195_v37  ;;  %v3356_v10 = vmul.f32 0.70710677, %v8325_v58  ;;  %v6201_v12 = vpop.eup %6200  ;;  %v8359_v37 = vadd.f32 %v8124_v44, %v7688_v25  ;;  %v320_v44 = vld [vmem:[%s11665_s0 + $0x988] sm:$0xff] }
 0x11f   :  { %v8343_v53 = vmul.f32 %v4001_v14, %v8219_v48  ;;  %v8350_v40 = vpop.f32.mrb[34].mxu0  ;;  %v8352_v8 = vpop.f32.mrb[34].mxu1  ;;  %6214 = verf.f32 %v3519_v7  ;;  %v8363_v48 = vadd.f32 %v8126_v47, %v7688_v25  ;;  %v8373_v7 = vmul.f32 0.5, %v2302_v49  ;;  %v158_v25 = vld [vmem:[%s11665_s0 + $0x478] sm:$0xff] }
 0x120   :  { %v8355_v57 = vmul.f32 %v4163_v28, %v8221_v21  ;;  %v8365_v14 = vpop.f32.mrb[35].mxu0  ;;  %5837 = vmatmul.mubr.msk.f32.gmra.mrb[140].mxu0 %vm348_vm3, %v156_v43  ;;  %v8368_v33 = vpop.f32.mrb[35].mxu1  ;;  %6080 = vmatmul.mubr.msk.f32.gmra.mrb[140].mxu1 %vm348_vm3, %v318_v56  ;;  %v4000_v28 = vadd.f32 1.0, %v6201_v12  ;;  %6216 = verf.f32 %v3356_v10  ;;  %v8384_v43 = vmul.f32 %v3998_v3, %v8176_v19 }
 0x121   :  { %11881 = vst [vmem:[#allocation39_spill] sm:$0xff] %v8343_v53  ;;  %v6203_v13 = vpop.eup %6202  ;;  %5839 = vmatprep.mubr.msk.f32.mxu0 %vm348_vm3, %v157_v29  ;;  %6082 = vmatprep.mubr.msk.f32.mxu1 %vm348_vm3, %v319_v23  ;;  %v3518_v56 = vmul.f32 0.70710677, %v8348_v20  ;;  %v159_v29 = vld [vmem:[%s11665_s0 + $0x480] sm:$0xff]  ;;  %v321_v23 = vld [vmem:[%s11665_s0 + $0x990] sm:$0xff]  ;;  %v3033_v19 = vmul.f32 0.5, %v8287_v52 }
 0x122   :  { %11882 = vst [vmem:[#allocation40_spill] sm:$0xff] %v8355_v57  ;;  %v6205_v47 = vpop.eup %6204  ;;  %11883 = vst [vmem:[#allocation41_spill] sm:$0xff] %v8384_v43  ;;  %v4162_v12 = vadd.f32 1.0, %v6203_v13  ;;  %v8396_v10 = vmul.f32 %v4000_v28, %v8251_v15  ;;  %v3359_v3 = vmul.f32 0.70710677, %v8359_v37  ;;  %v3197_v63 = vmul.f32 0.5, %v8363_v48 }
 0x123   :  { %v4003_v21 = vadd.f32 1.0, %v6205_v47  ;;  %v8400_v49 = vpop.f32.mrb[36].mxu0  ;;  %v8402_v13 = vpop.f32.mrb[36].mxu1  ;;  %6218 = verf.f32 %v3518_v56  ;;  %v3521_v53 = vmul.f32 0.70710677, %v8363_v48  ;;  %v166_v48 = vld [vmem:[%s11665_s0 + $0x4b8] sm:$0xff] }
 0x124   :  { %v6207_v57 = vpop.eup %6206  ;;  %v8405_v16 = vmul.f32 %v4162_v12, %v8259_v27  ;;  %v8411_v15 = vld [vmem:[%s11667_s2] ss:$0 sm:$0xff]  ;;  %v8417_v28 = vpop.f32.mrb[37].mxu0  ;;  %5840 = vmatmul.mubr.msk.f32.gmra.mrb[142].mxu0 %vm348_vm3, %v158_v25  ;;  %6083 = vmatmul.mubr.msk.f32.gmra.mrb[142].mxu1 %vm348_vm3, %v320_v44  ;;  %6220 = verf.f32 %v3359_v3  ;;  %v322_v25 = vld [vmem:[%s11665_s0 + $0x998] sm:$0xff]  ;;  %v8437_v44 = vmul.f32 %v4160_v11, %v8208_v34 }
 0x125   :  { %v8415_v52 = vadd.f32 %v8411_v15, %v8135_v50  ;;  %v8420_v47 = vpop.f32.mrb[37].mxu1  ;;  %v6209_v27 = vpop.eup %6208  ;;  %v8426_v56 = vmul.f32 %v4003_v21, %v8283_v32  ;;  %v4165_v2 = vadd.f32 1.0, %v6207_v57  ;;  %5842 = vmatprep.mubr.msk.f32.mxu0 %vm348_vm3, %v159_v29  ;;  %6085 = vmatprep.mubr.msk.f32.mxu1 %vm348_vm3, %v321_v23  ;;  %v160_v50 = vld [vmem:[%s11665_s0 + $0x488] sm:$0xff]  ;;  %6222 = verf.f32 %v3521_v53  ;;  %v161_v21 = vld [vmem:[%s11665_s0 + $0x490] sm:$0xff]  ;;  %v323_v29 = vld [vmem:[%s11665_s0 + $0x9a0] sm:$0xff] }
 0x126   :  { %11884 = vst [vmem:[#allocation42_spill] sm:$0xff] %v8405_v16  ;;  %11886 = vst [vmem:[#allocation44_spill] sm:$0xff] %v8437_v44  ;;  %v4002_v57 = vadd.f32 1.0, %v6209_v27  ;;  %v6211_v23 = vpop.eup %6210  ;;  %v8455_v53 = vadd.f32 %v8411_v15, %v8138_v22  ;;  %v8466_v3 = vadd.f32 %v8411_v15, %v8172_v4  ;;  %v162_v4 = vld [vmem:[%s11665_s0 + $0x498] sm:$0xff] }
 0x127   :  { %11885 = vst [vmem:[#allocation43_spill] sm:$0xff] %v8426_v56  ;;  %v8450_v34 = vmul.f32 %v4165_v2, %v8298_v36  ;;  %v3358_v11 = vmul.f32 0.70710677, %v8415_v52  ;;  %v8457_v27 = vpop.f32.mrb[38].mxu0  ;;  %v8459_v32 = vpop.f32.mrb[38].mxu1  ;;  %v4164_v31 = vadd.f32 1.0, %v6211_v23  ;;  %v8470_v2 = vadd.f32 %v8411_v15, %v8174_v60 }
 0x128   :  { %v6213_v12 = vpop.eup %6212  ;;  %v8462_v16 = vmul.f32 %v4002_v57, %v8307_v51  ;;  %v8472_v36 = vpop.f32.mrb[39].mxu0  ;;  %5843 = vmatmul.mubr.msk.f32.gmra.mrb[144].mxu0 %vm348_vm3, %v160_v50  ;;  %6086 = vmatmul.mubr.msk.f32.gmra.mrb[144].mxu1 %vm348_vm3, %v322_v25  ;;  %v3195_v23 = vmul.f32 0.5, %v8312_v26  ;;  %v324_v60 = vld [vmem:[%s11665_s0 + $0x9a8] sm:$0xff]  ;;  %v3032_v26 = vmul.f32 0.5, %v8325_v58  ;;  %v3194_v25 = vmul.f32 0.5, %v8348_v20 }
 0x129   :  { %11887 = vst [vmem:[#allocation45_spill] sm:$0xff] %v8450_v34  ;;  %v8475_v22 = vpop.f32.mrb[39].mxu1  ;;  %v4005_v57 = vadd.f32 1.0, %v6213_v12  ;;  %6224 = verf.f32 %v3358_v11  ;;  %5845 = vmatprep.mubr.msk.f32.mxu0 %vm348_vm3, %v161_v21  ;;  %6088 = vmatprep.mubr.msk.f32.mxu1 %vm348_vm3, %v323_v29  ;;  %v6215_v50 = vpop.eup %6214  ;;  %v8492_v12 = vmul.f32 %v4164_v31, %v8373_v7  ;;  %v3520_v21 = vmul.f32 0.70710677, %v8455_v53  ;;  %v163_v29 = vld [vmem:[%s11665_s0 + $0x4a0] sm:$0xff] }
 0x12a   :  { %11888 = vst [vmem:[#allocation46_spill] sm:$0xff] %v8462_v16  ;;  %v325_v11 = vld [vmem:[%s11665_s0 + $0x9b0] sm:$0xff]  ;;  %v6217_v51 = vpop.eup %6216  ;;  %v4167_v45 = vadd.f32 1.0, %v6215_v50  ;;  %v3361_v31 = vmul.f32 0.70710677, %v8466_v3  ;;  %v11979_v44 = vld [vmem:[#allocation40_spill] sm:$0xff] }
 0x12b   :  { %11889 = vst [vmem:[#allocation47_spill] sm:$0xff] %v8492_v12  ;;  %v8502_v34 = vmul.f32 %v4005_v57, %v3033_v19  ;;  %v8506_v7 = vpop.f32.mrb[40].mxu0  ;;  %v8508_v58 = vpop.f32.mrb[40].mxu1  ;;  %v4004_v54 = vadd.f32 1.0, %v6217_v51  ;;  %6226 = verf.f32 %v3520_v21  ;;  %v3523_v56 = vmul.f32 0.70710677, %v8470_v2 }
 0x12c   :  { %v8513_v39 = vpop.f32.mrb[41].mxu0  ;;  %5846 = vmatmul.mubr.msk.f32.gmra.mrb[146].mxu0 %vm348_vm3, %v162_v4  ;;  %v8516_v19 = vpop.f32.mrb[41].mxu1  ;;  %6089 = vmatmul.mubr.msk.f32.gmra.mrb[146].mxu1 %vm348_vm3, %v324_v60  ;;  %v8521_v57 = vmul.f32 %v4167_v45, %v3195_v23  ;;  %6228 = verf.f32 %v3361_v31  ;;  %v8525_v51 = vadd.f32 %v8411_v15, %v8178_v6  ;;  %v164_v4 = vld [vmem:[%s11665_s0 + $0x4a8] sm:$0xff]  ;;  %v326_v60 = vld [vmem:[%s11665_s0 + $0x9b8] sm:$0xff]  ;;  %v8539_v6 = vadd.f32 %v8411_v15, %v8181_v61  ;;  %v165_v21 = vld [vmem:[%s11665_s0 + $0x4b0] sm:$0xff] }
 0x12d   :  { %11890 = vst [vmem:[#allocation48_spill] sm:$0xff] %v8502_v34  ;;  %5848 = vmatprep.mubr.msk.f32.mxu0 %vm348_vm3, %v163_v29  ;;  %6091 = vmatprep.mubr.msk.f32.mxu1 %vm348_vm3, %v325_v11  ;;  %v6219_v50 = vpop.eup %6218  ;;  %v8535_v45 = vmul.f32 %v4004_v54, %v3032_v26  ;;  %6230 = verf.f32 %v3523_v56  ;;  %v8543_v23 = vadd.f32 %v8411_v15, %v8212_v0  ;;  %v327_v29 = vld [vmem:[%s11665_s0 + $0x9c0] sm:$0xff]  ;;  %v3035_v61 = vmul.f32 0.5, %v8359_v37 }
 0x12e   :  { %11891 = vst [vmem:[#allocation49_spill] sm:$0xff] %v8521_v57  ;;  %v6221_v11 = vpop.eup %6220  ;;  %v4166_v56 = vadd.f32 1.0, %v6219_v50  ;;  %v3360_v26 = vmul.f32 0.70710677, %v8525_v51  ;;  %v3522_v12 = vmul.f32 0.70710677, %v8539_v6 }
 0x12f   :  { %11892 = vst [vmem:[#allocation50_spill] sm:$0xff] %v8535_v45  ;;  %v8555_v31 = vpop.f32.mrb[42].mxu0  ;;  %v8557_v0 = vpop.f32.mrb[42].mxu1  ;;  %v4007_v34 = vadd.f32 1.0, %v6221_v11  ;;  %v3034_v57 = vmul.f32 0.5, %v8415_v52  ;;  %v8585_v52 = vadd.f32 %v8411_v15, %v8214_v59  ;;  %v8603_v59 = vadd.f32 %v8411_v15, %v8233_v38  ;;  %v168_v38 = vld [vmem:[%s11665_s0 + $0x4c8] sm:$0xff] }
 0x130   :  { %v6223_v20 = vpop.eup %6222  ;;  %v8563_v62 = vpop.f32.mrb[43].mxu0  ;;  %5849 = vmatmul.mubr.msk.f32.gmra.mrb[148].mxu0 %vm348_vm3, %v164_v4  ;;  %6092 = vmatmul.mubr.msk.f32.gmra.mrb[148].mxu1 %vm348_vm3, %v326_v60  ;;  %v8569_v50 = vmul.f32 %v4166_v56, %v3194_v25  ;;  %6232 = verf.f32 %v3360_v26  ;;  %v328_v4 = vld [vmem:[%s11665_s0 + $0x9c8] sm:$0xff]  ;;  %v3363_v25 = vmul.f32 0.70710677, %v8543_v23  ;;  %v329_v60 = vld [vmem:[%s11665_s0 + $0x9d0] sm:$0xff] }
 0x131   :  { %v8566_v37 = vpop.f32.mrb[43].mxu1  ;;  %v4169_v54 = vadd.f32 1.0, %v6223_v20  ;;  %5851 = vmatprep.mubr.msk.f32.mxu0 %vm348_vm3, %v165_v21  ;;  %6094 = vmatprep.mubr.msk.f32.mxu1 %vm348_vm3, %v327_v29  ;;  %v8580_v11 = vmul.f32 %v4007_v34, %v3035_v61  ;;  %6234 = verf.f32 %v3522_v12  ;;  %v167_v20 = vld [vmem:[%s11665_s0 + $0x4c0] sm:$0xff]  ;;  %v8599_v12 = vadd.f32 %v8411_v15, %v8223_v46 }
 0x132   :  { %11893 = vst [vmem:[#allocation51_spill] sm:$0xff] %v8569_v50  ;;  %v3196_v34 = vmul.f32 0.5, %v8455_v53  ;;  %6236 = verf.f32 %v3363_v25  ;;  %v3525_v53 = vmul.f32 0.70710677, %v8585_v52  ;;  %v3524_v50 = vmul.f32 0.70710677, %v8603_v59 }
 0x133   :  { %11894 = vst [vmem:[#allocation52_spill] sm:$0xff] %v8580_v11  ;;  %v6225_v21 = vpop.eup %6224  ;;  %v8595_v29 = vmul.f32 %v4169_v54, %v3197_v63  ;;  %v8605_v56 = vpop.f32.mrb[44].mxu0  ;;  %v3362_v25 = vmul.f32 0.70710677, %v8599_v12  ;;  %v3199_v11 = vmul.f32 0.5, %v8470_v2  ;;  %v8647_v2 = vadd.f32 %v8411_v15, %v8257_v9 }
 0x134   :  { %v8607_v61 = vpop.f32.mrb[44].mxu1  ;;  %v4006_v45 = vadd.f32 1.0, %v6225_v21  ;;  %v8612_v63 = vpop.f32.mrb[45].mxu0  ;;  %5852 = vmatmul.mubr.msk.f32.gmra.mrb[150].mxu0 %vm348_vm3, %v166_v48  ;;  %6095 = vmatmul.mubr.msk.f32.gmra.mrb[150].mxu1 %vm348_vm3, %v328_v4  ;;  %v3037_v21 = vmul.f32 0.5, %v8466_v3  ;;  %v330_v48 = vld [vmem:[%s11665_s0 + $0x9d8] sm:$0xff]  ;;  %v8637_v3 = vadd.f32 %v8411_v15, %v8255_v41  ;;  %6238 = verf.f32 %v3525_v53 }
 0x135   :  { %11895 = vst [vmem:[#allocation53_spill] sm:$0xff] %v8595_v29  ;;  %v8615_v46 = vpop.f32.mrb[45].mxu1  ;;  %5854 = vmatprep.mubr.msk.f32.mxu0 %vm348_vm3, %v167_v20  ;;  %6097 = vmatprep.mubr.msk.f32.mxu1 %vm348_vm3, %v329_v60  ;;  %v6227_v4 = vpop.eup %6226  ;;  %v169_v20 = vld [vmem:[%s11665_s0 + $0x4d0] sm:$0xff]  ;;  %v331_v60 = vld [vmem:[%s11665_s0 + $0x9e0] sm:$0xff]  ;;  %6240 = verf.f32 %v3362_v25 }
 0x136   :  { %11897 = vst [vmem:[#allocation54_spill] sm:$0xff] %v8615_v46  ;;  %v8631_v16 = vmul.f32 %v4006_v45, %v3034_v57  ;;  %v6229_v29 = vpop.eup %6228  ;;  %v4168_v54 = vadd.f32 1.0, %v6227_v4  ;;  %v8651_v57 = vadd.f32 %v8411_v15, %v8261_v55  ;;  %v3036_v4 = vmul.f32 0.5, %v8525_v51  ;;  %v170_v51 = vld [vmem:[%s11665_s0 + $0x4d8] sm:$0xff]  ;;  %v333_v25 = vld [vmem:[%s11665_s0 + $0x9f0] sm:$0xff] }
 0x137   :  { %v8653_v41 = vpop.f32.mrb[46].mxu0  ;;  %v8655_v45 = vpop.f32.mrb[46].mxu1  ;;  %v4009_v46 = vadd.f32 1.0, %v6229_v29  ;;  %6242 = verf.f32 %v3524_v50  ;;  %v332_v29 = vld [vmem:[%s11665_s0 + $0x9e8] sm:$0xff]  ;;  %v3039_v50 = vmul.f32 0.5, %v8543_v23 }
 0x138   :  { %11899 = vst [vmem:[#allocation55_spill] sm:$0xff] %v8631_v16  ;;  %11900 = vst [vmem:[#allocation56_spill] sm:$0xff] %v8653_v41  ;;  %v6231_v26 = vpop.eup %6230  ;;  %v8660_v53 = vpop.f32.mrb[47].mxu0  ;;  %5855 = vmatmul.mubr.msk.f32.gmra.mrb[152].mxu0 %vm348_vm3, %v168_v38  ;;  %6098 = vmatmul.mubr.msk.f32.gmra.mrb[152].mxu1 %vm348_vm3, %v330_v48  ;;  %v8666_v55 = vmul.f32 %v4168_v54, %v3196_v34  ;;  %v3198_v34 = vmul.f32 0.5, %v8539_v6  ;;  %v171_v54 = vld [vmem:[%s11665_s0 + $0x4e0] sm:$0xff] }
 0x139   :  { %11901 = vst [vmem:[#allocation57_spill] sm:$0xff] %v8655_v45  ;;  %11903 = vst [vmem:[#allocation58_spill] sm:$0xff] %v8660_v53  ;;  %v8663_v9 = vpop.f32.mrb[47].mxu1  ;;  %v4171_v41 = vadd.f32 1.0, %v6231_v26  ;;  %v3365_v45 = vmul.f32 0.70710677, %v8637_v3  ;;  %5857 = vmatprep.mubr.msk.f32.mxu0 %vm348_vm3, %v169_v20  ;;  %6100 = vmatprep.mubr.msk.f32.mxu1 %vm348_vm3, %v331_v60  ;;  %v8677_v38 = vmul.f32 %v4009_v46, %v3037_v21 }
 0x13a   :  { %11904 = vst [vmem:[#allocation59_spill] sm:$0xff] %v8663_v9  ;;  %11905 = vst [vmem:[#allocation60_spill] sm:$0xff] %v8666_v55  ;;  %v3527_v26 = vmul.f32 0.70710677, %v8647_v2  ;;  %v6233_v48 = vpop.eup %6232  ;;  %v11907_v20 = vld [vmem:[#allocation19_spill] sm:$0xff]  ;;  %v11910_v53 = vld [vmem:[#allocation33_spill] sm:$0xff] }
 0x13b   :  { %11906 = vst [vmem:[#allocation61_spill] sm:$0xff] %v8677_v38  ;;  %v8690_v46 = vmul.f32 %v4171_v41, %v3199_v11  ;;  %6244 = verf.f32 %v3365_v45  ;;  %v3364_v6 = vmul.f32 0.70710677, %v8651_v57  ;;  %v8693_v23 = vpop.f32.mrb[48].mxu0  ;;  %v8695_v21 = vpop.f32.mrb[48].mxu1  ;;  %v4008_v9 = vadd.f32 1.0, %v6233_v48 }
 0x13c   :  { %v6235_v24 = vpop.eup %6234  ;;  %6246 = verf.f32 %v3527_v26  ;;  %v8701_v42 = vadd.f32 %v8411_v15, %v11910_v53  ;;  %v8703_v60 = vpop.f32.mrb[49].mxu0  ;;  %5858 = vmatmul.mubr.msk.f32.gmra.mrb[154].mxu0 %vm348_vm3, %v170_v51  ;;  %6101 = vmatmul.mubr.msk.f32.gmra.mrb[154].mxu1 %vm348_vm3, %v332_v29  ;;  %v8713_v26 = vadd.f32 %v8411_v15, %v8300_v5  ;;  %v172_v53 = vld [vmem:[%s11665_s0 + $0x4e8] sm:$0xff]  ;;  %v334_v51 = vld [vmem:[%s11665_s0 + $0x9f8] sm:$0xff]  ;;  %v3200_v38 = vmul.f32 0.5, %v8603_v59 }
 0x13d   :  { %11908 = vst [vmem:[#allocation19_spill] sm:$0xff] %v8690_v46  ;;  %v8706_v11 = vpop.f32.mrb[49].mxu1  ;;  %v4170_v55 = vadd.f32 1.0, %v6235_v24  ;;  %6248 = verf.f32 %v3364_v6  ;;  %5860 = vmatprep.mubr.msk.f32.mxu0 %vm348_vm3, %v171_v54  ;;  %6103 = vmatprep.mubr.msk.f32.mxu1 %vm348_vm3, %v333_v25  ;;  %v6237_v29 = vpop.eup %6236  ;;  %v8723_v48 = vmul.f32 %v4008_v9, %v3036_v4  ;;  %v3201_v24 = vmul.f32 0.5, %v8585_v52  ;;  %v173_v25 = vld [vmem:[%s11665_s0 + $0x4f0] sm:$0xff]  ;;  %v335_v6 = vld [vmem:[%s11665_s0 + $0xa00] sm:$0xff] }
 0x13e   :  { %11911 = vst [vmem:[#allocation33_spill] sm:$0xff] %v8706_v11  ;;  %v3526_v5 = vmul.f32 0.70710677, %v8701_v42  ;;  %v8729_v54 = vadd.f32 %v8411_v15, %v8302_v35  ;;  %v4011_v4 = vadd.f32 1.0, %v6237_v29  ;;  %v3038_v9 = vmul.f32 0.5, %v8599_v12  ;;  %v6239_v12 = vpop.eup %6238 }
 0x13f   :  { %11913 = vst [vmem:[#allocation62_spill] sm:$0xff] %v8723_v48  ;;  %v8737_v45 = vmul.f32 %v4170_v55, %v3198_v34  ;;  %v3367_v52 = vmul.f32 0.70710677, %v8713_v26  ;;  %v8741_v30 = vpop.f32.mrb[50].mxu0  ;;  %v8743_v46 = vpop.f32.mrb[50].mxu1  ;;  %v8761_v59 = vadd.f32 %v8411_v15, %v8314_v1  ;;  %v8777_v1 = vadd.f32 %v8411_v15, %v8350_v40 }
 0x140   :  { %11915 = vst [vmem:[#allocation64_spill] sm:$0xff] %v8743_v46  ;;  %6250 = verf.f32 %v3526_v5  ;;  %v3529_v16 = vmul.f32 0.70710677, %v8729_v54  ;;  %v8749_v11 = vpop.f32.mrb[51].mxu0  ;;  %5861 = vmatmul.mubr.msk.f32.gmra.mrb[156].mxu0 %vm348_vm3, %v172_v53  ;;  %v8752_v55 = vpop.f32.mrb[51].mxu1  ;;  %6104 = vmatmul.mubr.msk.f32.gmra.mrb[156].mxu1 %vm348_vm3, %v334_v51  ;;  %v8757_v46 = vmul.f32 %v4011_v4, %v3039_v50  ;;  %v174_v53 = vld [vmem:[%s11665_s0 + $0x4f8] sm:$0xff]  ;;  %v8773_v4 = vadd.f32 %v8411_v15, %v8317_v17 }
 0x141   :  { %11914 = vst [vmem:[#allocation63_spill] sm:$0xff] %v8737_v45  ;;  %11917 = vst [vmem:[#allocation65_spill] sm:$0xff] %v8749_v11  ;;  %6252 = verf.f32 %v3367_v52  ;;  %5863 = vmatprep.mubr.msk.f32.mxu0 %vm348_vm3, %v173_v25  ;;  %6106 = vmatprep.mubr.msk.f32.mxu1 %vm348_vm3, %v335_v6  ;;  %v336_v51 = vld [vmem:[%s11665_s0 + $0xa08] sm:$0xff]  ;;  %v6241_v5 = vpop.eup %6240  ;;  %v4173_v50 = vadd.f32 1.0, %v6239_v12  ;;  %v175_v25 = vld [vmem:[%s11665_s0 + $0x500] sm:$0xff]  ;;  %v3041_v17 = vmul.f32 0.5, %v8637_v3 }
 0x142   :  { %11918 = vst [vmem:[#allocation66_spill] sm:$0xff] %v8752_v55  ;;  %6254 = verf.f32 %v3529_v16  ;;  %v337_v6 = vld [vmem:[%s11665_s0 + $0xa10] sm:$0xff]  ;;  %v6243_v52 = vpop.eup %6242  ;;  %v11920_v12 = vld [vmem:[#allocation24_spill] sm:$0xff]  ;;  %v4010_v29 = vadd.f32 1.0, %v6241_v5  ;;  %v3366_v41 = vmul.f32 0.70710677, %v8761_v59 }
 0x143   :  { %v8789_v55 = vpop.f32.mrb[52].mxu0  ;;  %v8791_v40 = vpop.f32.mrb[52].mxu1  ;;  %v8793_v45 = vmul.f32 %v4173_v50, %v3201_v24  ;;  %v4172_v34 = vadd.f32 1.0, %v6243_v52  ;;  %v3203_v11 = vmul.f32 0.5, %v8647_v2  ;;  %v3528_v48 = vmul.f32 0.70710677, %v8773_v4 }
 0x144   :  { %11921 = vst [vmem:[#allocation24_spill] sm:$0xff] %v8789_v55  ;;  %11922 = vst [vmem:[#allocation67_spill] sm:$0xff] %v8791_v40  ;;  %v8797_v35 = vpop.f32.mrb[53].mxu0  ;;  %5864 = vmatmul.mubr.msk.f32.gmra.mrb[158].mxu0 %vm348_vm3, %v174_v53  ;;  %v8800_v5 = vpop.f32.mrb[53].mxu1  ;;  %6107 = vmatmul.mubr.msk.f32.gmra.mrb[158].mxu1 %vm348_vm3, %v336_v51  ;;  %v8803_v16 = vmul.f32 %v4010_v29, %v3038_v9  ;;  %v3040_v40 = vmul.f32 0.5, %v8651_v57  ;;  %6256 = verf.f32 %v3366_v41  ;;  %v176_v2 = vld [vmem:[%s11665_s0 + $0x508] sm:$0xff] }
 0x145   :  { %11923 = vst [vmem:[#allocation68_spill] sm:$0xff] %v8797_v35  ;;  %11924 = vst [vmem:[#allocation69_spill] sm:$0xff] %v8800_v5  ;;  %v6245_v3 = vpop.eup %6244  ;;  %v3369_v24 = vmul.f32 0.70710677, %v8777_v1  ;;  %5866 = vmatprep.mubr.msk.f32.mxu0 %vm348_vm3, %v175_v25  ;;  %6109 = vmatprep.mubr.msk.f32.mxu1 %vm348_vm3, %v337_v6  ;;  %v338_v53 = vld [vmem:[%s11665_s0 + $0xa18] sm:$0xff]  ;;  %v11925_v9 = vld [vmem:[#allocation25_spill] sm:$0xff]  ;;  %v8817_v57 = vmul.f32 %v4172_v34, %v3200_v38  ;;  %6258 = verf.f32 %v3528_v48 }
 0x146   :  { %v6247_v51 = vpop.eup %6246  ;;  %v4013_v41 = vadd.f32 1.0, %v6245_v3  ;;  %v11927_v25 = vld [vmem:[#allocation26_spill] sm:$0xff]  ;;  %v8823_v5 = vadd.f32 %v8411_v15, %v8352_v8  ;;  %v11930_v29 = vld [vmem:[#allocation27_spill] sm:$0xff]  ;;  %v8835_v3 = vadd.f32 %v8411_v15, %v8365_v14  ;;  %v3202_v6 = vmul.f32 0.5, %v8701_v42 }
 0x147   :  { %11926 = vst [vmem:[#allocation25_spill] sm:$0xff] %v8817_v57  ;;  %v6249_v50 = vpop.eup %6248  ;;  %v4175_v52 = vadd.f32 1.0, %v6247_v51  ;;  %6260 = verf.f32 %v3369_v24  ;;  %v8825_v35 = vpop.f32.mrb[54].mxu0  ;;  %v8879_v42 = vadd.f32 %v8411_v15, %v8402_v13  ;;  %v8895_v13 = vadd.f32 %v8411_v15, %v8420_v47  ;;  %v11949_v47 = vld [vmem:[#allocation34_spill] sm:$0xff] }
 0x148   :  { %11928 = vst [vmem:[#allocation26_spill] sm:$0xff] %v8825_v35  ;;  %v8827_v55 = vpop.f32.mrb[54].mxu1  ;;  %v8831_v34 = vmul.f32 %v4013_v41, %v3041_v17  ;;  %v4012_v48 = vadd.f32 1.0, %v6249_v50  ;;  %v8837_v51 = vpop.f32.mrb[55].mxu0  ;;  %5867 = vmatmul.mubr.msk.f32.gmra.mrb[160].mxu0 %vm348_vm3, %v176_v2  ;;  %6110 = vmatmul.mubr.msk.f32.gmra.mrb[160].mxu1 %vm348_vm3, %v338_v53  ;;  %v3531_v17 = vmul.f32 0.70710677, %v8823_v5  ;;  %v8849_v41 = vadd.f32 %v8411_v15, %v8368_v33 }
 0x149   :  { %11929 = vst [vmem:[#allocation70_spill] sm:$0xff] %v8827_v55  ;;  %11932 = vst [vmem:[#allocation71_spill] sm:$0xff] %v8837_v51  ;;  %v8840_v8 = vpop.f32.mrb[55].mxu1  ;;  %v8843_v24 = vmul.f32 %v4175_v52, %v3203_v11  ;;  %v3043_v2 = vmul.f32 0.5, %v8713_v26  ;;  %v3368_v53 = vmul.f32 0.70710677, %v8835_v3 }
 0x14a   :  { %11931 = vst [vmem:[#allocation27_spill] sm:$0xff] %v8831_v34  ;;  %11933 = vst [vmem:[#allocation72_spill] sm:$0xff] %v8840_v8  ;;  %v6251_v14 = vpop.eup %6250  ;;  %v8853_v51 = vmul.f32 %v4012_v48, %v3040_v40  ;;  %v11935_v52 = vld [vmem:[#allocation29_spill] sm:$0xff]  ;;  %v3205_v55 = vmul.f32 0.5, %v8729_v54  ;;  %6262 = verf.f32 %v3531_v17  ;;  %v11938_v40 = vld [vmem:[#allocation30_spill] sm:$0xff]  ;;  %v8875_v17 = vadd.f32 %v8411_v15, %v8400_v49 }
 0x14b   :  { %v6253_v11 = vpop.eup %6252  ;;  %v4174_v8 = vadd.f32 1.0, %v6251_v14  ;;  %v8860_v33 = vpop.f32.mrb[56].mxu0  ;;  %6264 = verf.f32 %v3368_v53  ;;  %v3530_v26 = vmul.f32 0.70710677, %v8849_v41  ;;  %v3042_v53 = vmul.f32 0.5, %v8761_v59 }
 0x14c   :  { %11936 = vst [vmem:[#allocation29_spill] sm:$0xff] %v8860_v33  ;;  %v8862_v35 = vpop.f32.mrb[56].mxu1  ;;  %v6255_v57 = vpop.eup %6254  ;;  %v4015_v38 = vadd.f32 1.0, %v6253_v11  ;;  %v8886_v11 = vadd.f32 %v8411_v15, %v8417_v28  ;;  %v3371_v49 = vmul.f32 0.70710677, %v8875_v17  ;;  %v11946_v28 = vld [vmem:[#allocation32_spill] sm:$0xff] }
 0x14d   :  { %11937 = vst [vmem:[#allocation73_spill] sm:$0xff] %v8862_v35  ;;  %v8867_v34 = vpop.f32.mrb[57].mxu0  ;;  %v8869_v50 = vpop.f32.mrb[57].mxu1  ;;  %v8871_v14 = vmul.f32 %v4174_v8, %v3202_v6  ;;  %v4177_v54 = vadd.f32 1.0, %v6255_v57  ;;  %6266 = verf.f32 %v3530_v26  ;;  %v3204_v35 = vmul.f32 0.5, %v8773_v4 }
 0x14e   :  { %11939 = vst [vmem:[#allocation30_spill] sm:$0xff] %v8867_v34  ;;  %11940 = vst [vmem:[#allocation74_spill] sm:$0xff] %v8869_v50  ;;  %v8881_v48 = vmul.f32 %v4015_v38, %v3043_v2  ;;  %v6257_v6 = vpop.eup %6256  ;;  %6268 = verf.f32 %v3371_v49  ;;  %v3370_v4 = vmul.f32 0.70710677, %v8886_v11 }
 0x14f   :  { %11941 = vst [vmem:[#allocation75_spill] sm:$0xff] %v8871_v14  ;;  %v8890_v50 = vmul.f32 %v4177_v54, %v3205_v55  ;;  %v8897_v38 = vpop.f32.mrb[58].mxu0  ;;  %v8899_v59 = vpop.f32.mrb[58].mxu1  ;;  %v4014_v34 = vadd.f32 1.0, %v6257_v6  ;;  %v3533_v55 = vmul.f32 0.70710677, %v8879_v42 }
 0x150   :  { %11942 = vst [vmem:[#allocation76_spill] sm:$0xff] %v8881_v48  ;;  %11944 = vst [vmem:[#allocation77_spill] sm:$0xff] %v8897_v38  ;;  %v6259_v2 = vpop.eup %6258  ;;  %v8905_v54 = vpop.f32.mrb[59].mxu0  ;;  %v8921_v48 = vadd.f32 %v8411_v15, %v8457_v27  ;;  %v3044_v14 = vmul.f32 0.5, %v8835_v3  ;;  %v8951_v3 = vadd.f32 %v8411_v15, %v8475_v22 }
 0x151   :  { %11945 = vst [vmem:[#allocation78_spill] sm:$0xff] %v8899_v59  ;;  %11947 = vst [vmem:[#allocation32_spill] sm:$0xff] %v8905_v54  ;;  %v8907_v8 = vpop.f32.mrb[59].mxu1  ;;  %v6261_v33 = vpop.eup %6260  ;;  %v4176_v38 = vadd.f32 1.0, %v6259_v2  ;;  %v3045_v59 = vmul.f32 0.5, %v8777_v1  ;;  %v8912_v57 = vmul.f32 %v4014_v34, %v3042_v53  ;;  %6270 = verf.f32 %v3533_v55  ;;  %v11953_v34 = vld [vmem:[#allocation35_spill] sm:$0xff] }
 0x152   :  { %11948 = vst [vmem:[#allocation79_spill] sm:$0xff] %v8907_v8  ;;  %v4017_v26 = vadd.f32 1.0, %v6261_v33  ;;  %v3207_v54 = vmul.f32 0.5, %v8823_v5  ;;  %v3532_v8 = vmul.f32 0.70710677, %v8895_v13  ;;  %6272 = verf.f32 %v3370_v4 }
 0x153   :  { %v8915_v6 = vmul.f32 %v4176_v38, %v3204_v35  ;;  %v8923_v2 = vpop.f32.mrb[60].mxu0  ;;  %v8925_v1 = vpop.f32.mrb[60].mxu1  ;;  %v8933_v35 = vadd.f32 %v8411_v15, %v8459_v32  ;;  %v11957_v38 = vld [vmem:[#allocation36_spill] sm:$0xff]  ;;  %v3373_v33 = vmul.f32 0.70710677, %v8921_v48  ;;  %v3206_v32 = vmul.f32 0.5, %v8849_v41 }
 0x154   :  { %11951 = vst [vmem:[#allocation80_spill] sm:$0xff] %v8923_v2  ;;  %11952 = vst [vmem:[#allocation81_spill] sm:$0xff] %v8925_v1  ;;  %v8929_v53 = vmul.f32 %v4017_v26, %v3045_v59  ;;  %v8935_v5 = vpop.f32.mrb[61].mxu0  ;;  %v8937_v49 = vpop.f32.mrb[61].mxu1  ;;  %6274 = verf.f32 %v3532_v8  ;;  %v11958_v26 = vld [vmem:[#allocation37_spill] sm:$0xff]  ;;  %v8961_v41 = vadd.f32 %v8411_v15, %v8506_v7  ;;  %v3209_v7 = vmul.f32 0.5, %v8879_v42 }
 0x155   :  { %11950 = vst [vmem:[#allocation34_spill] sm:$0xff] %v8915_v6  ;;  %11955 = vst [vmem:[#allocation82_spill] sm:$0xff] %v8935_v5  ;;  %v6263_v27 = vpop.eup %6262  ;;  %v3535_v5 = vmul.f32 0.70710677, %v8933_v35  ;;  %6276 = verf.f32 %v3373_v33  ;;  %v8965_v33 = vadd.f32 %v8411_v15, %v8508_v58  ;;  %v3534_v58 = vmul.f32 0.70710677, %v8951_v3 }
 0x156   :  { %11954 = vst [vmem:[#allocation35_spill] sm:$0xff] %v8929_v53  ;;  %11956 = vst [vmem:[#allocation83_spill] sm:$0xff] %v8937_v49  ;;  %v6265_v59 = vpop.eup %6264  ;;  %v4179_v1 = vadd.f32 1.0, %v6263_v27  ;;  %v1582_v49 = vadd.f32 %v8411_v15, %v8472_v36  ;;  %v3208_v42 = vmul.f32 0.5, %v8895_v13  ;;  %v9002_v13 = vadd.f32 %v8411_v15, %v8516_v19 }
 0x157   :  { %v4016_v2 = vadd.f32 1.0, %v6265_v59  ;;  %v8953_v8 = vpop.f32.mrb[62].mxu0  ;;  %v8955_v55 = vpop.f32.mrb[62].mxu1  ;;  %6278 = verf.f32 %v3535_v5 }
 0x158   :  { %11959 = vst [vmem:[#allocation36_spill] sm:$0xff] %v8953_v8  ;;  %11960 = vst [vmem:[#allocation37_spill] sm:$0xff] %v8955_v55  ;;  %v6267_v6 = vpop.eup %6266  ;;  %v8957_v4 = vmul.f32 %v4179_v1, %v3207_v54  ;;  %v8967_v36 = vpop.f32.mrb[63].mxu0  ;;  %v3047_v55 = vmul.f32 0.5, %v8875_v17  ;;  %v3372_v54 = vmul.f32 0.70710677, %v1582_v49 }
 0x159   :  { %11962 = vst [vmem:[#allocation85_spill] sm:$0xff] %v8967_v36  ;;  %v8969_v22 = vpop.f32.mrb[63].mxu1  ;;  %v8971_v27 = vmul.f32 %v4016_v2, %v3044_v14  ;;  %v4178_v59 = vadd.f32 1.0, %v6267_v6  ;;  %v3046_v8 = vmul.f32 0.5, %v8886_v11  ;;  %v6269_v53 = vpop.eup %6268  ;;  %v3375_v14 = vmul.f32 0.70710677, %v8961_v41 }
 0x15a   :  { %11961 = vst [vmem:[#allocation84_spill] sm:$0xff] %v8957_v4  ;;  %11963 = vst [vmem:[#allocation86_spill] sm:$0xff] %v8969_v22  ;;  %6280 = verf.f32 %v3372_v54  ;;  %v4019_v5 = vadd.f32 1.0, %v6269_v53  ;;  %v3537_v11 = vmul.f32 0.70710677, %v8965_v33  ;;  %v8998_v54 = vadd.f32 %v8411_v15, %v8513_v39 }
 0x15b   :  { %11964 = vst [vmem:[#allocation87_spill] sm:$0xff] %v8971_v27  ;;  %v8981_v22 = vmul.f32 %v4178_v59, %v3206_v32  ;;  %v8984_v17 = vpop.f32.mrb[64].mxu0  ;;  %v8986_v6 = vpop.f32.mrb[64].mxu1  ;;  %6282 = verf.f32 %v3534_v58  ;;  %v9006_v58 = vadd.f32 %v8411_v15, %v8555_v31  ;;  %v3211_v31 = vmul.f32 0.5, %v8933_v35 }
 0x15c   :  { %11967 = vst [vmem:[#allocation89_spill] sm:$0xff] %v8984_v17  ;;  %11968 = vst [vmem:[#allocation90_spill] sm:$0xff] %v8986_v6  ;;  %v6271_v2 = vpop.eup %6270  ;;  %v8990_v4 = vpop.f32.mrb[65].mxu0  ;;  %6284 = verf.f32 %v3375_v14  ;;  %v4343_v53 = vmul.f32 %v4019_v5, %v3047_v55  ;;  %v3049_v14 = vmul.f32 0.5, %v8921_v48  ;;  %v11973_v55 = vld [vmem:[#allocation5_spill] sm:$0xff]  ;;  %v11974_v5 = vld [vmem:[#allocation39_spill] sm:$0xff] }
 0x15d   :  { %11966 = vst [vmem:[#allocation88_spill] sm:$0xff] %v8981_v22  ;;  %11969 = vst [vmem:[#allocation91_spill] sm:$0xff] %v8990_v4  ;;  %v8992_v1 = vpop.f32.mrb[65].mxu1  ;;  %v4181_v59 = vadd.f32 1.0, %v6271_v2  ;;  %v6273_v36 = vpop.eup %6272  ;;  %6286 = verf.f32 %v3537_v11  ;;  %v3374_v2 = vmul.f32 0.70710677, %v8998_v54  ;;  %v11975_v11 = vmax.f32 %v11973_v55, %v11974_v5 }
 0x15e   :  { %11970 = vst [vmem:[#allocation92_spill] sm:$0xff] %v8992_v1  ;;  %v6275_v1 = vpop.eup %6274  ;;  %v4018_v32 = vadd.f32 1.0, %v6273_v36  ;;  %v3536_v22 = vmul.f32 0.70710677, %v9002_v13  ;;  %v3048_v43 = vmul.f32 0.5, %v1582_v49  ;;  %v11981_v5 = vmax.f32 %v7857_v18, %v8396_v10 }
 0x15f   :  { %v4505_v4 = vmul.f32 %v4181_v59, %v3209_v7  ;;  %v9010_v39 = vpop.f32.mrb[66].mxu0  ;;  %v9012_v6 = vpop.f32.mrb[66].mxu1  ;;  %v9017_v19 = vmax.f32 %v11975_v11, %v4343_v53  ;;  %v4180_v17 = vadd.f32 1.0, %v6275_v1  ;;  %v11978_v59 = vld [vmem:[#allocation6_spill] sm:$0xff]  ;;  %6288 = verf.f32 %v3374_v2 }
 0x160   :  { %11971 = vst [vmem:[#allocation93_spill] sm:$0xff] %v9010_v39  ;;  %11972 = vst [vmem:[#allocation94_spill] sm:$0xff] %v9012_v6  ;;  %v9021_v7 = vpop.f32.mrb[67].mxu0  ;;  %v9023_v36 = vpop.f32.mrb[67].mxu1  ;;  %v11980_v39 = vmax.f32 %v11978_v59, %v11979_v44  ;;  %v4342_v6 = vmul.f32 %v4018_v32, %v3046_v8  ;;  %6290 = verf.f32 %v3536_v22  ;;  %v3377_v35 = vmul.f32 0.70710677, %v9006_v58 }
 0x161   :  { %11976 = vst [vmem:[#allocation5_spill] sm:$0xff] %v9021_v7  ;;  %11977 = vst [vmem:[#allocation39_spill] sm:$0xff] %v9023_v36  ;;  %v6277_v48 = vpop.eup %6276  ;;  %v4504_v55 = vmul.f32 %v4180_v17, %v3208_v42  ;;  %v9038_v44 = vadd.f32 %v8411_v15, %v8557_v0  ;;  %v9042_v49 = vadd.f32 %v8411_v15, %v8563_v62  ;;  %v11984_v22 = vld [vmem:[#allocation7_spill] sm:$0xff]  ;;  %v11985_v17 = vld [vmem:[#allocation42_spill] sm:$0xff] }
 0x162   :  { %v9028_v27 = vmax.f32 %v11980_v39, %v4505_v4  ;;  %v6279_v53 = vpop.eup %6278  ;;  %v4021_v1 = vadd.f32 1.0, %v6277_v48  ;;  %v9034_v11 = vmax.f32 %v11981_v5, %v4342_v6  ;;  %v11986_v42 = vmax.f32 %v11984_v22, %v11985_v17  ;;  %v12034_v7 = vld [vmem:[#allocation16_spill] sm:$0xff] }
 0x163   :  { %v4183_v36 = vadd.f32 1.0, %v6279_v53  ;;  %v9044_v4 = vpop.f32.mrb[68].mxu0  ;;  %v9046_v8 = vpop.f32.mrb[68].mxu1  ;;  %6292 = verf.f32 %v3377_v35  ;;  %v9055_v10 = vadd.f32 %v8411_v15, %v8566_v37  ;;  %v3210_v39 = vmul.f32 0.5, %v8951_v3 }
 0x164   :  { %11982 = vst [vmem:[#allocation6_spill] sm:$0xff] %v9044_v4  ;;  %11983 = vst [vmem:[#allocation40_spill] sm:$0xff] %v9046_v8  ;;  %v9051_v32 = vmax.f32 %v11986_v42, %v4504_v55  ;;  %v4345_v18 = vmul.f32 %v4021_v1, %v3049_v14  ;;  %v9057_v0 = vpop.f32.mrb[69].mxu0  ;;  %v9059_v6 = vpop.f32.mrb[69].mxu1  ;;  %v3051_v48 = vmul.f32 0.5, %v8961_v41  ;;  %v11989_v55 = vld [vmem:[#allocation8_spill] sm:$0xff] }
 0x165   :  { %11987 = vst [vmem:[#allocation7_spill] sm:$0xff] %v9057_v0  ;;  %11988 = vst [vmem:[#allocation42_spill] sm:$0xff] %v9059_v6  ;;  %v6281_v62 = vpop.eup %6280  ;;  %v4507_v2 = vmul.f32 %v4183_v36, %v3211_v31  ;;  %v3539_v59 = vmul.f32 0.70710677, %v9038_v44  ;;  %v11990_v14 = vld [vmem:[#allocation43_spill] sm:$0xff]  ;;  %v3213_v5 = vmul.f32 0.5, %v8965_v33  ;;  %v9083_v33 = vadd.f32 %v8411_v15, %v8605_v56 }
 0x166   :  { %v6283_v53 = vpop.eup %6282  ;;  %v11991_v1 = vmax.f32 %v11989_v55, %v11990_v14  ;;  %v4020_v37 = vadd.f32 1.0, %v6281_v62  ;;  %v3376_v22 = vmul.f32 0.70710677, %v9042_v49  ;;  %v11992_v42 = vld [vmem:[#allocation9_spill] sm:$0xff]  ;;  %v3538_v6 = vmul.f32 0.70710677, %v9055_v10 }
 0x167   :  { %v6285_v17 = vpop.eup %6284  ;;  %v11993_v31 = vld [vmem:[#allocation45_spill] sm:$0xff]  ;;  %v4182_v41 = vadd.f32 1.0, %v6283_v53  ;;  %6294 = verf.f32 %v3539_v59  ;;  %v9077_v0 = vpop.f32.mrb[70].mxu0  ;;  %v3050_v56 = vmul.f32 0.5, %v8998_v54  ;;  %v12009_v54 = vld [vmem:[#allocation48_spill] sm:$0xff] }
 0x168   :  { %v9067_v35 = vmax.f32 %v11991_v1, %v4345_v18  ;;  %v11994_v36 = vmax.f32 %v11992_v42, %v11993_v31  ;;  %11995 = vst [vmem:[#allocation8_spill] sm:$0xff] %v9077_v0  ;;  %v9079_v55 = vpop.f32.mrb[70].mxu1  ;;  %v6287_v18 = vpop.eup %6286  ;;  %v4344_v62 = vmul.f32 %v4020_v37, %v3048_v43  ;;  %v4023_v14 = vadd.f32 1.0, %v6285_v17  ;;  %v11999_v31 = vld [vmem:[#allocation10_spill] sm:$0xff] }
 0x169   :  { %11996 = vst [vmem:[#allocation43_spill] sm:$0xff] %v9079_v55  ;;  %6296 = verf.f32 %v3376_v22  ;;  %v9085_v1 = vpop.f32.mrb[71].mxu0  ;;  %v4506_v53 = vmul.f32 %v4182_v41, %v3210_v39  ;;  %v4185_v59 = vadd.f32 1.0, %v6287_v18  ;;  %v9091_v42 = vadd.f32 %v8411_v15, %v8607_v61  ;;  %v12002_v55 = vld [vmem:[#allocation11_spill] sm:$0xff] }
 0x16a   :  { %v9074_v3 = vmax.f32 %v11994_v36, %v4507_v2  ;;  %11997 = vst [vmem:[#allocation9_spill] sm:$0xff] %v9085_v1  ;;  %v9087_v2 = vpop.f32.mrb[71].mxu1  ;;  %6298 = verf.f32 %v3538_v6  ;;  %v12000_v36 = vld [vmem:[#allocation46_spill] sm:$0xff]  ;;  %v4347_v22 = vmul.f32 %v4023_v14, %v3051_v48  ;;  %v3379_v17 = vmul.f32 0.70710677, %v9083_v33  ;;  %v6289_v1 = vpop.eup %6288  ;;  %v12008_v14 = vld [vmem:[#allocation12_spill] sm:$0xff] }
 0x16b   :  { %11998 = vst [vmem:[#allocation45_spill] sm:$0xff] %v9087_v2  ;;  %v12001_v43 = vmax.f32 %v11999_v31, %v12000_v36  ;;  %v12003_v2 = vld [vmem:[#allocation47_spill] sm:$0xff]  ;;  %v4509_v6 = vmul.f32 %v4185_v59, %v3213_v5  ;;  %v3212_v61 = vmul.f32 0.5, %v9002_v13  ;;  %v3541_v18 = vmul.f32 0.70710677, %v9091_v42  ;;  %v9107_v0 = vpop.f32.mrb[72].mxu0  ;;  %v6291_v48 = vpop.eup %6290 }
 0x16c   :  { %v12004_v39 = vmax.f32 %v12002_v55, %v12003_v2  ;;  %12006 = vst [vmem:[#allocation46_spill] sm:$0xff] %v9107_v0  ;;  %v12010_v31 = vmax.f32 %v12008_v14, %v12009_v54  ;;  %6300 = verf.f32 %v3379_v17  ;;  %v9118_v55 = vadd.f32 %v8411_v15, %v8612_v63  ;;  %v9120_v5 = vpop.f32.mrb[73].mxu0  ;;  %v12014_v2 = vld [vmem:[#allocation13_spill] sm:$0xff]  ;;  %v12018_v14 = vld [vmem:[#allocation54_spill] sm:$0xff]  ;;  %v12028_v0 = vld [vmem:[#allocation51_spill] sm:$0xff] }
 0x16d   :  { %v9096_v37 = vmax.f32 %v12001_v43, %v4344_v62  ;;  %v9109_v62 = vpop.f32.mrb[72].mxu1  ;;  %v4022_v43 = vadd.f32 1.0, %v6289_v1  ;;  %12012 = vst [vmem:[#allocation12_spill] sm:$0xff] %v9120_v5  ;;  %6302 = verf.f32 %v3541_v18  ;;  %v6293_v1 = vpop.eup %6292  ;;  %v3053_v63 = vmul.f32 0.5, %v9006_v58 }
 0x16e   :  { %v9103_v41 = vmax.f32 %v12004_v39, %v4506_v53  ;;  %12007 = vst [vmem:[#allocation11_spill] sm:$0xff] %v9109_v62  ;;  %v9114_v36 = vmax.f32 %v12010_v31, %v4347_v22  ;;  %v9122_v13 = vpop.f32.mrb[73].mxu1  ;;  %v12015_v53 = vld [vmem:[#allocation49_spill] sm:$0xff]  ;;  %v4184_v62 = vadd.f32 1.0, %v6291_v48  ;;  %v9131_v22 = vadd.f32 %v8411_v15, %v12018_v14  ;;  %v12019_v31 = vld [vmem:[#allocation56_spill] sm:$0xff] }
 0x16f   :  { %12013 = vst [vmem:[#allocation48_spill] sm:$0xff] %v9122_v13  ;;  %v12016_v59 = vmax.f32 %v12014_v2, %v12015_v53  ;;  %v4346_v17 = vmul.f32 %v4022_v43, %v3050_v56  ;;  %v3378_v54 = vmul.f32 0.70710677, %v9118_v55  ;;  %v9137_v13 = vadd.f32 %v8411_v15, %v12019_v31  ;;  %v9141_v48 = vpop.f32.mrb[74].mxu0  ;;  %v9143_v53 = vpop.f32.mrb[74].mxu1  ;;  %v12023_v56 = vld [vmem:[#allocation50_spill] sm:$0xff] }
 0x170   :  { %12005 = vst [vmem:[#allocation10_spill] sm:$0xff] %v9103_v41  ;;  %12011 = vst [vmem:[#allocation47_spill] sm:$0xff] %v9114_v36  ;;  %v4508_v5 = vmul.f32 %v4184_v62, %v3212_v61  ;;  %v4025_v2 = vadd.f32 1.0, %v6293_v1  ;;  %v3540_v18 = vmul.f32 0.70710677, %v9131_v22  ;;  %v3052_v14 = vmul.f32 0.5, %v9042_v49 }
 0x171   :  { %v9127_v39 = vmax.f32 %v12016_v59, %v4509_v6  ;;  %v3215_v6 = vmul.f32 0.5, %v9038_v44  ;;  %12020 = vst [vmem:[#allocation49_spill] sm:$0xff] %v9141_v48  ;;  %12021 = vst [vmem:[#allocation54_spill] sm:$0xff] %v9143_v53  ;;  %v12022_v59 = vld [vmem:[#allocation14_spill] sm:$0xff]  ;;  %6304 = verf.f32 %v3378_v54  ;;  %v3381_v31 = vmul.f32 0.70710677, %v9137_v13  ;;  %v6295_v44 = vpop.eup %6294 }
 0x172   :  { %v12024_v43 = vmax.f32 %v12022_v59, %v12023_v56  ;;  %v9152_v61 = vpop.f32.mrb[75].mxu0  ;;  %v9154_v62 = vpop.f32.mrb[75].mxu1  ;;  %v12027_v1 = vld [vmem:[#allocation15_spill] sm:$0xff]  ;;  %v4349_v53 = vmul.f32 %v4025_v2, %v3053_v63  ;;  %6306 = verf.f32 %v3540_v18  ;;  %v12031_v59 = vld [vmem:[#allocation57_spill] sm:$0xff]  ;;  %v4187_v49 = vadd.f32 1.0, %v6295_v44  ;;  %v12032_v54 = vld [vmem:[#allocation58_spill] sm:$0xff] }
 0x173   :  { %12017 = vst [vmem:[#allocation13_spill] sm:$0xff] %v9127_v39  ;;  %12025 = vst [vmem:[#allocation56_spill] sm:$0xff] %v9152_v61  ;;  %v12029_v48 = vmax.f32 %v12027_v1, %v12028_v0  ;;  %v6297_v56 = vpop.eup %6296  ;;  %6308 = verf.f32 %v3381_v31  ;;  %v12033_v61 = vld [vmem:[#allocation59_spill] sm:$0xff]  ;;  %v12035_v0 = vld [vmem:[#allocation52_spill] sm:$0xff]  ;;  %v3214_v2 = vmul.f32 0.5, %v9055_v10  ;;  %v9175_v1 = vpop.f32.mrb[76].mxu0 }
 0x174   :  { %v9148_v58 = vmax.f32 %v12024_v43, %v4346_v17  ;;  %12026 = vst [vmem:[#allocation14_spill] sm:$0xff] %v9154_v62  ;;  %v2437_v17 = vadd.f32 %v8411_v15, %v12031_v59  ;;  %v1622_v43 = vadd.f32 %v8411_v15, %v12032_v54  ;;  %v9167_v62 = vadd.f32 %v8411_v15, %v12033_v61  ;;  %v6299_v4 = vpop.eup %6298  ;;  %v9177_v31 = vpop.f32.mrb[76].mxu1  ;;  %v12191_v39 = vld [vmem:[#allocation91_spill] sm:$0xff] }
 0x175   :  { %v9159_v8 = vmax.f32 %v12029_v48, %v4508_v5  ;;  %v12036_v5 = vmax.f32 %v12034_v7, %v12035_v0  ;;  %v4024_v63 = vadd.f32 1.0, %v6297_v56  ;;  %12038 = vst [vmem:[#allocation51_spill] sm:$0xff] %v9175_v1  ;;  %12039 = vst [vmem:[#allocation57_spill] sm:$0xff] %v9177_v31  ;;  %v4511_v44 = vmul.f32 %v4187_v49, %v3215_v6  ;;  %v9180_v61 = vpop.f32.mrb[77].mxu0  ;;  %v12042_v0 = vld [vmem:[#allocation17_spill] sm:$0xff]  ;;  %v12047_v49 = vld [vmem:[#allocation55_spill] sm:$0xff] }
 0x176   :  { %v3543_v18 = vmul.f32 0.70710677, %v2437_v17  ;;  %v4186_v59 = vadd.f32 1.0, %v6299_v4  ;;  %v3055_v54 = vmul.f32 0.5, %v9083_v33  ;;  %v3380_v15 = vmul.f32 0.70710677, %v1622_v43  ;;  %v6301_v56 = vpop.eup %6300 }
 0x177   :  { %12030 = vst [vmem:[#allocation50_spill] sm:$0xff] %v9159_v8  ;;  %v9172_v48 = vmax.f32 %v12036_v5, %v4349_v53  ;;  %12040 = vst [vmem:[#allocation58_spill] sm:$0xff] %v9180_v61  ;;  %v9182_v8 = vpop.f32.mrb[77].mxu1  ;;  %v4348_v7 = vmul.f32 %v4024_v63, %v3052_v14  ;;  %v3217_v53 = vmul.f32 0.5, %v9091_v42  ;;  %v3542_v10 = vmul.f32 0.70710677, %v9167_v62  ;;  %v6303_v42 = vpop.eup %6302 }
 0x178   :  { %12041 = vst [vmem:[#allocation59_spill] sm:$0xff] %v9182_v8  ;;  %6310 = verf.f32 %v3543_v18  ;;  %v12043_v5 = vld [vmem:[#allocation53_spill] sm:$0xff]  ;;  %v4510_v4 = vmul.f32 %v4186_v59, %v3214_v2  ;;  %v12046_v14 = vld [vmem:[#allocation18_spill] sm:$0xff]  ;;  %v4027_v8 = vadd.f32 1.0, %v6301_v56  ;;  %v12052_v59 = vld [vmem:[#allocation60_spill] sm:$0xff] }
 0x179   :  { %12037 = vst [vmem:[#allocation15_spill] sm:$0xff] %v9172_v48  ;;  %v12044_v1 = vmax.f32 %v12042_v0, %v12043_v5  ;;  %6312 = verf.f32 %v3380_v15  ;;  %v9194_v33 = vld [vmem:[%s11667_s2] ss:$0 sm:$0xff]  ;;  %v12048_v63 = vmax.f32 %v12046_v14, %v12047_v49  ;;  %v12053_v15 = vmax.f32 %v11907_v20, %v12052_v59 }
 0x17a   :  { %v1637_v6 = vadd.f32 %v9194_v33, %v8693_v23  ;;  %6314 = verf.f32 %v3542_v10  ;;  %v9205_v2 = vadd.f32 %v9194_v33, %v8695_v21  ;;  %v4189_v0 = vadd.f32 1.0, %v6303_v42  ;;  %v12057_v42 = vld [vmem:[#allocation33_spill] sm:$0xff] }
 0x17b   :  { %v9189_v31 = vmax.f32 %v12044_v1, %v4511_v44  ;;  %v9201_v18 = vmax.f32 %v12048_v63, %v4348_v7  ;;  %v9207_v1 = vpop.f32.mrb[78].mxu0  ;;  %v9209_v44 = vpop.f32.mrb[78].mxu1  ;;  %v9214_v23 = vmax.f32 %v12053_v15, %v4510_v4  ;;  %v3054_v5 = vmul.f32 0.5, %v9118_v55 }
 0x17c   :  { %12050 = vst [vmem:[#allocation17_spill] sm:$0xff] %v9207_v1  ;;  %12051 = vst [vmem:[#allocation53_spill] sm:$0xff] %v9209_v44  ;;  %v3383_v7 = vmul.f32 0.70710677, %v1637_v6  ;;  %v9217_v14 = vpop.f32.mrb[79].mxu0  ;;  %v9219_v10 = vpop.f32.mrb[79].mxu1  ;;  %v4351_v56 = vmul.f32 %v4027_v8, %v3055_v54  ;;  %v9225_v63 = vadd.f32 %v9194_v33, %v8703_v60  ;;  %v4513_v4 = vmul.f32 %v4189_v0, %v3217_v53 }
 0x17d   :  { %12045 = vst [vmem:[#allocation16_spill] sm:$0xff] %v9189_v31  ;;  %12049 = vst [vmem:[#allocation52_spill] sm:$0xff] %v9201_v18  ;;  %v3216_v21 = vmul.f32 0.5, %v9131_v22  ;;  %v3545_v49 = vmul.f32 0.70710677, %v9205_v2  ;;  %v6305_v20 = vpop.eup %6304  ;;  %v9229_v55 = vadd.f32 %v9194_v33, %v12057_v42  ;;  %v9233_v59 = vadd.f32 %v9194_v33, %v8741_v30  ;;  %v12058_v54 = vld [vmem:[#allocation20_spill] sm:$0xff] }
 0x17e   :  { %12054 = vst [vmem:[#allocation18_spill] sm:$0xff] %v9214_v23  ;;  %12055 = vst [vmem:[#allocation55_spill] sm:$0xff] %v9217_v14  ;;  %6316 = verf.f32 %v3383_v7  ;;  %v6307_v8 = vpop.eup %6306  ;;  %v12059_v22 = vld [vmem:[#allocation61_spill] sm:$0xff]  ;;  %v4026_v14 = vadd.f32 1.0, %v6305_v20  ;;  %v3057_v60 = vmul.f32 0.5, %v9137_v13  ;;  %v9241_v53 = vpop.f32.mrb[80].mxu0  ;;  %v9628_v41 = vadd.f32 %v9194_v33, %v12191_v39 }
 0x17f   :  { %12056 = vst [vmem:[#allocation60_spill] sm:$0xff] %v9219_v10  ;;  %v12060_v15 = vmax.f32 %v12058_v54, %v12059_v22  ;;  %6318 = verf.f32 %v3545_v49  ;;  %12062 = vst [vmem:[#allocation20_spill] sm:$0xff] %v9241_v53  ;;  %v9243_v0 = vpop.f32.mrb[80].mxu1  ;;  %v6309_v7 = vpop.eup %6308  ;;  %v12064_v42 = vld [vmem:[#allocation21_spill] sm:$0xff]  ;;  %v12065_v44 = vld [vmem:[#allocation19_spill] sm:$0xff]  ;;  %v4188_v61 = vadd.f32 1.0, %v6307_v8 }
 0x180   :  { %12063 = vst [vmem:[#allocation61_spill] sm:$0xff] %v9243_v0  ;;  %v12066_v1 = vmax.f32 %v12064_v42, %v12065_v44  ;;  %v3219_v23 = vmul.f32 0.5, %v2437_v17  ;;  %v3382_v54 = vmul.f32 0.70710677, %v9225_v63  ;;  %v9253_v20 = vpop.f32.mrb[81].mxu1  ;;  %v4350_v13 = vmul.f32 %v4026_v14, %v3054_v5  ;;  %v12070_v44 = vld [vmem:[#allocation64_spill] sm:$0xff] }
 0x181   :  { %v9238_v10 = vmax.f32 %v12060_v15, %v4351_v56  ;;  %v9251_v56 = vpop.f32.mrb[81].mxu0  ;;  %12069 = vst [vmem:[#allocation95_spill] sm:$0xff] %v9253_v20  ;;  %v4029_v49 = vadd.f32 1.0, %v6309_v7  ;;  %v3056_v22 = vmul.f32 0.5, %v1622_v43  ;;  %v3544_v15 = vmul.f32 0.70710677, %v9229_v55 }
 0x182   :  { %v9248_v30 = vmax.f32 %v12066_v1, %v4513_v4  ;;  %12068 = vst [vmem:[#allocation19_spill] sm:$0xff] %v9251_v56  ;;  %v4512_v0 = vmul.f32 %v4188_v61, %v3216_v21  ;;  %6320 = verf.f32 %v3382_v54  ;;  %v3385_v53 = vmul.f32 0.70710677, %v9233_v59  ;;  %v6311_v17 = vpop.eup %6310  ;;  %v12071_v4 = vld [vmem:[#allocation22_spill] sm:$0xff]  ;;  %v12075_v5 = vld [vmem:[#allocation65_spill] sm:$0xff]  ;;  %v9270_v61 = vpop.f32.mrb[82].mxu0 }
 0x183   :  { %12061 = vst [vmem:[#allocation33_spill] sm:$0xff] %v9238_v10  ;;  %v9259_v1 = vadd.f32 %v9194_v33, %v12070_v44  ;;  %v12072_v8 = vld [vmem:[#allocation62_spill] sm:$0xff]  ;;  %v4353_v20 = vmul.f32 %v4029_v49, %v3057_v60  ;;  %6322 = verf.f32 %v3544_v15  ;;  %v9268_v43 = vadd.f32 %v9194_v33, %v12075_v5  ;;  %12076 = vst [vmem:[#allocation22_spill] sm:$0xff] %v9270_v61  ;;  %v9272_v14 = vpop.f32.mrb[82].mxu1  ;;  %v6313_v21 = vpop.eup %6312  ;;  %v12078_v7 = vld [vmem:[#allocation23_spill] sm:$0xff] }
 0x184   :  { %12067 = vst [vmem:[#allocation21_spill] sm:$0xff] %v9248_v30  ;;  %v12073_v42 = vmax.f32 %v12071_v4, %v12072_v8  ;;  %12077 = vst [vmem:[#allocation62_spill] sm:$0xff] %v9272_v14  ;;  %v12079_v54 = vld [vmem:[#allocation63_spill] sm:$0xff]  ;;  %v4191_v10 = vadd.f32 1.0, %v6311_v17  ;;  %6324 = verf.f32 %v3385_v53  ;;  %v9280_v60 = vpop.f32.mrb[83].mxu0  ;;  %v9282_v49 = vpop.f32.mrb[83].mxu1  ;;  %v12083_v4 = vmax.f32 %v11920_v12, %v8757_v46 }
 0x185   :  { %v12080_v44 = vmax.f32 %v12078_v7, %v12079_v54  ;;  %12081 = vst [vmem:[#allocation65_spill] sm:$0xff] %v9280_v60  ;;  %12082 = vst [vmem:[#allocation23_spill] sm:$0xff] %v9282_v49  ;;  %v6315_v15 = vpop.eup %6314  ;;  %v3059_v5 = vmul.f32 0.5, %v1637_v6  ;;  %v3547_v7 = vmul.f32 0.70710677, %v9259_v1  ;;  %v12085_v49 = vld [vmem:[#allocation24_spill] sm:$0xff] }
 0x186   :  { %v9264_v56 = vmax.f32 %v12073_v42, %v4350_v13  ;;  %v3218_v13 = vmul.f32 0.5, %v9167_v62  ;;  %v9287_v8 = vmax.f32 %v12083_v4, %v4353_v20  ;;  %v4028_v42 = vadd.f32 1.0, %v6313_v21  ;;  %v12084_v62 = vld [vmem:[#allocation66_spill] sm:$0xff]  ;;  %v12086_v46 = vld [vmem:[#allocation67_spill] sm:$0xff]  ;;  %v9303_v6 = vpop.f32.mrb[84].mxu0 }
 0x187   :  { %v9277_v30 = vmax.f32 %v12080_v44, %v4512_v0  ;;  %v4515_v0 = vmul.f32 %v4191_v10, %v3219_v23  ;;  %v4190_v54 = vadd.f32 1.0, %v6315_v15  ;;  %v3384_v17 = vmul.f32 0.70710677, %v9268_v43  ;;  %12087 = vst [vmem:[#allocation63_spill] sm:$0xff] %v9303_v6  ;;  %v9305_v23 = vpop.f32.mrb[84].mxu1 }
 0x188   :  { %12074 = vst [vmem:[#allocation64_spill] sm:$0xff] %v9264_v56  ;;  %v9293_v53 = vadd.f32 %v9194_v33, %v12084_v62  ;;  %v4352_v44 = vmul.f32 %v4028_v42, %v3056_v22  ;;  %6326 = verf.f32 %v3547_v7  ;;  %v9297_v60 = vadd.f32 %v9194_v33, %v12085_v49  ;;  %12088 = vst [vmem:[#allocation66_spill] sm:$0xff] %v9305_v23  ;;  %v6317_v10 = vpop.eup %6316  ;;  %v9313_v49 = vpop.f32.mrb[85].mxu0 }
 0x189   :  { %v9301_v12 = vadd.f32 %v9194_v33, %v12086_v46  ;;  %v12089_v20 = vmax.f32 %v11925_v9, %v8793_v45  ;;  %v4514_v22 = vmul.f32 %v4190_v54, %v3218_v13  ;;  %v3221_v15 = vmul.f32 0.5, %v9205_v2  ;;  %12091 = vst [vmem:[#allocation67_spill] sm:$0xff] %v9313_v49  ;;  %v9315_v4 = vpop.f32.mrb[85].mxu1  ;;  %v6319_v42 = vpop.eup %6318  ;;  %v12095_v9 = vld [vmem:[#allocation25_spill] sm:$0xff] }
 0x18a   :  { %6328 = verf.f32 %v3384_v17  ;;  %12092 = vst [vmem:[#allocation96_spill] sm:$0xff] %v9315_v4  ;;  %v12093_v7 = vmax.f32 %v11927_v25, %v8803_v16  ;;  %v4031_v46 = vadd.f32 1.0, %v6317_v10  ;;  %v3058_v23 = vmul.f32 0.5, %v9225_v63  ;;  %v12097_v25 = vld [vmem:[#allocation68_spill] sm:$0xff]  ;;  %v9336_v63 = vpop.f32.mrb[86].mxu0  ;;  %v9338_v10 = vpop.f32.mrb[86].mxu1 }
 0x18b   :  { %v9310_v21 = vmax.f32 %v12089_v20, %v4515_v0  ;;  %v3546_v45 = vmul.f32 0.70710677, %v9293_v53  ;;  %v12096_v13 = vmax.f32 %v11930_v29, %v12095_v9  ;;  %v4193_v0 = vadd.f32 1.0, %v6319_v42  ;;  %12098 = vst [vmem:[#allocation25_spill] sm:$0xff] %v9336_v63  ;;  %12099 = vst [vmem:[#allocation68_spill] sm:$0xff] %v9338_v10  ;;  %v12100_v42 = vld [vmem:[#allocation69_spill] sm:$0xff] }
 0x18c   :  { %v9320_v62 = vmax.f32 %v12093_v7, %v4352_v44  ;;  %v3220_v54 = vmul.f32 0.5, %v9229_v55  ;;  %v3387_v17 = vmul.f32 0.70710677, %v9297_v60  ;;  %v4355_v20 = vmul.f32 %v4031_v46, %v3059_v5  ;;  %v6321_v29 = vpop.eup %6320  ;;  %v12101_v7 = vld [vmem:[#allocation26_spill] sm:$0xff]  ;;  %v9348_v46 = vpop.f32.mrb[87].mxu0 }
 0x18d   :  { %12090 = vst [vmem:[#allocation24_spill] sm:$0xff] %v9310_v21  ;;  %v9327_v2 = vmax.f32 %v12096_v13, %v4514_v22  ;;  %6330 = verf.f32 %v3546_v45  ;;  %v3549_v16 = vmul.f32 0.70710677, %v9301_v12  ;;  %v9334_v44 = vadd.f32 %v9194_v33, %v12097_v25  ;;  %12102 = vst [vmem:[#allocation69_spill] sm:$0xff] %v9348_v46  ;;  %v9350_v45 = vpop.f32.mrb[87].mxu1  ;;  %v6323_v9 = vpop.eup %6322  ;;  %v12104_v13 = vld [vmem:[#allocation28_spill] sm:$0xff] }
 0x18e   :  { %12094 = vst [vmem:[#allocation97_spill] sm:$0xff] %v9320_v62  ;;  %v4517_v22 = vmul.f32 %v4193_v0, %v3221_v15  ;;  %6332 = verf.f32 %v3387_v17  ;;  %v9342_v55 = vadd.f32 %v9194_v33, %v12100_v42  ;;  %v9346_v5 = vadd.f32 %v9194_v33, %v12101_v7  ;;  %12103 = vst [vmem:[#allocation26_spill] sm:$0xff] %v9350_v45  ;;  %v12105_v25 = vld [vmem:[#allocation27_spill] sm:$0xff]  ;;  %v6325_v17 = vpop.eup %6324 }
 0x18f   :  { %v12106_v63 = vmax.f32 %v12104_v13, %v12105_v25  ;;  %v4030_v15 = vadd.f32 1.0, %v6321_v29  ;;  %v3061_v0 = vmul.f32 0.5, %v9233_v59  ;;  %6334 = verf.f32 %v3549_v16  ;;  %v9367_v29 = vpop.f32.mrb[88].mxu0  ;;  %v9369_v59 = vpop.f32.mrb[88].mxu1 }
 0x190   :  { %v12108_v42 = vmax.f32 %v11935_v52, %v8843_v24  ;;  %v4192_v4 = vadd.f32 1.0, %v6323_v9  ;;  %v3223_v46 = vmul.f32 0.5, %v9259_v1  ;;  %v3386_v45 = vmul.f32 0.70710677, %v9334_v44  ;;  %12110 = vst [vmem:[#allocation98_spill] sm:$0xff] %v9367_v29  ;;  %12111 = vst [vmem:[#allocation99_spill] sm:$0xff] %v9369_v59 }
 0x191   :  { %v9355_v10 = vmax.f32 %v12106_v63, %v4355_v20  ;;  %v4354_v49 = vmul.f32 %v4030_v15, %v3058_v23  ;;  %v4033_v6 = vadd.f32 1.0, %v6325_v17  ;;  %v3060_v20 = vmul.f32 0.5, %v9268_v43  ;;  %v12112_v52 = vld [vmem:[#allocation70_spill] sm:$0xff]  ;;  %v9376_v1 = vpop.f32.mrb[89].mxu0  ;;  %v9378_v23 = vpop.f32.mrb[89].mxu1  ;;  %v12117_v15 = vld [vmem:[#allocation31_spill] sm:$0xff] }
 0x192   :  { %v9361_v7 = vmax.f32 %v12108_v42, %v4517_v22  ;;  %v3548_v63 = vmul.f32 0.70710677, %v9342_v55  ;;  %v4516_v16 = vmul.f32 %v4192_v4, %v3220_v54  ;;  %6336 = verf.f32 %v3386_v45  ;;  %12113 = vst [vmem:[#allocation70_spill] sm:$0xff] %v9376_v1  ;;  %12114 = vst [vmem:[#allocation100_spill] sm:$0xff] %v9378_v23  ;;  %v6327_v9 = vpop.eup %6326  ;;  %v12116_v4 = vld [vmem:[#allocation71_spill] sm:$0xff]  ;;  %v12151_v59 = vld [vmem:[#allocation78_spill] sm:$0xff] }
 0x193   :  { %12107 = vst [vmem:[#allocation28_spill] sm:$0xff] %v9355_v10  ;;  %v3389_v24 = vmul.f32 0.70710677, %v9346_v5  ;;  %v9374_v22 = vadd.f32 %v9194_v33, %v12112_v52  ;;  %v12115_v43 = vmax.f32 %v11938_v40, %v8853_v51  ;;  %v4357_v25 = vmul.f32 %v4033_v6, %v3061_v0  ;;  %v12118_v17 = vld [vmem:[#allocation75_spill] sm:$0xff]  ;;  %v12120_v51 = vld [vmem:[#allocation76_spill] sm:$0xff] }
 0x194   :  { %12109 = vst [vmem:[#allocation27_spill] sm:$0xff] %v9361_v7  ;;  %6338 = verf.f32 %v3548_v63  ;;  %v9387_v54 = vadd.f32 %v9194_v33, %v12116_v4  ;;  %v6329_v45 = vpop.eup %6328  ;;  %v12119_v42 = vmax.f32 %v12117_v15, %v12118_v17  ;;  %v4195_v1 = vadd.f32 1.0, %v6327_v9  ;;  %v9404_v4 = vpop.f32.mrb[90].mxu1  ;;  %v12125_v15 = vld [vmem:[#allocation72_spill] sm:$0xff] }
 0x195   :  { %v9383_v13 = vmax.f32 %v12115_v43, %v4354_v49  ;;  %v3222_v23 = vmul.f32 0.5, %v9293_v53  ;;  %6340 = verf.f32 %v3389_v24  ;;  %v12121_v40 = vmax.f32 %v11946_v28, %v12120_v51  ;;  %v9402_v43 = vpop.f32.mrb[90].mxu0  ;;  %12124 = vst [vmem:[#allocation75_spill] sm:$0xff] %v9404_v4  ;;  %v12126_v24 = vld [vmem:[#allocation29_spill] sm:$0xff] }
 0x196   :  { %v9392_v52 = vmax.f32 %v12119_v42, %v4516_v16  ;;  %v4032_v6 = vadd.f32 1.0, %v6329_v45  ;;  %v3063_v0 = vmul.f32 0.5, %v9297_v60  ;;  %v3551_v63 = vmul.f32 0.70710677, %v9374_v22  ;;  %12123 = vst [vmem:[#allocation31_spill] sm:$0xff] %v9402_v43  ;;  %v9417_v60 = vpop.f32.mrb[91].mxu1 }
 0x197   :  { %v9398_v49 = vmax.f32 %v12121_v40, %v4357_v25  ;;  %v4519_v16 = vmul.f32 %v4195_v1, %v3223_v46  ;;  %v3388_v9 = vmul.f32 0.70710677, %v9387_v54  ;;  %v9409_v53 = vadd.f32 %v9194_v33, %v12125_v15  ;;  %v9415_v25 = vpop.f32.mrb[91].mxu0  ;;  %12128 = vst [vmem:[#allocation72_spill] sm:$0xff] %v9417_v60  ;;  %v6331_v45 = vpop.eup %6330  ;;  %v12129_v46 = vld [vmem:[#allocation73_spill] sm:$0xff] }
 0x198   :  { %v9413_v28 = vadd.f32 %v9194_v33, %v12126_v24  ;;  %12127 = vst [vmem:[#allocation76_spill] sm:$0xff] %v9415_v25  ;;  %v4356_v17 = vmul.f32 %v4032_v6, %v3060_v20  ;;  %v3225_v42 = vmul.f32 0.5, %v9301_v12  ;;  %6342 = verf.f32 %v3551_v63  ;;  %v6333_v51 = vpop.eup %6332  ;;  %v12132_v25 = vld [vmem:[#allocation30_spill] sm:$0xff] }
 0x199   :  { %12122 = vst [vmem:[#allocation71_spill] sm:$0xff] %v9398_v49  ;;  %v9422_v1 = vadd.f32 %v9194_v33, %v12129_v46  ;;  %v12130_v40 = vmax.f32 %v11949_v47, %v8890_v50  ;;  %v4194_v24 = vadd.f32 1.0, %v6331_v45  ;;  %6344 = verf.f32 %v3388_v9  ;;  %v6335_v20 = vpop.eup %6334  ;;  %v9440_v50 = vpop.f32.mrb[92].mxu0 }
 0x19a   :  { %v9431_v60 = vadd.f32 %v9194_v33, %v12132_v25  ;;  %v12133_v12 = vmax.f32 %v11953_v34, %v8912_v57  ;;  %v4035_v63 = vadd.f32 1.0, %v6333_v51  ;;  %v3062_v46 = vmul.f32 0.5, %v9334_v44  ;;  %12134 = vst [vmem:[#allocation73_spill] sm:$0xff] %v9440_v50  ;;  %v9442_v47 = vpop.f32.mrb[92].mxu1 }
 0x19b   :  { %v9427_v15 = vmax.f32 %v12130_v40, %v4519_v16  ;;  %v3550_v4 = vmul.f32 0.70710677, %v9409_v53  ;;  %12135 = vst [vmem:[#allocation30_spill] sm:$0xff] %v9442_v47  ;;  %v4518_v16 = vmul.f32 %v4194_v24, %v3222_v23  ;;  %v4197_v9 = vadd.f32 1.0, %v6335_v20  ;;  %v9446_v40 = vpop.f32.mrb[93].mxu0  ;;  %v9448_v57 = vpop.f32.mrb[93].mxu1 }
 0x19c   :  { %v9436_v6 = vmax.f32 %v12133_v12, %v4356_v17  ;;  %v3224_v25 = vmul.f32 0.5, %v9342_v55  ;;  %v3391_v45 = vmul.f32 0.70710677, %v9413_v28  ;;  %12136 = vst [vmem:[#allocation101_spill] sm:$0xff] %v9446_v40  ;;  %12137 = vst [vmem:[#allocation102_spill] sm:$0xff] %v9448_v57  ;;  %v4359_v34 = vmul.f32 %v4035_v63, %v3063_v0  ;;  %v6337_v51 = vpop.eup %6336  ;;  %v12138_v12 = vld [vmem:[#allocation34_spill] sm:$0xff] }
 0x19d   :  { %12131 = vst [vmem:[#allocation29_spill] sm:$0xff] %v9427_v15  ;;  %v3065_v17 = vmul.f32 0.5, %v9346_v5  ;;  %6346 = verf.f32 %v3550_v4  ;;  %v3553_v44 = vmul.f32 0.70710677, %v9422_v1  ;;  %v12139_v47 = vmax.f32 %v11957_v38, %v12138_v12  ;;  %v12140_v40 = vld [vmem:[#allocation35_spill] sm:$0xff]  ;;  %v12142_v4 = vld [vmem:[#allocation74_spill] sm:$0xff] }
 0x19e   :  { %v4521_v24 = vmul.f32 %v4197_v9, %v3225_v42  ;;  %6348 = verf.f32 %v3391_v45  ;;  %v3390_v55 = vmul.f32 0.70710677, %v9431_v60  ;;  %v6339_v20 = vpop.eup %6338  ;;  %v12141_v57 = vmax.f32 %v11958_v26, %v12140_v40  ;;  %v9465_v50 = vpop.f32.mrb[94].mxu0  ;;  %v12145_v42 = vld [vmem:[#allocation38_spill] sm:$0xff]  ;;  %v12149_v26 = vld [vmem:[#allocation77_spill] sm:$0xff] }
 0x19f   :  { %v9455_v23 = vmax.f32 %v12139_v47, %v4518_v16  ;;  %v4034_v5 = vadd.f32 1.0, %v6337_v51  ;;  %6350 = verf.f32 %v3553_v44  ;;  %v2482_v63 = vadd.f32 %v9194_v33, %v12142_v4  ;;  %12143 = vst [vmem:[#allocation34_spill] sm:$0xff] %v9465_v50  ;;  %v9467_v38 = vpop.f32.mrb[94].mxu1  ;;  %v6341_v47 = vpop.eup %6340  ;;  %v12146_v16 = vld [vmem:[#allocation84_spill] sm:$0xff] }
 0x1a0   :  { %v9461_v0 = vmax.f32 %v12141_v57, %v4359_v34  ;;  %12144 = vst [vmem:[#allocation35_spill] sm:$0xff] %v9467_v38  ;;  %v12147_v9 = vmax.f32 %v12145_v42, %v12146_v16  ;;  %v4196_v12 = vadd.f32 1.0, %v6339_v20  ;;  %6352 = verf.f32 %v3390_v55  ;;  %v9476_v57 = vpop.f32.mrb[95].mxu0  ;;  %v9484_v20 = vpop.f32.mrb[95].mxu1  ;;  %v12153_v42 = vld [vmem:[#allocation41_spill] sm:$0xff]  ;;  %v12154_v16 = vld [vmem:[#allocation87_spill] sm:$0xff] }
 0x1a1   :  { %v1687_v40 = vadd.f32 %v9194_v33, %v12149_v26  ;;  %12150 = vst [vmem:[#allocation38_spill] sm:$0xff] %v9476_v57  ;;  %v4358_v34 = vmul.f32 %v4034_v5, %v3062_v46  ;;  %v4037_v44 = vadd.f32 1.0, %v6341_v47  ;;  %v3227_v51 = vmul.f32 0.5, %v9374_v22  ;;  %12152 = vst [vmem:[#allocation84_spill] sm:$0xff] %v9484_v20  ;;  %v12156_v22 = vld [vmem:[#allocation32_spill] sm:$0xff] }
 0x1a2   :  { %v9472_v45 = vmax.f32 %v12147_v9, %v4521_v24  ;;  %v3552_v4 = vmul.f32 0.70710677, %v2482_v63  ;;  %v4520_v50 = vmul.f32 %v4196_v12, %v3224_v25  ;;  %v3064_v38 = vmul.f32 0.5, %v9387_v54  ;;  %v6343_v55 = vpop.eup %6342  ;;  %v12157_v5 = vld [vmem:[#allocation44_spill] sm:$0xff] }
 0x1a3   :  { %v3393_v43 = vmul.f32 0.70710677, %v1687_v40  ;;  %v9482_v24 = vadd.f32 %v9194_v33, %v12151_v59  ;;  %v12155_v9 = vmax.f32 %v12153_v42, %v12154_v16  ;;  %v9491_v46 = vmul.f32 %v4037_v44, %v3065_v17  ;;  %v6345_v54 = vpop.eup %6344  ;;  %v12158_v47 = vld [vmem:[#allocation88_spill] sm:$0xff] }
 0x1a4   :  { %12148 = vst [vmem:[#allocation74_spill] sm:$0xff] %v9472_v45  ;;  %6354 = verf.f32 %v3552_v4  ;;  %v9495_v25 = vadd.f32 %v9194_v33, %v12156_v22  ;;  %v12159_v59 = vmax.f32 %v12157_v5, %v12158_v47  ;;  %v4199_v20 = vadd.f32 1.0, %v6343_v55  ;;  %v12162_v22 = vld [vmem:[#allocation80_spill] sm:$0xff] }
 0x1a5   :  { %v9489_v26 = vmax.f32 %v12155_v9, %v4358_v34  ;;  %v3226_v57 = vmul.f32 0.5, %v9409_v53  ;;  %6356 = verf.f32 %v3393_v43  ;;  %v4036_v17 = vadd.f32 1.0, %v6345_v54  ;;  %v12161_v9 = vld [vmem:[#allocation79_spill] sm:$0xff]  ;;  %v9516_v43 = vpop.f32.mrb[96].mxu0  ;;  %v9518_v53 = vpop.f32.mrb[96].mxu1 }
 0x1a6   :  { %v9500_v12 = vmax.f32 %v12159_v59, %v4520_v50  ;;  %v3067_v44 = vmul.f32 0.5, %v9413_v28  ;;  %v3555_v4 = vmul.f32 0.70710677, %v9482_v24  ;;  %v9507_v42 = vmul.f32 %v4199_v20, %v3227_v51  ;;  %12163 = vst [vmem:[#allocation78_spill] sm:$0xff] %v9516_v43  ;;  %12164 = vst [vmem:[#allocation41_spill] sm:$0xff] %v9518_v53  ;;  %v12165_v51 = vld [vmem:[#allocation81_spill] sm:$0xff] }
 0x1a7   :  { %v3392_v16 = vmul.f32 0.70710677, %v9495_v25  ;;  %v2492_v50 = vadd.f32 %v9194_v33, %v12161_v9  ;;  %v9514_v55 = vadd.f32 %v9194_v33, %v12162_v22  ;;  %v6347_v54 = vpop.eup %6346  ;;  %v9520_v5 = vmul.f32 %v4036_v17, %v3064_v38  ;;  %v9530_v34 = vpop.f32.mrb[97].mxu0 }
 0x1a8   :  { %12160 = vst [vmem:[#allocation77_spill] sm:$0xff] %v9500_v12  ;;  %v3229_v28 = vmul.f32 0.5, %v9422_v1  ;;  %6358 = verf.f32 %v3555_v4  ;;  %v9525_v20 = vadd.f32 %v9194_v33, %v12165_v51  ;;  %v6349_v47 = vpop.eup %6348  ;;  %v4198_v9 = vadd.f32 1.0, %v6347_v54  ;;  %12166 = vst [vmem:[#allocation87_spill] sm:$0xff] %v9530_v34  ;;  %v9532_v53 = vpop.f32.mrb[97].mxu1  ;;  %v12168_v51 = vld [vmem:[#allocation82_spill] sm:$0xff] }
 0x1a9   :  { %v3066_v22 = vmul.f32 0.5, %v9431_v60  ;;  %6360 = verf.f32 %v3392_v16  ;;  %12167 = vst [vmem:[#allocation32_spill] sm:$0xff] %v9532_v53  ;;  %v6351_v38 = vpop.eup %6350  ;;  %v4039_v17 = vadd.f32 1.0, %v6349_v47  ;;  %v3554_v4 = vmul.f32 0.70710677, %v2492_v50 }
 0x1aa   :  { %v9538_v43 = vadd.f32 %v9194_v33, %v12168_v51  ;;  %v6353_v29 = vpop.eup %6352  ;;  %v9540_v59 = vmul.f32 %v4198_v9, %v3226_v57  ;;  %v4201_v54 = vadd.f32 1.0, %v6351_v38  ;;  %v3228_v60 = vmul.f32 0.5, %v2482_v63  ;;  %v9557_v9 = vpop.f32.mrb[98].mxu1  ;;  %v12176_v57 = vld [vmem:[#allocation37_spill] sm:$0xff] }
 0x1ab   :  { %v3395_v16 = vmul.f32 0.70710677, %v9514_v55  ;;  %v9543_v34 = vmul.f32 %v4039_v17, %v3067_v44  ;;  %v4038_v53 = vadd.f32 1.0, %v6353_v29  ;;  %6362 = verf.f32 %v3554_v4  ;;  %v9555_v29 = vpop.f32.mrb[98].mxu0  ;;  %12172 = vst [vmem:[#allocation80_spill] sm:$0xff] %v9557_v9 }
 0x1ac   :  { %v3557_v14 = vmul.f32 0.70710677, %v9525_v20  ;;  %v9548_v1 = vmul.f32 %v4201_v54, %v3229_v28  ;;  %v3069_v51 = vmul.f32 0.5, %v1687_v40  ;;  %v3394_v44 = vmul.f32 0.70710677, %v9538_v43  ;;  %12171 = vst [vmem:[#allocation79_spill] sm:$0xff] %v9555_v29 }
 0x1ad   :  { %6364 = verf.f32 %v3395_v16  ;;  %v9552_v63 = vmul.f32 %v4038_v53, %v3066_v22  ;;  %v12173_v40 = vld [vmem:[#allocation83_spill] sm:$0xff]  ;;  %v12174_v54 = vld [vmem:[#allocation36_spill] sm:$0xff]  ;;  %v9565_v53 = vpop.f32.mrb[99].mxu0  ;;  %v9571_v47 = vadd.f32 %v9194_v33, %v12176_v57  ;;  %v9577_v29 = vpop.f32.mrb[99].mxu1 }
 0x1ae   :  { %12169 = vst [vmem:[#allocation44_spill] sm:$0xff] %v9548_v1  ;;  %v6355_v61 = vpop.eup %6354  ;;  %6366 = verf.f32 %v3557_v14  ;;  %v2502_v4 = vadd.f32 %v9194_v33, %v12173_v40  ;;  %v1707_v16 = vadd.f32 %v9194_v33, %v12174_v54  ;;  %12175 = vst [vmem:[#allocation81_spill] sm:$0xff] %v9565_v53  ;;  %v3068_v40 = vmul.f32 0.5, %v9495_v25 }
 0x1af   :  { %12170 = vst [vmem:[#allocation88_spill] sm:$0xff] %v9552_v63  ;;  %v6357_v38 = vpop.eup %6356  ;;  %v4200_v17 = vadd.f32 1.0, %v6355_v61  ;;  %6368 = verf.f32 %v3394_v44  ;;  %v3231_v61 = vmul.f32 0.5, %v9482_v24  ;;  %12178 = vst [vmem:[#allocation83_spill] sm:$0xff] %v9577_v29  ;;  %v3230_v1 = vmul.f32 0.5, %v2492_v50 }
 0x1b0   :  { %v4041_v22 = vadd.f32 1.0, %v6357_v38  ;;  %v3556_v28 = vmul.f32 0.70710677, %v2502_v4  ;;  %v3397_v14 = vmul.f32 0.70710677, %v1707_v16  ;;  %v3071_v63 = vmul.f32 0.5, %v9514_v55 }
 0x1b1   :  { %v9573_v9 = vmul.f32 %v4200_v17, %v3228_v60  ;;  %v3559_v44 = vmul.f32 0.70710677, %v9571_v47  ;;  %v12180_v17 = vld [vmem:[#allocation85_spill] sm:$0xff] }
 0x1b2   :  { %v6359_v54 = vpop.eup %6358  ;;  %v9579_v53 = vmul.f32 %v4041_v22, %v3069_v51  ;;  %6370 = verf.f32 %v3556_v28  ;;  %v9586_v24 = vadd.f32 %v9194_v33, %v12180_v17  ;;  %v12181_v51 = vld [vmem:[#allocation86_spill] sm:$0xff]  ;;  %v9600_v17 = vpop.f32.mrb[100].mxu1 }
 0x1b3   :  { %12177 = vst [vmem:[#allocation82_spill] sm:$0xff] %v9573_v9  ;;  %v6361_v38 = vpop.eup %6360  ;;  %v4203_v60 = vadd.f32 1.0, %v6359_v54  ;;  %6372 = verf.f32 %v3397_v14  ;;  %v9592_v50 = vadd.f32 %v9194_v33, %v12181_v51  ;;  %v9598_v54 = vpop.f32.mrb[100].mxu0  ;;  %12184 = vst [vmem:[#allocation86_spill] sm:$0xff] %v9600_v17  ;;  %v3233_v14 = vmul.f32 0.5, %v9525_v20  ;;  %v12185_v51 = vld [vmem:[#allocation89_spill] sm:$0xff] }
 0x1b4   :  { %12179 = vst [vmem:[#allocation36_spill] sm:$0xff] %v9579_v53  ;;  %v4040_v29 = vadd.f32 1.0, %v6361_v38  ;;  %6374 = verf.f32 %v3559_v44  ;;  %v3396_v28 = vmul.f32 0.70710677, %v9586_v24  ;;  %12183 = vst [vmem:[#allocation85_spill] sm:$0xff] %v9598_v54  ;;  %v12187_v54 = vld [vmem:[#allocation90_spill] sm:$0xff] }
 0x1b5   :  { %v9594_v22 = vmul.f32 %v4203_v60, %v3231_v61  ;;  %v6363_v57 = vpop.eup %6362  ;;  %v3558_v38 = vmul.f32 0.70710677, %v9592_v50  ;;  %v1717_v61 = vadd.f32 %v9194_v33, %v12185_v51  ;;  %v9608_v60 = vpop.f32.mrb[101].mxu0  ;;  %v9614_v17 = vadd.f32 %v9194_v33, %v12187_v54 }
 0x1b6   :  { %v9602_v9 = vmul.f32 %v4040_v29, %v3068_v40  ;;  %12186 = vst [vmem:[#allocation89_spill] sm:$0xff] %v9608_v60  ;;  %v4202_v25 = vadd.f32 1.0, %v6363_v57  ;;  %6376 = verf.f32 %v3396_v28  ;;  %v3070_v53 = vmul.f32 0.5, %v9538_v43  ;;  %v9619_v51 = vpop.f32.mrb[101].mxu1  ;;  %v9641_v39 = vpop.f32.mrb[102].mxu0 }
 0x1b7   :  { %12182 = vst [vmem:[#allocation37_spill] sm:$0xff] %v9594_v22  ;;  %v6365_v55 = vpop.eup %6364  ;;  %6378 = verf.f32 %v3558_v38  ;;  %12188 = vst [vmem:[#allocation90_spill] sm:$0xff] %v9619_v51  ;;  %v3232_v44 = vmul.f32 0.5, %v2502_v4  ;;  %v3399_v57 = vmul.f32 0.70710677, %v1717_v61  ;;  %v12193_v38 = vld [vmem:[#allocation50_spill] sm:$0xff] }
 0x1b8   :  { %v6367_v29 = vpop.eup %6366  ;;  %v4043_v40 = vadd.f32 1.0, %v6365_v55  ;;  %v9621_v60 = vmul.f32 %v4202_v25, %v3230_v1  ;;  %v3561_v54 = vmul.f32 0.70710677, %v9614_v17  ;;  %v12192_v55 = vld [vmem:[#allocation92_spill] sm:$0xff]  ;;  %v9643_v20 = vpop.f32.mrb[102].mxu1  ;;  %v12202_v51 = vld [vmem:[#allocation5_spill] sm:$0xff] }
 0x1b9   :  { %v4205_v36 = vadd.f32 1.0, %v6367_v29  ;;  %v6369_v28 = vpop.eup %6368  ;;  %v9632_v43 = vadd.f32 %v9194_v33, %v12192_v55  ;;  %6380 = verf.f32 %v3399_v57  ;;  %v3073_v29 = vmul.f32 0.5, %v1707_v16  ;;  %12195 = vst [vmem:[#allocation92_spill] sm:$0xff] %v9641_v39  ;;  %12196 = vst [vmem:[#allocation50_spill] sm:$0xff] %v9643_v20  ;;  %v9651_v57 = vpop.f32.mrb[103].mxu0  ;;  %v12200_v39 = vld [vmem:[#allocation94_spill] sm:$0xff] }
 0x1ba   :  { %12189 = vst [vmem:[#allocation103_spill] sm:$0xff] %v9621_v60  ;;  %v9623_v22 = vmul.f32 %v4043_v40, %v3071_v63  ;;  %v4042_v4 = vadd.f32 1.0, %v6369_v28  ;;  %6382 = verf.f32 %v3561_v54  ;;  %v3398_v40 = vmul.f32 0.70710677, %v9628_v41  ;;  %12198 = vst [vmem:[#allocation106_spill] sm:$0xff] %v9651_v57  ;;  %v12199_v54 = vld [vmem:[#allocation93_spill] sm:$0xff] }
 0x1bb   :  { %v9636_v25 = vmul.f32 %v4205_v36, %v3233_v14  ;;  %v3235_v36 = vmul.f32 0.5, %v9571_v47  ;;  %v3560_v14 = vmul.f32 0.70710677, %v9632_v43  ;;  %v1727_v63 = vadd.f32 %v9194_v33, %v12199_v54 }
 0x1bc   :  { %12190 = vst [vmem:[#allocation104_spill] sm:$0xff] %v9623_v22  ;;  %v6371_v55 = vpop.eup %6370  ;;  %v9647_v1 = vmul.f32 %v4042_v4, %v3070_v53  ;;  %6384 = verf.f32 %v3398_v40  ;;  %v9657_v20 = vadd.f32 %v9194_v33, %v12200_v39  ;;  %v9659_v22 = vpop.f32.mrb[103].mxu1  ;;  %v9665_v57 = vadd.f32 %v9194_v33, %v12202_v51 }
 0x1bd   :  { %12194 = vst [vmem:[#allocation91_spill] sm:$0xff] %v9636_v25  ;;  %v6373_v16 = vpop.eup %6372  ;;  %v4204_v28 = vadd.f32 1.0, %v6371_v55  ;;  %12201 = vst [vmem:[#allocation93_spill] sm:$0xff] %v9659_v22  ;;  %6386 = verf.f32 %v3560_v14  ;;  %v3072_v54 = vmul.f32 0.5, %v9586_v24  ;;  %v3401_v25 = vmul.f32 0.70710677, %v1727_v63 }
 0x1be   :  { %12197 = vst [vmem:[#allocation105_spill] sm:$0xff] %v9647_v1  ;;  %v6375_v53 = vpop.eup %6374  ;;  %v4045_v4 = vadd.f32 1.0, %v6373_v16  ;;  %v3234_v22 = vmul.f32 0.5, %v9592_v50  ;;  %v3075_v48 = vmul.f32 0.5, %v1717_v61  ;;  %v3563_v47 = vmul.f32 0.70710677, %v9657_v20 }
 0x1bf   :  { %v9667_v40 = vmul.f32 %v4204_v28, %v3232_v44  ;;  %v4207_v55 = vadd.f32 1.0, %v6375_v53  ;;  %v12203_v14 = vld [vmem:[#allocation18_spill] sm:$0xff]  ;;  %6388 = verf.f32 %v3401_v25  ;;  %v9678_v28 = vpop.f32.mrb[104].mxu0  ;;  %v12206_v24 = vld [vmem:[#allocation33_spill] sm:$0xff]  ;;  %v3400_v50 = vmul.f32 0.70710677, %v9665_v57 }
 0x1c0   :  { %v6377_v39 = vpop.eup %6376  ;;  %v9670_v31 = vmul.f32 %v4045_v4, %v3073_v29  ;;  %12205 = vst [vmem:[#allocation5_spill] sm:$0xff] %v9678_v28  ;;  %6390 = verf.f32 %v3563_v47  ;;  %v9683_v61 = vpop.f32.mrb[104].mxu1  ;;  %v12211_v25 = vld [vmem:[#allocation6_spill] sm:$0xff]  ;;  %v3237_v47 = vmul.f32 0.5, %v9614_v17  ;;  %v3077_v56 = vmul.f32 0.5, %v1727_v63 }
 0x1c1   :  { %v6379_v16 = vpop.eup %6378  ;;  %v9676_v51 = vmul.f32 %v4207_v55, %v3235_v36  ;;  %v4044_v44 = vadd.f32 1.0, %v6377_v39  ;;  %12207 = vst [vmem:[#allocation18_spill] sm:$0xff] %v9683_v61  ;;  %v12210_v36 = vld [vmem:[#allocation39_spill] sm:$0xff]  ;;  %v1737_v39 = vadd.f32 %v9194_v33, %v12211_v25  ;;  %6392 = verf.f32 %v3400_v50  ;;  %v9700_v61 = vpop.f32.mrb[105].mxu0 }
 0x1c2   :  { %v4206_v29 = vadd.f32 1.0, %v6379_v16  ;;  %v2532_v55 = vadd.f32 %v9194_v33, %v12210_v36  ;;  %v12212_v16 = vld [vmem:[#allocation40_spill] sm:$0xff]  ;;  %12213 = vst [vmem:[#allocation39_spill] sm:$0xff] %v9700_v61  ;;  %v3074_v50 = vmul.f32 0.5, %v9628_v41 }
 0x1c3   :  { %12204 = vst [vmem:[#allocation94_spill] sm:$0xff] %v9676_v51  ;;  %v9687_v60 = vmul.f32 %v4044_v44, %v3072_v54  ;;  %v6381_v1 = vpop.eup %6380  ;;  %v9698_v53 = vadd.f32 %v9194_v33, %v12212_v16  ;;  %v9702_v54 = vpop.f32.mrb[105].mxu1  ;;  %v12215_v51 = vld [vmem:[#allocation7_spill] sm:$0xff]  ;;  %v3403_v16 = vmul.f32 0.70710677, %v1737_v39  ;;  %v3079_v62 = vmul.f32 0.5, %v1737_v39 }
 0x1c4   :  { %v9693_v28 = vmul.f32 %v4206_v29, %v3234_v22  ;;  %12214 = vst [vmem:[#allocation6_spill] sm:$0xff] %v9702_v54  ;;  %v6383_v44 = vpop.eup %6382  ;;  %v4047_v18 = vadd.f32 1.0, %v6381_v1  ;;  %v3562_v25 = vmul.f32 0.70710677, %v2532_v55  ;;  %v9708_v22 = vadd.f32 %v9194_v33, %v12215_v51  ;;  %v12231_v39 = vld [vmem:[#allocation46_spill] sm:$0xff] }
 0x1c5   :  { %12209 = vst [vmem:[#allocation33_spill] sm:$0xff] %v9687_v60  ;;  %v4209_v29 = vadd.f32 1.0, %v6383_v44  ;;  %v3236_v54 = vmul.f32 0.5, %v9632_v43  ;;  %v3565_v1 = vmul.f32 0.70710677, %v9698_v53  ;;  %v3239_v44 = vmul.f32 0.5, %v9657_v20 }
 0x1c6   :  { %v6385_v61 = vpop.eup %6384  ;;  %v9713_v4 = vmul.f32 %v4047_v18, %v3075_v48  ;;  %6394 = verf.f32 %v3562_v25  ;;  %v3402_v41 = vmul.f32 0.70710677, %v9708_v22  ;;  %v9722_v48 = vpop.f32.mrb[106].mxu0 }
 0x1c7   :  { %v6387_v36 = vpop.eup %6386  ;;  %v9717_v60 = vmul.f32 %v4209_v29, %v3237_v47  ;;  %v4046_v51 = vadd.f32 1.0, %v6385_v61  ;;  %6396 = verf.f32 %v3403_v16  ;;  %12217 = vst [vmem:[#allocation7_spill] sm:$0xff] %v9722_v48  ;;  %v9724_v18 = vpop.f32.mrb[106].mxu1  ;;  %v12220_v47 = vld [vmem:[#allocation42_spill] sm:$0xff]  ;;  %v12221_v61 = vld [vmem:[#allocation8_spill] sm:$0xff] }
 0x1c8   :  { %v4208_v17 = vadd.f32 1.0, %v6387_v36  ;;  %6398 = verf.f32 %v3565_v1  ;;  %12218 = vst [vmem:[#allocation107_spill] sm:$0xff] %v9724_v18  ;;  %v2542_v63 = vadd.f32 %v9194_v33, %v12220_v47  ;;  %v9734_v29 = vadd.f32 %v9194_v33, %v12221_v61  ;;  %v9736_v36 = vpop.f32.mrb[107].mxu0  ;;  %v12223_v18 = vld [vmem:[#allocation43_spill] sm:$0xff]  ;;  %v12224_v61 = vld [vmem:[#allocation9_spill] sm:$0xff] }
 0x1c9   :  { %12216 = vst [vmem:[#allocation40_spill] sm:$0xff] %v9717_v60  ;;  %v9728_v25 = vmul.f32 %v4046_v51, %v3074_v50  ;;  %12222 = vst [vmem:[#allocation42_spill] sm:$0xff] %v9736_v36  ;;  %v6389_v16 = vpop.eup %6388  ;;  %6400 = verf.f32 %v3402_v41  ;;  %v9743_v43 = vadd.f32 %v9194_v33, %v12223_v18  ;;  %v9749_v60 = vadd.f32 %v9194_v33, %v12224_v61  ;;  %v9751_v36 = vpop.f32.mrb[107].mxu1 }
 0x1ca   :  { %v9738_v1 = vmul.f32 %v4208_v17, %v3236_v54  ;;  %v6391_v50 = vpop.eup %6390  ;;  %v4049_v47 = vadd.f32 1.0, %v6389_v16  ;;  %v3564_v48 = vmul.f32 0.70710677, %v2542_v63  ;;  %12225 = vst [vmem:[#allocation8_spill] sm:$0xff] %v9751_v36  ;;  %v3076_v17 = vmul.f32 0.5, %v9665_v57 }
 0x1cb   :  { %12219 = vst [vmem:[#allocation108_spill] sm:$0xff] %v9728_v25  ;;  %v4211_v54 = vadd.f32 1.0, %v6391_v50  ;;  %v3405_v41 = vmul.f32 0.70710677, %v9734_v29  ;;  %v6393_v18 = vpop.eup %6392  ;;  %v3238_v51 = vmul.f32 0.5, %v2532_v55  ;;  %v12228_v50 = vld [vmem:[#allocation45_spill] sm:$0xff] }
 0x1cc   :  { %v9757_v21 = vmul.f32 %v4049_v47, %v3077_v56  ;;  %6402 = verf.f32 %v3564_v48  ;;  %v3567_v16 = vmul.f32 0.70710677, %v9743_v43  ;;  %v4048_v61 = vadd.f32 1.0, %v6393_v18  ;;  %v9767_v56 = vpop.f32.mrb[108].mxu0  ;;  %v9769_v55 = vpop.f32.mrb[108].mxu1 }
 0x1cd   :  { %v9760_v25 = vmul.f32 %v4211_v54, %v3239_v44  ;;  %6404 = verf.f32 %v3405_v41  ;;  %v3404_v57 = vmul.f32 0.70710677, %v9749_v60  ;;  %v2552_v36 = vadd.f32 %v9194_v33, %v12228_v50  ;;  %12229 = vst [vmem:[#allocation45_spill] sm:$0xff] %v9767_v56  ;;  %12230 = vst [vmem:[#allocation109_spill] sm:$0xff] %v9769_v55  ;;  %v12232_v41 = vld [vmem:[#allocation11_spill] sm:$0xff]  ;;  %v9783_v50 = vpop.f32.mrb[109].mxu1 }
 0x1ce   :  { %12226 = vst [vmem:[#allocation43_spill] sm:$0xff] %v9757_v21  ;;  %6406 = verf.f32 %v3567_v16  ;;  %v9773_v47 = vmul.f32 %v4048_v61, %v3076_v17  ;;  %v1757_v54 = vadd.f32 %v9194_v33, %v12231_v39  ;;  %v9779_v18 = vadd.f32 %v9194_v33, %v12232_v41  ;;  %v9781_v16 = vpop.f32.mrb[109].mxu0  ;;  %12234 = vst [vmem:[#allocation11_spill] sm:$0xff] %v9783_v50  ;;  %v12243_v17 = vld [vmem:[#allocation54_spill] sm:$0xff] }
 0x1cf   :  { %12227 = vst [vmem:[#allocation9_spill] sm:$0xff] %v9760_v25  ;;  %12233 = vst [vmem:[#allocation46_spill] sm:$0xff] %v9781_v16  ;;  %v3241_v55 = vmul.f32 0.5, %v9698_v53  ;;  %6408 = verf.f32 %v3404_v57  ;;  %v3566_v21 = vmul.f32 0.70710677, %v2552_v36  ;;  %v3078_v39 = vmul.f32 0.5, %v9708_v22 }
 0x1d0   :  { %v6395_v48 = vpop.eup %6394  ;;  %v3407_v25 = vmul.f32 0.70710677, %v1757_v54  ;;  %v3240_v16 = vmul.f32 0.5, %v2542_v63  ;;  %v3569_v53 = vmul.f32 0.70710677, %v9779_v18  ;;  %v12237_v57 = vld [vmem:[#allocation12_spill] sm:$0xff] }
 0x1d1   :  { %v6397_v20 = vpop.eup %6396  ;;  %v4210_v56 = vadd.f32 1.0, %v6395_v48  ;;  %6410 = verf.f32 %v3566_v21  ;;  %v9796_v48 = vadd.f32 %v9194_v33, %v12237_v57  ;;  %v3083_v49 = vmul.f32 0.5, %v1757_v54 }
 0x1d2   :  { %v6399_v44 = vpop.eup %6398  ;;  %v4051_v61 = vadd.f32 1.0, %v6397_v20  ;;  %6412 = verf.f32 %v3407_v25 }
 0x1d3   :  { %v9789_v41 = vmul.f32 %v4210_v56, %v3238_v51  ;;  %v4213_v7 = vadd.f32 1.0, %v6399_v44  ;;  %v6401_v50 = vpop.eup %6400  ;;  %v12239_v56 = vld [vmem:[#allocation48_spill] sm:$0xff]  ;;  %6414 = verf.f32 %v3569_v53  ;;  %v3406_v25 = vmul.f32 0.70710677, %v9796_v48  ;;  %v9810_v44 = vpop.f32.mrb[110].mxu0 }
 0x1d4   :  { %v9791_v10 = vmul.f32 %v4051_v61, %v3079_v62  ;;  %v4050_v51 = vadd.f32 1.0, %v6401_v50  ;;  %v9804_v63 = vadd.f32 %v9194_v33, %v12239_v56  ;;  %v3081_v62 = vmul.f32 0.5, %v9734_v29  ;;  %12240 = vst [vmem:[#allocation48_spill] sm:$0xff] %v9810_v44  ;;  %v9812_v61 = vpop.f32.mrb[110].mxu1  ;;  %v12242_v29 = vld [vmem:[#allocation49_spill] sm:$0xff] }
 0x1d5   :  { %12235 = vst [vmem:[#allocation110_spill] sm:$0xff] %v9789_v41  ;;  %v9800_v22 = vmul.f32 %v4213_v7, %v3241_v55  ;;  %12241 = vst [vmem:[#allocation112_spill] sm:$0xff] %v9812_v61  ;;  %v3243_v50 = vmul.f32 0.5, %v9743_v43  ;;  %6416 = verf.f32 %v3406_v25  ;;  %v1767_v53 = vadd.f32 %v9194_v33, %v12242_v29  ;;  %v9826_v61 = vpop.f32.mrb[111].mxu0  ;;  %v12246_v7 = vld [vmem:[#allocation56_spill] sm:$0xff] }
 0x1d6   :  { %12236 = vst [vmem:[#allocation111_spill] sm:$0xff] %v9791_v10  ;;  %v6403_v57 = vpop.eup %6402  ;;  %v9816_v55 = vmul.f32 %v4050_v51, %v3078_v39  ;;  %v3568_v56 = vmul.f32 0.70710677, %v9804_v63  ;;  %v9824_v44 = vadd.f32 %v9194_v33, %v12243_v17  ;;  %12244 = vst [vmem:[#allocation49_spill] sm:$0xff] %v9826_v61  ;;  %v9828_v10 = vpop.f32.mrb[111].mxu1  ;;  %v9834_v25 = vadd.f32 %v9194_v33, %v12246_v7 }
 0x1d7   :  { %12238 = vst [vmem:[#allocation12_spill] sm:$0xff] %v9800_v22  ;;  %v6405_v21 = vpop.eup %6404  ;;  %v4212_v20 = vadd.f32 1.0, %v6403_v57  ;;  %12245 = vst [vmem:[#allocation54_spill] sm:$0xff] %v9828_v10  ;;  %v3080_v17 = vmul.f32 0.5, %v9749_v60  ;;  %v3409_v22 = vmul.f32 0.70710677, %v1767_v53 }
 0x1d8   :  { %v6407_v39 = vpop.eup %6406  ;;  %v4053_v51 = vadd.f32 1.0, %v6405_v21  ;;  %6418 = verf.f32 %v3568_v56  ;;  %v3242_v10 = vmul.f32 0.5, %v2552_v36  ;;  %v3571_v41 = vmul.f32 0.70710677, %v9824_v44  ;;  %v12249_v36 = vld [vmem:[#allocation14_spill] sm:$0xff] }
 0x1d9   :  { %v9836_v57 = vmul.f32 %v4212_v20, %v3240_v16  ;;  %v4215_v29 = vadd.f32 1.0, %v6407_v39  ;;  %v6409_v15 = vpop.eup %6408  ;;  %6420 = verf.f32 %v3409_v22  ;;  %v9846_v16 = vpop.f32.mrb[112].mxu0  ;;  %v2572_v54 = vadd.f32 %v9194_v33, %v12249_v36 }
 0x1da   :  { %v9839_v61 = vmul.f32 %v4053_v51, %v3081_v62  ;;  %v4052_v7 = vadd.f32 1.0, %v6409_v15  ;;  %12248 = vst [vmem:[#allocation113_spill] sm:$0xff] %v9846_v16  ;;  %6422 = verf.f32 %v3571_v41  ;;  %v3408_v62 = vmul.f32 0.70710677, %v9834_v25  ;;  %v9853_v39 = vpop.f32.mrb[112].mxu1  ;;  %v12252_v41 = vld [vmem:[#allocation51_spill] sm:$0xff] }
 0x1db   :  { %v9844_v56 = vmul.f32 %v4215_v29, %v3243_v50  ;;  %v6411_v20 = vpop.eup %6410  ;;  %12250 = vst [vmem:[#allocation14_spill] sm:$0xff] %v9853_v39  ;;  %v9862_v29 = vld [vmem:[%s11667_s2] ss:$0 sm:$0xff]  ;;  %v3245_v33 = vmul.f32 0.5, %v9779_v18  ;;  %v3570_v36 = vmul.f32 0.70710677, %v2572_v54 }
 0x1dc   :  { %v6413_v51 = vpop.eup %6412  ;;  %v9857_v15 = vmul.f32 %v4052_v7, %v3080_v17  ;;  %v4214_v22 = vadd.f32 1.0, %v6411_v20  ;;  %v1777_v60 = vadd.f32 %v9862_v29, %v12252_v41  ;;  %6424 = verf.f32 %v3408_v62  ;;  %v9867_v43 = vpop.f32.mrb[113].mxu0  ;;  %v12258_v7 = vld [vmem:[#allocation59_spill] sm:$0xff] }
 0x1dd   :  { %12247 = vst [vmem:[#allocation56_spill] sm:$0xff] %v9844_v56  ;;  %v4055_v21 = vadd.f32 1.0, %v6413_v51  ;;  %12253 = vst [vmem:[#allocation51_spill] sm:$0xff] %v9867_v43  ;;  %v9869_v39 = vpop.f32.mrb[113].mxu1  ;;  %v6415_v17 = vpop.eup %6414  ;;  %v3082_v50 = vmul.f32 0.5, %v9796_v48  ;;  %6426 = verf.f32 %v3570_v36  ;;  %v12256_v51 = vld [vmem:[#allocation57_spill] sm:$0xff] }
 0x1de   :  { %12251 = vst [vmem:[#allocation114_spill] sm:$0xff] %v9857_v15  ;;  %12254 = vst [vmem:[#allocation115_spill] sm:$0xff] %v9869_v39  ;;  %v9873_v20 = vmul.f32 %v4214_v22, %v3242_v10  ;;  %v3411_v16 = vmul.f32 0.70710677, %v1777_v60  ;;  %v4217_v41 = vadd.f32 1.0, %v6415_v17  ;;  %v2587_v18 = vadd.f32 %v9862_v29, %v12256_v51  ;;  %v12257_v39 = vld [vmem:[#allocation58_spill] sm:$0xff] }
 0x1df   :  { %v4379_v56 = vmul.f32 %v4055_v21, %v3083_v49  ;;  %v6417_v62 = vpop.eup %6416  ;;  %v1772_v45 = vadd.f32 %v9862_v29, %v12257_v39  ;;  %v9884_v10 = vadd.f32 %v9862_v29, %v12258_v7  ;;  %v12259_v49 = vmax.f32 %v9017_v19, %v9491_v46  ;;  %v9899_v46 = vpop.f32.mrb[114].mxu0 }
 0x1e0   :  { %12255 = vst [vmem:[#allocation116_spill] sm:$0xff] %v9873_v20  ;;  %6428 = verf.f32 %v3411_v16  ;;  %v4541_v22 = vmul.f32 %v4217_v41, %v3245_v33  ;;  %v4054_v36 = vadd.f32 1.0, %v6417_v62  ;;  %v3244_v17 = vmul.f32 0.5, %v9804_v63  ;;  %12261 = vst [vmem:[#allocation57_spill] sm:$0xff] %v9899_v46  ;;  %v12264_v62 = vld [vmem:[#allocation53_spill] sm:$0xff] }
 0x1e1   :  { %v9889_v21 = vmax.f32 %v12259_v49, %v4379_v56  ;;  %v3085_v43 = vmul.f32 0.5, %v1767_v53  ;;  %v3573_v16 = vmul.f32 0.70710677, %v2587_v18  ;;  %v3410_v20 = vmul.f32 0.70710677, %v1772_v45  ;;  %v9901_v56 = vpop.f32.mrb[114].mxu1 }
 0x1e2   :  { %v6419_v48 = vpop.eup %6418  ;;  %v12260_v39 = vmax.f32 %v9028_v27, %v9507_v42  ;;  %v4378_v7 = vmul.f32 %v4054_v36, %v3082_v50  ;;  %v3247_v15 = vmul.f32 0.5, %v9824_v44  ;;  %v3572_v19 = vmul.f32 0.70710677, %v9884_v10  ;;  %12262 = vst [vmem:[#allocation58_spill] sm:$0xff] %v9901_v56  ;;  %v12263_v53 = vld [vmem:[#allocation17_spill] sm:$0xff]  ;;  %v12266_v49 = vld [vmem:[#allocation55_spill] sm:$0xff] }
 0x1e3   :  { %v4216_v51 = vadd.f32 1.0, %v6419_v48  ;;  %v6421_v33 = vpop.eup %6420  ;;  %6430 = verf.f32 %v3573_v16  ;;  %v1787_v41 = vadd.f32 %v9862_v29, %v12263_v53  ;;  %v2597_v27 = vadd.f32 %v9862_v29, %v12264_v62  ;;  %v9916_v36 = vpop.f32.mrb[115].mxu0 }
 0x1e4   :  { %v9895_v12 = vmax.f32 %v12260_v39, %v4541_v22  ;;  %v6423_v42 = vpop.eup %6422  ;;  %v12265_v50 = vmax.f32 %v9034_v11, %v9520_v5  ;;  %v4057_v48 = vadd.f32 1.0, %v6421_v33  ;;  %6432 = verf.f32 %v3410_v20  ;;  %12267 = vst [vmem:[#allocation59_spill] sm:$0xff] %v9916_v36 }
 0x1e5   :  { %v4540_v63 = vmul.f32 %v4216_v51, %v3244_v17  ;;  %v9914_v22 = vadd.f32 %v9862_v29, %v12266_v49  ;;  %v9918_v17 = vpop.f32.mrb[115].mxu1  ;;  %v12269_v51 = vmax.f32 %v9051_v32, %v9540_v59  ;;  %v4219_v39 = vadd.f32 1.0, %v6423_v42  ;;  %v12275_v42 = vld [vmem:[#allocation44_spill] sm:$0xff] }
 0x1e6   :  { %v9910_v44 = vmax.f32 %v12265_v50, %v4378_v7  ;;  %12268 = vst [vmem:[#allocation17_spill] sm:$0xff] %v9918_v17  ;;  %v3084_v11 = vmul.f32 0.5, %v9834_v25  ;;  %6434 = verf.f32 %v3572_v19  ;;  %v6425_v5 = vpop.eup %6424  ;;  %v4381_v7 = vmul.f32 %v4057_v48, %v3085_v43  ;;  %v12272_v19 = vld [vmem:[#allocation20_spill] sm:$0xff] }
 0x1e7   :  { %v9923_v16 = vmax.f32 %v12269_v51, %v4540_v63  ;;  %v3246_v20 = vmul.f32 0.5, %v2572_v54  ;;  %v3413_v33 = vmul.f32 0.70710677, %v1787_v41  ;;  %v3575_v53 = vmul.f32 0.70710677, %v2597_v27  ;;  %v6427_v17 = vpop.eup %6426  ;;  %v12271_v63 = vld [vmem:[#allocation60_spill] sm:$0xff] }
 0x1e8   :  { %v4543_v62 = vmul.f32 %v4219_v39, %v3247_v15  ;;  %v4056_v50 = vadd.f32 1.0, %v6425_v5  ;;  %v3087_v49 = vmul.f32 0.5, %v1777_v60  ;;  %v3412_v36 = vmul.f32 0.70710677, %v9914_v22  ;;  %v9938_v54 = vpop.f32.mrb[116].mxu0  ;;  %v9940_v15 = vpop.f32.mrb[116].mxu1 }
 0x1e9   :  { %v12270_v32 = vmax.f32 %v9067_v35, %v9543_v34  ;;  %6436 = verf.f32 %v3413_v33  ;;  %v2592_v25 = vadd.f32 %v9862_v29, %v12271_v63  ;;  %v9936_v43 = vadd.f32 %v9862_v29, %v12272_v19  ;;  %12273 = vst [vmem:[#allocation53_spill] sm:$0xff] %v9938_v54  ;;  %12274 = vst [vmem:[#allocation55_spill] sm:$0xff] %v9940_v15  ;;  %v9947_v39 = vpop.f32.mrb[117].mxu0  ;;  %v9949_v5 = vpop.f32.mrb[117].mxu1  ;;  %v12279_v63 = vld [vmem:[#allocation88_spill] sm:$0xff] }
 0x1ea   :  { %v6429_v60 = vpop.eup %6428  ;;  %v12276_v48 = vmax.f32 %v9074_v3, %v12275_v42  ;;  %v4380_v35 = vmul.f32 %v4056_v50, %v3084_v11  ;;  %v4218_v34 = vadd.f32 1.0, %v6427_v17  ;;  %6438 = verf.f32 %v3575_v53  ;;  %12277 = vst [vmem:[#allocation60_spill] sm:$0xff] %v9947_v39  ;;  %12278 = vst [vmem:[#allocation20_spill] sm:$0xff] %v9949_v5  ;;  %v12281_v17 = vld [vmem:[#allocation61_spill] sm:$0xff]  ;;  %v12282_v50 = vld [vmem:[#allocation19_spill] sm:$0xff]  ;;  %v9983_v5 = vpop.f32.mrb[118].mxu0 }
 0x1eb   :  { %v9930_v59 = vmax.f32 %v12270_v32, %v4381_v7  ;;  %v4059_v7 = vadd.f32 1.0, %v6429_v60  ;;  %v3249_v33 = vmul.f32 0.5, %v2587_v18  ;;  %6440 = verf.f32 %v3412_v36  ;;  %v12283_v36 = vld [vmem:[#allocation10_spill] sm:$0xff]  ;;  %12293 = vst [vmem:[#allocation61_spill] sm:$0xff] %v9983_v5 }
 0x1ec   :  { %v9945_v51 = vmax.f32 %v12276_v48, %v4543_v62  ;;  %v3574_v32 = vmul.f32 0.70710677, %v2592_v25  ;;  %v12280_v19 = vmax.f32 %v9096_v37, %v12279_v63  ;;  %v4542_v54 = vmul.f32 %v4218_v34, %v3246_v20  ;;  %v12284_v42 = vld [vmem:[#allocation82_spill] sm:$0xff]  ;;  %v12287_v20 = vld [vmem:[#allocation95_spill] sm:$0xff] }
 0x1ed   :  { %v3086_v3 = vmul.f32 0.5, %v1772_v45  ;;  %v3415_v62 = vmul.f32 0.70710677, %v9936_v43  ;;  %v4383_v11 = vmul.f32 %v4059_v7, %v3087_v49  ;;  %v2607_v53 = vadd.f32 %v9862_v29, %v12281_v17  ;;  %v6431_v18 = vpop.eup %6430  ;;  %v12288_v49 = vld [vmem:[#allocation22_spill] sm:$0xff]  ;;  %v12289_v7 = vld [vmem:[#allocation47_spill] sm:$0xff] }
 0x1ee   :  { %v9954_v15 = vmax.f32 %v12280_v19, %v4380_v35  ;;  %6442 = verf.f32 %v3574_v32  ;;  %v9961_v60 = vadd.f32 %v9862_v29, %v12282_v50  ;;  %v12285_v48 = vmax.f32 %v12283_v36, %v12284_v42  ;;  %v6433_v34 = vpop.eup %6432  ;;  %v12290_v32 = vld [vmem:[#allocation36_spill] sm:$0xff] }
 0x1ef   :  { %6444 = verf.f32 %v3415_v62  ;;  %v9970_v45 = vadd.f32 %v9862_v29, %v12287_v20  ;;  %v9974_v35 = vadd.f32 %v9862_v29, %v12288_v49  ;;  %v12291_v63 = vmax.f32 %v12289_v7, %v12290_v32  ;;  %v9986_v7 = vpop.f32.mrb[118].mxu1  ;;  %v12297_v32 = vld [vmem:[#allocation13_spill] sm:$0xff] }
 0x1f0   :  { %v9966_v37 = vmax.f32 %v12285_v48, %v4542_v54  ;;  %v4221_v17 = vadd.f32 1.0, %v6431_v18  ;;  %v3248_v50 = vmul.f32 0.5, %v9884_v10  ;;  %v3577_v54 = vmul.f32 0.70710677, %v2607_v53  ;;  %v6435_v36 = vpop.eup %6434  ;;  %12294 = vst [vmem:[#allocation19_spill] sm:$0xff] %v9986_v7 }
 0x1f1   :  { %v9979_v19 = vmax.f32 %v12291_v63, %v4383_v11  ;;  %v4058_v62 = vadd.f32 1.0, %v6433_v34  ;;  %v3089_v42 = vmul.f32 0.5, %v1787_v41  ;;  %v3251_v48 = vmul.f32 0.5, %v2597_v27  ;;  %v9988_v11 = vpop.f32.mrb[119].mxu0  ;;  %v9992_v27 = vpop.f32.mrb[119].mxu1  ;;  %v12298_v63 = vld [vmem:[#allocation37_spill] sm:$0xff] }
 0x1f2   :  { %12286 = vst [vmem:[#allocation44_spill] sm:$0xff] %v9966_v37  ;;  %v3414_v20 = vmul.f32 0.70710677, %v9961_v60  ;;  %v4545_v49 = vmul.f32 %v4221_v17, %v3249_v33  ;;  %v4220_v39 = vadd.f32 1.0, %v6435_v36  ;;  %6446 = verf.f32 %v3577_v54  ;;  %12295 = vst [vmem:[#allocation10_spill] sm:$0xff] %v9988_v11  ;;  %v12301_v36 = vld [vmem:[#allocation62_spill] sm:$0xff] }
 0x1f3   :  { %12292 = vst [vmem:[#allocation88_spill] sm:$0xff] %v9979_v19  ;;  %v3576_v56 = vmul.f32 0.70710677, %v9970_v45  ;;  %v4382_v18 = vmul.f32 %v4058_v62, %v3086_v3  ;;  %v3088_v10 = vmul.f32 0.5, %v9914_v22  ;;  %v3417_v41 = vmul.f32 0.70710677, %v9974_v35  ;;  %v6437_v34 = vpop.eup %6436 }
 0x1f4   :  { %6448 = verf.f32 %v3414_v20  ;;  %12296 = vst [vmem:[#allocation82_spill] sm:$0xff] %v9992_v27  ;;  %v12299_v33 = vmax.f32 %v12297_v32, %v12298_v63  ;;  %v4544_v54 = vmul.f32 %v4220_v39, %v3248_v50  ;;  %v2617_v7 = vadd.f32 %v9862_v29, %v12301_v36  ;;  %v6439_v11 = vpop.eup %6438  ;;  %v12304_v20 = vld [vmem:[#allocation65_spill] sm:$0xff] }
 0x1f5   :  { %6450 = verf.f32 %v3576_v56  ;;  %v12302_v22 = vmax.f32 %v9148_v58, %v9602_v9  ;;  %v4061_v62 = vadd.f32 1.0, %v6437_v34  ;;  %v10008_v27 = vadd.f32 %v9862_v29, %v12304_v20  ;;  %v6441_v32 = vpop.eup %6440  ;;  %v12310_v20 = vld [vmem:[#allocation23_spill] sm:$0xff] }
 0x1f6   :  { %v9997_v17 = vmax.f32 %v12299_v33, %v4545_v49  ;;  %6452 = verf.f32 %v3417_v41  ;;  %v12305_v49 = vld [vmem:[#allocation103_spill] sm:$0xff]  ;;  %v4223_v50 = vadd.f32 1.0, %v6439_v11  ;;  %v3250_v63 = vmul.f32 0.5, %v2592_v25  ;;  %v10019_v41 = vpop.f32.mrb[120].mxu1 }
 0x1f7   :  { %v10004_v3 = vmax.f32 %v12302_v22, %v4382_v18  ;;  %v12306_v39 = vmax.f32 %v12193_v38, %v12305_v49  ;;  %v3579_v33 = vmul.f32 0.70710677, %v2617_v7  ;;  %v4385_v36 = vmul.f32 %v4061_v62, %v3089_v42  ;;  %v10017_v18 = vpop.f32.mrb[120].mxu0  ;;  %12309 = vst [vmem:[#allocation13_spill] sm:$0xff] %v10019_v41  ;;  %v12311_v11 = vld [vmem:[#allocation63_spill] sm:$0xff]  ;;  %v12316_v41 = vld [vmem:[#allocation16_spill] sm:$0xff] }
 0x1f8   :  { %12300 = vst [vmem:[#allocation95_spill] sm:$0xff] %v9997_v17  ;;  %v4060_v5 = vadd.f32 1.0, %v6441_v32  ;;  %v3091_v58 = vmul.f32 0.5, %v9936_v43  ;;  %v3416_v9 = vmul.f32 0.70710677, %v10008_v27  ;;  %12308 = vst [vmem:[#allocation36_spill] sm:$0xff] %v10017_v18  ;;  %v6443_v34 = vpop.eup %6442  ;;  %v4547_v22 = vmul.f32 %v4223_v50, %v3251_v48 }
 0x1f9   :  { %12303 = vst [vmem:[#allocation22_spill] sm:$0xff] %v10004_v3  ;;  %v10013_v56 = vmax.f32 %v12306_v39, %v4544_v54  ;;  %6454 = verf.f32 %v3579_v33  ;;  %v10023_v38 = vadd.f32 %v9862_v29, %v12310_v20  ;;  %v10027_v25 = vadd.f32 %v9862_v29, %v12311_v11  ;;  %v6445_v42 = vpop.eup %6444  ;;  %v12312_v54 = vld [vmem:[#allocation15_spill] sm:$0xff]  ;;  %v12313_v43 = vld [vmem:[#allocation104_spill] sm:$0xff]  ;;  %v10040_v11 = vpop.f32.mrb[121].mxu0 }
 0x1fa   :  { %v12314_v62 = vmax.f32 %v12312_v54, %v12313_v43  ;;  %v4384_v49 = vmul.f32 %v4060_v5, %v3088_v10  ;;  %v4222_v39 = vadd.f32 1.0, %v6443_v34  ;;  %6456 = verf.f32 %v3416_v9  ;;  %v12317_v48 = vld [vmem:[#allocation91_spill] sm:$0xff]  ;;  %12319 = vst [vmem:[#allocation62_spill] sm:$0xff] %v10040_v11  ;;  %v12321_v3 = vld [vmem:[#allocation52_spill] sm:$0xff]  ;;  %v12322_v54 = vld [vmem:[#allocation105_spill] sm:$0xff] }
 0x1fb   :  { %12307 = vst [vmem:[#allocation47_spill] sm:$0xff] %v10013_v56  ;;  %v12318_v50 = vmax.f32 %v12316_v41, %v12317_v48  ;;  %v4063_v20 = vadd.f32 1.0, %v6445_v42  ;;  %v3253_v18 = vmul.f32 0.5, %v2607_v53  ;;  %v3578_v46 = vmul.f32 0.70710677, %v10023_v38  ;;  %v10042_v56 = vpop.f32.mrb[121].mxu1 }
 0x1fc   :  { %v10032_v32 = vmax.f32 %v12314_v62, %v4385_v36  ;;  %12320 = vst [vmem:[#allocation65_spill] sm:$0xff] %v10042_v56  ;;  %v12323_v36 = vmax.f32 %v12321_v3, %v12322_v54  ;;  %v4546_v5 = vmul.f32 %v4222_v39, %v3250_v63  ;;  %v3090_v10 = vmul.f32 0.5, %v9961_v60  ;;  %v6447_v41 = vpop.eup %6446  ;;  %v12324_v53 = vld [vmem:[#allocation66_spill] sm:$0xff]  ;;  %v12325_v42 = vld [vmem:[#allocation67_spill] sm:$0xff]  ;;  %v12327_v60 = vld [vmem:[#allocation96_spill] sm:$0xff] }
 0x1fd   :  { %v10037_v33 = vmax.f32 %v12318_v50, %v4547_v22  ;;  %v3419_v9 = vmul.f32 0.70710677, %v10027_v25  ;;  %v4387_v34 = vmul.f32 %v4063_v20, %v3091_v58  ;;  %6458 = verf.f32 %v3578_v46 }
 0x1fe   :  { %12315 = vst [vmem:[#allocation37_spill] sm:$0xff] %v10032_v32  ;;  %v10047_v43 = vmax.f32 %v12323_v36, %v4384_v49  ;;  %v2627_v22 = vadd.f32 %v9862_v29, %v12324_v53  ;;  %v10055_v62 = vadd.f32 %v9862_v29, %v12325_v42  ;;  %v6449_v48 = vpop.eup %6448  ;;  %v12326_v3 = vmax.f32 %v12203_v14, %v9667_v40  ;;  %v12456_v32 = vld [vmem:[#allocation50_spill] sm:$0xff] }
 0x1ff   :  { %v4225_v63 = vadd.f32 1.0, %v6447_v41  ;;  %6460 = verf.f32 %v3419_v9  ;;  %v10064_v39 = vadd.f32 %v9862_v29, %v12327_v60  ;;  %v6451_v46 = vpop.eup %6450  ;;  %v12328_v58 = vmax.f32 %v12206_v24, %v9670_v31  ;;  %v10074_v60 = vpop.f32.mrb[122].mxu0  ;;  %v12332_v24 = vld [vmem:[#allocation21_spill] sm:$0xff] }
 0x200   :  { %v10060_v49 = vmax.f32 %v12326_v3, %v4546_v5  ;;  %v4062_v20 = vadd.f32 1.0, %v6449_v48  ;;  %v3252_v54 = vmul.f32 0.5, %v9970_v45  ;;  %v3581_v36 = vmul.f32 0.70710677, %v2627_v22  ;;  %v6453_v53 = vpop.eup %6452  ;;  %12330 = vst [vmem:[#allocation23_spill] sm:$0xff] %v10074_v60  ;;  %v10076_v31 = vpop.f32.mrb[122].mxu1 }
 0x201   :  { %v10069_v50 = vmax.f32 %v12328_v58, %v4387_v34  ;;  %v4549_v40 = vmul.f32 %v4225_v63, %v3253_v18  ;;  %v4224_v14 = vadd.f32 1.0, %v6451_v46  ;;  %v3093_v5 = vmul.f32 0.5, %v9974_v35  ;;  %12331 = vst [vmem:[#allocation63_spill] sm:$0xff] %v10076_v31  ;;  %v12333_v34 = vld [vmem:[#allocation94_spill] sm:$0xff]  ;;  %v12335_v63 = vld [vmem:[#allocation64_spill] sm:$0xff]  ;;  %v12336_v46 = vld [vmem:[#allocation33_spill] sm:$0xff] }
 0x202   :  { %v3418_v9 = vmul.f32 0.70710677, %v10055_v62  ;;  %v4386_v41 = vmul.f32 %v4062_v20, %v3090_v10  ;;  %v4065_v42 = vadd.f32 1.0, %v6453_v53  ;;  %v3255_v3 = vmul.f32 0.5, %v2617_v7  ;;  %v12339_v31 = vld [vmem:[#allocation68_spill] sm:$0xff] }
 0x203   :  { %12329 = vst [vmem:[#allocation103_spill] sm:$0xff] %v10069_v50  ;;  %6462 = verf.f32 %v3581_v36  ;;  %v12334_v48 = vmax.f32 %v12332_v24, %v12333_v34  ;;  %v4548_v58 = vmul.f32 %v4224_v14, %v3252_v54  ;;  %v3580_v18 = vmul.f32 0.70710677, %v10064_v39  ;;  %v6455_v35 = vpop.eup %6454  ;;  %v12338_v36 = vld [vmem:[#allocation25_spill] sm:$0xff]  ;;  %v10093_v24 = vpop.f32.mrb[123].mxu0 }
 0x204   :  { %6464 = verf.f32 %v3418_v9  ;;  %v12337_v10 = vmax.f32 %v12335_v63, %v12336_v46  ;;  %v4389_v7 = vmul.f32 %v4065_v42, %v3093_v5  ;;  %v1827_v53 = vadd.f32 %v9862_v29, %v12338_v36  ;;  %12340 = vst [vmem:[#allocation15_spill] sm:$0xff] %v10093_v24  ;;  %v6457_v54 = vpop.eup %6456 }
 0x205   :  { %v10081_v45 = vmax.f32 %v12334_v48, %v4549_v40  ;;  %v2637_v60 = vadd.f32 %v9862_v29, %v12339_v31  ;;  %v10095_v40 = vpop.f32.mrb[123].mxu1  ;;  %v12342_v14 = vmax.f32 %v9277_v30, %v9693_v28  ;;  %v4227_v34 = vadd.f32 1.0, %v6455_v35 }
 0x206   :  { %v10087_v20 = vmax.f32 %v12337_v10, %v4386_v41  ;;  %12341 = vst [vmem:[#allocation104_spill] sm:$0xff] %v10095_v40  ;;  %6466 = verf.f32 %v3580_v18  ;;  %v12344_v41 = vld [vmem:[#allocation69_spill] sm:$0xff]  ;;  %v12345_v42 = vmax.f32 %v9287_v8, %v9713_v4  ;;  %v3092_v31 = vmul.f32 0.5, %v10008_v27  ;;  %v10114_v8 = vpop.f32.mrb[124].mxu0  ;;  %v10116_v4 = vpop.f32.mrb[124].mxu1 }
 0x207   :  { %v10100_v9 = vmax.f32 %v12342_v14, %v4548_v58  ;;  %v1822_v5 = vadd.f32 %v9862_v29, %v12344_v41  ;;  %v4064_v63 = vadd.f32 1.0, %v6457_v54  ;;  %v3421_v46 = vmul.f32 0.70710677, %v1827_v53  ;;  %v6459_v58 = vpop.eup %6458  ;;  %v12347_v14 = vld [vmem:[#allocation26_spill] sm:$0xff]  ;;  %12348 = vst [vmem:[#allocation52_spill] sm:$0xff] %v10114_v8  ;;  %12349 = vst [vmem:[#allocation105_spill] sm:$0xff] %v10116_v4 }
 0x208   :  { %v10107_v48 = vmax.f32 %v12345_v42, %v4389_v7  ;;  %v4551_v10 = vmul.f32 %v4227_v34, %v3255_v3  ;;  %v3254_v36 = vmul.f32 0.5, %v10023_v38  ;;  %v3095_v30 = vmul.f32 0.5, %v10027_v25  ;;  %v12350_v7 = vld [vmem:[#allocation24_spill] sm:$0xff]  ;;  %v12354_v25 = vld [vmem:[#allocation98_spill] sm:$0xff]  ;;  %v10130_v4 = vpop.f32.mrb[125].mxu0  ;;  %v10132_v24 = vpop.f32.mrb[125].mxu1 }
 0x209   :  { %12343 = vst [vmem:[#allocation16_spill] sm:$0xff] %v10100_v9  ;;  %v3583_v28 = vmul.f32 0.70710677, %v2637_v60  ;;  %v4388_v18 = vmul.f32 %v4064_v63, %v3092_v31  ;;  %6468 = verf.f32 %v3421_v46  ;;  %v3420_v35 = vmul.f32 0.70710677, %v1822_v5  ;;  %v6461_v27 = vpop.eup %6460  ;;  %v12351_v54 = vld [vmem:[#allocation40_spill] sm:$0xff] }
 0x20a   :  { %12346 = vst [vmem:[#allocation91_spill] sm:$0xff] %v10107_v48  ;;  %v2632_v41 = vadd.f32 %v9862_v29, %v12347_v14  ;;  %v12352_v3 = vmax.f32 %v12350_v7, %v12351_v54  ;;  %v4226_v38 = vadd.f32 1.0, %v6459_v58  ;;  %v1837_v42 = vadd.f32 %v9862_v29, %v12354_v25  ;;  %v12355_v31 = vld [vmem:[#allocation97_spill] sm:$0xff]  ;;  %v12356_v63 = vld [vmem:[#allocation108_spill] sm:$0xff]  ;;  %12358 = vst [vmem:[#allocation67_spill] sm:$0xff] %v10130_v4 }
 0x20b   :  { %6470 = verf.f32 %v3583_v28  ;;  %v12357_v46 = vmax.f32 %v12355_v31, %v12356_v63  ;;  %v4067_v14 = vadd.f32 1.0, %v6461_v27  ;;  %v3257_v8 = vmul.f32 0.5, %v2627_v22  ;;  %12359 = vst [vmem:[#allocation96_spill] sm:$0xff] %v10132_v24  ;;  %v12360_v25 = vld [vmem:[#allocation99_spill] sm:$0xff]  ;;  %v12361_v31 = vld [vmem:[#allocation70_spill] sm:$0xff]  ;;  %v12362_v22 = vld [vmem:[#allocation100_spill] sm:$0xff] }
 0x20c   :  { %v10121_v34 = vmax.f32 %v12352_v3, %v4551_v10  ;;  %6472 = verf.f32 %v3420_v35  ;;  %v4550_v7 = vmul.f32 %v4226_v38, %v3254_v36  ;;  %v3094_v10 = vmul.f32 0.5, %v10055_v62 }
 0x20d   :  { %v10128_v40 = vmax.f32 %v12357_v46, %v4388_v18  ;;  %v3582_v58 = vmul.f32 0.70710677, %v2632_v41  ;;  %v3423_v28 = vmul.f32 0.70710677, %v1837_v42  ;;  %v6463_v54 = vpop.eup %6462  ;;  %v4391_v3 = vmul.f32 %v4067_v14, %v3095_v30  ;;  %v12365_v30 = vld [vmem:[#allocation31_spill] sm:$0xff]  ;;  %v12366_v46 = vld [vmem:[#allocation28_spill] sm:$0xff] }
 0x20e   :  { %12353 = vst [vmem:[#allocation66_spill] sm:$0xff] %v10121_v34  ;;  %v2647_v56 = vadd.f32 %v9862_v29, %v12360_v25  ;;  %v10139_v18 = vadd.f32 %v9862_v29, %v12361_v31  ;;  %v10143_v35 = vadd.f32 %v9862_v29, %v12362_v22  ;;  %v6465_v27 = vpop.eup %6464  ;;  %v12363_v36 = vmax.f32 %v9327_v2, %v9738_v1  ;;  %v12367_v14 = vld [vmem:[#allocation43_spill] sm:$0xff] }
 0x20f   :  { %v4229_v38 = vadd.f32 1.0, %v6463_v54  ;;  %6474 = verf.f32 %v3582_v58  ;;  %v10152_v63 = vadd.f32 %v9862_v29, %v12365_v30  ;;  %v12368_v25 = vmax.f32 %v12366_v46, %v12367_v14  ;;  %v10164_v46 = vpop.f32.mrb[126].mxu1 }
 0x210   :  { %v10148_v62 = vmax.f32 %v12363_v36, %v4550_v7  ;;  %v4066_v24 = vadd.f32 1.0, %v6465_v27  ;;  %v3256_v22 = vmul.f32 0.5, %v10064_v39  ;;  %6476 = verf.f32 %v3423_v28  ;;  %v6467_v4 = vpop.eup %6466  ;;  %12371 = vst [vmem:[#allocation33_spill] sm:$0xff] %v10164_v46  ;;  %v12373_v27 = vld [vmem:[#allocation9_spill] sm:$0xff] }
 0x211   :  { %v10157_v31 = vmax.f32 %v12368_v25, %v4391_v3  ;;  %v4553_v11 = vmul.f32 %v4229_v38, %v3257_v8  ;;  %v3097_v2 = vmul.f32 0.5, %v1827_v53  ;;  %v3585_v1 = vmul.f32 0.70710677, %v2647_v56  ;;  %v12372_v3 = vld [vmem:[#allocation27_spill] sm:$0xff] }
 0x212   :  { %12364 = vst [vmem:[#allocation21_spill] sm:$0xff] %v10148_v62  ;;  %v3422_v7 = vmul.f32 0.70710677, %v10139_v18  ;;  %v4390_v58 = vmul.f32 %v4066_v24, %v3094_v10  ;;  %v4228_v54 = vadd.f32 1.0, %v6467_v4  ;;  %v3259_v36 = vmul.f32 0.5, %v2637_v60  ;;  %v10162_v62 = vpop.f32.mrb[126].mxu0 }
 0x213   :  { %12369 = vst [vmem:[#allocation94_spill] sm:$0xff] %v10157_v31  ;;  %v3584_v30 = vmul.f32 0.70710677, %v10143_v35  ;;  %12370 = vst [vmem:[#allocation64_spill] sm:$0xff] %v10162_v62  ;;  %v12374_v14 = vmax.f32 %v12372_v3, %v12373_v27  ;;  %v3096_v28 = vmul.f32 0.5, %v1822_v5  ;;  %6478 = verf.f32 %v3585_v1  ;;  %v10172_v8 = vpop.f32.mrb[127].mxu0  ;;  %v6469_v60 = vpop.eup %6468 }
 0x214   :  { %v3425_v53 = vmul.f32 0.70710677, %v10152_v63  ;;  %12376 = vst [vmem:[#allocation68_spill] sm:$0xff] %v10172_v8  ;;  %v10174_v24 = vpop.f32.mrb[127].mxu1  ;;  %v12378_v4 = vmax.f32 %v9383_v13, %v9773_v47  ;;  %v4552_v38 = vmul.f32 %v4228_v54, %v3256_v22  ;;  %6480 = verf.f32 %v3422_v7  ;;  %v12380_v25 = vld [vmem:[#allocation75_spill] sm:$0xff]  ;;  %v12381_v1 = vld [vmem:[#allocation76_spill] sm:$0xff] }
 0x215   :  { %v10169_v39 = vmax.f32 %v12374_v14, %v4553_v11  ;;  %12377 = vst [vmem:[#allocation69_spill] sm:$0xff] %v10174_v24  ;;  %v2657_v11 = vadd.f32 %v9862_v29, %v12380_v25  ;;  %v6471_v3 = vpop.eup %6470  ;;  %v4069_v5 = vadd.f32 1.0, %v6469_v60  ;;  %6482 = verf.f32 %v3584_v30  ;;  %v12382_v14 = vld [vmem:[#allocation72_spill] sm:$0xff]  ;;  %v12383_v13 = vld [vmem:[#allocation110_spill] sm:$0xff]  ;;  %v12387_v31 = vld [vmem:[#allocation111_spill] sm:$0xff] }
 0x216   :  { %v10179_v10 = vmax.f32 %v12378_v4, %v4390_v58  ;;  %v1842_v27 = vadd.f32 %v9862_v29, %v12381_v1  ;;  %v10187_v24 = vadd.f32 %v9862_v29, %v12382_v14  ;;  %v6473_v8 = vpop.eup %6472  ;;  %v12384_v47 = vmax.f32 %v9392_v52, %v12383_v13  ;;  %v10195_v14 = vpop.f32.mrb[128].mxu0 }
 0x217   :  { %12375 = vst [vmem:[#allocation25_spill] sm:$0xff] %v10169_v39  ;;  %v4231_v22 = vadd.f32 1.0, %v6471_v3  ;;  %v3258_v7 = vmul.f32 0.5, %v2632_v41  ;;  %6484 = verf.f32 %v3425_v53  ;;  %v4393_v54 = vmul.f32 %v4069_v5, %v3097_v2  ;;  %12385 = vst [vmem:[#allocation24_spill] sm:$0xff] %v10195_v14  ;;  %v12386_v39 = vld [vmem:[#allocation71_spill] sm:$0xff]  ;;  %v12389_v41 = vld [vmem:[#allocation73_spill] sm:$0xff] }
 0x218   :  { %12379 = vst [vmem:[#allocation26_spill] sm:$0xff] %v10179_v10  ;;  %v10192_v58 = vmax.f32 %v12384_v47, %v4552_v38  ;;  %v4068_v4 = vadd.f32 1.0, %v6473_v8  ;;  %v3099_v60 = vmul.f32 0.5, %v1837_v42  ;;  %v3587_v30 = vmul.f32 0.70710677, %v2657_v11  ;;  %v10206_v42 = vpop.f32.mrb[128].mxu1 }
 0x219   :  { %v4555_v25 = vmul.f32 %v4231_v22, %v3259_v36  ;;  %v3261_v46 = vmul.f32 0.5, %v2647_v56  ;;  %v3424_v1 = vmul.f32 0.70710677, %v1842_v27  ;;  %v3586_v62 = vmul.f32 0.70710677, %v10187_v24  ;;  %v6475_v10 = vpop.eup %6474  ;;  %12390 = vst [vmem:[#allocation40_spill] sm:$0xff] %v10206_v42 }
 0x21a   :  { %v12388_v52 = vmax.f32 %v12386_v39, %v12387_v31  ;;  %v4392_v3 = vmul.f32 %v4068_v4, %v3096_v28  ;;  %6486 = verf.f32 %v3587_v30  ;;  %v10204_v2 = vadd.f32 %v9862_v29, %v12389_v41  ;;  %v6477_v56 = vpop.eup %6476  ;;  %v12391_v36 = vld [vmem:[#allocation29_spill] sm:$0xff]  ;;  %v12392_v53 = vld [vmem:[#allocation12_spill] sm:$0xff]  ;;  %v12394_v47 = vld [vmem:[#allocation30_spill] sm:$0xff]  ;;  %v10217_v39 = vpop.f32.mrb[129].mxu0 }
 0x21b   :  { %v12393_v8 = vmax.f32 %v12391_v36, %v12392_v53  ;;  %v4230_v13 = vadd.f32 1.0, %v6475_v10  ;;  %6488 = verf.f32 %v3424_v1  ;;  %v10215_v31 = vadd.f32 %v9862_v29, %v12394_v47  ;;  %12395 = vst [vmem:[#allocation98_spill] sm:$0xff] %v10217_v39  ;;  %v10219_v28 = vpop.f32.mrb[129].mxu1 }
 0x21c   :  { %v10200_v38 = vmax.f32 %v12388_v52, %v4393_v54  ;;  %12396 = vst [vmem:[#allocation97_spill] sm:$0xff] %v10219_v28  ;;  %v12397_v22 = vmax.f32 %v9436_v6, %v9816_v55  ;;  %v4071_v4 = vadd.f32 1.0, %v6477_v56  ;;  %v3098_v30 = vmul.f32 0.5, %v10139_v18  ;;  %v12399_v55 = vld [vmem:[#allocation102_spill] sm:$0xff] }
 0x21d   :  { %v10211_v5 = vmax.f32 %v12393_v8, %v4555_v25  ;;  %6490 = verf.f32 %v3586_v62  ;;  %v4554_v25 = vmul.f32 %v4230_v13, %v3258_v7  ;;  %v3260_v10 = vmul.f32 0.5, %v10143_v35  ;;  %v6479_v41 = vpop.eup %6478  ;;  %v12398_v8 = vld [vmem:[#allocation101_spill] sm:$0xff]  ;;  %v12402_v56 = vld [vmem:[#allocation34_spill] sm:$0xff]  ;;  %v10248_v13 = vpop.f32.mrb[130].mxu1 }
 0x21e   :  { %v10224_v54 = vmax.f32 %v12397_v22, %v4392_v3  ;;  %v3427_v1 = vmul.f32 0.70710677, %v10204_v2  ;;  %v3589_v52 = vmul.f32 0.70710677, %v10215_v31  ;;  %v4395_v36 = vmul.f32 %v4071_v4, %v3099_v60  ;;  %v6481_v18 = vpop.eup %6480  ;;  %12404 = vst [vmem:[#allocation70_spill] sm:$0xff] %v10248_v13 }
 0x21f   :  { %v3101_v53 = vmul.f32 0.5, %v10152_v63  ;;  %v1852_v6 = vadd.f32 %v9862_v29, %v12398_v8  ;;  %v10235_v3 = vadd.f32 %v9862_v29, %v12399_v55  ;;  %v12400_v62 = vmax.f32 %v9455_v23, %v9836_v57  ;;  %v10246_v63 = vpop.f32.mrb[130].mxu0  ;;  %v6483_v47 = vpop.eup %6482  ;;  %v12407_v55 = vld [vmem:[#allocation35_spill] sm:$0xff] }
 0x220   :  { %v4233_v7 = vadd.f32 1.0, %v6479_v41  ;;  %6492 = verf.f32 %v3427_v1  ;;  %v10244_v60 = vadd.f32 %v9862_v29, %v12402_v56  ;;  %12403 = vst [vmem:[#allocation99_spill] sm:$0xff] %v10246_v63  ;;  %v12405_v22 = vmax.f32 %v9461_v0, %v9839_v61  ;;  %v10259_v56 = vpop.f32.mrb[131].mxu0  ;;  %v12409_v61 = vld [vmem:[#allocation74_spill] sm:$0xff] }
 0x221   :  { %v10240_v35 = vmax.f32 %v12400_v62, %v4554_v25  ;;  %v4070_v8 = vadd.f32 1.0, %v6481_v18  ;;  %v3263_v23 = vmul.f32 0.5, %v2657_v11  ;;  %6494 = verf.f32 %v3589_v52  ;;  %v6485_v57 = vpop.eup %6484  ;;  %12408 = vst [vmem:[#allocation31_spill] sm:$0xff] %v10259_v56 }
 0x222   :  { %v10253_v4 = vmax.f32 %v12405_v22, %v4395_v36  ;;  %v4557_v25 = vmul.f32 %v4233_v7, %v3261_v46  ;;  %v4232_v1 = vadd.f32 1.0, %v6483_v47  ;;  %v3426_v41 = vmul.f32 0.70710677, %v1852_v6  ;;  %v12410_v36 = vld [vmem:[#allocation56_spill] sm:$0xff]  ;;  %v10268_v7 = vpop.f32.mrb[131].mxu1  ;;  %v12414_v22 = vld [vmem:[#allocation114_spill] sm:$0xff] }
 0x223   :  { %12401 = vst [vmem:[#allocation108_spill] sm:$0xff] %v10240_v35  ;;  %v10257_v62 = vadd.f32 %v9862_v29, %v12407_v55  ;;  %v4394_v13 = vmul.f32 %v4070_v8, %v3098_v30  ;;  %v4073_v63 = vadd.f32 1.0, %v6485_v57  ;;  %v3100_v28 = vmul.f32 0.5, %v1842_v27  ;;  %12413 = vst [vmem:[#allocation43_spill] sm:$0xff] %v10268_v7 }
 0x224   :  { %12406 = vst [vmem:[#allocation100_spill] sm:$0xff] %v10253_v4  ;;  %v3588_v0 = vmul.f32 0.70710677, %v10235_v3  ;;  %v12411_v18 = vmax.f32 %v12409_v61, %v12410_v36  ;;  %v4556_v52 = vmul.f32 %v4232_v1, %v3260_v10  ;;  %6496 = verf.f32 %v3426_v41  ;;  %v6487_v47 = vpop.eup %6486  ;;  %v12417_v61 = vld [vmem:[#allocation116_spill] sm:$0xff] }
 0x225   :  { %v3429_v46 = vmul.f32 0.70710677, %v10244_v60  ;;  %v12415_v55 = vmax.f32 %v9489_v26, %v12414_v22  ;;  %v10275_v27 = vmul.f32 %v4073_v63, %v3101_v53  ;;  %v3262_v8 = vmul.f32 0.5, %v10187_v24  ;;  %v6489_v57 = vpop.eup %6488  ;;  %v12419_v53 = vld [vmem:[#allocation38_spill] sm:$0xff]  ;;  %v12420_v24 = vld [vmem:[#allocation84_spill] sm:$0xff] }
 0x226   :  { %v10265_v11 = vmax.f32 %v12411_v18, %v4557_v25  ;;  %6498 = verf.f32 %v3588_v0  ;;  %v12416_v25 = vld [vmem:[#allocation77_spill] sm:$0xff]  ;;  %v4235_v41 = vadd.f32 1.0, %v6487_v47  ;;  %v3591_v36 = vmul.f32 0.70710677, %v10257_v62  ;;  %v12421_v47 = vld [vmem:[#allocation78_spill] sm:$0xff] }
 0x227   :  { %v10273_v30 = vmax.f32 %v12415_v55, %v4394_v13  ;;  %v12418_v10 = vmax.f32 %v12416_v25, %v12417_v61  ;;  %6500 = verf.f32 %v3429_v46  ;;  %v6491_v18 = vpop.eup %6490  ;;  %v4072_v13 = vadd.f32 1.0, %v6489_v57  ;;  %v10298_v55 = vpop.f32.mrb[132].mxu0 }
 0x228   :  { %12412 = vst [vmem:[#allocation28_spill] sm:$0xff] %v10265_v11  ;;  %v1862_v63 = vadd.f32 %v9862_v29, %v12419_v53  ;;  %v10290_v0 = vadd.f32 %v9862_v29, %v12420_v24  ;;  %v10292_v22 = vmul.f32 %v4235_v41, %v3263_v23  ;;  %6502 = verf.f32 %v3591_v36  ;;  %12422 = vst [vmem:[#allocation27_spill] sm:$0xff] %v10298_v55  ;;  %v10300_v25 = vpop.f32.mrb[132].mxu1  ;;  %v10306_v24 = vpop.f32.mrb[133].mxu0  ;;  %v12427_v41 = vld [vmem:[#allocation87_spill] sm:$0xff]  ;;  %v12428_v55 = vld [vmem:[#allocation32_spill] sm:$0xff] }
 0x229   :  { %v10281_v1 = vmax.f32 %v12418_v10, %v4556_v52  ;;  %v4234_v52 = vadd.f32 1.0, %v6491_v18  ;;  %v10296_v46 = vadd.f32 %v9862_v29, %v12421_v47  ;;  %12423 = vst [vmem:[#allocation9_spill] sm:$0xff] %v10300_v25  ;;  %v10302_v57 = vmul.f32 %v4072_v13, %v3100_v28  ;;  %12424 = vst [vmem:[#allocation75_spill] sm:$0xff] %v10306_v24  ;;  %v10313_v26 = vpop.f32.mrb[133].mxu1  ;;  %v10343_v56 = vpop.f32.mrb[134].mxu0 }
 0x22a   :  { %v3103_v61 = vmul.f32 0.5, %v10204_v2  ;;  %v3265_v10 = vmul.f32 0.5, %v10215_v31  ;;  %v3428_v53 = vmul.f32 0.70710677, %v1862_v63  ;;  %v6493_v23 = vpop.eup %6492  ;;  %v3102_v18 = vmul.f32 0.5, %v1852_v6  ;;  %12425 = vst [vmem:[#allocation76_spill] sm:$0xff] %v10313_v26 }
 0x22b   :  { %v10310_v36 = vmul.f32 %v4234_v52, %v3262_v8  ;;  %v3590_v47 = vmul.f32 0.70710677, %v10290_v0  ;;  %v6495_v28 = vpop.eup %6494  ;;  %v4075_v13 = vadd.f32 1.0, %v6493_v23  ;;  %v3431_v31 = vmul.f32 0.70710677, %v10296_v46  ;;  %v12426_v8 = vld [vmem:[#allocation41_spill] sm:$0xff] }
 0x22c   :  { %6504 = verf.f32 %v3428_v53  ;;  %v4237_v25 = vadd.f32 1.0, %v6495_v28  ;;  %v2687_v6 = vadd.f32 %v9862_v29, %v12426_v8  ;;  %v1872_v26 = vadd.f32 %v9862_v29, %v12427_v41  ;;  %12430 = vst [vmem:[#allocation72_spill] sm:$0xff] %v10343_v56 }
 0x22d   :  { %6506 = verf.f32 %v3590_v47  ;;  %v10322_v52 = vmul.f32 %v4075_v13, %v3103_v61  ;;  %v10328_v23 = vadd.f32 %v9862_v29, %v12428_v55  ;;  %v3264_v24 = vmul.f32 0.5, %v10235_v3  ;;  %v12429_v47 = vld [vmem:[#allocation79_spill] sm:$0xff] }
 0x22e   :  { %6508 = verf.f32 %v3431_v31  ;;  %v6497_v53 = vpop.eup %6496  ;;  %v10330_v2 = vmul.f32 %v4237_v25, %v3265_v10  ;;  %v3593_v28 = vmul.f32 0.70710677, %v2687_v6  ;;  %v10335_v7 = vadd.f32 %v9862_v29, %v12429_v47  ;;  %v10345_v47 = vpop.f32.mrb[134].mxu1 }
 0x22f   :  { %v4074_v31 = vadd.f32 1.0, %v6497_v53  ;;  %v3105_v41 = vmul.f32 0.5, %v10244_v60  ;;  %v3430_v8 = vmul.f32 0.70710677, %v1872_v26  ;;  %v3267_v3 = vmul.f32 0.5, %v10257_v62  ;;  %12431 = vst [vmem:[#allocation110_spill] sm:$0xff] %v10345_v47 }
 0x230   :  { %v6499_v61 = vpop.eup %6498  ;;  %6510 = verf.f32 %v3593_v28  ;;  %v3592_v53 = vmul.f32 0.70710677, %v10328_v23  ;;  %v10350_v60 = vpop.f32.mrb[135].mxu0  ;;  %v3433_v62 = vmul.f32 0.70710677, %v10335_v7  ;;  %v12435_v28 = vld [vmem:[#allocation80_spill] sm:$0xff] }
 0x231   :  { %v6501_v55 = vpop.eup %6500  ;;  %v4236_v10 = vadd.f32 1.0, %v6499_v61  ;;  %v10347_v39 = vmul.f32 %v4074_v31, %v3102_v18  ;;  %6512 = verf.f32 %v3430_v8  ;;  %12432 = vst [vmem:[#allocation71_spill] sm:$0xff] %v10350_v60  ;;  %v10352_v13 = vpop.f32.mrb[135].mxu1  ;;  %v3104_v61 = vmul.f32 0.5, %v1862_v63  ;;  %v12438_v60 = vld [vmem:[#allocation81_spill] sm:$0xff] }
 0x232   :  { %v4077_v42 = vadd.f32 1.0, %v6501_v55  ;;  %12433 = vst [vmem:[#allocation111_spill] sm:$0xff] %v10352_v13  ;;  %v6503_v14 = vpop.eup %6502  ;;  %v10359_v56 = vadd.f32 %v9862_v29, %v12435_v28  ;;  %6514 = verf.f32 %v3592_v53  ;;  %v10384_v47 = vpop.f32.mrb[136].mxu0  ;;  %v3269_v19 = vmul.f32 0.5, %v2687_v6 }
 0x233   :  { %v10354_v25 = vmul.f32 %v4236_v10, %v3264_v24  ;;  %v4239_v8 = vadd.f32 1.0, %v6503_v14  ;;  %v3266_v24 = vmul.f32 0.5, %v10290_v0  ;;  %6516 = verf.f32 %v3433_v62  ;;  %v12440_v62 = vld [vmem:[#allocation85_spill] sm:$0xff]  ;;  %12441 = vst [vmem:[#allocation30_spill] sm:$0xff] %v10384_v47 }
 0x234   :  { %v10363_v31 = vmul.f32 %v4077_v42, %v3105_v41  ;;  %v3595_v63 = vmul.f32 0.70710677, %v10359_v56  ;;  %v1882_v42 = vadd.f32 %v9862_v29, %v12438_v60  ;;  %v12439_v41 = vld [vmem:[#allocation83_spill] sm:$0xff]  ;;  %v3107_v0 = vmul.f32 0.5, %v10296_v46  ;;  %v10394_v46 = vpop.f32.mrb[137].mxu0 }
 0x235   :  { %12434 = vst [vmem:[#allocation73_spill] sm:$0xff] %v10354_v25  ;;  %v10371_v13 = vmul.f32 %v4239_v8, %v3267_v3  ;;  %v10377_v14 = vadd.f32 %v9862_v29, %v12439_v41  ;;  %v10382_v18 = vadd.f32 %v9862_v29, %v12440_v62  ;;  %v10386_v3 = vpop.f32.mrb[136].mxu1  ;;  %12444 = vst [vmem:[#allocation102_spill] sm:$0xff] %v10394_v46 }
 0x236   :  { %12436 = vst [vmem:[#allocation29_spill] sm:$0xff] %v10363_v31  ;;  %v6505_v10 = vpop.eup %6504  ;;  %6518 = verf.f32 %v3595_v63  ;;  %12442 = vst [vmem:[#allocation101_spill] sm:$0xff] %v10386_v3  ;;  %v3432_v41 = vmul.f32 0.70710677, %v1882_v42  ;;  %v12443_v31 = vld [vmem:[#allocation86_spill] sm:$0xff]  ;;  %v3106_v3 = vmul.f32 0.5, %v1872_v26 }
 0x237   :  { %12437 = vst [vmem:[#allocation12_spill] sm:$0xff] %v10371_v13  ;;  %v6507_v53 = vpop.eup %6506  ;;  %v4076_v55 = vadd.f32 1.0, %v6505_v10  ;;  %v10392_v10 = vadd.f32 %v9862_v29, %v12443_v31  ;;  %v3594_v47 = vmul.f32 0.70710677, %v10377_v14  ;;  %v3435_v60 = vmul.f32 0.70710677, %v10382_v18 }
 0x238   :  { %v6509_v8 = vpop.eup %6508  ;;  %v4238_v28 = vadd.f32 1.0, %v6507_v53  ;;  %6520 = verf.f32 %v3432_v41  ;;  %v10402_v53 = vpop.f32.mrb[137].mxu1  ;;  %v12447_v31 = vld [vmem:[#allocation22_spill] sm:$0xff] }
 0x239   :  { %v10396_v63 = vmul.f32 %v4076_v55, %v3104_v61  ;;  %v4079_v62 = vadd.f32 1.0, %v6509_v8  ;;  %12446 = vst [vmem:[#allocation35_spill] sm:$0xff] %v10402_v53  ;;  %v3268_v61 = vmul.f32 0.5, %v10328_v23  ;;  %6522 = verf.f32 %v3594_v47  ;;  %v12449_v55 = vld [vmem:[#allocation47_spill] sm:$0xff]  ;;  %v12450_v53 = vld [vmem:[#allocation89_spill] sm:$0xff]  ;;  %v10429_v8 = vpop.f32.mrb[138].mxu0 }
 0x23a   :  { %v10399_v25 = vmul.f32 %v4238_v28, %v3266_v24  ;;  %v6511_v13 = vpop.eup %6510  ;;  %6524 = verf.f32 %v3435_v60  ;;  %v3597_v26 = vmul.f32 0.70710677, %v10392_v10  ;;  %v10416_v17 = vadd.f32 %v9862_v29, %v12450_v53  ;;  %v12453_v60 = vld [vmem:[#allocation92_spill] sm:$0xff]  ;;  %12454 = vst [vmem:[#allocation114_spill] sm:$0xff] %v10429_v8 }
 0x23b   :  { %v10406_v37 = vmul.f32 %v4079_v62, %v3107_v0  ;;  %v6513_v6 = vpop.eup %6512  ;;  %v4241_v28 = vadd.f32 1.0, %v6511_v13  ;;  %v12451_v0 = vld [vmem:[#allocation90_spill] sm:$0xff]  ;;  %v3109_v13 = vmul.f32 0.5, %v10335_v7  ;;  %v10427_v24 = vadd.f32 %v9862_v29, %v12453_v60  ;;  %v10440_v7 = vpop.f32.mrb[139].mxu0 }
 0x23c   :  { %12445 = vst [vmem:[#allocation34_spill] sm:$0xff] %v10399_v25  ;;  %v4078_v41 = vadd.f32 1.0, %v6513_v6  ;;  %v10420_v23 = vadd.f32 %v9862_v29, %v12451_v0  ;;  %v6515_v47 = vpop.eup %6514  ;;  %6526 = verf.f32 %v3597_v26  ;;  %v10431_v6 = vpop.f32.mrb[138].mxu1  ;;  %v3434_v0 = vmul.f32 0.70710677, %v10416_v17  ;;  %12457 = vst [vmem:[#allocation116_spill] sm:$0xff] %v10440_v7 }
 0x23d   :  { %12448 = vst [vmem:[#allocation74_spill] sm:$0xff] %v10406_v37  ;;  %v10422_v62 = vmul.f32 %v4241_v28, %v3269_v19  ;;  %12455 = vst [vmem:[#allocation77_spill] sm:$0xff] %v10431_v6  ;;  %v6517_v53 = vpop.eup %6516  ;;  %v4240_v37 = vadd.f32 1.0, %v6515_v47  ;;  %v10438_v19 = vadd.f32 %v9862_v29, %v12456_v32  ;;  %v3271_v60 = vmul.f32 0.5, %v10359_v56  ;;  %v10450_v32 = vpop.f32.mrb[139].mxu1 }
 0x23e   :  { %v10433_v46 = vmul.f32 %v4078_v41, %v3106_v3  ;;  %v4081_v26 = vadd.f32 1.0, %v6517_v53  ;;  %v3596_v6 = vmul.f32 0.70710677, %v10420_v23  ;;  %v3108_v47 = vmul.f32 0.5, %v1882_v42  ;;  %12459 = vst [vmem:[#allocation84_spill] sm:$0xff] %v10450_v32  ;;  %v12461_v3 = vld [vmem:[#allocation106_spill] sm:$0xff] }
 0x23f   :  { %12452 = vst [vmem:[#allocation56_spill] sm:$0xff] %v10422_v62  ;;  %v10448_v41 = vmul.f32 %v4240_v37, %v3268_v61  ;;  %6528 = verf.f32 %v3434_v0  ;;  %v3437_v53 = vmul.f32 0.70710677, %v10427_v24  ;;  %v3270_v28 = vmul.f32 0.5, %v10377_v14  ;;  %v10471_v32 = vpop.f32.mrb[140].mxu0 }
 0x240   :  { %v6519_v8 = vpop.eup %6518  ;;  %v10452_v25 = vmul.f32 %v4081_v26, %v3109_v13  ;;  %6530 = verf.f32 %v3596_v6  ;;  %v3599_v62 = vmul.f32 0.70710677, %v10438_v19  ;;  %v10461_v37 = vadd.f32 %v9862_v29, %v12461_v3  ;;  %12463 = vst [vmem:[#allocation41_spill] sm:$0xff] %v10471_v32  ;;  %v10473_v3 = vpop.f32.mrb[140].mxu1 }
 0x241   :  { %12458 = vst [vmem:[#allocation38_spill] sm:$0xff] %v10448_v41  ;;  %v4243_v7 = vadd.f32 1.0, %v6519_v8  ;;  %6532 = verf.f32 %v3437_v53  ;;  %v12462_v8 = vld [vmem:[#allocation93_spill] sm:$0xff]  ;;  %v3111_v14 = vmul.f32 0.5, %v10382_v18  ;;  %12464 = vst [vmem:[#allocation87_spill] sm:$0xff] %v10473_v3  ;;  %v3273_v53 = vmul.f32 0.5, %v10392_v10 }
 0x242   :  { %12460 = vst [vmem:[#allocation78_spill] sm:$0xff] %v10452_v25  ;;  %v6521_v42 = vpop.eup %6520  ;;  %v2712_v6 = vadd.f32 %v9862_v29, %v12462_v8  ;;  %6534 = verf.f32 %v3599_v62  ;;  %v3436_v56 = vmul.f32 0.70710677, %v10461_v37  ;;  %v12466_v18 = vld [vmem:[#allocation5_spill] sm:$0xff]  ;;  %v10484_v25 = vpop.f32.mrb[141].mxu0 }
 0x243   :  { %v10465_v13 = vmul.f32 %v4243_v7, %v3271_v60  ;;  %v6523_v0 = vpop.eup %6522  ;;  %v4080_v26 = vadd.f32 1.0, %v6521_v42  ;;  %v10482_v62 = vadd.f32 %v9862_v29, %v12466_v18  ;;  %12467 = vst [vmem:[#allocation79_spill] sm:$0xff] %v10484_v25  ;;  %v10486_v32 = vpop.f32.mrb[141].mxu1  ;;  %v10493_v10 = vld [vmem:[%s11667_s2] ss:$0 sm:$0xff]  ;;  %v3272_v18 = vmul.f32 0.5, %v10420_v23 }
 0x244   :  { %v6525_v41 = vpop.eup %6524  ;;  %v4242_v60 = vadd.f32 1.0, %v6523_v0  ;;  %v3598_v61 = vmul.f32 0.70710677, %v2712_v6  ;;  %6536 = verf.f32 %v3436_v56  ;;  %12468 = vst [vmem:[#allocation80_spill] sm:$0xff] %v10486_v32  ;;  %v12471_v56 = vld [vmem:[#allocation39_spill] sm:$0xff] }
 0x245   :  { %v10478_v8 = vmul.f32 %v4080_v26, %v3108_v47  ;;  %v4083_v42 = vadd.f32 1.0, %v6525_v41  ;;  %v12470_v47 = vld [vmem:[#allocation18_spill] sm:$0xff]  ;;  %v1912_v29 = vadd.f32 %v10493_v10, %v12471_v56  ;;  %v3439_v7 = vmul.f32 0.70710677, %v10482_v62 }
 0x246   :  { %v6527_v3 = vpop.eup %6526  ;;  %v10488_v50 = vmul.f32 %v4242_v60, %v3270_v28  ;;  %6538 = verf.f32 %v3598_v61  ;;  %v10497_v41 = vadd.f32 %v10493_v10, %v12470_v47  ;;  %v3110_v61 = vmul.f32 0.5, %v10416_v17  ;;  %v12475_v60 = vld [vmem:[#allocation6_spill] sm:$0xff] }
 0x247   :  { %12465 = vst [vmem:[#allocation32_spill] sm:$0xff] %v10478_v8  ;;  %v10503_v26 = vmul.f32 %v4083_v42, %v3111_v14  ;;  %v4245_v28 = vadd.f32 1.0, %v6527_v3  ;;  %v3113_v14 = vmul.f32 0.5, %v10427_v24  ;;  %v3438_v3 = vmul.f32 0.70710677, %v1912_v29  ;;  %v10516_v42 = vpop.f32.mrb[142].mxu0 }
 0x248   :  { %12469 = vst [vmem:[#allocation81_spill] sm:$0xff] %v10488_v50  ;;  %v3601_v47 = vmul.f32 0.70710677, %v10497_v41  ;;  %12474 = vst [vmem:[#allocation86_spill] sm:$0xff] %v10516_v42  ;;  %6540 = verf.f32 %v3439_v7  ;;  %v2722_v23 = vadd.f32 %v10493_v10, %v12475_v60  ;;  %v12476_v50 = vld [vmem:[#allocation7_spill] sm:$0xff]  ;;  %v10524_v8 = vpop.f32.mrb[142].mxu1 }
 0x249   :  { %12472 = vst [vmem:[#allocation83_spill] sm:$0xff] %v10503_v26  ;;  %v6529_v32 = vpop.eup %6528  ;;  %v10513_v25 = vmul.f32 %v4245_v28, %v3273_v53  ;;  %v10522_v9 = vadd.f32 %v10493_v10, %v12476_v50  ;;  %12477 = vst [vmem:[#allocation22_spill] sm:$0xff] %v10524_v8  ;;  %v12478_v24 = vld [vmem:[#allocation107_spill] sm:$0xff]  ;;  %v3275_v60 = vmul.f32 0.5, %v10438_v19  ;;  %v10535_v50 = vpop.f32.mrb[143].mxu0  ;;  %v3274_v53 = vmul.f32 0.5, %v2712_v6 }
 0x24a   :  { %v6531_v17 = vpop.eup %6530  ;;  %v4082_v0 = vadd.f32 1.0, %v6529_v32  ;;  %6542 = verf.f32 %v3601_v47  ;;  %v10530_v56 = vadd.f32 %v10493_v10, %v12478_v24  ;;  %v3600_v42 = vmul.f32 0.70710677, %v2722_v23  ;;  %12479 = vst [vmem:[#allocation47_spill] sm:$0xff] %v10535_v50  ;;  %v10537_v26 = vpop.f32.mrb[143].mxu1 }
 0x24b   :  { %12473 = vst [vmem:[#allocation85_spill] sm:$0xff] %v10513_v25  ;;  %v4244_v28 = vadd.f32 1.0, %v6531_v17  ;;  %v6533_v32 = vpop.eup %6532  ;;  %6544 = verf.f32 %v3438_v3  ;;  %12480 = vst [vmem:[#allocation89_spill] sm:$0xff] %v10537_v26  ;;  %v3112_v47 = vmul.f32 0.5, %v10461_v37  ;;  %v3441_v24 = vmul.f32 0.70710677, %v10522_v9 }
 0x24c   :  { %v10532_v7 = vmul.f32 %v4082_v0, %v3110_v61  ;;  %v6535_v8 = vpop.eup %6534  ;;  %v4085_v17 = vadd.f32 1.0, %v6533_v32  ;;  %6546 = verf.f32 %v3600_v42  ;;  %v12485_v26 = vld [vmem:[#allocation42_spill] sm:$0xff]  ;;  %v12486_v0 = vld [vmem:[#allocation8_spill] sm:$0xff] }
 0x24d   :  { %v10539_v48 = vmul.f32 %v4244_v28, %v3272_v18  ;;  %v4247_v61 = vadd.f32 1.0, %v6535_v8  ;;  %6548 = verf.f32 %v3441_v24  ;;  %v3603_v18 = vmul.f32 0.70710677, %v10530_v56  ;;  %v12496_v24 = vld [vmem:[#allocation109_spill] sm:$0xff] }
 0x24e   :  { %v6537_v19 = vpop.eup %6536  ;;  %v10547_v25 = vmul.f32 %v4085_v17, %v3113_v14  ;;  %v1922_v34 = vadd.f32 %v10493_v10, %v12485_v26  ;;  %v10556_v6 = vadd.f32 %v10493_v10, %v12486_v0  ;;  %v12488_v14 = vld [vmem:[#allocation45_spill] sm:$0xff]  ;;  %v3115_v26 = vmul.f32 0.5, %v10482_v62  ;;  %v10571_v0 = vpop.f32.mrb[144].mxu1 }
 0x24f   :  { %12481 = vst [vmem:[#allocation90_spill] sm:$0xff] %v10539_v48  ;;  %v10550_v32 = vmul.f32 %v4247_v61, %v3275_v60  ;;  %v4084_v37 = vadd.f32 1.0, %v6537_v19  ;;  %6550 = verf.f32 %v3603_v18  ;;  %v10562_v17 = vadd.f32 %v10493_v10, %v12488_v14  ;;  %v10569_v48 = vpop.f32.mrb[144].mxu0  ;;  %12492 = vst [vmem:[#allocation5_spill] sm:$0xff] %v10571_v0  ;;  %v10584_v0 = vpop.f32.mrb[145].mxu1 }
 0x250   :  { %12483 = vst [vmem:[#allocation92_spill] sm:$0xff] %v10547_v25  ;;  %v6539_v28 = vpop.eup %6538  ;;  %v3440_v19 = vmul.f32 0.70710677, %v1922_v34  ;;  %12491 = vst [vmem:[#allocation93_spill] sm:$0xff] %v10569_v48  ;;  %v3277_v18 = vmul.f32 0.5, %v10497_v41  ;;  %v10577_v42 = vpop.f32.mrb[145].mxu0  ;;  %v2747_v48 = vadd.f32 %v10493_v10, %v12496_v24 }
 0x251   :  { %12484 = vst [vmem:[#allocation50_spill] sm:$0xff] %v10550_v32  ;;  %v4246_v50 = vadd.f32 1.0, %v6539_v28  ;;  %v10566_v61 = vmul.f32 %v4084_v37, %v3112_v47  ;;  %v3114_v28 = vmul.f32 0.5, %v1912_v29  ;;  %v3602_v14 = vmul.f32 0.70710677, %v10556_v6  ;;  %12494 = vst [vmem:[#allocation39_spill] sm:$0xff] %v10577_v42 }
 0x252   :  { %v6541_v25 = vpop.eup %6540  ;;  %6552 = verf.f32 %v3440_v19  ;;  %v3443_v62 = vmul.f32 0.70710677, %v10562_v17  ;;  %12497 = vst [vmem:[#allocation6_spill] sm:$0xff] %v10584_v0  ;;  %v3276_v19 = vmul.f32 0.5, %v2722_v23  ;;  %v3117_v0 = vmul.f32 0.5, %v10522_v9  ;;  %v10604_v23 = vpop.f32.mrb[146].mxu0 }
 0x253   :  { %12490 = vst [vmem:[#allocation106_spill] sm:$0xff] %v10566_v61  ;;  %v10573_v3 = vmul.f32 %v4246_v50, %v3274_v53  ;;  %v4087_v29 = vadd.f32 1.0, %v6541_v25  ;;  %6554 = verf.f32 %v3602_v14  ;;  %v12498_v50 = vld [vmem:[#allocation46_spill] sm:$0xff]  ;;  %v3605_v61 = vmul.f32 0.70710677, %v2747_v48  ;;  %v12499_v25 = vld [vmem:[#allocation11_spill] sm:$0xff] }
 0x254   :  { %v6543_v53 = vpop.eup %6542  ;;  %v10590_v42 = vadd.f32 %v10493_v10, %v12498_v50  ;;  %6556 = verf.f32 %v3443_v62  ;;  %v2742_v14 = vadd.f32 %v10493_v10, %v12499_v25  ;;  %v12500_v50 = vld [vmem:[#allocation48_spill] sm:$0xff]  ;;  %12501 = vst [vmem:[#allocation7_spill] sm:$0xff] %v10604_v23 }
 0x255   :  { %12493 = vst [vmem:[#allocation18_spill] sm:$0xff] %v10573_v3  ;;  %v6545_v32 = vpop.eup %6544  ;;  %v4249_v37 = vadd.f32 1.0, %v6543_v53  ;;  %v10592_v47 = vmul.f32 %v4087_v29, %v3115_v26  ;;  %6558 = verf.f32 %v3605_v61  ;;  %v10602_v53 = vadd.f32 %v10493_v10, %v12500_v50  ;;  %v10606_v26 = vpop.f32.mrb[146].mxu1  ;;  %v12510_v3 = vld [vmem:[#allocation54_spill] sm:$0xff] }
 0x256   :  { %v4086_v24 = vadd.f32 1.0, %v6545_v32  ;;  %v3442_v60 = vmul.f32 0.70710677, %v10590_v42  ;;  %v6547_v8 = vpop.eup %6546  ;;  %12502 = vst [vmem:[#allocation107_spill] sm:$0xff] %v10606_v26  ;;  %v3279_v29 = vmul.f32 0.5, %v10530_v56  ;;  %v10615_v50 = vpop.f32.mrb[147].mxu0 }
 0x257   :  { %v10596_v41 = vmul.f32 %v4249_v37, %v3277_v18  ;;  %v6549_v32 = vpop.eup %6548  ;;  %v4248_v18 = vadd.f32 1.0, %v6547_v8  ;;  %v3604_v25 = vmul.f32 0.70710677, %v2742_v14  ;;  %12504 = vst [vmem:[#allocation8_spill] sm:$0xff] %v10615_v50  ;;  %v10617_v23 = vpop.f32.mrb[147].mxu1  ;;  %v3121_v11 = vmul.f32 0.5, %v10602_v53 }
 0x258   :  { %v10610_v62 = vmul.f32 %v4086_v24, %v3114_v28  ;;  %6560 = verf.f32 %v3442_v60  ;;  %v4089_v37 = vadd.f32 1.0, %v6549_v32  ;;  %12505 = vst [vmem:[#allocation45_spill] sm:$0xff] %v10617_v23  ;;  %v3116_v28 = vmul.f32 0.5, %v1922_v34  ;;  %v12508_v32 = vld [vmem:[#allocation112_spill] sm:$0xff]  ;;  %v12509_v23 = vld [vmem:[#allocation49_spill] sm:$0xff] }
 0x259   :  { %v6551_v26 = vpop.eup %6550  ;;  %v10621_v9 = vmul.f32 %v4248_v18, %v3276_v19  ;;  %v3445_v8 = vmul.f32 0.70710677, %v10602_v53  ;;  %6562 = verf.f32 %v3604_v25  ;;  %v2757_v56 = vadd.f32 %v10493_v10, %v12508_v32  ;;  %v10641_v25 = vpop.f32.mrb[148].mxu0 }
 0x25a   :  { %12503 = vst [vmem:[#allocation42_spill] sm:$0xff] %v10610_v62  ;;  %v10624_v60 = vmul.f32 %v4089_v37, %v3117_v0  ;;  %v4251_v24 = vadd.f32 1.0, %v6551_v26  ;;  %v1942_v50 = vadd.f32 %v10493_v10, %v12509_v23  ;;  %v10634_v19 = vadd.f32 %v10493_v10, %v12510_v3  ;;  %12512 = vst [vmem:[#allocation48_spill] sm:$0xff] %v10641_v25  ;;  %v10643_v32 = vpop.f32.mrb[148].mxu1 }
 0x25b   :  { %12506 = vst [vmem:[#allocation109_spill] sm:$0xff] %v10621_v9  ;;  %6564 = verf.f32 %v3445_v8  ;;  %v3278_v18 = vmul.f32 0.5, %v10556_v6  ;;  %v3607_v37 = vmul.f32 0.70710677, %v2757_v56  ;;  %12513 = vst [vmem:[#allocation112_spill] sm:$0xff] %v10643_v32  ;;  %v3119_v23 = vmul.f32 0.5, %v10562_v17 }
 0x25c   :  { %12507 = vst [vmem:[#allocation46_spill] sm:$0xff] %v10624_v60  ;;  %v6553_v34 = vpop.eup %6552  ;;  %v10638_v26 = vmul.f32 %v4251_v24, %v3279_v29  ;;  %v3281_v9 = vmul.f32 0.5, %v2747_v48  ;;  %v3444_v3 = vmul.f32 0.70710677, %v1942_v50  ;;  %v3606_v29 = vmul.f32 0.70710677, %v10634_v19 }
 0x25d   :  { %v6555_v8 = vpop.eup %6554  ;;  %v4088_v61 = vadd.f32 1.0, %v6553_v34  ;;  %6566 = verf.f32 %v3607_v37  ;;  %v10649_v6 = vpop.f32.mrb[149].mxu0  ;;  %v12515_v32 = vld [vmem:[#allocation113_spill] sm:$0xff]  ;;  %v12516_v60 = vld [vmem:[#allocation14_spill] sm:$0xff] }
 0x25e   :  { %12511 = vst [vmem:[#allocation11_spill] sm:$0xff] %v10638_v26  ;;  %v6557_v35 = vpop.eup %6556  ;;  %v4250_v0 = vadd.f32 1.0, %v6555_v8  ;;  %12514 = vst [vmem:[#allocation49_spill] sm:$0xff] %v10649_v6  ;;  %6568 = verf.f32 %v3444_v3  ;;  %v1957_v34 = vadd.f32 %v10493_v10, %v12515_v32  ;;  %v2767_v62 = vadd.f32 %v10493_v10, %v12516_v60  ;;  %v12517_v8 = vld [vmem:[#allocation51_spill] sm:$0xff]  ;;  %v10663_v26 = vpop.f32.mrb[149].mxu1 }
 0x25f   :  { %v10651_v24 = vmul.f32 %v4088_v61, %v3116_v28  ;;  %v4091_v25 = vadd.f32 1.0, %v6557_v35  ;;  %v6559_v17 = vpop.eup %6558  ;;  %6570 = verf.f32 %v3606_v29  ;;  %v10661_v37 = vadd.f32 %v10493_v10, %v12517_v8  ;;  %12518 = vst [vmem:[#allocation54_spill] sm:$0xff] %v10663_v26 }
 0x260   :  { %v10655_v48 = vmul.f32 %v4250_v0, %v3278_v18  ;;  %v4253_v3 = vadd.f32 1.0, %v6559_v17  ;;  %v3118_v32 = vmul.f32 0.5, %v10590_v42  ;;  %v3280_v29 = vmul.f32 0.5, %v2742_v14  ;;  %v10681_v14 = vpop.f32.mrb[150].mxu1 }
 0x261   :  { %v4415_v28 = vmul.f32 %v4091_v25, %v3119_v23  ;;  %v3447_v60 = vmul.f32 0.70710677, %v1957_v34  ;;  %v12519_v8 = vmax.f32 %v9889_v21, %v10275_v27  ;;  %v3609_v4 = vmul.f32 0.70710677, %v2767_v62  ;;  %v12520_v23 = vld [vmem:[#allocation115_spill] sm:$0xff]  ;;  %12522 = vst [vmem:[#allocation14_spill] sm:$0xff] %v10681_v14 }
 0x262   :  { %v6561_v61 = vpop.eup %6560  ;;  %v4577_v26 = vmul.f32 %v4253_v3, %v3281_v9  ;;  %v3446_v42 = vmul.f32 0.70710677, %v10661_v37  ;;  %v2762_v17 = vadd.f32 %v10493_v10, %v12520_v23  ;;  %v12523_v21 = vmax.f32 %v9895_v12, %v10292_v22  ;;  %v12524_v9 = vld [vmem:[#allocation57_spill] sm:$0xff]  ;;  %v10697_v23 = vpop.f32.mrb[151].mxu1  ;;  %v12528_v14 = vld [vmem:[#allocation58_spill] sm:$0xff] }
 0x263   :  { %v4090_v18 = vadd.f32 1.0, %v6561_v61  ;;  %v10673_v6 = vmax.f32 %v12519_v8, %v4415_v28  ;;  %v6563_v35 = vpop.eup %6562  ;;  %6572 = verf.f32 %v3447_v60  ;;  %v10679_v61 = vpop.f32.mrb[150].mxu0  ;;  %v1967_v28 = vadd.f32 %v10493_v10, %v12524_v9  ;;  %12527 = vst [vmem:[#allocation115_spill] sm:$0xff] %v10697_v23 }
 0x264   :  { %12521 = vst [vmem:[#allocation113_spill] sm:$0xff] %v10679_v61  ;;  %v10686_v27 = vmax.f32 %v12523_v21, %v4577_v26  ;;  %v4252_v53 = vadd.f32 1.0, %v6563_v35  ;;  %6574 = verf.f32 %v3609_v4  ;;  %v12525_v3 = vmax.f32 %v9910_v44, %v10302_v57  ;;  %v10695_v8 = vpop.f32.mrb[151].mxu0  ;;  %v12529_v61 = vld [vmem:[#allocation59_spill] sm:$0xff]  ;;  %v12530_v57 = vld [vmem:[#allocation17_spill] sm:$0xff] }
 0x265   :  { %v4414_v25 = vmul.f32 %v4090_v18, %v3118_v32  ;;  %v6565_v0 = vpop.eup %6564  ;;  %v3283_v60 = vmul.f32 0.5, %v2757_v56  ;;  %6576 = verf.f32 %v3446_v42  ;;  %12526 = vst [vmem:[#allocation51_spill] sm:$0xff] %v10695_v8  ;;  %v3120_v22 = vmul.f32 0.5, %v1942_v50 }
 0x266   :  { %v4093_v18 = vadd.f32 1.0, %v6565_v0  ;;  %v4576_v12 = vmul.f32 %v4252_v53, %v3280_v29  ;;  %v3608_v26 = vmul.f32 0.70710677, %v2762_v17  ;;  %v3449_v35 = vmul.f32 0.70710677, %v1967_v28 }
 0x267   :  { %v10693_v32 = vmax.f32 %v12525_v3, %v4414_v25  ;;  %v6567_v4 = vpop.eup %6566  ;;  %v2777_v9 = vadd.f32 %v10493_v10, %v12528_v14  ;;  %v10703_v44 = vadd.f32 %v10493_v10, %v12529_v61  ;;  %v10707_v56 = vadd.f32 %v10493_v10, %v12530_v57  ;;  %v12533_v3 = vld [vmem:[#allocation53_spill] sm:$0xff]  ;;  %v10724_v57 = vpop.f32.mrb[152].mxu0 }
 0x268   :  { %v4417_v21 = vmul.f32 %v4093_v18, %v3121_v11  ;;  %v6569_v0 = vpop.eup %6568  ;;  %v12531_v29 = vmax.f32 %v9923_v16, %v10310_v36  ;;  %v4255_v25 = vadd.f32 1.0, %v6567_v4  ;;  %v3282_v11 = vmul.f32 0.5, %v10634_v19  ;;  %12534 = vst [vmem:[#allocation57_spill] sm:$0xff] %v10724_v57  ;;  %v10726_v16 = vpop.f32.mrb[152].mxu1  ;;  %v12545_v57 = vld [vmem:[#allocation20_spill] sm:$0xff] }
 0x269   :  { %6578 = verf.f32 %v3608_v26  ;;  %v6571_v42 = vpop.eup %6570  ;;  %v12532_v14 = vmax.f32 %v9930_v59, %v10322_v52  ;;  %v4092_v53 = vadd.f32 1.0, %v6569_v0  ;;  %v10722_v18 = vadd.f32 %v10493_v10, %v12533_v3  ;;  %12535 = vst [vmem:[#allocation58_spill] sm:$0xff] %v10726_v16 }
 0x26a   :  { %v10712_v50 = vmax.f32 %v12531_v29, %v4576_v12  ;;  %6580 = verf.f32 %v3449_v35  ;;  %v4579_v36 = vmul.f32 %v4255_v25, %v3283_v60  ;;  %v4254_v12 = vadd.f32 1.0, %v6571_v42  ;;  %v12539_v25 = vld [vmem:[#allocation55_spill] sm:$0xff] }
 0x26b   :  { %v10718_v61 = vmax.f32 %v12532_v14, %v4417_v21  ;;  %v3123_v19 = vmul.f32 0.5, %v1957_v34  ;;  %v3611_v26 = vmul.f32 0.70710677, %v2777_v9  ;;  %v4416_v4 = vmul.f32 %v4092_v53, %v3120_v22  ;;  %v10730_v21 = vpop.f32.mrb[153].mxu0  ;;  %v10746_v53 = vpop.f32.mrb[153].mxu1 }
 0x26c   :  { %v3285_v29 = vmul.f32 0.5, %v2767_v62  ;;  %v3448_v59 = vmul.f32 0.70710677, %v10703_v44  ;;  %v3610_v52 = vmul.f32 0.70710677, %v10707_v56  ;;  %12536 = vst [vmem:[#allocation59_spill] sm:$0xff] %v10730_v21  ;;  %v12537_v35 = vmax.f32 %v9945_v51, %v10330_v2 }
 0x26d   :  { %v4578_v14 = vmul.f32 %v4254_v12, %v3282_v11  ;;  %v3122_v3 = vmul.f32 0.5, %v10661_v37  ;;  %6582 = verf.f32 %v3611_v26  ;;  %v6573_v60 = vpop.eup %6572  ;;  %v12538_v34 = vmax.f32 %v9954_v15, %v10347_v39  ;;  %12540 = vst [vmem:[#allocation17_spill] sm:$0xff] %v10746_v53  ;;  %v12541_v2 = vld [vmem:[#allocation44_spill] sm:$0xff]  ;;  %v12542_v11 = vld [vmem:[#allocation73_spill] sm:$0xff] }
 0x26e   :  { %v10735_v0 = vmax.f32 %v12537_v35, %v4579_v36  ;;  %6584 = verf.f32 %v3448_v59  ;;  %v3451_v22 = vmul.f32 0.70710677, %v10722_v18  ;;  %v2787_v42 = vadd.f32 %v10493_v10, %v12539_v25  ;;  %v6575_v51 = vpop.eup %6574  ;;  %v12544_v26 = vld [vmem:[#allocation60_spill] sm:$0xff] }
 0x26f   :  { %v10741_v62 = vmax.f32 %v12538_v34, %v4416_v4  ;;  %v12543_v36 = vmax.f32 %v12541_v2, %v12542_v11  ;;  %v4095_v12 = vadd.f32 1.0, %v6573_v60  ;;  %6586 = verf.f32 %v3610_v52  ;;  %v6577_v39 = vpop.eup %6576  ;;  %v12546_v60 = vld [vmem:[#allocation61_spill] sm:$0xff]  ;;  %v10763_v2 = vpop.f32.mrb[154].mxu0 }
 0x270   :  { %v1972_v15 = vadd.f32 %v10493_v10, %v12544_v26  ;;  %v4257_v4 = vadd.f32 1.0, %v6575_v51  ;;  %v3284_v59 = vmul.f32 0.5, %v2762_v17  ;;  %6588 = verf.f32 %v3451_v22  ;;  %12547 = vst [vmem:[#allocation53_spill] sm:$0xff] %v10763_v2  ;;  %v10765_v51 = vpop.f32.mrb[154].mxu1  ;;  %v12549_v22 = vld [vmem:[#allocation88_spill] sm:$0xff]  ;;  %v12554_v26 = vld [vmem:[#allocation95_spill] sm:$0xff] }
 0x271   :  { %v10751_v37 = vmax.f32 %v12543_v36, %v4578_v14  ;;  %v3613_v35 = vmul.f32 0.70710677, %v2787_v42  ;;  %v4419_v34 = vmul.f32 %v4095_v12, %v3123_v19  ;;  %v4094_v25 = vadd.f32 1.0, %v6577_v39  ;;  %12548 = vst [vmem:[#allocation55_spill] sm:$0xff] %v10765_v51  ;;  %v12550_v19 = vld [vmem:[#allocation29_spill] sm:$0xff]  ;;  %v12553_v36 = vld [vmem:[#allocation19_spill] sm:$0xff] }
 0x272   :  { %v3125_v21 = vmul.f32 0.5, %v1967_v28  ;;  %v3450_v53 = vmul.f32 0.70710677, %v1972_v15  ;;  %v4581_v16 = vmul.f32 %v4257_v4, %v3285_v29  ;;  %v10757_v14 = vadd.f32 %v10493_v10, %v12545_v57  ;;  %v12555_v39 = vld [vmem:[#allocation12_spill] sm:$0xff]  ;;  %v10782_v23 = vpop.f32.mrb[155].mxu0 }
 0x273   :  { %6590 = verf.f32 %v3613_v35  ;;  %v10761_v52 = vadd.f32 %v10493_v10, %v12546_v60  ;;  %v6579_v17 = vpop.eup %6578  ;;  %v12551_v11 = vmax.f32 %v12549_v22, %v12550_v19  ;;  %v4418_v29 = vmul.f32 %v4094_v25, %v3122_v3  ;;  %12558 = vst [vmem:[#allocation60_spill] sm:$0xff] %v10782_v23 }
 0x274   :  { %6592 = verf.f32 %v3450_v53  ;;  %v10774_v57 = vadd.f32 %v10493_v10, %v12553_v36  ;;  %v6581_v12 = vpop.eup %6580  ;;  %v12556_v4 = vmax.f32 %v12554_v26, %v12555_v39  ;;  %v4256_v60 = vadd.f32 1.0, %v6579_v17  ;;  %v12561_v26 = vld [vmem:[#allocation10_spill] sm:$0xff] }
 0x275   :  { %v10770_v28 = vmax.f32 %v12551_v11, %v4419_v34  ;;  %v3287_v51 = vmul.f32 0.5, %v2777_v9  ;;  %v3612_v2 = vmul.f32 0.70710677, %v10757_v14  ;;  %v10784_v34 = vpop.f32.mrb[155].mxu1  ;;  %v12560_v3 = vmax.f32 %v12447_v31, %v10396_v63  ;;  %v12562_v63 = vld [vmem:[#allocation82_spill] sm:$0xff] }
 0x276   :  { %v10779_v35 = vmax.f32 %v12556_v4, %v4581_v16  ;;  %12559 = vst [vmem:[#allocation20_spill] sm:$0xff] %v10784_v34  ;;  %v4097_v25 = vadd.f32 1.0, %v6581_v12  ;;  %v3124_v22 = vmul.f32 0.5, %v10703_v44  ;;  %v3453_v19 = vmul.f32 0.70710677, %v10761_v52 }
 0x277   :  { %12552 = vst [vmem:[#allocation44_spill] sm:$0xff] %v10770_v28  ;;  %v10789_v53 = vmax.f32 %v12560_v3, %v4418_v29  ;;  %v4580_v16 = vmul.f32 %v4256_v60, %v3284_v59  ;;  %v3286_v17 = vmul.f32 0.5, %v10707_v56  ;;  %6594 = verf.f32 %v3612_v2  ;;  %v6583_v11 = vpop.eup %6582  ;;  %v12563_v29 = vld [vmem:[#allocation34_spill] sm:$0xff]  ;;  %v12565_v2 = vld [vmem:[#allocation36_spill] sm:$0xff]  ;;  %v12566_v60 = vld [vmem:[#allocation37_spill] sm:$0xff] }
 0x278   :  { %12557 = vst [vmem:[#allocation73_spill] sm:$0xff] %v10779_v35  ;;  %v3615_v9 = vmul.f32 0.70710677, %v10774_v57  ;;  %v4421_v36 = vmul.f32 %v4097_v25, %v3125_v21  ;;  %6596 = verf.f32 %v3453_v19  ;;  %v10797_v39 = vadd.f32 %v10493_v10, %v12561_v26  ;;  %v6585_v44 = vpop.eup %6584  ;;  %v12567_v3 = vld [vmem:[#allocation74_spill] sm:$0xff] }
 0x279   :  { %v10801_v31 = vadd.f32 %v10493_v10, %v12562_v63  ;;  %v12564_v59 = vmax.f32 %v12449_v55, %v12563_v29  ;;  %v4259_v56 = vadd.f32 1.0, %v6583_v11  ;;  %v10810_v21 = vadd.f32 %v10493_v10, %v12565_v2  ;;  %v6587_v4 = vpop.eup %6586  ;;  %v10822_v2 = vpop.f32.mrb[156].mxu1 }
 0x27a   :  { %6598 = verf.f32 %v3615_v9  ;;  %v12568_v25 = vmax.f32 %v12566_v60, %v12567_v3  ;;  %v4096_v26 = vadd.f32 1.0, %v6585_v44  ;;  %v3127_v63 = vmul.f32 0.5, %v10722_v18  ;;  %v6589_v55 = vpop.eup %6588  ;;  %12571 = vst [vmem:[#allocation29_spill] sm:$0xff] %v10822_v2  ;;  %v12573_v18 = vld [vmem:[#allocation56_spill] sm:$0xff]  ;;  %v12607_v2 = vld [vmem:[#allocation66_spill] sm:$0xff] }
 0x27b   :  { %v10806_v12 = vmax.f32 %v12564_v59, %v4580_v16  ;;  %v3452_v34 = vmul.f32 0.70710677, %v10797_v39  ;;  %v4583_v16 = vmul.f32 %v4259_v56, %v3287_v51  ;;  %v4258_v29 = vadd.f32 1.0, %v6587_v4  ;;  %v10820_v59 = vpop.f32.mrb[156].mxu0  ;;  %v10832_v56 = vpop.f32.mrb[157].mxu1 }
 0x27c   :  { %v10815_v19 = vmax.f32 %v12568_v25, %v4421_v36  ;;  %v3289_v11 = vmul.f32 0.5, %v2787_v42  ;;  %v3614_v9 = vmul.f32 0.70710677, %v10801_v31  ;;  %12570 = vst [vmem:[#allocation88_spill] sm:$0xff] %v10820_v59  ;;  %v4420_v23 = vmul.f32 %v4096_v26, %v3124_v22  ;;  %v10824_v36 = vpop.f32.mrb[157].mxu0  ;;  %12576 = vst [vmem:[#allocation12_spill] sm:$0xff] %v10832_v56 }
 0x27d   :  { %v4099_v8 = vadd.f32 1.0, %v6589_v55  ;;  %v3126_v60 = vmul.f32 0.5, %v1972_v15  ;;  %6600 = verf.f32 %v3452_v34  ;;  %12572 = vst [vmem:[#allocation19_spill] sm:$0xff] %v10824_v36  ;;  %v6591_v44 = vpop.eup %6590  ;;  %v12574_v3 = vmax.f32 %v10037_v33, %v12573_v18  ;;  %v12578_v55 = vld [vmem:[#allocation13_spill] sm:$0xff]  ;;  %v12579_v33 = vld [vmem:[#allocation38_spill] sm:$0xff] }
 0x27e   :  { %12569 = vst [vmem:[#allocation61_spill] sm:$0xff] %v10815_v19  ;;  %v4582_v51 = vmul.f32 %v4258_v29, %v3286_v17  ;;  %6602 = verf.f32 %v3614_v9  ;;  %v3455_v42 = vmul.f32 0.70710677, %v10810_v21  ;;  %v6593_v4 = vpop.eup %6592  ;;  %v12577_v22 = vmax.f32 %v10047_v43, %v10433_v46  ;;  %v12581_v9 = vld [vmem:[#allocation62_spill] sm:$0xff]  ;;  %v12582_v43 = vld [vmem:[#allocation103_spill] sm:$0xff] }
 0x27f   :  { %v10829_v25 = vmax.f32 %v12574_v3, %v4583_v16  ;;  %v4423_v34 = vmul.f32 %v4099_v8, %v3127_v63  ;;  %v4261_v26 = vadd.f32 1.0, %v6591_v44  ;;  %v10841_v36 = vadd.f32 %v10493_v10, %v12578_v55  ;;  %v12583_v46 = vld [vmem:[#allocation78_spill] sm:$0xff]  ;;  %v10864_v55 = vpop.f32.mrb[158].mxu0 }
 0x280   :  { %v10837_v15 = vmax.f32 %v12577_v22, %v4420_v23  ;;  %v12580_v17 = vmax.f32 %v10060_v49, %v12579_v33  ;;  %v4098_v29 = vadd.f32 1.0, %v6593_v4  ;;  %6604 = verf.f32 %v3455_v42  ;;  %v12585_v4 = vld [vmem:[#allocation65_spill] sm:$0xff]  ;;  %12586 = vst [vmem:[#allocation10_spill] sm:$0xff] %v10864_v55  ;;  %v10866_v33 = vpop.f32.mrb[158].mxu1 }
 0x281   :  { %12575 = vst [vmem:[#allocation95_spill] sm:$0xff] %v10829_v25  ;;  %v10850_v18 = vadd.f32 %v10493_v10, %v12581_v9  ;;  %v12584_v23 = vmax.f32 %v12582_v43, %v12583_v46  ;;  %v4585_v63 = vmul.f32 %v4261_v26, %v3289_v11  ;;  %v3617_v44 = vmul.f32 0.70710677, %v10841_v36  ;;  %v6595_v3 = vpop.eup %6594  ;;  %12587 = vst [vmem:[#allocation82_spill] sm:$0xff] %v10866_v33  ;;  %v12591_v9 = vld [vmem:[#allocation32_spill] sm:$0xff]  ;;  %v10883_v33 = vpop.f32.mrb[159].mxu0 }
 0x282   :  { %v10846_v16 = vmax.f32 %v12580_v17, %v4582_v51  ;;  %v4422_v22 = vmul.f32 %v4098_v29, %v3126_v60  ;;  %v3288_v49 = vmul.f32 0.5, %v10757_v14  ;;  %v10862_v42 = vadd.f32 %v10493_v10, %v12585_v4  ;;  %v6597_v17 = vpop.eup %6596  ;;  %v12590_v60 = vld [vmem:[#allocation23_spill] sm:$0xff]  ;;  %12594 = vst [vmem:[#allocation37_spill] sm:$0xff] %v10883_v33 }
 0x283   :  { %v10855_v8 = vmax.f32 %v12584_v23, %v4423_v34  ;;  %v3454_v51 = vmul.f32 0.70710677, %v10850_v18  ;;  %v12588_v11 = vmax.f32 %v10081_v45, %v10465_v13  ;;  %v4260_v26 = vadd.f32 1.0, %v6595_v3  ;;  %v10885_v45 = vpop.f32.mrb[159].mxu1  ;;  %v12604_v33 = vld [vmem:[#allocation83_spill] sm:$0xff] }
 0x284   :  { %6606 = verf.f32 %v3617_v44  ;;  %v10875_v14 = vadd.f32 %v10493_v10, %v12590_v60  ;;  %v6599_v29 = vpop.eup %6598  ;;  %v12592_v43 = vmax.f32 %v10087_v20, %v12591_v9  ;;  %v3129_v23 = vmul.f32 0.5, %v10761_v52  ;;  %12595 = vst [vmem:[#allocation74_spill] sm:$0xff] %v10885_v45  ;;  %v12596_v20 = vld [vmem:[#allocation63_spill] sm:$0xff] }
 0x285   :  { %v10871_v34 = vmax.f32 %v12588_v11, %v4585_v63  ;;  %v4101_v4 = vadd.f32 1.0, %v6597_v17  ;;  %6608 = verf.f32 %v3454_v51  ;;  %v4584_v13 = vmul.f32 %v4260_v26, %v3288_v49  ;;  %v12597_v9 = vld [vmem:[#allocation15_spill] sm:$0xff]  ;;  %v12598_v17 = vld [vmem:[#allocation16_spill] sm:$0xff] }
 0x286   :  { %v10880_v46 = vmax.f32 %v12592_v43, %v4422_v22  ;;  %v3291_v63 = vmul.f32 0.5, %v10774_v57  ;;  %v4263_v44 = vadd.f32 1.0, %v6599_v29  ;;  %v3616_v3 = vmul.f32 0.70710677, %v10862_v42  ;;  %v12599_v43 = vld [vmem:[#allocation81_spill] sm:$0xff]  ;;  %v12602_v26 = vld [vmem:[#allocation104_spill] sm:$0xff] }
 0x287   :  { %12589 = vst [vmem:[#allocation34_spill] sm:$0xff] %v10871_v34  ;;  %v4425_v11 = vmul.f32 %v4101_v4, %v3129_v23  ;;  %v3457_v60 = vmul.f32 0.70710677, %v10875_v14  ;;  %v2817_v22 = vadd.f32 %v10493_v10, %v12596_v20  ;;  %v10894_v52 = vadd.f32 %v10493_v10, %v12597_v9  ;;  %v6601_v51 = vpop.eup %6600  ;;  %v12603_v4 = vld [vmem:[#allocation91_spill] sm:$0xff] }
 0x288   :  { %12593 = vst [vmem:[#allocation36_spill] sm:$0xff] %v10880_v46  ;;  %v12600_v45 = vmax.f32 %v12598_v17, %v12599_v43  ;;  %v4587_v57 = vmul.f32 %v4263_v44, %v3291_v63  ;;  %6610 = verf.f32 %v3616_v3  ;;  %v10903_v29 = vadd.f32 %v10493_v10, %v12602_v26  ;;  %v6603_v23 = vpop.eup %6602  ;;  %v12608_v17 = vld [vmem:[#allocation85_spill] sm:$0xff] }
 0x289   :  { %v12605_v20 = vmax.f32 %v12603_v4, %v12604_v33  ;;  %v3128_v9 = vmul.f32 0.5, %v10797_v39  ;;  %v4100_v56 = vadd.f32 1.0, %v6601_v51  ;;  %6612 = verf.f32 %v3457_v60  ;;  %v10920_v39 = vpop.f32.mrb[160].mxu0  ;;  %v10924_v4 = vpop.f32.mrb[160].mxu1 }
 0x28a   :  { %v10899_v49 = vmax.f32 %v12600_v45, %v4584_v13  ;;  %v12609_v45 = vmax.f32 %v12607_v2, %v12608_v17  ;;  %v3290_v63 = vmul.f32 0.5, %v10801_v31  ;;  %v4262_v44 = vadd.f32 1.0, %v6603_v23  ;;  %v6605_v43 = vpop.eup %6604  ;;  %12611 = vst [vmem:[#allocation62_spill] sm:$0xff] %v10920_v39  ;;  %v12612_v2 = vld [vmem:[#allocation52_spill] sm:$0xff]  ;;  %12613 = vst [vmem:[#allocation103_spill] sm:$0xff] %v10924_v4  ;;  %v10926_v31 = vpop.f32.mrb[161].mxu0 }
 0x28b   :  { %v10908_v55 = vmax.f32 %v12605_v20, %v4425_v11  ;;  %v3619_v3 = vmul.f32 0.70710677, %v2817_v22  ;;  %v4424_v26 = vmul.f32 %v4100_v56, %v3128_v9  ;;  %v3131_v59 = vmul.f32 0.5, %v10810_v21  ;;  %12614 = vst [vmem:[#allocation78_spill] sm:$0xff] %v10926_v31  ;;  %v12617_v23 = vld [vmem:[#allocation105_spill] sm:$0xff]  ;;  %v12618_v9 = vld [vmem:[#allocation67_spill] sm:$0xff] }
 0x28c   :  { %12601 = vst [vmem:[#allocation56_spill] sm:$0xff] %v10899_v49  ;;  %v10914_v13 = vmax.f32 %v12609_v45, %v4587_v57  ;;  %v3456_v33 = vmul.f32 0.70710677, %v10894_v52  ;;  %v3618_v11 = vmul.f32 0.70710677, %v10903_v29  ;;  %v4586_v60 = vmul.f32 %v4262_v44, %v3290_v63  ;;  %v10939_v45 = vpop.f32.mrb[161].mxu1 }
 0x28d   :  { %12606 = vst [vmem:[#allocation13_spill] sm:$0xff] %v10908_v55  ;;  %v4103_v51 = vadd.f32 1.0, %v6605_v43  ;;  %6614 = verf.f32 %v3619_v3  ;;  %v2017_v57 = vadd.f32 %v10493_v10, %v12612_v2  ;;  %v12615_v56 = vmax.f32 %v10128_v40, %v10532_v7  ;;  %12619 = vst [vmem:[#allocation23_spill] sm:$0xff] %v10939_v45  ;;  %v12620_v44 = vld [vmem:[#allocation21_spill] sm:$0xff]  ;;  %v12621_v3 = vld [vmem:[#allocation90_spill] sm:$0xff] }
 0x28e   :  { %12610 = vst [vmem:[#allocation38_spill] sm:$0xff] %v10914_v13  ;;  %6616 = verf.f32 %v3456_v33  ;;  %v2827_v20 = vadd.f32 %v10493_v10, %v12617_v23  ;;  %v10937_v17 = vadd.f32 %v10493_v10, %v12618_v9  ;;  %v6607_v63 = vpop.eup %6606  ;;  %v12622_v43 = vmax.f32 %v12620_v44, %v12621_v3  ;;  %v12624_v9 = vld [vmem:[#allocation94_spill] sm:$0xff]  ;;  %v12625_v4 = vld [vmem:[#allocation92_spill] sm:$0xff]  ;;  %v12705_v49 = vld [vmem:[#allocation47_spill] sm:$0xff] }
 0x28f   :  { %v10931_v21 = vmax.f32 %v12615_v56, %v4424_v26  ;;  %v4427_v31 = vmul.f32 %v4103_v51, %v3131_v59  ;;  %v3293_v40 = vmul.f32 0.5, %v10841_v36  ;;  %6618 = verf.f32 %v3618_v11  ;;  %v6609_v7 = vpop.eup %6608  ;;  %v12628_v36 = vld [vmem:[#allocation96_spill] sm:$0xff] }
 0x290   :  { %v10944_v2 = vmax.f32 %v12622_v43, %v4586_v60  ;;  %v4265_v26 = vadd.f32 1.0, %v6607_v63  ;;  %v3130_v33 = vmul.f32 0.5, %v10850_v18  ;;  %v3459_v56 = vmul.f32 0.70710677, %v2017_v57  ;;  %v12629_v51 = vld [vmem:[#allocation64_spill] sm:$0xff]  ;;  %v12630_v43 = vld [vmem:[#allocation33_spill] sm:$0xff] }
 0x291   :  { %12616 = vst [vmem:[#allocation65_spill] sm:$0xff] %v10931_v21  ;;  %v3621_v23 = vmul.f32 0.70710677, %v2827_v20  ;;  %v12626_v39 = vmax.f32 %v12624_v9, %v12625_v4  ;;  %v4102_v21 = vadd.f32 1.0, %v6609_v7  ;;  %v3292_v44 = vmul.f32 0.5, %v10862_v42  ;;  %v12631_v4 = vld [vmem:[#allocation68_spill] sm:$0xff] }
 0x292   :  { %12623 = vst [vmem:[#allocation32_spill] sm:$0xff] %v10944_v2  ;;  %v3458_v60 = vmul.f32 0.70710677, %v10937_v17  ;;  %v4589_v59 = vmul.f32 %v4265_v26, %v3293_v40  ;;  %6620 = verf.f32 %v3459_v56  ;;  %v2822_v11 = vadd.f32 %v10493_v10, %v12628_v36  ;;  %v6611_v63 = vpop.eup %6610  ;;  %v12632_v40 = vld [vmem:[#allocation25_spill] sm:$0xff]  ;;  %v12633_v7 = vld [vmem:[#allocation50_spill] sm:$0xff] }
 0x293   :  { %v10951_v45 = vmax.f32 %v12626_v39, %v4427_v31  ;;  %v2027_v18 = vadd.f32 %v10493_v10, %v12629_v51  ;;  %v4426_v3 = vmul.f32 %v4102_v21, %v3130_v33  ;;  %6622 = verf.f32 %v3621_v23  ;;  %v6613_v31 = vpop.eup %6612  ;;  %v12635_v21 = vld [vmem:[#allocation26_spill] sm:$0xff] }
 0x294   :  { %v10961_v39 = vadd.f32 %v10493_v10, %v12630_v43  ;;  %v10965_v42 = vadd.f32 %v10493_v10, %v12631_v4  ;;  %v12634_v26 = vmax.f32 %v12632_v40, %v12633_v7  ;;  %v4264_v9 = vadd.f32 1.0, %v6611_v63  ;;  %v12636_v33 = vld [vmem:[#allocation106_spill] sm:$0xff] }
 0x295   :  { %12627 = vst [vmem:[#allocation63_spill] sm:$0xff] %v10951_v45  ;;  %v3133_v36 = vmul.f32 0.5, %v10875_v14  ;;  %6624 = verf.f32 %v3458_v60  ;;  %v12637_v23 = vmax.f32 %v12635_v21, %v12636_v33  ;;  %v4105_v43 = vadd.f32 1.0, %v6613_v31  ;;  %v12642_v21 = vld [vmem:[#allocation24_spill] sm:$0xff] }
 0x296   :  { %v10970_v56 = vmax.f32 %v12634_v26, %v4589_v59  ;;  %v3295_v45 = vmul.f32 0.5, %v2817_v22  ;;  %v3620_v2 = vmul.f32 0.70710677, %v2822_v11  ;;  %v4588_v4 = vmul.f32 %v4264_v9, %v3292_v44  ;;  %v12640_v44 = vld [vmem:[#allocation69_spill] sm:$0xff] }
 0x297   :  { %v10976_v51 = vmax.f32 %v12637_v23, %v4426_v3  ;;  %v3132_v13 = vmul.f32 0.5, %v10894_v52  ;;  %v3461_v55 = vmul.f32 0.70710677, %v2027_v18  ;;  %v3623_v40 = vmul.f32 0.70710677, %v10961_v39  ;;  %v6615_v59 = vpop.eup %6614  ;;  %v12638_v3 = vld [vmem:[#allocation18_spill] sm:$0xff] }
 0x298   :  { %v4429_v7 = vmul.f32 %v4105_v43, %v3133_v36  ;;  %v3294_v63 = vmul.f32 0.5, %v10903_v29  ;;  %6626 = verf.f32 %v3620_v2  ;;  %v3460_v14 = vmul.f32 0.70710677, %v10965_v42  ;;  %v6617_v60 = vpop.eup %6616 }
 0x299   :  { %v12639_v26 = vmax.f32 %v10192_v58, %v12638_v3  ;;  %v4267_v22 = vadd.f32 1.0, %v6615_v59  ;;  %6628 = verf.f32 %v3461_v55  ;;  %v10989_v52 = vadd.f32 %v10493_v10, %v12640_v44  ;;  %v6619_v9 = vpop.eup %6618 }
 0x29a   :  { %v12641_v36 = vmax.f32 %v10200_v38, %v10592_v47  ;;  %v4104_v2 = vadd.f32 1.0, %v6617_v60  ;;  %6630 = verf.f32 %v3623_v40  ;;  %v10998_v33 = vadd.f32 %v10493_v10, %v12642_v21 }
 0x29b   :  { %v10985_v31 = vmax.f32 %v12639_v26, %v4588_v4  ;;  %v4591_v58 = vmul.f32 %v4267_v22, %v3295_v45  ;;  %v4266_v23 = vadd.f32 1.0, %v6619_v9  ;;  %v3135_v43 = vmul.f32 0.5, %v2017_v57  ;;  %v12646_v45 = vld [vmem:[#allocation98_spill] sm:$0xff]  ;;  %v12651_v9 = vld [vmem:[#allocation108_spill] sm:$0xff] }
 0x29c   :  { %v10994_v29 = vmax.f32 %v12641_v36, %v4429_v7  ;;  %6632 = verf.f32 %v3460_v14  ;;  %v4428_v55 = vmul.f32 %v4104_v2, %v3132_v13  ;;  %v3297_v4 = vmul.f32 0.5, %v2827_v20  ;;  %v6621_v26 = vpop.eup %6620  ;;  %v12645_v7 = vld [vmem:[#allocation40_spill] sm:$0xff]  ;;  %v12647_v20 = vld [vmem:[#allocation42_spill] sm:$0xff]  ;;  %v12652_v36 = vld [vmem:[#allocation109_spill] sm:$0xff] }
 0x29d   :  { %v3622_v59 = vmul.f32 0.70710677, %v10989_v52  ;;  %v3463_v3 = vmul.f32 0.70710677, %v10998_v33  ;;  %v12643_v38 = vmax.f32 %v10211_v5, %v10596_v41  ;;  %v4590_v40 = vmul.f32 %v4266_v23, %v3294_v63  ;;  %v6623_v13 = vpop.eup %6622  ;;  %v12650_v5 = vld [vmem:[#allocation97_spill] sm:$0xff] }
 0x29e   :  { %v11009_v60 = vadd.f32 %v10493_v10, %v12645_v7  ;;  %v11013_v57 = vadd.f32 %v10493_v10, %v12646_v45  ;;  %v12648_v14 = vmax.f32 %v10224_v54, %v12647_v20  ;;  %v4107_v44 = vadd.f32 1.0, %v6621_v26 }
 0x29f   :  { %v11005_v47 = vmax.f32 %v12643_v38, %v4591_v58  ;;  %6634 = verf.f32 %v3622_v59  ;;  %v11022_v41 = vadd.f32 %v10493_v10, %v12650_v5  ;;  %v6625_v63 = vpop.eup %6624  ;;  %v12653_v2 = vmax.f32 %v12651_v9, %v12652_v36  ;;  %v12654_v5 = vld [vmem:[#allocation100_spill] sm:$0xff]  ;;  %v12655_v9 = vld [vmem:[#allocation46_spill] sm:$0xff] }
 0x2a0   :  { %v11018_v22 = vmax.f32 %v12648_v14, %v4428_v55  ;;  %v4269_v58 = vadd.f32 1.0, %v6623_v13  ;;  %v3134_v23 = vmul.f32 0.5, %v10937_v17  ;;  %6636 = verf.f32 %v3463_v3  ;;  %v12657_v17 = vld [vmem:[#allocation99_spill] sm:$0xff]  ;;  %v12658_v3 = vld [vmem:[#allocation28_spill] sm:$0xff] }
 0x2a1   :  { %12644 = vst [vmem:[#allocation15_spill] sm:$0xff] %v11005_v47  ;;  %v11027_v21 = vmax.f32 %v12653_v2, %v4590_v40  ;;  %v4431_v38 = vmul.f32 %v4107_v44, %v3135_v43  ;;  %v4106_v54 = vadd.f32 1.0, %v6625_v63  ;;  %v3296_v55 = vmul.f32 0.5, %v2822_v11  ;;  %v12662_v2 = vld [vmem:[#allocation70_spill] sm:$0xff] }
 0x2a2   :  { %12649 = vst [vmem:[#allocation16_spill] sm:$0xff] %v11018_v22  ;;  %v3625_v26 = vmul.f32 0.70710677, %v11009_v60  ;;  %v4593_v59 = vmul.f32 %v4269_v58, %v3297_v4  ;;  %v3137_v7 = vmul.f32 0.5, %v2027_v18  ;;  %v3462_v45 = vmul.f32 0.70710677, %v11013_v57  ;;  %v6627_v14 = vpop.eup %6626 }
 0x2a3   :  { %v3624_v20 = vmul.f32 0.70710677, %v11022_v41  ;;  %v12656_v40 = vmax.f32 %v12654_v5, %v12655_v9  ;;  %v4430_v13 = vmul.f32 %v4106_v54, %v3134_v23  ;;  %v11040_v43 = vadd.f32 %v10493_v10, %v12657_v17  ;;  %v6629_v11 = vpop.eup %6628  ;;  %v12659_v4 = vld [vmem:[#allocation11_spill] sm:$0xff] }
 0x2a4   :  { %6638 = verf.f32 %v3625_v26  ;;  %v12660_v18 = vmax.f32 %v12658_v3, %v12659_v4  ;;  %v4268_v63 = vadd.f32 1.0, %v6627_v14  ;;  %v11049_v58 = vadd.f32 %v10493_v10, %v12662_v2 }
 0x2a5   :  { %v11036_v36 = vmax.f32 %v12656_v40, %v4431_v38  ;;  %6640 = verf.f32 %v3462_v45  ;;  %v6631_v38 = vpop.eup %6630  ;;  %v12663_v23 = vmax.f32 %v10273_v30, %v10651_v24  ;;  %v4109_v26 = vadd.f32 1.0, %v6629_v11 }
 0x2a6   :  { %v11045_v44 = vmax.f32 %v12660_v18, %v4593_v59  ;;  %v3299_v5 = vmul.f32 0.5, %v10961_v39  ;;  %6642 = verf.f32 %v3624_v20  ;;  %v6633_v9 = vpop.eup %6632  ;;  %v4592_v40 = vmul.f32 %v4268_v63, %v3296_v55  ;;  %v12664_v18 = vld [vmem:[#allocation31_spill] sm:$0xff] }
 0x2a7   :  { %v11054_v54 = vmax.f32 %v12663_v23, %v4430_v13  ;;  %v4271_v59 = vadd.f32 1.0, %v6631_v38  ;;  %v3136_v14 = vmul.f32 0.5, %v10965_v42  ;;  %v3465_v45 = vmul.f32 0.70710677, %v11040_v43  ;;  %v12666_v55 = vld [vmem:[#allocation43_spill] sm:$0xff] }
 0x2a8   :  { %12661 = vst [vmem:[#allocation81_spill] sm:$0xff] %v11045_v44  ;;  %v11059_v17 = vmul.f32 %v4109_v26, %v3137_v7  ;;  %v4108_v3 = vadd.f32 1.0, %v6633_v9  ;;  %v3627_v4 = vmul.f32 0.70710677, %v11049_v58  ;;  %v2042_v30 = vadd.f32 %v10493_v10, %v12664_v18  ;;  %v12672_v26 = vld [vmem:[#allocation72_spill] sm:$0xff] }
 0x2a9   :  { %v12665_v24 = vmax.f32 %v10281_v1, %v10655_v48  ;;  %v11069_v20 = vmul.f32 %v4271_v59, %v3299_v5  ;;  %6644 = verf.f32 %v3465_v45  ;;  %v11073_v42 = vadd.f32 %v10493_v10, %v12666_v55  ;;  %v6635_v7 = vpop.eup %6634 }
 0x2aa   :  { %v11077_v11 = vmul.f32 %v4108_v3, %v3136_v14  ;;  %v3298_v63 = vmul.f32 0.5, %v10989_v52  ;;  %6646 = verf.f32 %v3627_v4  ;;  %v6637_v2 = vpop.eup %6636  ;;  %v4270_v48 = vadd.f32 1.0, %v6635_v7  ;;  %v12668_v14 = vld [vmem:[#allocation9_spill] sm:$0xff]  ;;  %v12669_v3 = vld [vmem:[#allocation75_spill] sm:$0xff] }
 0x2ab   :  { %v11067_v39 = vmax.f32 %v12665_v24, %v4592_v40  ;;  %v3139_v38 = vmul.f32 0.5, %v10998_v33  ;;  %v3464_v23 = vmul.f32 0.70710677, %v2042_v30  ;;  %v4111_v5 = vadd.f32 1.0, %v6637_v2  ;;  %v12667_v40 = vld [vmem:[#allocation27_spill] sm:$0xff] }
 0x2ac   :  { %v3626_v9 = vmul.f32 0.70710677, %v11073_v42  ;;  %v11088_v59 = vadd.f32 %v10493_v10, %v12667_v40  ;;  %v11090_v52 = vmul.f32 %v4270_v48, %v3298_v63  ;;  %v11094_v45 = vadd.f32 %v10493_v10, %v12668_v14  ;;  %v12673_v14 = vld [vmem:[#allocation110_spill] sm:$0xff] }
 0x2ad   :  { %6648 = verf.f32 %v3464_v23  ;;  %v11098_v33 = vadd.f32 %v10493_v10, %v12669_v3  ;;  %v11100_v18 = vmul.f32 %v4111_v5, %v3139_v38  ;;  %v3301_v24 = vmul.f32 0.5, %v11009_v60 }
 0x2ae   :  { %v6639_v4 = vpop.eup %6638  ;;  %6650 = verf.f32 %v3626_v9  ;;  %v3467_v55 = vmul.f32 0.70710677, %v11088_v59  ;;  %v3138_v48 = vmul.f32 0.5, %v11013_v57  ;;  %v3629_v23 = vmul.f32 0.70710677, %v11094_v45 }
 0x2af   :  { %v6641_v7 = vpop.eup %6640  ;;  %v4273_v2 = vadd.f32 1.0, %v6639_v4  ;;  %v3300_v5 = vmul.f32 0.5, %v11022_v41  ;;  %v3466_v3 = vmul.f32 0.70710677, %v11098_v33  ;;  %v12671_v4 = vld [vmem:[#allocation76_spill] sm:$0xff]  ;;  %v11120_v1 = vadd.f32 %v10493_v10, %v12672_v26 }
 0x2b0   :  { %v6643_v40 = vpop.eup %6642  ;;  %v4110_v38 = vadd.f32 1.0, %v6641_v7  ;;  %6652 = verf.f32 %v3467_v55  ;;  %v2862_v57 = vadd.f32 %v10493_v10, %v12671_v4  ;;  %v11124_v7 = vadd.f32 %v10493_v10, %v12673_v14 }
 0x2b1   :  { %v11111_v60 = vmul.f32 %v4273_v2, %v3301_v24  ;;  %v4272_v9 = vadd.f32 1.0, %v6643_v40  ;;  %6654 = verf.f32 %v3629_v23  ;;  %v11133_v2 = vld [vmem:[%s11667_s2] ss:$0 sm:$0xff]  ;;  %v3141_v40 = vmul.f32 0.5, %v11040_v43  ;;  %s6802_s2 = smov [#allocation2]  }
 0x2b2   :  { %v11114_v63 = vmul.f32 %v4110_v38, %v3138_v48  ;;  %6656 = verf.f32 %v3466_v3  ;;  %v12674_v48 = vld [vmem:[#allocation71_spill] sm:$0xff]  ;;  %v3628_v38 = vmul.f32 0.70710677, %v2862_v57  ;;  %v3469_v4 = vmul.f32 0.70710677, %v11120_v1  ;;  %s4959_s30 = sshll.u32 %s6802_s2, 4  ;;  %s4960_s30 = int_to_ptr.vmem [resolvable:$true] %s4959_s30 }
 0x2b3   :  { %12670 = vst [vmem:[#allocation104_spill] sm:$0xff] %v11111_v60  ;;  %v6645_v41 = vpop.eup %6644  ;;  %v11128_v55 = vmul.f32 %v4272_v9, %v3300_v5  ;;  %v11137_v26 = vadd.f32 %v11133_v2, %v12674_v48  ;;  %v3303_v9 = vmul.f32 0.5, %v11049_v58  ;;  %v3140_v48 = vmul.f32 0.5, %v2042_v30  ;;  %s6777_s4 = scalar_lea.vmem %s4960_s30, 4608  ;;  %p6782_p1 = scmp.lt.s32.totalorder %s4960_s30, %s4960_s30 }
 0x2b4   :  { %v6647_v23 = vpop.eup %6646  ;;  %v4113_v14 = vadd.f32 1.0, %v6645_v41  ;;  %6658 = verf.f32 %v3628_v38  ;;  %v3631_v13 = vmul.f32 0.70710677, %v11124_v7  ;;  %v3302_v43 = vmul.f32 0.5, %v11073_v42  ;;  %p6778_p0 = scmp.ne.s32.totalorder %s4960_s30, %s6777_s4  ;;  %p6783_p2 = scmp.lt.s32.totalorder %s6777_s4, %s6777_s4 }
 0x2b5   :  { %v4275_v3 = vadd.f32 1.0, %v6647_v23  ;;  %6660 = verf.f32 %v3469_v4  ;;  %v3468_v41 = vmul.f32 0.70710677, %v11137_v26  ;;  %v3143_v58 = vmul.f32 0.5, %v11088_v59 }
 0x2b6   :  { %v11146_v24 = vmul.f32 %v4113_v14, %v3141_v40  ;;  %6662 = verf.f32 %v3631_v13  ;;  %v12677_v40 = vld [vmem:[#allocation111_spill] sm:$0xff]  ;;  %v3142_v59 = vmul.f32 0.5, %v11098_v33  ;;  %p6784_p3 = por %p6783_p2, %p6782_p1 }
 0x2b7   :  { %v6649_v60 = vpop.eup %6648  ;;  %v11149_v10 = vmul.f32 %v4275_v3, %v3303_v9  ;;  %v11157_v30 = vadd.f32 %v11133_v2, %v12677_v40  ;;  %6664 = verf.f32 %v3468_v41  ;;  %v12678_v9 = vld [vmem:[#allocation30_spill] sm:$0xff]  ;;  %v3305_v41 = vmul.f32 0.5, %v11094_v45 }
 0x2b8   :  { %12675 = vst [vmem:[#allocation91_spill] sm:$0xff] %v11146_v24  ;;  %v6651_v5 = vpop.eup %6650  ;;  %v4112_v23 = vadd.f32 1.0, %v6649_v60  ;;  %v11163_v42 = vadd.f32 %v11133_v2, %v12678_v9  ;;  %v12679_v60 = vld [vmem:[#allocation101_spill] sm:$0xff]  ;;  %p6785_p4 = pnand %p6784_p3, %p6778_p0 }
 0x2b9   :  { %12676 = vst [vmem:[#allocation83_spill] sm:$0xff] %v11149_v10  ;;  %v4274_v38 = vadd.f32 1.0, %v6651_v5  ;;  %v3630_v13 = vmul.f32 0.70710677, %v11157_v30  ;;  %v11171_v40 = vadd.f32 %v11133_v2, %v12679_v60  ;;  %v3304_v60 = vmul.f32 0.5, %v2862_v57 }
 0x2ba   :  { %v6653_v3 = vpop.eup %6652  ;;  %v11165_v4 = vmul.f32 %v4112_v23, %v3140_v48  ;;  %v3471_v9 = vmul.f32 0.70710677, %v11163_v42  ;;  %v3145_v57 = vmul.f32 0.5, %v11120_v1 }
 0x2bb   :  { %v6655_v24 = vpop.eup %6654  ;;  %v11173_v28 = vmul.f32 %v4274_v38, %v3302_v43  ;;  %v4115_v5 = vadd.f32 1.0, %v6653_v3  ;;  %6666 = verf.f32 %v3630_v13  ;;  %v3633_v43 = vmul.f32 0.70710677, %v11171_v40  ;;  %v12682_v3 = vld [vmem:[#allocation102_spill] sm:$0xff] }
 0x2bc   :  { %v4277_v23 = vadd.f32 1.0, %v6655_v24  ;;  %v6657_v14 = vpop.eup %6656  ;;  %6668 = verf.f32 %v3471_v9  ;;  %v11189_v35 = vadd.f32 %v11133_v2, %v12682_v3  ;;  %v12683_v24 = vld [vmem:[#allocation35_spill] sm:$0xff]  ;;  %v12686_v3 = vld [vmem:[#allocation77_spill] sm:$0xff] }
 0x2bd   :  { %v11182_v10 = vmul.f32 %v4115_v5, %v3143_v58  ;;  %v4114_v45 = vadd.f32 1.0, %v6657_v14  ;;  %v11193_v33 = vadd.f32 %v11133_v2, %v12683_v24  ;;  %6670 = verf.f32 %v3633_v43  ;;  %v12684_v58 = vld [vmem:[#allocation114_spill] sm:$0xff] }
 0x2be   :  { %v11185_v38 = vmul.f32 %v4277_v23, %v3305_v41  ;;  %v11199_v5 = vadd.f32 %v11133_v2, %v12684_v58  ;;  %v6659_v41 = vpop.eup %6658  ;;  %v3470_v23 = vmul.f32 0.70710677, %v11189_v35  ;;  %v11208_v24 = vadd.f32 %v11133_v2, %v12686_v3 }
 0x2bf   :  { %12680 = vst [vmem:[#allocation66_spill] sm:$0xff] %v11182_v10  ;;  %v11203_v9 = vmul.f32 %v4114_v45, %v3142_v59  ;;  %v6661_v48 = vpop.eup %6660  ;;  %v4276_v13 = vadd.f32 1.0, %v6659_v41  ;;  %v3307_v43 = vmul.f32 0.5, %v11124_v7  ;;  %v3632_v58 = vmul.f32 0.70710677, %v11193_v33 }
 0x2c0   :  { %12681 = vst [vmem:[#allocation85_spill] sm:$0xff] %v11185_v38  ;;  %v6663_v10 = vpop.eup %6662  ;;  %v4117_v59 = vadd.f32 1.0, %v6661_v48  ;;  %6672 = verf.f32 %v3470_v23  ;;  %v3473_v45 = vmul.f32 0.70710677, %v11199_v5  ;;  %v3144_v41 = vmul.f32 0.5, %v11137_v26  ;;  %v12689_v23 = vld [vmem:[#allocation116_spill] sm:$0xff] }
 0x2c1   :  { %12685 = vst [vmem:[#allocation52_spill] sm:$0xff] %v11203_v9  ;;  %v6665_v38 = vpop.eup %6664  ;;  %v11216_v25 = vmul.f32 %v4276_v13, %v3304_v60  ;;  %v4279_v3 = vadd.f32 1.0, %v6663_v10  ;;  %6674 = verf.f32 %v3632_v58  ;;  %v3635_v19 = vmul.f32 0.70710677, %v11208_v24  ;;  %v12690_v60 = vld [vmem:[#allocation84_spill] sm:$0xff] }
 0x2c2   :  { %v11219_v1 = vmul.f32 %v4117_v59, %v3145_v57  ;;  %v4116_v7 = vadd.f32 1.0, %v6665_v38  ;;  %6676 = verf.f32 %v3473_v45  ;;  %v2082_v9 = vadd.f32 %v11133_v2, %v12689_v23  ;;  %v12692_v57 = vld [vmem:[#allocation41_spill] sm:$0xff] }
 0x2c3   :  { %v11224_v48 = vmul.f32 %v4279_v3, %v3307_v43  ;;  %v11230_v10 = vadd.f32 %v11133_v2, %v12690_v60  ;;  %6678 = verf.f32 %v3635_v19  ;;  %v11238_v58 = vadd.f32 %v11133_v2, %v12692_v57 }
 0x2c4   :  { %12687 = vst [vmem:[#allocation105_spill] sm:$0xff] %v11219_v1  ;;  %v11234_v38 = vmul.f32 %v4116_v7, %v3144_v41  ;;  %v3306_v45 = vmul.f32 0.5, %v11157_v30  ;;  %v3472_v23 = vmul.f32 0.70710677, %v2082_v9  ;;  %v3147_v13 = vmul.f32 0.5, %v11163_v42 }
 0x2c5   :  { %12688 = vst [vmem:[#allocation67_spill] sm:$0xff] %v11224_v48  ;;  %v6667_v26 = vpop.eup %6666  ;;  %v3634_v19 = vmul.f32 0.70710677, %v11230_v10  ;;  %v3309_v57 = vmul.f32 0.5, %v11171_v40  ;;  %v3475_v59 = vmul.f32 0.70710677, %v11238_v58 }
 0x2c6   :  { %12691 = vst [vmem:[#allocation21_spill] sm:$0xff] %v11234_v38  ;;  %v6669_v43 = vpop.eup %6668  ;;  %v4278_v3 = vadd.f32 1.0, %v6667_v26  ;;  %6680 = verf.f32 %v3472_v23  ;;  %v12695_v26 = vld [vmem:[#allocation87_spill] sm:$0xff]  ;;  %v3149_v42 = vmul.f32 0.5, %v11199_v5  ;;  %v12704_v5 = vld [vmem:[#allocation22_spill] sm:$0xff] }
 0x2c7   :  { %v4119_v41 = vadd.f32 1.0, %v6669_v43  ;;  %v6671_v7 = vpop.eup %6670  ;;  %6682 = verf.f32 %v3634_v19  ;;  %v2907_v60 = vadd.f32 %v11133_v2, %v12695_v26  ;;  %v12696_v43 = vld [vmem:[#allocation79_spill] sm:$0xff]  ;;  %v3146_v19 = vmul.f32 0.5, %v11189_v35  ;;  %v12702_v35 = vld [vmem:[#allocation86_spill] sm:$0xff] }
 0x2c8   :  { %v11247_v14 = vmul.f32 %v4278_v3, %v3306_v45  ;;  %v4281_v30 = vadd.f32 1.0, %v6671_v7  ;;  %6684 = verf.f32 %v3475_v59  ;;  %v2092_v45 = vadd.f32 %v11133_v2, %v12696_v43  ;;  %v12697_v3 = vld [vmem:[#allocation80_spill] sm:$0xff] }
 0x2c9   :  { %v11251_v48 = vmul.f32 %v4119_v41, %v3147_v13  ;;  %v11261_v40 = vadd.f32 %v11133_v2, %v12697_v3  ;;  %v3637_v26 = vmul.f32 0.70710677, %v2907_v60  ;;  %v3308_v59 = vmul.f32 0.5, %v11193_v33 }
 0x2ca   :  { %12693 = vst [vmem:[#allocation90_spill] sm:$0xff] %v11247_v14  ;;  %v6673_v23 = vpop.eup %6672  ;;  %v11265_v7 = vmul.f32 %v4281_v30, %v3309_v57  ;;  %v3474_v43 = vmul.f32 0.70710677, %v2092_v45  ;;  %v11281_v13 = vadd.f32 %v11133_v2, %v12704_v5 }
 0x2cb   :  { %12694 = vst [vmem:[#allocation94_spill] sm:$0xff] %v11251_v48  ;;  %v6675_v38 = vpop.eup %6674  ;;  %v4118_v46 = vadd.f32 1.0, %v6673_v23  ;;  %6686 = verf.f32 %v3637_v26  ;;  %v3636_v41 = vmul.f32 0.70710677, %v11261_v40  ;;  %v2107_v23 = vadd.f32 %v11133_v2, %v12702_v35 }
 0x2cc   :  { %12699 = vst [vmem:[#allocation92_spill] sm:$0xff] %v11265_v7  ;;  %v6677_v14 = vpop.eup %6676  ;;  %v4280_v34 = vadd.f32 1.0, %v6675_v38  ;;  %6688 = verf.f32 %v3474_v43  ;;  %v11285_v38 = vadd.f32 %v11133_v2, %v12705_v49  ;;  %v3311_v26 = vmul.f32 0.5, %v11208_v24 }
 0x2cd   :  { %v11273_v57 = vmul.f32 %v4118_v46, %v3146_v19  ;;  %v4121_v30 = vadd.f32 1.0, %v6677_v14  ;;  %v6679_v48 = vpop.eup %6678  ;;  %6690 = verf.f32 %v3636_v41  ;;  %v3148_v41 = vmul.f32 0.5, %v2082_v9  ;;  %v12711_v9 = vld [vmem:[#allocation93_spill] sm:$0xff] }
 0x2ce   :  { %v11277_v33 = vmul.f32 %v4280_v34, %v3308_v59  ;;  %v4283_v43 = vadd.f32 1.0, %v6679_v48  ;;  %v3477_v35 = vmul.f32 0.70710677, %v2107_v23  ;;  %v3639_v5 = vmul.f32 0.70710677, %v11281_v13  ;;  %v12710_v48 = vld [vmem:[#allocation89_spill] sm:$0xff] }
 0x2cf   :  { %12701 = vst [vmem:[#allocation96_spill] sm:$0xff] %v11273_v57  ;;  %v11289_v14 = vmul.f32 %v4121_v30, %v3149_v42  ;;  %v3310_v19 = vmul.f32 0.5, %v11230_v10  ;;  %v3476_v42 = vmul.f32 0.70710677, %v11285_v38  ;;  %v2912_v59 = vadd.f32 %v11133_v2, %v12710_v48 }
 0x2d0   :  { %12703 = vst [vmem:[#allocation64_spill] sm:$0xff] %v11277_v33  ;;  %v6681_v7 = vpop.eup %6680  ;;  %v11297_v1 = vmul.f32 %v4283_v43, %v3311_v26  ;;  %6692 = verf.f32 %v3477_v35  ;;  %v2117_v33 = vadd.f32 %v11133_v2, %v12711_v9  ;;  %v12712_v26 = vld [vmem:[#allocation5_spill] sm:$0xff]  ;;  %v3150_v57 = vmul.f32 0.5, %v2092_v45 }
 0x2d1   :  { %12707 = vst [vmem:[#allocation33_spill] sm:$0xff] %v11289_v14  ;;  %v6683_v30 = vpop.eup %6682  ;;  %v4120_v24 = vadd.f32 1.0, %v6681_v7  ;;  %6694 = verf.f32 %v3639_v5  ;;  %v11309_v10 = vadd.f32 %v11133_v2, %v12712_v26  ;;  %v3151_v7 = vmul.f32 0.5, %v11238_v58 }
 0x2d2   :  { %v6685_v34 = vpop.eup %6684  ;;  %v4282_v49 = vadd.f32 1.0, %v6683_v30  ;;  %6696 = verf.f32 %v3476_v42  ;;  %v3313_v14 = vmul.f32 0.5, %v2907_v60  ;;  %v3638_v9 = vmul.f32 0.70710677, %v2912_v59  ;;  %v12719_v42 = vld [vmem:[#allocation7_spill] sm:$0xff] }
 0x2d3   :  { %v11311_v43 = vmul.f32 %v4120_v24, %v3148_v41  ;;  %v4123_v35 = vadd.f32 1.0, %v6685_v34  ;;  %v3479_v3 = vmul.f32 0.70710677, %v2117_v33  ;;  %v3641_v26 = vmul.f32 0.70710677, %v11309_v10 }
 0x2d4   :  { %v11314_v48 = vmul.f32 %v4282_v49, %v3310_v19  ;;  %6698 = verf.f32 %v3638_v9  ;;  %v12715_v19 = vld [vmem:[#allocation39_spill] sm:$0xff]  ;;  %v3312_v30 = vmul.f32 0.5, %v11261_v40  ;;  %v3153_v9 = vmul.f32 0.5, %v2107_v23  ;;  %v12721_v23 = vld [vmem:[#allocation8_spill] sm:$0xff] }
 0x2d5   :  { %v6687_v46 = vpop.eup %6686  ;;  %v11318_v5 = vmul.f32 %v4123_v35, %v3151_v7  ;;  %v2112_v60 = vadd.f32 %v11133_v2, %v12715_v19  ;;  %6700 = verf.f32 %v3479_v3  ;;  %v12716_v7 = vld [vmem:[#allocation6_spill] sm:$0xff] }
 0x2d6   :  { %12713 = vst [vmem:[#allocation68_spill] sm:$0xff] %v11314_v48  ;;  %v6689_v41 = vpop.eup %6688  ;;  %v4285_v34 = vadd.f32 1.0, %v6687_v46  ;;  %v11329_v45 = vadd.f32 %v11133_v2, %v12716_v7  ;;  %6702 = verf.f32 %v3641_v26  ;;  %v2127_v7 = vadd.f32 %v11133_v2, %v12719_v42 }
 0x2d7   :  { %12714 = vst [vmem:[#allocation25_spill] sm:$0xff] %v11318_v5  ;;  %v6691_v49 = vpop.eup %6690  ;;  %v4122_v24 = vadd.f32 1.0, %v6689_v41  ;;  %v3478_v19 = vmul.f32 0.70710677, %v2112_v60  ;;  %v11351_v26 = vadd.f32 %v11133_v2, %v12721_v23  ;;  %v3155_v42 = vmul.f32 0.5, %v2117_v33  ;;  %v12726_v33 = vld [vmem:[#allocation112_spill] sm:$0xff] }
 0x2d8   :  { %v11331_v35 = vmul.f32 %v4285_v34, %v3313_v14  ;;  %v4284_v58 = vadd.f32 1.0, %v6691_v49  ;;  %v3640_v48 = vmul.f32 0.70710677, %v11329_v45  ;;  %v12720_v14 = vld [vmem:[#allocation107_spill] sm:$0xff]  ;;  %v12722_v49 = vld [vmem:[#allocation45_spill] sm:$0xff] }
 0x2d9   :  { %v11334_v46 = vmul.f32 %v4122_v24, %v3150_v57  ;;  %v11345_v34 = vadd.f32 %v11133_v2, %v12720_v14  ;;  %6704 = verf.f32 %v3478_v19  ;;  %v3315_v14 = vmul.f32 0.5, %v11281_v13 }
 0x2da   :  { %12717 = vst [vmem:[#allocation50_spill] sm:$0xff] %v11331_v35  ;;  %v11339_v3 = vmul.f32 %v4284_v58, %v3312_v30  ;;  %v6693_v40 = vpop.eup %6692  ;;  %v11355_v30 = vadd.f32 %v11133_v2, %v12722_v49  ;;  %6706 = verf.f32 %v3640_v48  ;;  %v3152_v19 = vmul.f32 0.5, %v11285_v38 }
 0x2db   :  { %12718 = vst [vmem:[#allocation26_spill] sm:$0xff] %v11334_v46  ;;  %v6695_v58 = vpop.eup %6694  ;;  %v4125_v24 = vadd.f32 1.0, %v6693_v40  ;;  %v3481_v57 = vmul.f32 0.70710677, %v2127_v7  ;;  %v3643_v23 = vmul.f32 0.70710677, %v11345_v34 }
 0x2dc   :  { %v6697_v41 = vpop.eup %6696  ;;  %v4287_v35 = vadd.f32 1.0, %v6695_v58  ;;  %v3314_v49 = vmul.f32 0.5, %v2912_v59  ;;  %v3480_v47 = vmul.f32 0.70710677, %v11351_v26  ;;  %v3642_v13 = vmul.f32 0.70710677, %v11355_v30 }
 0x2dd   :  { %v11362_v46 = vmul.f32 %v4125_v24, %v3153_v9  ;;  %v4124_v22 = vadd.f32 1.0, %v6697_v41  ;;  %6708 = verf.f32 %v3481_v57  ;;  %v12725_v58 = vld [vmem:[#allocation48_spill] sm:$0xff]  ;;  %v11378_v57 = vadd.f32 %v11133_v2, %v12726_v33 }
 0x2de   :  { %v11365_v5 = vmul.f32 %v4287_v35, %v3315_v14  ;;  %v6699_v48 = vpop.eup %6698  ;;  %6710 = verf.f32 %v3643_v23  ;;  %v2137_v9 = vadd.f32 %v11133_v2, %v12725_v58  ;;  %v3154_v40 = vmul.f32 0.5, %v2112_v60 }
 0x2df   :  { %12723 = vst [vmem:[#allocation106_spill] sm:$0xff] %v11362_v46  ;;  %v11370_v38 = vmul.f32 %v4124_v22, %v3152_v19  ;;  %v6701_v41 = vpop.eup %6700  ;;  %v4286_v35 = vadd.f32 1.0, %v6699_v48  ;;  %6712 = verf.f32 %v3480_v47  ;;  %v3317_v19 = vmul.f32 0.5, %v11309_v10  ;;  %v12728_v48 = vld [vmem:[#allocation49_spill] sm:$0xff] }
 0x2e0   :  { %12724 = vst [vmem:[#allocation18_spill] sm:$0xff] %v11365_v5  ;;  %v6703_v24 = vpop.eup %6702  ;;  %v4127_v22 = vadd.f32 1.0, %v6701_v41  ;;  %6714 = verf.f32 %v3642_v13  ;;  %v3483_v46 = vmul.f32 0.70710677, %v2137_v9  ;;  %v3645_v47 = vmul.f32 0.70710677, %v11378_v57 }
 0x2e1   :  { %v11383_v23 = vmul.f32 %v4286_v35, %v3314_v49  ;;  %v4289_v58 = vadd.f32 1.0, %v6703_v24  ;;  %v11388_v33 = vadd.f32 %v11133_v2, %v12728_v48  ;;  %v12729_v5 = vld [vmem:[#allocation54_spill] sm:$0xff]  ;;  %v12730_v13 = vld [vmem:[#allocation113_spill] sm:$0xff]  ;;  %v12731_v35 = vmax.f32 %v10673_v6, %v11059_v17 }
 0x2e2   :  { %v4451_v59 = vmul.f32 %v4127_v22, %v3155_v42  ;;  %v11392_v44 = vadd.f32 %v11133_v2, %v12729_v5  ;;  %6716 = verf.f32 %v3483_v46  ;;  %v11398_v60 = vadd.f32 %v11133_v2, %v12730_v13 }
 0x2e3   :  { %12727 = vst [vmem:[#allocation69_spill] sm:$0xff] %v11383_v23  ;;  %v6705_v41 = vpop.eup %6704  ;;  %v4613_v49 = vmul.f32 %v4289_v58, %v3317_v19  ;;  %v3316_v48 = vmul.f32 0.5, %v11329_v45  ;;  %6718 = verf.f32 %v3645_v47  ;;  %v12732_v5 = vmax.f32 %v10686_v27, %v11069_v20  ;;  %v12734_v20 = vld [vmem:[#allocation51_spill] sm:$0xff] }
 0x2e4   :  { %v6707_v42 = vpop.eup %6706  ;;  %v4883_v24 = vmax.f32 %v12731_v35, %v4451_v59  ;;  %v4126_v22 = vadd.f32 1.0, %v6705_v41  ;;  %v3157_v19 = vmul.f32 0.5, %v2127_v7  ;;  %v3482_v46 = vmul.f32 0.70710677, %v11388_v33  ;;  %v12733_v59 = vld [vmem:[#allocation14_spill] sm:$0xff] }
 0x2e5   :  { %v4901_v14 = vmax.f32 %v12732_v5, %v4613_v49  ;;  %v4288_v10 = vadd.f32 1.0, %v6707_v42  ;;  %v3319_v13 = vmul.f32 0.5, %v11345_v34  ;;  %v3644_v23 = vmul.f32 0.70710677, %v11392_v44  ;;  %v12736_v49 = vld [vmem:[#allocation115_spill] sm:$0xff] }
 0x2e6   :  { %4919 = vst [vmem:[#allocation2 + $0x8] sm:$0xff] %v4883_v24  ;;  %v4450_v58 = vmul.f32 %v4126_v22, %v3154_v40  ;;  %v3485_v6 = vmul.f32 0.70710677, %v11398_v60  ;;  %6720 = verf.f32 %v3482_v46  ;;  %v11413_v27 = vadd.f32 %v11133_v2, %v12733_v59 }
 0x2e7   :  { %v6709_v17 = vpop.eup %6708  ;;  %4937 = vst [vmem:[#allocation2 + $0x98] sm:$0xff] %v4901_v14  ;;  %v4612_v45 = vmul.f32 %v4288_v10, %v3316_v48  ;;  %v11417_v7 = vadd.f32 %v11133_v2, %v12734_v20  ;;  %v12735_v34 = vmax.f32 %v10693_v32, %v11077_v11  ;;  %6722 = verf.f32 %v3644_v23 }
 0x2e8   :  { %v6711_v47 = vpop.eup %6710  ;;  %v4129_v41 = vadd.f32 1.0, %v6709_v17  ;;  %v11424_v14 = vadd.f32 %v11133_v2, %v12736_v49  ;;  %v12737_v42 = vmax.f32 %v10712_v50, %v11090_v52  ;;  %v3156_v22 = vmul.f32 0.5, %v11351_v26 }
 0x2e9   :  { %v4882_v40 = vmax.f32 %v12735_v34, %v4450_v58  ;;  %v6713_v10 = vpop.eup %6712  ;;  %v4291_v24 = vadd.f32 1.0, %v6711_v47  ;;  %6724 = verf.f32 %v3485_v6  ;;  %v3318_v11 = vmul.f32 0.5, %v11355_v30 }
 0x2ea   :  { %v4900_v35 = vmax.f32 %v12737_v42, %v4612_v45  ;;  %v6715_v48 = vpop.eup %6714  ;;  %v4453_v5 = vmul.f32 %v4129_v41, %v3157_v19  ;;  %v4128_v32 = vadd.f32 1.0, %v6713_v10  ;;  %v3647_v23 = vmul.f32 0.70710677, %v11413_v27  ;;  %v12739_v45 = vld [vmem:[#allocation104_spill] sm:$0xff]  ;;  %v12743_v41 = vld [vmem:[#allocation58_spill] sm:$0xff] }
 0x2eb   :  { %4918 = vst [vmem:[#allocation2] sm:$0xff] %v4882_v40  ;;  %v4615_v46 = vmul.f32 %v4291_v24, %v3319_v13  ;;  %v4290_v58 = vadd.f32 1.0, %v6715_v48  ;;  %v3159_v17 = vmul.f32 0.5, %v2137_v9  ;;  %v3484_v59 = vmul.f32 0.70710677, %v11417_v7  ;;  %v12741_v13 = vld [vmem:[#allocation57_spill] sm:$0xff] }
 0x2ec   :  { %4936 = vst [vmem:[#allocation2 + $0x90] sm:$0xff] %v4900_v35  ;;  %v12738_v50 = vmax.f32 %v10718_v61, %v11100_v18  ;;  %v4452_v26 = vmul.f32 %v4128_v32, %v3156_v22  ;;  %6726 = verf.f32 %v3647_v23  ;;  %v3646_v6 = vmul.f32 0.70710677, %v11424_v14  ;;  %v6717_v19 = vpop.eup %6716  ;;  %v12745_v48 = vld [vmem:[#allocation59_spill] sm:$0xff] }
 0x2ed   :  { %v12740_v30 = vmax.f32 %v10735_v0, %v12739_v45  ;;  %v4614_v47 = vmul.f32 %v4290_v58, %v3318_v11  ;;  %6728 = verf.f32 %v3484_v59  ;;  %v11442_v9 = vadd.f32 %v11133_v2, %v12741_v13  ;;  %v6719_v34 = vpop.eup %6718  ;;  %v12749_v58 = vld [vmem:[#allocation91_spill] sm:$0xff] }
 0x2ee   :  { %v4885_v52 = vmax.f32 %v12738_v50, %v4453_v5  ;;  %v12742_v61 = vmax.f32 %v10741_v62, %v11114_v63  ;;  %v4131_v40 = vadd.f32 1.0, %v6717_v19  ;;  %6730 = verf.f32 %v3646_v6  ;;  %v12751_v6 = vld [vmem:[#allocation73_spill] sm:$0xff]  ;;  %v12752_v19 = vld [vmem:[#allocation83_spill] sm:$0xff] }
 0x2ef   :  { %v4903_v20 = vmax.f32 %v12740_v30, %v4615_v46  ;;  %v11449_v49 = vadd.f32 %v11133_v2, %v12743_v41  ;;  %v12744_v0 = vmax.f32 %v10751_v37, %v11128_v55  ;;  %v3321_v42 = vmul.f32 0.5, %v11378_v57  ;;  %v12746_v37 = vld [vmem:[#allocation17_spill] sm:$0xff] }
 0x2f0   :  { %4921 = vst [vmem:[#allocation2 + $0x18] sm:$0xff] %v4885_v52  ;;  %v4884_v18 = vmax.f32 %v12742_v61, %v4452_v26  ;;  %v4293_v35 = vadd.f32 1.0, %v6719_v34  ;;  %v3487_v24 = vmul.f32 0.70710677, %v11442_v9  ;;  %v4455_v22 = vmul.f32 %v4131_v40, %v3159_v17  ;;  %v6721_v32 = vpop.eup %6720  ;;  %v12747_v57 = vld [vmem:[#allocation53_spill] sm:$0xff] }
 0x2f1   :  { %4939 = vst [vmem:[#allocation2 + $0xa8] sm:$0xff] %v4903_v20  ;;  %v4902_v10 = vmax.f32 %v12744_v0, %v4614_v47  ;;  %v3158_v62 = vmul.f32 0.5, %v11388_v33  ;;  %v3649_v63 = vmul.f32 0.70710677, %v11449_v49  ;;  %v11460_v5 = vadd.f32 %v11133_v2, %v12745_v48  ;;  %v6723_v46 = vpop.eup %6722  ;;  %v12748_v33 = vld [vmem:[#allocation44_spill] sm:$0xff]  ;;  %v12754_v0 = vld [vmem:[#allocation55_spill] sm:$0xff] }
 0x2f2   :  { %4920 = vst [vmem:[#allocation2 + $0x10] sm:$0xff] %v4884_v18  ;;  %v4617_v11 = vmul.f32 %v4293_v35, %v3321_v42  ;;  %6732 = verf.f32 %v3487_v24  ;;  %v11464_v55 = vadd.f32 %v11133_v2, %v12746_v37  ;;  %v11468_v23 = vadd.f32 %v11133_v2, %v12747_v57  ;;  %v12758_v57 = vld [vmem:[#allocation61_spill] sm:$0xff] }
 0x2f3   :  { %4938 = vst [vmem:[#allocation2 + $0xa0] sm:$0xff] %v4902_v10  ;;  %v12750_v17 = vmax.f32 %v12748_v33, %v12749_v58  ;;  %v4130_v50 = vadd.f32 1.0, %v6721_v32  ;;  %v3320_v52 = vmul.f32 0.5, %v11392_v44  ;;  %6734 = verf.f32 %v3649_v63  ;;  %v6725_v26 = vpop.eup %6724 }
 0x2f4   :  { %v12753_v45 = vmax.f32 %v12751_v6, %v12752_v19  ;;  %v4292_v20 = vadd.f32 1.0, %v6723_v46  ;;  %v3161_v47 = vmul.f32 0.5, %v11398_v60  ;;  %v3486_v13 = vmul.f32 0.70710677, %v11460_v5  ;;  %v12763_v19 = vld [vmem:[#allocation29_spill] sm:$0xff] }
 0x2f5   :  { %v4887_v59 = vmax.f32 %v12750_v17, %v4455_v22  ;;  %v4454_v34 = vmul.f32 %v4130_v50, %v3158_v62  ;;  %v4133_v61 = vadd.f32 1.0, %v6725_v26  ;;  %v3323_v18 = vmul.f32 0.5, %v11413_v27  ;;  %v12756_v22 = vld [vmem:[#allocation60_spill] sm:$0xff] }
 0x2f6   :  { %v4905_v30 = vmax.f32 %v12753_v45, %v4617_v11  ;;  %v3648_v40 = vmul.f32 0.70710677, %v11464_v55  ;;  %v4616_v44 = vmul.f32 %v4292_v20, %v3320_v52  ;;  %6736 = verf.f32 %v3486_v13  ;;  %v6727_v42 = vpop.eup %6726  ;;  %v12762_v26 = vld [vmem:[#allocation88_spill] sm:$0xff]  ;;  %v12765_v20 = vld [vmem:[#allocation85_spill] sm:$0xff] }
 0x2f7   :  { %4923 = vst [vmem:[#allocation2 + $0x28] sm:$0xff] %v4887_v59  ;;  %v3489_v41 = vmul.f32 0.70710677, %v11468_v23  ;;  %v11484_v10 = vadd.f32 %v11133_v2, %v12754_v0  ;;  %v12755_v60 = vmax.f32 %v10789_v53, %v11165_v4  ;;  %v4457_v24 = vmul.f32 %v4133_v61, %v3161_v47  ;;  %v6729_v62 = vpop.eup %6728  ;;  %v12759_v53 = vld [vmem:[#allocation66_spill] sm:$0xff] }
 0x2f8   :  { %4941 = vst [vmem:[#allocation2 + $0xb8] sm:$0xff] %v4905_v30  ;;  %6738 = verf.f32 %v3648_v40  ;;  %v11491_v27 = vadd.f32 %v11133_v2, %v12756_v22  ;;  %v12757_v63 = vmax.f32 %v10806_v12, %v11173_v28  ;;  %v4295_v32 = vadd.f32 1.0, %v6727_v42  ;;  %v6731_v37 = vpop.eup %6730  ;;  %v12761_v12 = vld [vmem:[#allocation20_spill] sm:$0xff]  ;;  %v12764_v30 = vld [vmem:[#allocation95_spill] sm:$0xff] }
 0x2f9   :  { %v4886_v35 = vmax.f32 %v12755_v60, %v4454_v34  ;;  %v3160_v11 = vmul.f32 0.5, %v11417_v7  ;;  %6740 = verf.f32 %v3489_v41  ;;  %v12760_v4 = vmax.f32 %v12758_v57, %v12759_v53  ;;  %v12773_v53 = vld [vmem:[#allocation105_spill] sm:$0xff] }
 0x2fa   :  { %v4904_v48 = vmax.f32 %v12757_v63, %v4616_v44  ;;  %v4132_v33 = vadd.f32 1.0, %v6729_v62  ;;  %v3322_v58 = vmul.f32 0.5, %v11424_v14  ;;  %v3651_v17 = vmul.f32 0.70710677, %v11484_v10 }
 0x2fb   :  { %4922 = vst [vmem:[#allocation2 + $0x20] sm:$0xff] %v4886_v35  ;;  %v4889_v46 = vmax.f32 %v12760_v4, %v4457_v24  ;;  %v4619_v59 = vmul.f32 %v4295_v32, %v3323_v18  ;;  %v4294_v50 = vadd.f32 1.0, %v6731_v37  ;;  %v3488_v28 = vmul.f32 0.70710677, %v11491_v27  ;;  %v12767_v18 = vld [vmem:[#allocation52_spill] sm:$0xff] }
 0x2fc   :  { %4940 = vst [vmem:[#allocation2 + $0xb0] sm:$0xff] %v4904_v48  ;;  %v11505_v7 = vadd.f32 %v11133_v2, %v12761_v12  ;;  %v4456_v52 = vmul.f32 %v4132_v33, %v3160_v11  ;;  %6742 = verf.f32 %v3651_v17  ;;  %v11509_v6 = vadd.f32 %v11133_v2, %v12762_v26  ;;  %v6733_v45 = vpop.eup %6732  ;;  %v12770_v48 = vld [vmem:[#allocation19_spill] sm:$0xff] }
 0x2fd   :  { %4925 = vst [vmem:[#allocation2 + $0x38] sm:$0xff] %v4889_v46  ;;  %v11513_v14 = vadd.f32 %v11133_v2, %v12763_v19  ;;  %v12766_v47 = vmax.f32 %v12764_v30, %v12765_v20  ;;  %v4618_v34 = vmul.f32 %v4294_v50, %v3322_v58  ;;  %6744 = verf.f32 %v3488_v28  ;;  %v6735_v61 = vpop.eup %6734  ;;  %v12776_v50 = vld [vmem:[#allocation67_spill] sm:$0xff] }
 0x2fe   :  { %v12768_v40 = vmax.f32 %v10837_v15, %v12767_v18  ;;  %v3163_v41 = vmul.f32 0.5, %v11442_v9  ;;  %v4135_v0 = vadd.f32 1.0, %v6733_v45  ;;  %v3650_v42 = vmul.f32 0.70710677, %v11505_v7  ;;  %v12780_v18 = vld [vmem:[#allocation21_spill] sm:$0xff] }
 0x2ff   :  { %v4907_v13 = vmax.f32 %v12766_v47, %v4619_v59  ;;  %v12769_v60 = vmax.f32 %v10846_v16, %v11216_v25  ;;  %v3325_v24 = vmul.f32 0.5, %v11449_v49  ;;  %v4297_v22 = vadd.f32 1.0, %v6735_v61  ;;  %v12771_v25 = vld [vmem:[#allocation12_spill] sm:$0xff]  ;;  %v12772_v49 = vld [vmem:[#allocation10_spill] sm:$0xff] }
 0x300   :  { %v4888_v44 = vmax.f32 %v12768_v40, %v4456_v52  ;;  %v3491_v62 = vmul.f32 0.70710677, %v11509_v6  ;;  %v4459_v63 = vmul.f32 %v4135_v0, %v3163_v41  ;;  %6746 = verf.f32 %v3650_v42  ;;  %v6737_v32 = vpop.eup %6736  ;;  %v12775_v59 = vld [vmem:[#allocation34_spill] sm:$0xff]  ;;  %v12779_v61 = vld [vmem:[#allocation36_spill] sm:$0xff] }
 0x301   :  { %4943 = vst [vmem:[#allocation2 + $0xc8] sm:$0xff] %v4907_v13  ;;  %v4906_v35 = vmax.f32 %v12769_v60, %v4618_v34  ;;  %v3653_v15 = vmul.f32 0.70710677, %v11513_v14  ;;  %v11531_v9 = vadd.f32 %v11133_v2, %v12770_v48  ;;  %v4621_v11 = vmul.f32 %v4297_v22, %v3325_v24  ;;  %v12778_v13 = vld [vmem:[#allocation82_spill] sm:$0xff]  ;;  %v12783_v60 = vld [vmem:[#allocation56_spill] sm:$0xff] }
 0x302   :  { %4924 = vst [vmem:[#allocation2 + $0x30] sm:$0xff] %v4888_v44  ;;  %6748 = verf.f32 %v3491_v62  ;;  %v11535_v16 = vadd.f32 %v11133_v2, %v12771_v25  ;;  %v11539_v37 = vadd.f32 %v11133_v2, %v12772_v49  ;;  %v6739_v57 = vpop.eup %6738  ;;  %v12774_v4 = vmax.f32 %v10855_v8, %v12773_v53  ;;  %v12787_v48 = vld [vmem:[#allocation94_spill] sm:$0xff] }
 0x303   :  { %4942 = vst [vmem:[#allocation2 + $0xc0] sm:$0xff] %v4906_v35  ;;  %v3162_v33 = vmul.f32 0.5, %v11460_v5  ;;  %v4134_v58 = vadd.f32 1.0, %v6737_v32  ;;  %6750 = verf.f32 %v3653_v15  ;;  %v6741_v17 = vpop.eup %6740  ;;  %v12777_v28 = vmax.f32 %v12775_v59, %v12776_v50  ;;  %v12784_v35 = vld [vmem:[#allocation90_spill] sm:$0xff]  ;;  %v12786_v15 = vld [vmem:[#allocation13_spill] sm:$0xff]  ;;  %v12791_v50 = vld [vmem:[#allocation103_spill] sm:$0xff] }
 0x304   :  { %v4891_v46 = vmax.f32 %v12774_v4, %v4459_v63  ;;  %v3324_v52 = vmul.f32 0.5, %v11464_v55  ;;  %v4296_v26 = vadd.f32 1.0, %v6739_v57  ;;  %v3490_v19 = vmul.f32 0.70710677, %v11531_v9 }
 0x305   :  { %v4909_v12 = vmax.f32 %v12777_v28, %v4621_v11  ;;  %v4458_v45 = vmul.f32 %v4134_v58, %v3162_v33  ;;  %v3165_v30 = vmul.f32 0.5, %v11468_v23  ;;  %v4137_v8 = vadd.f32 1.0, %v6741_v17  ;;  %v12782_v23 = vld [vmem:[#allocation37_spill] sm:$0xff] }
 0x306   :  { %4927 = vst [vmem:[#allocation2 + $0x48] sm:$0xff] %v4891_v46  ;;  %v3652_v20 = vmul.f32 0.70710677, %v11535_v16  ;;  %v4620_v5 = vmul.f32 %v4296_v26, %v3324_v52  ;;  %6752 = verf.f32 %v3490_v19  ;;  %v3493_v47 = vmul.f32 0.70710677, %v11539_v37  ;;  %v6743_v55 = vpop.eup %6742  ;;  %v12789_v46 = vld [vmem:[#allocation74_spill] sm:$0xff] }
 0x307   :  { %4945 = vst [vmem:[#allocation2 + $0xd8] sm:$0xff] %v4909_v12  ;;  %v11555_v34 = vadd.f32 %v11133_v2, %v12778_v13  ;;  %v12781_v40 = vmax.f32 %v12779_v61, %v12780_v18  ;;  %v4461_v41 = vmul.f32 %v4137_v8, %v3165_v30  ;;  %v11562_v0 = vadd.f32 %v11133_v2, %v12782_v23  ;;  %v6745_v42 = vpop.eup %6744  ;;  %v12792_v52 = vld [vmem:[#allocation38_spill] sm:$0xff]  ;;  %v12793_v26 = vld [vmem:[#allocation92_spill] sm:$0xff] }
 0x308   :  { %6754 = verf.f32 %v3652_v20  ;;  %v12785_v24 = vmax.f32 %v12783_v60, %v12784_v35  ;;  %v3327_v62 = vmul.f32 0.5, %v11484_v10  ;;  %v4299_v63 = vadd.f32 1.0, %v6743_v55  ;;  %v12790_v10 = vld [vmem:[#allocation62_spill] sm:$0xff]  ;;  %v12797_v13 = vld [vmem:[#allocation96_spill] sm:$0xff] }
 0x309   :  { %v4890_v44 = vmax.f32 %v12781_v40, %v4458_v45  ;;  %6756 = verf.f32 %v3493_v47  ;;  %v12788_v32 = vmax.f32 %v12786_v15, %v12787_v48  ;;  %v3164_v25 = vmul.f32 0.5, %v11491_v27  ;;  %v12795_v8 = vld [vmem:[#allocation78_spill] sm:$0xff]  ;;  %v12796_v47 = vld [vmem:[#allocation65_spill] sm:$0xff] }
 0x30a   :  { %v4908_v22 = vmax.f32 %v12785_v24, %v4620_v5  ;;  %v4136_v49 = vadd.f32 1.0, %v6745_v42  ;;  %v3655_v57 = vmul.f32 0.70710677, %v11555_v34  ;;  %v4623_v53 = vmul.f32 %v4299_v63, %v3327_v62  ;;  %v6747_v17 = vpop.eup %6746  ;;  %v12799_v62 = vld [vmem:[#allocation32_spill] sm:$0xff] }
 0x30b   :  { %4926 = vst [vmem:[#allocation2 + $0x40] sm:$0xff] %v4890_v44  ;;  %v4893_v11 = vmax.f32 %v12788_v32, %v4461_v41  ;;  %v3492_v4 = vmul.f32 0.70710677, %v11562_v0  ;;  %v11576_v33 = vadd.f32 %v11133_v2, %v12789_v46  ;;  %v11580_v58 = vadd.f32 %v11133_v2, %v12790_v10 }
 0x30c   :  { %4944 = vst [vmem:[#allocation2 + $0xd0] sm:$0xff] %v4908_v22  ;;  %v4460_v59 = vmul.f32 %v4136_v49, %v3164_v25  ;;  %v3326_v27 = vmul.f32 0.5, %v11505_v7  ;;  %6758 = verf.f32 %v3655_v57  ;;  %v11585_v28 = vadd.f32 %v11133_v2, %v12791_v50  ;;  %v6749_v12 = vpop.eup %6748  ;;  %v12803_v25 = vld [vmem:[#allocation33_spill] sm:$0xff] }
 0x30d   :  { %4929 = vst [vmem:[#allocation2 + $0x58] sm:$0xff] %v4893_v11  ;;  %v12794_v19 = vmax.f32 %v12792_v52, %v12793_v26  ;;  %v4298_v30 = vadd.f32 1.0, %v6747_v17  ;;  %6760 = verf.f32 %v3492_v4  ;;  %v11592_v20 = vadd.f32 %v11133_v2, %v12795_v8  ;;  %v6751_v5 = vpop.eup %6750  ;;  %v12802_v11 = vld [vmem:[#allocation63_spill] sm:$0xff] }
 0x30e   :  { %v12798_v7 = vmax.f32 %v12796_v47, %v12797_v13  ;;  %v3167_v61 = vmul.f32 0.5, %v11509_v6  ;;  %v4139_v18 = vadd.f32 1.0, %v6749_v12  ;;  %v3654_v40 = vmul.f32 0.70710677, %v11576_v33  ;;  %v12800_v6 = vld [vmem:[#allocation64_spill] sm:$0xff] }
 0x30f   :  { %v4911_v45 = vmax.f32 %v12794_v19, %v4623_v53  ;;  %v4622_v44 = vmul.f32 %v4298_v30, %v3326_v27  ;;  %v3329_v41 = vmul.f32 0.5, %v11513_v14  ;;  %v4301_v23 = vadd.f32 1.0, %v6751_v5 }
 0x310   :  { %v4892_v55 = vmax.f32 %v12798_v7, %v4460_v59  ;;  %v3495_v42 = vmul.f32 0.70710677, %v11580_v58  ;;  %v4463_v60 = vmul.f32 %v4139_v18, %v3167_v61  ;;  %v3166_v35 = vmul.f32 0.5, %v11531_v9  ;;  %v6753_v22 = vpop.eup %6752  ;;  %v12805_v9 = vld [vmem:[#allocation23_spill] sm:$0xff] }
 0x311   :  { %4947 = vst [vmem:[#allocation2 + $0xe8] sm:$0xff] %v4911_v45  ;;  %6762 = verf.f32 %v3654_v40  ;;  %v3657_v24 = vmul.f32 0.70710677, %v11585_v28  ;;  %v12801_v63 = vmax.f32 %v12799_v62, %v12800_v6  ;;  %v4625_v48 = vmul.f32 %v4301_v23, %v3329_v41  ;;  %v12812_v41 = vld [vmem:[#allocation15_spill] sm:$0xff] }
 0x312   :  { %4928 = vst [vmem:[#allocation2 + $0x50] sm:$0xff] %v4892_v55  ;;  %6764 = verf.f32 %v3495_v42  ;;  %v3494_v32 = vmul.f32 0.70710677, %v11592_v20  ;;  %v6755_v14 = vpop.eup %6754  ;;  %v12804_v49 = vmax.f32 %v12802_v11, %v12803_v25  ;;  %v4138_v53 = vadd.f32 1.0, %v6753_v22 }
 0x313   :  { %v4910_v15 = vmax.f32 %v12801_v63, %v4622_v44  ;;  %6766 = verf.f32 %v3657_v24  ;;  %v3002_v4 = vadd.f32 %v11133_v2, %v12805_v9  ;;  %v6757_v46 = vpop.eup %6756  ;;  %v12806_v10 = vmax.f32 %v10970_v56, %v11297_v1  ;;  %v12808_v1 = vld [vmem:[#allocation68_spill] sm:$0xff] }
 0x314   :  { %v4895_v57 = vmax.f32 %v12804_v49, %v4463_v60  ;;  %v3328_v59 = vmul.f32 0.5, %v11535_v16  ;;  %v4300_v27 = vadd.f32 1.0, %v6755_v14  ;;  %6768 = verf.f32 %v3494_v32  ;;  %v12815_v24 = vld [vmem:[#allocation16_spill] sm:$0xff] }
 0x315   :  { %4946 = vst [vmem:[#allocation2 + $0xe0] sm:$0xff] %v4910_v15  ;;  %v4913_v17 = vmax.f32 %v12806_v10, %v4625_v48  ;;  %v4462_v50 = vmul.f32 %v4138_v53, %v3166_v35  ;;  %v3169_v12 = vmul.f32 0.5, %v11539_v37  ;;  %v4141_v52 = vadd.f32 1.0, %v6757_v46  ;;  %v12810_v37 = vld [vmem:[#allocation25_spill] sm:$0xff] }
 0x316   :  { %4931 = vst [vmem:[#allocation2 + $0x68] sm:$0xff] %v4895_v57  ;;  %v3656_v26 = vmul.f32 0.70710677, %v3002_v4  ;;  %v4624_v19 = vmul.f32 %v4300_v27, %v3328_v59  ;;  %v6759_v45 = vpop.eup %6758  ;;  %v12807_v2 = vmax.f32 %v10976_v51, %v11311_v43  ;;  %v12809_v16 = vmax.f32 %v10985_v31, %v12808_v1  ;;  %v12813_v31 = vld [vmem:[#allocation50_spill] sm:$0xff] }
 0x317   :  { %4949 = vst [vmem:[#allocation2 + $0xf8] sm:$0xff] %v4913_v17  ;;  %v4465_v8 = vmul.f32 %v4141_v52, %v3169_v12  ;;  %v6761_v56 = vpop.eup %6760  ;;  %v3331_v47 = vmul.f32 0.5, %v11555_v34  ;;  %v4303_v13 = vadd.f32 1.0, %v6759_v45  ;;  %v12811_v7 = vmax.f32 %v10994_v29, %v12810_v37  ;;  %v12816_v29 = vld [vmem:[#allocation26_spill] sm:$0xff]  ;;  %v12821_v17 = vld [vmem:[#allocation81_spill] sm:$0xff] }
 0x318   :  { %v4894_v30 = vmax.f32 %v12807_v2, %v4462_v50  ;;  %6770 = verf.f32 %v3656_v26  ;;  %v4912_v5 = vmax.f32 %v12809_v16, %v4624_v19  ;;  %v3168_v61 = vmul.f32 0.5, %v11562_v0 }
 0x319   :  { %v4897_v55 = vmax.f32 %v12811_v7, %v4465_v8  ;;  %v4140_v18 = vadd.f32 1.0, %v6761_v56  ;;  %v4627_v51 = vmul.f32 %v4303_v13, %v3331_v47  ;;  %v12814_v23 = vmax.f32 %v12812_v41, %v12813_v31 }
 0x31a   :  { %4930 = vst [vmem:[#allocation2 + $0x60] sm:$0xff] %v4894_v30  ;;  %4948 = vst [vmem:[#allocation2 + $0xf0] sm:$0xff] %v4912_v5  ;;  %v3330_v34 = vmul.f32 0.5, %v11576_v33  ;;  %v12817_v22 = vmax.f32 %v12815_v24, %v12816_v29  ;;  %v3171_v0 = vmul.f32 0.5, %v11580_v58  ;;  %v3333_v48 = vmul.f32 0.5, %v11585_v28  ;;  %v12819_v58 = vld [vmem:[#allocation106_spill] sm:$0xff] }
 0x31b   :  { %v6763_v43 = vpop.eup %6762  ;;  %4933 = vst [vmem:[#allocation2 + $0x78] sm:$0xff] %v4897_v55  ;;  %v4464_v40 = vmul.f32 %v4140_v18, %v3168_v61  ;;  %v4915_v42 = vmax.f32 %v12814_v23, %v4627_v51  ;;  %v3170_v11 = vmul.f32 0.5, %v11592_v20  ;;  %v12818_v25 = vmax.f32 %v11027_v21, %v11339_v3  ;;  %v12822_v28 = vld [vmem:[#allocation18_spill] sm:$0xff] }
 0x31c   :  { %v6765_v44 = vpop.eup %6764  ;;  %v4302_v60 = vadd.f32 1.0, %v6763_v43  ;;  %v12820_v9 = vmax.f32 %v11036_v36, %v12819_v58  ;;  %v12823_v59 = vmax.f32 %v12821_v17, %v12822_v28  ;;  %v3332_v50 = vmul.f32 0.5, %v3002_v4  ;;  %v12825_v36 = vld [vmem:[#allocation69_spill] sm:$0xff] }
 0x31d   :  { %v6767_v35 = vpop.eup %6766  ;;  %v4896_v62 = vmax.f32 %v12817_v22, %v4464_v40  ;;  %v4143_v6 = vadd.f32 1.0, %v6765_v44  ;;  %4951 = vst [vmem:[#allocation2 + $0x108] sm:$0xff] %v4915_v42  ;;  %v12824_v21 = vmax.f32 %v11054_v54, %v11370_v38  ;;  %v12826_v52 = vmax.f32 %v11067_v39, %v12825_v36 }
 0x31e   :  { %v6769_v63 = vpop.eup %6768  ;;  %v4626_v15 = vmul.f32 %v4302_v60, %v3330_v34  ;;  %v4305_v32 = vadd.f32 1.0, %v6767_v35 }
 0x31f   :  { %4932 = vst [vmem:[#allocation2 + $0x70] sm:$0xff] %v4896_v62  ;;  %v4467_v14 = vmul.f32 %v4143_v6, %v3171_v0  ;;  %v4142_v33 = vadd.f32 1.0, %v6769_v63 }
 0x320   :  { %v4914_v49 = vmax.f32 %v12818_v25, %v4626_v15  ;;  %v4629_v57 = vmul.f32 %v4305_v32, %v3333_v48 }
 0x321   :  { %v4899_v46 = vmax.f32 %v12820_v9, %v4467_v14  ;;  %v4466_v10 = vmul.f32 %v4142_v33, %v3170_v11 }
 0x322   :  { %v6771_v53 = vpop.eup %6770  ;;  %4950 = vst [vmem:[#allocation2 + $0x100] sm:$0xff] %v4914_v49  ;;  %v4917_v27 = vmax.f32 %v12823_v59, %v4629_v57 }
 0x323   :  { %v4304_v12 = vadd.f32 1.0, %v6771_v53  ;;  %4935 = vst [vmem:[#allocation2 + $0x88] sm:$0xff] %v4899_v46  ;;  %v4898_v3 = vmax.f32 %v12824_v21, %v4466_v10 }
 0x324   :  { %4953 = vst [vmem:[#allocation2 + $0x118] sm:$0xff] %v4917_v27 }
 0x325   :  { %v4628_v20 = vmul.f32 %v4304_v12, %v3332_v50  ;;  %4934 = vst [vmem:[#allocation2 + $0x80] sm:$0xff] %v4898_v3 }
 0x327   :  { %v4916_v26 = vmax.f32 %v12826_v52, %v4628_v20 }
 0x329   :  { %4952 = vst [vmem:[#allocation2 + $0x110] sm:$0xff] %v4916_v26 }
 0x32a   :  { %6788 = shalt.err (!%p6785_p4)
}
 0x32b   :  { %s6789_s7 = scalar_lea.hbm %s11668_s3, 4608 }
 0x32c   :  { %p6790_p5 = scmp.ne.s32.totalorder %s11668_s3, %s6789_s7  ;;  %p6793_p6 = scmp.lt.u32.totalorder %s6789_s7, %s11668_s3 }
 0x32e   :  { %p6795_p7 = pnand %p6793_p6, %p6790_p5 }
 0x330   :  { %6798 = shalt.err (!%p6795_p7)
}
 0x331   :  { %s6803_s12 = smov 128   ;;  %s6804_s13 = smov 8  }
 0x332   :  { %4965 = dma.vmem_to_hbm [thread:$0]  %s4960_s30, 4608, %s11668_s3, [#allocation3], %s6803_s12, %s6803_s12, %s6804_s13  }
 0x333   :  { %6799 = dma.done.wait [#allocation3], 4608  }
 0x334   :  { %6800 = vsyncadd [#allocation3], 4294962688 }
 0x335   :  { %4969 = vsyncpa [#allocation3], 1 }

</bundles_post_ra>
